<compile_context>
chip_gen: v7x
topology: tpu7x:2x2x1
jax: 0.10.0
libtpu: 0.0.40
codegen_flags: <defaults>
</compile_context>

<pallas_src>
import jax
import jax.numpy as jnp
import numpy as np
from jax.experimental import pallas as pl
from jax.experimental.pallas import tpu as pltpu

D_TEXT = 768


def _round_up(x, m):
    return (x + m - 1) // m * m


def _mm_kernel(text_ref, audio_ref, table_ref,
               wt_ref, bt_ref,
               wa_ref, ba_ref,
               wtab_ref, btab_ref,
               w1t_ref, w1a_ref, w1tab_ref, b1_ref,
               w2_ref, b2_ref,
               w3_ref, b3_ref,
               out_ref,
               tpool_ref, apool_ref):
    f32 = jnp.float32
    bf16 = jnp.bfloat16
    j = pl.program_id(1)

    @pl.when(j == 0)
    def _init():
        tpool_ref[...] = jnp.zeros_like(tpool_ref)
        apool_ref[...] = jnp.zeros_like(apool_ref)

    # --- pooling: bf16 chunks streamed from HBM, f32 accumulation in scratch.
    # 1/S_text and 1/S_audio are folded into wt/wa on the host, so only sums
    # remain here (zero-padded seq frames contribute nothing).
    tpool_ref[...] += jnp.sum(text_ref[...].astype(f32), axis=1)    # [TB, 768]
    apool_ref[...] += jnp.sum(audio_ref[...].astype(f32), axis=1)   # [TB, A]

    @pl.when(j == pl.num_programs(1) - 1)
    def _finalize():
        # --- text encoder (stand-in for LongformerEncoder): mean-pool + Linear.
        text_emb = jnp.dot(tpool_ref[...].astype(bf16), wt_ref[...],
                           preferred_element_type=f32) + bt_ref[...]      # [TB,768]

        # --- audio encoder (stand-in for BiLSTMEncoder): mean-pool + Linear.
        audio_emb = jnp.dot(apool_ref[...].astype(bf16), wa_ref[...],
                            preferred_element_type=f32) + ba_ref[...]     # [TB,768]

        # --- table encoder: nn.Linear(table_in, table_out).
        table_emb = jnp.dot(table_ref[...], wtab_ref[...],
                            preferred_element_type=f32) + btab_ref[...]   # [TB,T]

        # --- MLP head over concat([text, audio, table], -1); the concat is
        # fused into the first matmul by splitting W1 into row slabs.
        h1 = (jnp.dot(text_emb.astype(bf16),  w1t_ref[...],   preferred_element_type=f32) +
              jnp.dot(audio_emb.astype(bf16), w1a_ref[...],   preferred_element_type=f32) +
              jnp.dot(table_emb.astype(bf16), w1tab_ref[...], preferred_element_type=f32) +
              b1_ref[...])
        h1 = jnp.maximum(h1, 0.0)                                         # [TB,H1p]

        h2 = jnp.dot(h1.astype(bf16), w2_ref[...],
                     preferred_element_type=f32) + b2_ref[...]
        h2 = jnp.maximum(h2, 0.0)                                         # [TB,H2p]

        # Final Linear(H2 -> 1): VPU multiply + lane reduce (skip N=1 matmul).
        out_ref[...] = (jnp.sum(h2 * w3_ref[...], axis=-1, keepdims=True)
                        + b3_ref[...])                                    # [TB,1]


def init_params(key, audio_dim, table_in, table_out):
    """Logical f32 parameters matching the PyTorch module's Linear shapes."""
    concat_dim = D_TEXT + D_TEXT + table_out
    h1, h2 = concat_dim // 2, concat_dim // 4
    ks = jax.random.split(key, 12)

    def lin(kw, kb, fan_in, fan_out):
        s = 1.0 / np.sqrt(fan_in)
        w = jax.random.uniform(kw, (fan_in, fan_out), jnp.float32, -s, s)
        b = jax.random.uniform(kb, (fan_out,), jnp.float32, -s, s)
        return w, b

    wt, bt = lin(ks[0], ks[1], D_TEXT, D_TEXT)
    wa, ba = lin(ks[2], ks[3], audio_dim, D_TEXT)
    wtab, btab = lin(ks[4], ks[5], table_in, table_out)
    w1, b1 = lin(ks[6], ks[7], concat_dim, h1)
    w2, b2 = lin(ks[8], ks[9], h1, h2)
    w3, b3 = lin(ks[10], ks[11], h2, 1)
    return dict(wt=wt, bt=bt, wa=wa, ba=ba, wtab=wtab, btab=btab,
                w1=w1, b1=b1, w2=w2, b2=b2, w3=w3, b3=b3)


def prepare_kernel_params(p, s_text, s_audio):
    """Fold 1/S mean scaling into encoder weights, split W1 into concat slabs,
    pad only the hidden (h1/h2) dims to 128 lanes, cast streamed weights to bf16."""
    table_in, table_out = p["wtab"].shape
    concat_dim = D_TEXT + D_TEXT + table_out
    h1, h2 = concat_dim // 2, concat_dim // 4
    h1_pad = _round_up(h1, 128)
    h2_pad = _round_up(h2, 128)

    def padc(w, cols):
        return jnp.pad(w, ((0, 0), (0, cols - w.shape[1])))

    def padb(b, cols):
        return jnp.pad(b.reshape(1, -1), ((0, 0), (0, cols - b.shape[-1])))

    w1t, w1a, w1tab = jnp.split(p["w1"], [D_TEXT, 2 * D_TEXT], axis=0)

    return {
        "wt":    (p["wt"] / float(s_text)).astype(jnp.bfloat16),
        "bt":    p["bt"].reshape(1, -1).astype(jnp.float32),
        "wa":    (p["wa"] / float(s_audio)).astype(jnp.bfloat16),    # no K padding
        "ba":    p["ba"].reshape(1, -1).astype(jnp.float32),
        "wtab":  p["wtab"].astype(jnp.bfloat16),                     # no padding
        "btab":  p["btab"].reshape(1, -1).astype(jnp.float32),
        "w1t":   padc(w1t, h1_pad).astype(jnp.bfloat16),
        "w1a":   padc(w1a, h1_pad).astype(jnp.bfloat16),
        "w1tab": padc(w1tab, h1_pad).astype(jnp.bfloat16),
        "b1":    padb(p["b1"], h1_pad).astype(jnp.float32),
        "w2":    jnp.pad(p["w2"], ((0, h1_pad - h1), (0, h2_pad - h2))).astype(jnp.bfloat16),
        "b2":    padb(p["b2"], h2_pad).astype(jnp.float32),
        # final layer stays f32: it runs as a VPU multiply + lane reduction.
        "w3":    jnp.pad(p["w3"].reshape(1, -1), ((0, 0), (0, h2_pad - h2))).astype(jnp.float32),
        "b3":    p["b3"].reshape(1, 1).astype(jnp.float32),
    }


def _vmem_limit_bytes():
    """Generation-dependent scoped-VMEM limit (v7x has 64 MiB/TC; v5e/v6e 128)."""
    vmem_cap = 64 << 20
    try:
        info = pltpu.get_tpu_info()
        vmem_cap = int(getattr(info, "vmem_capacity_bytes", vmem_cap))
    except Exception:
        pass
    return (48 << 20) if vmem_cap <= (64 << 20) else (96 << 20)


def _pick_seq_chunk(seq_len, tb, feat, itemsize=2, budget=4 << 20):
    """Seq chunk (multiple of 16) so the bf16 activation tile stays ~<= budget."""
    full = _round_up(max(int(seq_len), 1), 16)
    max_chunk = max(16, (budget // (tb * feat * itemsize)) // 16 * 16)
    return min(full, max_chunk)


def multimodality_forward(text_input, audio_input, table_input, kp):
    B, s_text, d_text = text_input.shape
    _, s_audio, a_dim = audio_input.shape
    _, t_in = table_input.shape

    # Batch tile: multiple of 16 sublanes (bf16 tiling), capped at 256 (v6e/v7x
    # MXU height; on v5e a 256-row LHS is simply two MXU passes).
    tb = min(256, _round_up(B, 16))
    b_pad = _round_up(B, tb)

    # Sequence chunking bounds VMEM independent of S_text/S_audio.
    chunk_t = _pick_seq_chunk(s_text, tb, d_text)
    chunk_a = _pick_seq_chunk(s_audio, tb, a_dim)
    n_seq = max(pl.cdiv(s_text, chunk_t), pl.cdiv(s_audio, chunk_a))
    s_text_p = n_seq * chunk_t
    s_audio_p = n_seq * chunk_a

    def pad_to(x, shape):
        pads = tuple((0, t - s) for s, t in zip(x.shape, shape))
        return jnp.pad(x, pads) if any(p[1] for p in pads) else x

    # bf16 activation streaming; f32 accumulation happens inside the kernel.
    text = pad_to(text_input.astype(jnp.bfloat16), (b_pad, s_text_p, d_text))
    audio = pad_to(audio_input.astype(jnp.bfloat16), (b_pad, s_audio_p, a_dim))
    table = pad_to(table_input.astype(jnp.bfloat16), (b_pad, t_in))

    weights = (kp["wt"], kp["bt"], kp["wa"], kp["ba"], kp["wtab"], kp["btab"],
               kp["w1t"], kp["w1a"], kp["w1tab"], kp["b1"],
               kp["w2"], kp["b2"], kp["w3"], kp["b3"])

    # Weights: whole arrays resident in VMEM (no per-step pipelining /
    # double-buffering); every grid step reuses them.
    w_spec = pl.BlockSpec(memory_space=pltpu.MemorySpace.VMEM)

    in_specs = [
        pl.BlockSpec((tb, chunk_t, d_text), lambda i, j: (i, j, 0)),
        # audio keeps its native feature width: last dim == full array dim, so
        # no 128-lane zero padding of the HBM stream is needed.
        pl.BlockSpec((tb, chunk_a, a_dim), lambda i, j: (i, j, 0)),
        pl.BlockSpec((tb, t_in), lambda i, j: (i, 0)),
    ] + [w_spec] * len(weights)

    out = pl.pallas_call(
        _mm_kernel,
        out_shape=jax.ShapeDtypeStruct((b_pad, 1), jnp.float32),
        grid=(b_pad // tb, n_seq),
        in_specs=in_specs,
        out_specs=pl.BlockSpec((tb, 1), lambda i, j: (i, 0)),
        scratch_shapes=[pltpu.VMEM((tb, d_text), jnp.float32),
                        pltpu.VMEM((tb, a_dim), jnp.float32)],
        compiler_params=pltpu.CompilerParams(
            dimension_semantics=("parallel", "arbitrary"),
            vmem_limit_bytes=_vmem_limit_bytes(),
        ),
    )(text, audio, table, *weights)

    return out[:B]


def reference_forward(text_input, audio_input, table_input, p):
    """Pure-JAX f32 reference with the module's logical (unpadded) weights."""
    text_emb = jnp.mean(text_input, axis=1) @ p["wt"] + p["bt"]
    audio_emb = jnp.mean(audio_input, axis=1) @ p["wa"] + p["ba"]
    table_emb = table_input @ p["wtab"] + p["btab"]
    concat = jnp.concatenate([text_emb, audio_emb, table_emb], axis=-1)
    h = jnp.maximum(concat @ p["w1"] + p["b1"], 0.0)
    h = jnp.maximum(h @ p["w2"] + p["b2"], 0.0)
    return h @ p["w3"] + p["b3"]


if __name__ == "__main__":
    B = 2
    S_TEXT = 8
    S_AUDIO = 8
    AUDIO_DIM = 32
    TABLE_IN = 8
    TABLE_OUT = 32

    key = jax.random.PRNGKey(0)
    k_text, k_audio, k_table, k_params = jax.random.split(key, 4)

    text_input = jax.random.normal(k_text, (B, S_TEXT, 768), jnp.float32)
    audio_input = jax.random.normal(k_audio, (B, S_AUDIO, AUDIO_DIM), jnp.float32)
    table_input = jax.random.normal(k_table, (B, TABLE_IN), jnp.float32)

    params = init_params(k_params, AUDIO_DIM, TABLE_IN, TABLE_OUT)
    kparams = prepare_kernel_params(params, S_TEXT, S_AUDIO)

    pred = multimodality_forward(text_input, audio_input, table_input, kparams)
    pred = jax.block_until_ready(pred)

    ref = reference_forward(text_input, audio_input, table_input, params)
    # bf16 activation/weight streaming (f32 accumulation) vs f32 reference.
    np.testing.assert_allclose(np.asarray(pred), np.asarray(ref),
                               rtol=5e-2, atol=5e-2)

    assert pred.shape == (B, 1)
    print("KERNEL_OK")
</pallas_src>

<mosaic_0001>
module attributes {stable_mosaic.version = 11 : i64} {
  func.func @_mm_kernel(%arg0: i32, %arg1: i32, %arg2: memref<16x16x768xbf16, #tpu.memory_space<vmem>>, %arg3: memref<16x16x32xbf16, #tpu.memory_space<vmem>>, %arg4: memref<16x8xbf16, #tpu.memory_space<vmem>>, %arg5: memref<768x768xbf16, #tpu.memory_space<vmem>>, %arg6: memref<1x768xf32, #tpu.memory_space<vmem>>, %arg7: memref<32x768xbf16, #tpu.memory_space<vmem>>, %arg8: memref<1x768xf32, #tpu.memory_space<vmem>>, %arg9: memref<8x32xbf16, #tpu.memory_space<vmem>>, %arg10: memref<1x32xf32, #tpu.memory_space<vmem>>, %arg11: memref<768x896xbf16, #tpu.memory_space<vmem>>, %arg12: memref<768x896xbf16, #tpu.memory_space<vmem>>, %arg13: memref<32x896xbf16, #tpu.memory_space<vmem>>, %arg14: memref<1x896xf32, #tpu.memory_space<vmem>>, %arg15: memref<896x512xbf16, #tpu.memory_space<vmem>>, %arg16: memref<1x512xf32, #tpu.memory_space<vmem>>, %arg17: memref<1x512xf32, #tpu.memory_space<vmem>>, %arg18: memref<1x1xf32, #tpu.memory_space<vmem>>, %arg19: memref<16x1xf32, #tpu.memory_space<vmem>>, %arg20: memref<16x768xf32, #tpu.memory_space<vmem>>, %arg21: memref<16x32xf32, #tpu.memory_space<vmem>>) attributes {dimension_semantics = [#tpu.dimension_semantics<parallel>, #tpu.dimension_semantics<arbitrary>], iteration_bounds = array<i64: 1, 1>, scalar_prefetch = 0 : i64, scratch_operands = 2 : i64, tpu.core_type = #tpu.core_type<tc>, window_params = [{transform_indices = @transform_0, window_bounds = array<i64: 16, 16, 768>}, {transform_indices = @transform_1, window_bounds = array<i64: 16, 16, 32>}, {transform_indices = @transform_2, window_bounds = array<i64: 16, 8>}, {pipeline_mode = #tpu.pipeline_mode<synchronous>, transform_indices = @transform_3, window_bounds = array<i64: 768, 768>}, {pipeline_mode = #tpu.pipeline_mode<synchronous>, transform_indices = @transform_4, window_bounds = array<i64: 1, 768>}, {pipeline_mode = #tpu.pipeline_mode<synchronous>, transform_indices = @transform_5, window_bounds = array<i64: 32, 768>}, {pipeline_mode = #tpu.pipeline_mode<synchronous>, transform_indices = @transform_6, window_bounds = array<i64: 1, 768>}, {pipeline_mode = #tpu.pipeline_mode<synchronous>, transform_indices = @transform_7, window_bounds = array<i64: 8, 32>}, {pipeline_mode = #tpu.pipeline_mode<synchronous>, transform_indices = @transform_8, window_bounds = array<i64: 1, 32>}, {pipeline_mode = #tpu.pipeline_mode<synchronous>, transform_indices = @transform_9, window_bounds = array<i64: 768, 896>}, {pipeline_mode = #tpu.pipeline_mode<synchronous>, transform_indices = @transform_10, window_bounds = array<i64: 768, 896>}, {pipeline_mode = #tpu.pipeline_mode<synchronous>, transform_indices = @transform_11, window_bounds = array<i64: 32, 896>}, {pipeline_mode = #tpu.pipeline_mode<synchronous>, transform_indices = @transform_12, window_bounds = array<i64: 1, 896>}, {pipeline_mode = #tpu.pipeline_mode<synchronous>, transform_indices = @transform_13, window_bounds = array<i64: 896, 512>}, {pipeline_mode = #tpu.pipeline_mode<synchronous>, transform_indices = @transform_14, window_bounds = array<i64: 1, 512>}, {pipeline_mode = #tpu.pipeline_mode<synchronous>, transform_indices = @transform_15, window_bounds = array<i64: 1, 512>}, {pipeline_mode = #tpu.pipeline_mode<synchronous>, transform_indices = @transform_16, window_bounds = array<i64: 1, 1>}, {transform_indices = @transform_17, window_bounds = array<i64: 16, 1>}]} {
    %c0_i32 = arith.constant 0 : i32
    %0 = arith.cmpi eq, %arg1, %c0_i32 : i32
    %1 = arith.extui %0 : i1 to i32
    %c0_i32_0 = arith.constant 0 : i32
    %2 = arith.cmpi ne, %1, %c0_i32_0 : i32
    scf.if %2 {
      %cst_17 = arith.constant 0.000000e+00 : f32
      %18 = vector.broadcast %cst_17 : f32 to vector<16x768xf32>
      %c0_18 = arith.constant 0 : index
      %c0_19 = arith.constant 0 : index
      %19 = vector.load %arg20[%c0_18, %c0_19] : memref<16x768xf32, #tpu.memory_space<vmem>>, vector<16x768xf32>
      tpu.vector_store %arg20[%c0_18, %c0_19], %18 {strides = array<i32>} : memref<16x768xf32, #tpu.memory_space<vmem>>, vector<16x768xf32>,
      %cst_20 = arith.constant 0.000000e+00 : f32
      %20 = vector.broadcast %cst_20 : f32 to vector<16x32xf32>
      %c0_21 = arith.constant 0 : index
      %c0_22 = arith.constant 0 : index
      %21 = vector.load %arg21[%c0_21, %c0_22] : memref<16x32xf32, #tpu.memory_space<vmem>>, vector<16x32xf32>
      tpu.vector_store %arg21[%c0_21, %c0_22], %20 {strides = array<i32>} : memref<16x32xf32, #tpu.memory_space<vmem>>, vector<16x32xf32>,
    } else {
    }
    %c0 = arith.constant 0 : index
    %c0_1 = arith.constant 0 : index
    %3 = vector.load %arg20[%c0, %c0_1] : memref<16x768xf32, #tpu.memory_space<vmem>>, vector<16x768xf32>
    %c0_2 = arith.constant 0 : index
    %c0_3 = arith.constant 0 : index
    %c0_4 = arith.constant 0 : index
    %4 = vector.load %arg2[%c0_2, %c0_3, %c0_4] : memref<16x16x768xbf16, #tpu.memory_space<vmem>>, vector<16x16x768xbf16>
    %5 = arith.extf %4 : vector<16x16x768xbf16> to vector<16x16x768xf32>
    %cst = arith.constant dense<0.000000e+00> : vector<16x768xf32>
    %6 = vector.multi_reduction <add>, %5, %cst [1] : vector<16x16x768xf32> to vector<16x768xf32>
    %7 = arith.addf %3, %6 : vector<16x768xf32>
    %c0_5 = arith.constant 0 : index
    %c0_6 = arith.constant 0 : index
    %8 = vector.load %arg20[%c0_5, %c0_6] : memref<16x768xf32, #tpu.memory_space<vmem>>, vector<16x768xf32>
    tpu.vector_store %arg20[%c0_5, %c0_6], %7 {strides = array<i32>} : memref<16x768xf32, #tpu.memory_space<vmem>>, vector<16x768xf32>,
    %c0_7 = arith.constant 0 : index
    %c0_8 = arith.constant 0 : index
    %9 = vector.load %arg21[%c0_7, %c0_8] : memref<16x32xf32, #tpu.memory_space<vmem>>, vector<16x32xf32>
    %c0_9 = arith.constant 0 : index
    %c0_10 = arith.constant 0 : index
    %c0_11 = arith.constant 0 : index
    %10 = vector.load %arg3[%c0_9, %c0_10, %c0_11] : memref<16x16x32xbf16, #tpu.memory_space<vmem>>, vector<16x16x32xbf16>
    %11 = arith.extf %10 : vector<16x16x32xbf16> to vector<16x16x32xf32>
    %cst_12 = arith.constant dense<0.000000e+00> : vector<16x32xf32>
    %12 = vector.multi_reduction <add>, %11, %cst_12 [1] : vector<16x16x32xf32> to vector<16x32xf32>
    %13 = arith.addf %9, %12 : vector<16x32xf32>
    %c0_13 = arith.constant 0 : index
    %c0_14 = arith.constant 0 : index
    %14 = vector.load %arg21[%c0_13, %c0_14] : memref<16x32xf32, #tpu.memory_space<vmem>>, vector<16x32xf32>
    tpu.vector_store %arg21[%c0_13, %c0_14], %13 {strides = array<i32>} : memref<16x32xf32, #tpu.memory_space<vmem>>, vector<16x32xf32>,
    %c0_i32_15 = arith.constant 0 : i32
    %15 = arith.cmpi eq, %arg1, %c0_i32_15 : i32
    %16 = arith.extui %15 : i1 to i32
    %c0_i32_16 = arith.constant 0 : i32
    %17 = arith.cmpi ne, %16, %c0_i32_16 : i32
    scf.if %17 {
      %c0_17 = arith.constant 0 : index
      %c0_18 = arith.constant 0 : index
      %18 = vector.load %arg20[%c0_17, %c0_18] : memref<16x768xf32, #tpu.memory_space<vmem>>, vector<16x768xf32>
      %19 = arith.truncf %18 : vector<16x768xf32> to vector<16x768xbf16>
      %c0_19 = arith.constant 0 : index
      %c0_20 = arith.constant 0 : index
      %20 = vector.load %arg5[%c0_19, %c0_20] : memref<768x768xbf16, #tpu.memory_space<vmem>>, vector<768x768xbf16>
      %cst_21 = arith.constant dense<0.000000e+00> : vector<16x768xf32>
      %21 = tpu.matmul %19, %20, %cst_21 {dimension_numbers = #tpu.dot_dimension_numbers<[1], [0], [0], [1], [0, 0, 1, 1], [], []>} : vector<16x768xbf16>, vector<768x768xbf16>, vector<16x768xf32> -> vector<16x768xf32>
      %c0_22 = arith.constant 0 : index
      %c0_23 = arith.constant 0 : index
      %22 = vector.load %arg6[%c0_22, %c0_23] : memref<1x768xf32, #tpu.memory_space<vmem>>, vector<1x768xf32>
      %23 = vector.broadcast %22 : vector<1x768xf32> to vector<16x768xf32>
      %24 = arith.addf %21, %23 : vector<16x768xf32>
      %c0_24 = arith.constant 0 : index
      %c0_25 = arith.constant 0 : index
      %25 = vector.load %arg21[%c0_24, %c0_25] : memref<16x32xf32, #tpu.memory_space<vmem>>, vector<16x32xf32>
      %26 = arith.truncf %25 : vector<16x32xf32> to vector<16x32xbf16>
      %c0_26 = arith.constant 0 : index
      %c0_27 = arith.constant 0 : index
      %27 = vector.load %arg7[%c0_26, %c0_27] : memref<32x768xbf16, #tpu.memory_space<vmem>>, vector<32x768xbf16>
      %cst_28 = arith.constant dense<0.000000e+00> : vector<16x768xf32>
      %28 = tpu.matmul %26, %27, %cst_28 {dimension_numbers = #tpu.dot_dimension_numbers<[1], [0], [0], [1], [0, 0, 1, 1], [], []>} : vector<16x32xbf16>, vector<32x768xbf16>, vector<16x768xf32> -> vector<16x768xf32>
      %c0_29 = arith.constant 0 : index
      %c0_30 = arith.constant 0 : index
      %29 = vector.load %arg8[%c0_29, %c0_30] : memref<1x768xf32, #tpu.memory_space<vmem>>, vector<1x768xf32>
      %30 = vector.broadcast %29 : vector<1x768xf32> to vector<16x768xf32>
      %31 = arith.addf %28, %30 : vector<16x768xf32>
      %c0_31 = arith.constant 0 : index
      %c0_32 = arith.constant 0 : index
      %32 = vector.load %arg4[%c0_31, %c0_32] : memref<16x8xbf16, #tpu.memory_space<vmem>>, vector<16x8xbf16>
      %c0_33 = arith.constant 0 : index
      %c0_34 = arith.constant 0 : index
      %33 = vector.load %arg9[%c0_33, %c0_34] : memref<8x32xbf16, #tpu.memory_space<vmem>>, vector<8x32xbf16>
      %cst_35 = arith.constant dense<0.000000e+00> : vector<16x32xf32>
      %34 = tpu.matmul %32, %33, %cst_35 {dimension_numbers = #tpu.dot_dimension_numbers<[1], [0], [0], [1], [0, 0, 1, 1], [], []>} : vector<16x8xbf16>, vector<8x32xbf16>, vector<16x32xf32> -> vector<16x32xf32>
      %c0_36 = arith.constant 0 : index
      %c0_37 = arith.constant 0 : index
      %35 = vector.load %arg10[%c0_36, %c0_37] : memref<1x32xf32, #tpu.memory_space<vmem>>, vector<1x32xf32>
      %36 = vector.broadcast %35 : vector<1x32xf32> to vector<16x32xf32>
      %37 = arith.addf %34, %36 : vector<16x32xf32>
      %38 = arith.truncf %24 : vector<16x768xf32> to vector<16x768xbf16>
      %c0_38 = arith.constant 0 : index
      %c0_39 = arith.constant 0 : index
      %39 = vector.load %arg11[%c0_38, %c0_39] : memref<768x896xbf16, #tpu.memory_space<vmem>>, vector<768x896xbf16>
      %cst_40 = arith.constant dense<0.000000e+00> : vector<16x896xf32>
      %40 = tpu.matmul %38, %39, %cst_40 {dimension_numbers = #tpu.dot_dimension_numbers<[1], [0], [0], [1], [0, 0, 1, 1], [], []>} : vector<16x768xbf16>, vector<768x896xbf16>, vector<16x896xf32> -> vector<16x896xf32>
      %41 = arith.truncf %31 : vector<16x768xf32> to vector<16x768xbf16>
      %c0_41 = arith.constant 0 : index
      %c0_42 = arith.constant 0 : index
      %42 = vector.load %arg12[%c0_41, %c0_42] : memref<768x896xbf16, #tpu.memory_space<vmem>>, vector<768x896xbf16>
      %cst_43 = arith.constant dense<0.000000e+00> : vector<16x896xf32>
      %43 = tpu.matmul %41, %42, %cst_43 {dimension_numbers = #tpu.dot_dimension_numbers<[1], [0], [0], [1], [0, 0, 1, 1], [], []>} : vector<16x768xbf16>, vector<768x896xbf16>, vector<16x896xf32> -> vector<16x896xf32>
      %44 = arith.addf %40, %43 : vector<16x896xf32>
      %45 = arith.truncf %37 : vector<16x32xf32> to vector<16x32xbf16>
      %c0_44 = arith.constant 0 : index
      %c0_45 = arith.constant 0 : index
      %46 = vector.load %arg13[%c0_44, %c0_45] : memref<32x896xbf16, #tpu.memory_space<vmem>>, vector<32x896xbf16>
      %cst_46 = arith.constant dense<0.000000e+00> : vector<16x896xf32>
      %47 = tpu.matmul %45, %46, %cst_46 {dimension_numbers = #tpu.dot_dimension_numbers<[1], [0], [0], [1], [0, 0, 1, 1], [], []>} : vector<16x32xbf16>, vector<32x896xbf16>, vector<16x896xf32> -> vector<16x896xf32>
      %48 = arith.addf %44, %47 : vector<16x896xf32>
      %c0_47 = arith.constant 0 : index
      %c0_48 = arith.constant 0 : index
      %49 = vector.load %arg14[%c0_47, %c0_48] : memref<1x896xf32, #tpu.memory_space<vmem>>, vector<1x896xf32>
      %50 = vector.broadcast %49 : vector<1x896xf32> to vector<16x896xf32>
      %51 = arith.addf %48, %50 : vector<16x896xf32>
      %cst_49 = arith.constant 0.000000e+00 : f32
      %52 = vector.broadcast %cst_49 : f32 to vector<16x896xf32>
      %53 = arith.maximumf %51, %52 : vector<16x896xf32>
      %54 = arith.truncf %53 : vector<16x896xf32> to vector<16x896xbf16>
      %c0_50 = arith.constant 0 : index
      %c0_51 = arith.constant 0 : index
      %55 = vector.load %arg15[%c0_50, %c0_51] : memref<896x512xbf16, #tpu.memory_space<vmem>>, vector<896x512xbf16>
      %cst_52 = arith.constant dense<0.000000e+00> : vector<16x512xf32>
      %56 = tpu.matmul %54, %55, %cst_52 {dimension_numbers = #tpu.dot_dimension_numbers<[1], [0], [0], [1], [0, 0, 1, 1], [], []>} : vector<16x896xbf16>, vector<896x512xbf16>, vector<16x512xf32> -> vector<16x512xf32>
      %c0_53 = arith.constant 0 : index
      %c0_54 = arith.constant 0 : index
      %57 = vector.load %arg16[%c0_53, %c0_54] : memref<1x512xf32, #tpu.memory_space<vmem>>, vector<1x512xf32>
      %58 = vector.broadcast %57 : vector<1x512xf32> to vector<16x512xf32>
      %59 = arith.addf %56, %58 : vector<16x512xf32>
      %cst_55 = arith.constant 0.000000e+00 : f32
      %60 = vector.broadcast %cst_55 : f32 to vector<16x512xf32>
      %61 = arith.maximumf %59, %60 : vector<16x512xf32>
      %c0_56 = arith.constant 0 : index
      %c0_57 = arith.constant 0 : index
      %62 = vector.load %arg17[%c0_56, %c0_57] : memref<1x512xf32, #tpu.memory_space<vmem>>, vector<1x512xf32>
      %63 = vector.broadcast %62 : vector<1x512xf32> to vector<16x512xf32>
      %64 = arith.mulf %61, %63 : vector<16x512xf32>
      %cst_58 = arith.constant dense<0.000000e+00> : vector<16xf32>
      %65 = vector.multi_reduction <add>, %64, %cst_58 [1] : vector<16x512xf32> to vector<16xf32>
      %66 = vector.shape_cast %65 : vector<16xf32> to vector<16x1xf32>
      %c0_59 = arith.constant 0 : index
      %c0_60 = arith.constant 0 : index
      %67 = vector.load %arg18[%c0_59, %c0_60] : memref<1x1xf32, #tpu.memory_space<vmem>>, vector<1x1xf32>
      %68 = vector.broadcast %67 : vector<1x1xf32> to vector<16x1xf32>
      %69 = arith.addf %66, %68 : vector<16x1xf32>
      %c0_61 = arith.constant 0 : index
      %c0_62 = arith.constant 0 : index
      %70 = vector.load %arg19[%c0_61, %c0_62] : memref<16x1xf32, #tpu.memory_space<vmem>>, vector<16x1xf32>
      tpu.vector_store %arg19[%c0_61, %c0_62], %69 {strides = array<i32>} : memref<16x1xf32, #tpu.memory_space<vmem>>, vector<16x1xf32>,
    } else {
    }
    return
  }
  func.func @transform_0(%arg0: i32, %arg1: i32) -> (i32, i32, i32) {
    %c0_i32 = arith.constant 0 : i32
    %c0_i32_0 = arith.constant 0 : i32
    return %arg0, %arg1, %c0_i32 : i32, i32, i32
  }
  func.func @transform_1(%arg0: i32, %arg1: i32) -> (i32, i32, i32) {
    %c0_i32 = arith.constant 0 : i32
    %c0_i32_0 = arith.constant 0 : i32
    return %arg0, %arg1, %c0_i32 : i32, i32, i32
  }
  func.func @transform_2(%arg0: i32, %arg1: i32) -> (i32, i32) {
    %c0_i32 = arith.constant 0 : i32
    %c0_i32_0 = arith.constant 0 : i32
    return %arg0, %c0_i32 : i32, i32
  }
  func.func @transform_3(%arg0: i32, %arg1: i32) -> (i32, i32) {
    %c0_i32 = arith.constant 0 : i32
    %c0_i32_0 = arith.constant 0 : i32
    %c0_i32_1 = arith.constant 0 : i32
    return %c0_i32, %c0_i32_0 : i32, i32
  }
  func.func @transform_4(%arg0: i32, %arg1: i32) -> (i32, i32) {
    %c0_i32 = arith.constant 0 : i32
    %c0_i32_0 = arith.constant 0 : i32
    %c0_i32_1 = arith.constant 0 : i32
    return %c0_i32, %c0_i32_0 : i32, i32
  }
  func.func @transform_5(%arg0: i32, %arg1: i32) -> (i32, i32) {
    %c0_i32 = arith.constant 0 : i32
    %c0_i32_0 = arith.constant 0 : i32
    %c0_i32_1 = arith.constant 0 : i32
    return %c0_i32, %c0_i32_0 : i32, i32
  }
  func.func @transform_6(%arg0: i32, %arg1: i32) -> (i32, i32) {
    %c0_i32 = arith.constant 0 : i32
    %c0_i32_0 = arith.constant 0 : i32
    %c0_i32_1 = arith.constant 0 : i32
    return %c0_i32, %c0_i32_0 : i32, i32
  }
  func.func @transform_7(%arg0: i32, %arg1: i32) -> (i32, i32) {
    %c0_i32 = arith.constant 0 : i32
    %c0_i32_0 = arith.constant 0 : i32
    %c0_i32_1 = arith.constant 0 : i32
    return %c0_i32, %c0_i32_0 : i32, i32
  }
  func.func @transform_8(%arg0: i32, %arg1: i32) -> (i32, i32) {
    %c0_i32 = arith.constant 0 : i32
    %c0_i32_0 = arith.constant 0 : i32
    %c0_i32_1 = arith.constant 0 : i32
    return %c0_i32, %c0_i32_0 : i32, i32
  }
  func.func @transform_9(%arg0: i32, %arg1: i32) -> (i32, i32) {
    %c0_i32 = arith.constant 0 : i32
    %c0_i32_0 = arith.constant 0 : i32
    %c0_i32_1 = arith.constant 0 : i32
    return %c0_i32, %c0_i32_0 : i32, i32
  }
  func.func @transform_10(%arg0: i32, %arg1: i32) -> (i32, i32) {
    %c0_i32 = arith.constant 0 : i32
    %c0_i32_0 = arith.constant 0 : i32
    %c0_i32_1 = arith.constant 0 : i32
    return %c0_i32, %c0_i32_0 : i32, i32
  }
  func.func @transform_11(%arg0: i32, %arg1: i32) -> (i32, i32) {
    %c0_i32 = arith.constant 0 : i32
    %c0_i32_0 = arith.constant 0 : i32
    %c0_i32_1 = arith.constant 0 : i32
    return %c0_i32, %c0_i32_0 : i32, i32
  }
  func.func @transform_12(%arg0: i32, %arg1: i32) -> (i32, i32) {
    %c0_i32 = arith.constant 0 : i32
    %c0_i32_0 = arith.constant 0 : i32
    %c0_i32_1 = arith.constant 0 : i32
    return %c0_i32, %c0_i32_0 : i32, i32
  }
  func.func @transform_13(%arg0: i32, %arg1: i32) -> (i32, i32) {
    %c0_i32 = arith.constant 0 : i32
    %c0_i32_0 = arith.constant 0 : i32
    %c0_i32_1 = arith.constant 0 : i32
    return %c0_i32, %c0_i32_0 : i32, i32
  }
  func.func @transform_14(%arg0: i32, %arg1: i32) -> (i32, i32) {
    %c0_i32 = arith.constant 0 : i32
    %c0_i32_0 = arith.constant 0 : i32
    %c0_i32_1 = arith.constant 0 : i32
    return %c0_i32, %c0_i32_0 : i32, i32
  }
  func.func @transform_15(%arg0: i32, %arg1: i32) -> (i32, i32) {
    %c0_i32 = arith.constant 0 : i32
    %c0_i32_0 = arith.constant 0 : i32
    %c0_i32_1 = arith.constant 0 : i32
    return %c0_i32, %c0_i32_0 : i32, i32
  }
  func.func @transform_16(%arg0: i32, %arg1: i32) -> (i32, i32) {
    %c0_i32 = arith.constant 0 : i32
    %c0_i32_0 = arith.constant 0 : i32
    %c0_i32_1 = arith.constant 0 : i32
    return %c0_i32, %c0_i32_0 : i32, i32
  }
  func.func @transform_17(%arg0: i32, %arg1: i32) -> (i32, i32) {
    %c0_i32 = arith.constant 0 : i32
    %c0_i32_0 = arith.constant 0 : i32
    return %arg0, %c0_i32 : i32, i32
  }
}

</mosaic_0001>

<bundles_post_ra>
// kernel: tpu_custom_call.1
= control target key start
LH: loop header
LB: loop body
LE: loop exit
PB: predicated region body
PF: predicated region fallthrough
CT: control target
= control target key end

     0   :  { %s16976_s0 = inlined_call_operand.hbm [shape: bf16[16,16,768], index: 0, kind: input, shape index: {}]   ;;  %s16977_s1 = inlined_call_operand.hbm [shape: bf16[16,16,32], index: 1, kind: input, shape index: {}]   ;;  %s16978_s2 = inlined_call_operand.vmem [shape: bf16[16,8], index: 2, kind: input, shape index: {}]   ;;  %s16979_s3 = inlined_call_operand.hbm [shape: bf16[768,768], index: 3, kind: input, shape index: {}]   ;;  %s16980_s4 = inlined_call_operand.hbm [shape: f32[1,768], index: 4, kind: input, shape index: {}]   ;;  %s16981_s5 = inlined_call_operand.hbm [shape: bf16[32,768], index: 5, kind: input, shape index: {}]   ;;  %s16982_s6 = inlined_call_operand.hbm [shape: f32[1,768], index: 6, kind: input, shape index: {}]   ;;  %s16983_s7 = inlined_call_operand.hbm [shape: bf16[8,32], index: 7, kind: input, shape index: {}]   ;;  %s16984_s8 = inlined_call_operand.hbm [shape: f32[1,32], index: 8, kind: input, shape index: {}]   ;;  %s16985_s9 = inlined_call_operand.hbm [shape: bf16[768,896], index: 9, kind: input, shape index: {}]   ;;  %s16986_s10 = inlined_call_operand.hbm [shape: bf16[768,896], index: 10, kind: input, shape index: {}]   ;;  %s16987_s11 = inlined_call_operand.hbm [shape: bf16[32,896], index: 11, kind: input, shape index: {}]   ;;  %s16988_s12 = inlined_call_operand.hbm [shape: f32[1,896], index: 12, kind: input, shape index: {}]   ;;  %s16989_s13 = inlined_call_operand.hbm [shape: bf16[896,512], index: 13, kind: input, shape index: {}]   ;;  %s16990_s14 = inlined_call_operand.hbm [shape: f32[1,512], index: 14, kind: input, shape index: {}]   ;;  %s16991_s15 = inlined_call_operand.hbm [shape: f32[1,512], index: 15, kind: input, shape index: {}]   ;;  %s16992_s16 = inlined_call_operand.<no memory space> [shape: f32[1,1], index: 16, kind: input, shape index: {}]   ;;  %s16993_s17 = inlined_call_operand.vmem [shape: f32[16,1], index: 17, kind: output, shape index: {}]  }
   0x1   :  { %17066 = sst [smem:[#allocation74_spill]] %s16976_s0  ;;  %v22_v0 = vstv %s16992_s16 }
   0x2   :  { %17067 = sst [smem:[#allocation75_spill]] %s16977_s1  ;;  %23 = vst [vmem:[#allocation4] sm:$0x1] %v22_v0 }
   0x3   :  { %17068 = sst [smem:[#allocation76_spill]] %s16993_s17 }
   0x4   :  { %24 = vsyncpa [#allocation6], 0 }
   0x5   :  { %25 = vsyncpa [#allocation8], 0 }
   0x6   :  { %26 = vsyncpa [#allocation11], 0 }
   0x7   :  { %27 = vsyncpa [#allocation14], 0 }
   0x8   :  { %28 = vsyncpa [#allocation17], 0 }
   0x9   :  { %29 = vsyncpa [#allocation20], 0 }
   0xa   :  { %30 = vsyncpa [#allocation23], 0 }
   0xb   :  { %31 = vsyncpa [#allocation26], 0  ;;  %s15306_s26 = smov [#allocation7]   ;;  %s17069_s0 = sld [smem:[#allocation75_spill]] }
   0xc   :  { %s49_s27 = sshll.u32 %s15306_s26, 4  ;;  %s50_s27 = int_to_ptr.vmem [resolvable:$true] %s49_s27 }
  0x11   :  { %s14960_s30 = scalar_lea.hbm %s17069_s0, 2048 }
  0x12   :  { %p14961_p0 = scmp.ne.s32.totalorder %s17069_s0, %s14960_s30  ;;  %p14964_p1 = scmp.lt.u32.totalorder %s14960_s30, %s17069_s0 }
  0x14   :  { %p14966_p2 = pnand %p14964_p1, %p14961_p0 }
  0x16   :  { %14969 = shalt.err (!%p14966_p2)
}
  0x17   :  { %s14970_s20 = scalar_lea.vmem %s50_s27, 2048  ;;  %p14975_p4 = scmp.lt.s32.totalorder %s50_s27, %s50_s27 }
  0x18   :  { %p14971_p3 = scmp.ne.s32.totalorder %s50_s27, %s14970_s20  ;;  %p14976_p5 = scmp.lt.s32.totalorder %s14970_s20, %s14970_s20 }
  0x1a   :  { %p14977_p6 = por %p14976_p5, %p14975_p4 }
  0x1c   :  { %p14978_p7 = pnand %p14977_p6, %p14971_p3 }
  0x1e   :  { %14981 = shalt.err (!%p14978_p7)
}
  0x1f   :  { %s15307_s21 = smov 64   ;;  %s15308_s22 = smov 4  }
  0x20   :  { %55 = dma.hbm_to_vmem [thread:$0]  %s17069_s0, 2048, %s50_s27, [#allocation8], %s15307_s21, %s15307_s21, %s15308_s22  }
  0x21   :  { %s15309_s25 = smov [#allocation10]   ;;  %s15310_s28 = smov [#allocation13]  }
  0x22   :  { %s76_s26 = sshll.u32 %s15309_s25, 4  ;;  %s98_s29 = sshll.u32 %s15310_s28, 4  ;;  %s77_s26 = int_to_ptr.vmem [resolvable:$true] %s76_s26  ;;  %s99_s29 = int_to_ptr.vmem [resolvable:$true] %s98_s29 }
  0x23   :  { %s14982_s19 = scalar_lea.hbm %s16980_s4, 96 }
  0x24   :  { %p14983_p8 = scmp.ne.s32.totalorder %s16980_s4, %s14982_s19  ;;  %p14986_p9 = scmp.lt.u32.totalorder %s14982_s19, %s16980_s4 }
  0x26   :  { %p14988_p10 = pnand %p14986_p9, %p14983_p8 }
  0x28   :  { %14991 = shalt.err (!%p14988_p10)
}
  0x29   :  { %s14992_s27 = scalar_lea.vmem %s77_s26, 96  ;;  %p14997_p12 = scmp.lt.s32.totalorder %s77_s26, %s77_s26 }
  0x2a   :  { %p14993_p11 = scmp.ne.s32.totalorder %s77_s26, %s14992_s27  ;;  %p14998_p13 = scmp.lt.s32.totalorder %s14992_s27, %s14992_s27 }
  0x2c   :  { %p14999_p0 = por %p14998_p13, %p14997_p12 }
  0x2e   :  { %p15000_p1 = pnand %p14999_p0, %p14993_p11 }
  0x30   :  { %15003 = shalt.err (!%p15000_p1)
}
  0x31   :  { %79 = dma.hbm_to_vmem [thread:$0]  %s16980_s4, 96, %s77_s26, [#allocation11]  }
  0x32   :  { %s15004_s24 = scalar_lea.hbm %s16982_s6, 96 }
  0x33   :  { %p15005_p2 = scmp.ne.s32.totalorder %s16982_s6, %s15004_s24  ;;  %p15008_p3 = scmp.lt.u32.totalorder %s15004_s24, %s16982_s6 }
  0x35   :  { %p15010_p4 = pnand %p15008_p3, %p15005_p2 }
  0x37   :  { %15013 = shalt.err (!%p15010_p4)
}
  0x38   :  { %s15014_s18 = scalar_lea.vmem %s99_s29, 96  ;;  %p15019_p6 = scmp.lt.s32.totalorder %s99_s29, %s99_s29 }
  0x39   :  { %p15015_p5 = scmp.ne.s32.totalorder %s99_s29, %s15014_s18  ;;  %p15020_p7 = scmp.lt.s32.totalorder %s15014_s18, %s15014_s18 }
  0x3b   :  { %p15021_p8 = por %p15020_p7, %p15019_p6 }
  0x3d   :  { %p15022_p9 = pnand %p15021_p8, %p15015_p5 }
  0x3f   :  { %15025 = shalt.err (!%p15022_p9)
}
  0x40   :  { %101 = dma.hbm_to_vmem [thread:$0]  %s16982_s6, 96, %s99_s29, [#allocation14]  }
  0x41   :  { %s15311_s19 = smov [#allocation16]   ;;  %s15026_s27 = scalar_lea.hbm %s16984_s8, 16 }
  0x42   :  { %s118_s16 = sshll.u32 %s15311_s19, 4  ;;  %p15027_p10 = scmp.ne.s32.totalorder %s16984_s8, %s15026_s27  ;;  %s119_s16 = int_to_ptr.vmem [resolvable:$true] %s118_s16 }
  0x43   :  { %p15030_p11 = scmp.lt.u32.totalorder %s15026_s27, %s16984_s8 }
  0x45   :  { %p15032_p12 = pnand %p15030_p11, %p15027_p10 }
  0x47   :  { %15035 = shalt.err (!%p15032_p12)
}
  0x48   :  { %s15036_s24 = scalar_lea.vmem %s119_s16, 16  ;;  %s15040_s6 = scalar_lea.vmem %s119_s16, 32 }
  0x49   :  { %p15037_p13 = scmp.ne.s32.totalorder %s119_s16, %s15036_s24  ;;  %p15041_p0 = scmp.lt.s32.totalorder %s119_s16, %s119_s16 }
  0x4a   :  { %p15042_p1 = scmp.lt.s32.totalorder %s15040_s6, %s15036_s24 }
  0x4c   :  { %p15043_p2 = por %p15042_p1, %p15041_p0 }
  0x4e   :  { %p15044_p3 = pnand %p15043_p2, %p15037_p13 }
  0x50   :  { %15047 = shalt.err (!%p15044_p3)
}
  0x51   :  { %121 = dma.hbm_to_vmem [thread:$0]  %s16984_s8, 16, %s119_s16, [#allocation17]  }
  0x52   :  { %s15312_s25 = smov [#allocation19]   ;;  %s15313_s30 = smov [#allocation22]  }
  0x53   :  { %s139_s28 = sshll.u32 %s15312_s25, 4  ;;  %s164_s18 = sshll.u32 %s15313_s30, 4  ;;  %s140_s28 = int_to_ptr.vmem [resolvable:$true] %s139_s28  ;;  %s15473_s18 = int_to_ptr.vmem [resolvable:$true] %s164_s18 }
  0x54   :  { %s15048_s19 = scalar_lea.hbm %s16986_s10, 43008 }
  0x55   :  { %p15049_p4 = scmp.ne.s32.totalorder %s16986_s10, %s15048_s19  ;;  %p15052_p5 = scmp.lt.u32.totalorder %s15048_s19, %s16986_s10 }
  0x57   :  { %p15054_p6 = pnand %p15052_p5, %p15049_p4 }
  0x59   :  { %15057 = shalt.err (!%p15054_p6)
}
  0x5a   :  { %s15058_s8 = scalar_lea.vmem %s140_s28, 43008  ;;  %p15063_p8 = scmp.lt.s32.totalorder %s140_s28, %s140_s28 }
  0x5b   :  { %p15059_p7 = scmp.ne.s32.totalorder %s140_s28, %s15058_s8  ;;  %p15064_p9 = scmp.lt.s32.totalorder %s15058_s8, %s15058_s8 }
  0x5d   :  { %p15065_p10 = por %p15064_p9, %p15063_p8 }
  0x5f   :  { %p15066_p11 = pnand %p15065_p10, %p15059_p7 }
  0x61   :  { %15069 = shalt.err (!%p15066_p11)
}
  0x62   :  { %s15314_s16 = smov 448   ;;  %s15315_s21 = smov 28  }
  0x63   :  { %145 = dma.hbm_to_vmem [thread:$0]  %s16986_s10, 43008, %s140_s28, [#allocation20], %s15314_s16, %s15314_s16, %s15315_s21  }
  0x64   :  { %s15070_s29 = scalar_lea.hbm %s16988_s12, 112 }
  0x65   :  { %p15071_p12 = scmp.ne.s32.totalorder %s16988_s12, %s15070_s29  ;;  %p15074_p13 = scmp.lt.u32.totalorder %s15070_s29, %s16988_s12 }
  0x67   :  { %p15076_p0 = pnand %p15074_p13, %p15071_p12 }
  0x69   :  { %15079 = shalt.err (!%p15076_p0)
}
  0x6a   :  { %s15080_s26 = scalar_lea.vmem %s15473_s18, 112  ;;  %s15084_s10 = scalar_lea.vmem %s15473_s18, 128 }
  0x6b   :  { %p15081_p1 = scmp.ne.s32.totalorder %s15473_s18, %s15080_s26  ;;  %p15085_p2 = scmp.lt.s32.totalorder %s15473_s18, %s15473_s18 }
  0x6c   :  { %p15086_p3 = scmp.lt.s32.totalorder %s15084_s10, %s15080_s26 }
  0x6e   :  { %p15087_p4 = por %p15086_p3, %p15085_p2 }
  0x70   :  { %p15088_p5 = pnand %p15087_p4, %p15081_p1 }
  0x72   :  { %15091 = shalt.err (!%p15088_p5)
}
  0x73   :  { %167 = dma.hbm_to_vmem [thread:$0]  %s16988_s12, 112, %s15473_s18, [#allocation23]  }
  0x74   :  { %s15316_s1 = smov [#allocation25]   ;;  %s15317_s27 = smov [#allocation5]  }
  0x75   :  { %s186_s20 = sshll.u32 %s15316_s1, 4  ;;  %s37_s0 = sshll.u32 %s15317_s27, 4  ;;  %s187_s20 = int_to_ptr.vmem [resolvable:$true] %s186_s20  ;;  %s15508_s0 = int_to_ptr.vmem [resolvable:$true] %s37_s0 }
  0x76   :  { %s15092_s23 = scalar_lea.hbm %s16990_s14, 64 }
  0x77   :  { %p15093_p6 = scmp.ne.s32.totalorder %s16990_s14, %s15092_s23  ;;  %p15096_p7 = scmp.lt.u32.totalorder %s15092_s23, %s16990_s14 }
  0x79   :  { %p15098_p8 = pnand %p15096_p7, %p15093_p6 }
  0x7b   :  { %15101 = shalt.err (!%p15098_p8)
}
  0x7c   :  { %s15102_s12 = scalar_lea.vmem %s187_s20, 64  ;;  %p15107_p10 = scmp.lt.s32.totalorder %s187_s20, %s187_s20 }
  0x7d   :  { %p15103_p9 = scmp.ne.s32.totalorder %s187_s20, %s15102_s12  ;;  %p15108_p11 = scmp.lt.s32.totalorder %s15102_s12, %s15102_s12 }
  0x7f   :  { %p15109_p12 = por %p15108_p11, %p15107_p10 }
  0x81   :  { %p15110_p13 = pnand %p15109_p12, %p15103_p9 }
  0x83   :  { %15113 = shalt.err (!%p15110_p13)
}
  0x84   :  { %189 = dma.hbm_to_vmem [thread:$0]  %s16990_s14, 64, %s187_s20, [#allocation26]  }
  0x85   :  { %s17070_s26 = sld [smem:[#allocation74_spill]] }
  0x8b   :  { %s15114_s10 = scalar_lea.hbm %s17070_s26, 12288 }
  0x8c   :  { %p15115_p0 = scmp.ne.s32.totalorder %s17070_s26, %s15114_s10  ;;  %p15118_p1 = scmp.lt.u32.totalorder %s15114_s10, %s17070_s26 }
  0x8e   :  { %p15120_p2 = pnand %p15118_p1, %p15115_p0 }
  0x90   :  { %15123 = shalt.err (!%p15120_p2)
}
  0x91   :  { %s15124_s8 = scalar_lea.vmem %s15508_s0, 12288  ;;  %p15129_p4 = scmp.lt.s32.totalorder %s15508_s0, %s15508_s0 }
  0x92   :  { %p15125_p3 = scmp.ne.s32.totalorder %s15508_s0, %s15124_s8  ;;  %p15130_p5 = scmp.lt.s32.totalorder %s15124_s8, %s15124_s8 }
  0x94   :  { %p15131_p6 = por %p15130_p5, %p15129_p4 }
  0x96   :  { %p15132_p7 = pnand %p15131_p6, %p15125_p3 }
  0x98   :  { %15135 = shalt.err (!%p15132_p7)
}
  0x99   :  { %s15318_s14 = smov 384   ;;  %s15319_s20 = smov 24  }
  0x9a   :  { %43 = dma.hbm_to_vmem [thread:$0]  %s17070_s26, 12288, %s15508_s0, [#allocation6], %s15318_s14, %s15318_s14, %s15319_s20  }
  0x9b   :  { %s15320_s24 = smov [#allocation9]   ;;  %s15321_s29 = smov [#allocation12]  }
  0x9c   :  { %s63_s6 = sshll.u32 %s15320_s24, 4  ;;  %s85_s17 = sshll.u32 %s15321_s29, 4  ;;  %s64_s6 = int_to_ptr.vmem [resolvable:$true] %s63_s6  ;;  %s15542_s17 = int_to_ptr.vmem [resolvable:$true] %s85_s17 }
  0x9d   :  { %s15136_s25 = scalar_lea.hbm %s16979_s3, 36864 }
  0x9e   :  { %p15137_p8 = scmp.ne.s32.totalorder %s16979_s3, %s15136_s25  ;;  %p15140_p9 = scmp.lt.u32.totalorder %s15136_s25, %s16979_s3 }
  0xa0   :  { %p15142_p10 = pnand %p15140_p9, %p15137_p8 }
  0xa2   :  { %15145 = shalt.err (!%p15142_p10)
}
  0xa3   :  { %s15146_s0 = scalar_lea.vmem %s64_s6, 36864  ;;  %p15151_p12 = scmp.lt.s32.totalorder %s64_s6, %s64_s6 }
  0xa4   :  { %p15147_p11 = scmp.ne.s32.totalorder %s64_s6, %s15146_s0  ;;  %p15152_p13 = scmp.lt.s32.totalorder %s15146_s0, %s15146_s0 }
  0xa6   :  { %p15153_p0 = por %p15152_p13, %p15151_p12 }
  0xa8   :  { %p15154_p1 = pnand %p15153_p0, %p15147_p11 }
  0xaa   :  { %15157 = shalt.err (!%p15154_p1)
}
  0xab   :  { %69 = dma.hbm_to_vmem [thread:$0]  %s16979_s3, 36864, %s64_s6, [#allocation8], %s15318_s14, %s15318_s14, %s15319_s20  }
  0xac   :  { %s15158_s8 = scalar_lea.hbm %s16981_s5, 1536 }
  0xad   :  { %p15159_p2 = scmp.ne.s32.totalorder %s16981_s5, %s15158_s8  ;;  %p15162_p3 = scmp.lt.u32.totalorder %s15158_s8, %s16981_s5 }
  0xaf   :  { %p15164_p4 = pnand %p15162_p3, %p15159_p2 }
  0xb1   :  { %15167 = shalt.err (!%p15164_p4)
}
  0xb2   :  { %s15168_s12 = scalar_lea.vmem %s15542_s17, 1536  ;;  %p15173_p6 = scmp.lt.s32.totalorder %s15542_s17, %s15542_s17 }
  0xb3   :  { %p15169_p5 = scmp.ne.s32.totalorder %s15542_s17, %s15168_s12  ;;  %p15174_p7 = scmp.lt.s32.totalorder %s15168_s12, %s15168_s12 }
  0xb5   :  { %p15175_p8 = por %p15174_p7, %p15173_p6 }
  0xb7   :  { %p15176_p9 = pnand %p15175_p8, %p15169_p5 }
  0xb9   :  { %15179 = shalt.err (!%p15176_p9)
}
  0xba   :  { %91 = dma.hbm_to_vmem [thread:$0]  %s16981_s5, 1536, %s15542_s17, [#allocation11], %s15318_s14, %s15318_s14, %s15319_s20  }
  0xbb   :  { %s15322_s18 = smov [#allocation15]   ;;  %s15323_s30 = smov [#allocation18]  }
  0xbc   :  { %s108_s25 = sshll.u32 %s15322_s18, 4  ;;  %s127_s4 = sshll.u32 %s15323_s30, 4  ;;  %s109_s25 = int_to_ptr.vmem [resolvable:$true] %s108_s25  ;;  %s15579_s4 = int_to_ptr.vmem [resolvable:$true] %s127_s4 }
  0xbd   :  { %s15180_s0 = scalar_lea.hbm %s16983_s7, 64 }
  0xbe   :  { %p15181_p10 = scmp.ne.s32.totalorder %s16983_s7, %s15180_s0  ;;  %p15184_p11 = scmp.lt.u32.totalorder %s15180_s0, %s16983_s7 }
  0xc0   :  { %p15186_p12 = pnand %p15184_p11, %p15181_p10 }
  0xc2   :  { %15189 = shalt.err (!%p15186_p12)
}
  0xc3   :  { %s15190_s5 = scalar_lea.vmem %s109_s25, 64  ;;  %p15195_p0 = scmp.lt.s32.totalorder %s109_s25, %s109_s25 }
  0xc4   :  { %p15191_p13 = scmp.ne.s32.totalorder %s109_s25, %s15190_s5  ;;  %p15196_p1 = scmp.lt.s32.totalorder %s15190_s5, %s15190_s5 }
  0xc6   :  { %p15197_p2 = por %p15196_p1, %p15195_p0 }
  0xc8   :  { %p15198_p3 = pnand %p15197_p2, %p15191_p13 }
  0xca   :  { %15201 = shalt.err (!%p15198_p3)
}
  0xcb   :  { %111 = dma.hbm_to_vmem [thread:$0]  %s16983_s7, 64, %s109_s25, [#allocation14]  }
  0xcc   :  { %s15202_s22 = scalar_lea.hbm %s16985_s9, 43008 }
  0xcd   :  { %p15203_p4 = scmp.ne.s32.totalorder %s16985_s9, %s15202_s22  ;;  %p15206_p5 = scmp.lt.u32.totalorder %s15202_s22, %s16985_s9 }
  0xcf   :  { %p15208_p6 = pnand %p15206_p5, %p15203_p4 }
  0xd1   :  { %15211 = shalt.err (!%p15208_p6)
}
  0xd2   :  { %s15212_s3 = scalar_lea.vmem %s15579_s4, 43008  ;;  %p15217_p8 = scmp.lt.s32.totalorder %s15579_s4, %s15579_s4 }
  0xd3   :  { %p15213_p7 = scmp.ne.s32.totalorder %s15579_s4, %s15212_s3  ;;  %p15218_p9 = scmp.lt.s32.totalorder %s15212_s3, %s15212_s3 }
  0xd5   :  { %p15219_p10 = por %p15218_p9, %p15217_p8 }
  0xd7   :  { %p15220_p11 = pnand %p15219_p10, %p15213_p7 }
  0xd9   :  { %15223 = shalt.err (!%p15220_p11)
}
  0xda   :  { %133 = dma.hbm_to_vmem [thread:$0]  %s16985_s9, 43008, %s15579_s4, [#allocation17], %s15314_s16, %s15314_s16, %s15315_s21  }
  0xdb   :  { %s15324_s18 = smov [#allocation21]   ;;  %s15325_s30 = smov [#allocation24]  }
  0xdc   :  { %s151_s25 = sshll.u32 %s15324_s18, 4  ;;  %s173_s10 = sshll.u32 %s15325_s30, 4  ;;  %s152_s25 = int_to_ptr.vmem [resolvable:$true] %s151_s25  ;;  %s15613_s10 = int_to_ptr.vmem [resolvable:$true] %s173_s10 }
  0xdd   :  { %s15224_s26 = scalar_lea.hbm %s16987_s11, 1792 }
  0xde   :  { %p15225_p12 = scmp.ne.s32.totalorder %s16987_s11, %s15224_s26  ;;  %p15228_p13 = scmp.lt.u32.totalorder %s15224_s26, %s16987_s11 }
  0xe0   :  { %p15230_p0 = pnand %p15228_p13, %p15225_p12 }
  0xe2   :  { %15233 = shalt.err (!%p15230_p0)
}
  0xe3   :  { %s15234_s9 = scalar_lea.vmem %s152_s25, 1792  ;;  %p15239_p2 = scmp.lt.s32.totalorder %s152_s25, %s152_s25 }
  0xe4   :  { %p15235_p1 = scmp.ne.s32.totalorder %s152_s25, %s15234_s9  ;;  %p15240_p3 = scmp.lt.s32.totalorder %s15234_s9, %s15234_s9 }
  0xe6   :  { %p15241_p4 = por %p15240_p3, %p15239_p2 }
  0xe8   :  { %p15242_p5 = pnand %p15241_p4, %p15235_p1 }
  0xea   :  { %15245 = shalt.err (!%p15242_p5)
}
  0xeb   :  { %157 = dma.hbm_to_vmem [thread:$0]  %s16987_s11, 1792, %s152_s25, [#allocation20], %s15314_s16, %s15314_s16, %s15315_s21  }
  0xec   :  { %s15246_s8 = scalar_lea.hbm %s16989_s13, 28672 }
  0xed   :  { %p15247_p6 = scmp.ne.s32.totalorder %s16989_s13, %s15246_s8  ;;  %p15250_p7 = scmp.lt.u32.totalorder %s15246_s8, %s16989_s13 }
  0xef   :  { %p15252_p8 = pnand %p15250_p7, %p15247_p6 }
  0xf1   :  { %15255 = shalt.err (!%p15252_p8)
}
  0xf2   :  { %s15256_s12 = scalar_lea.vmem %s15613_s10, 28672  ;;  %p15261_p10 = scmp.lt.s32.totalorder %s15613_s10, %s15613_s10 }
  0xf3   :  { %p15257_p9 = scmp.ne.s32.totalorder %s15613_s10, %s15256_s12  ;;  %p15262_p11 = scmp.lt.s32.totalorder %s15256_s12, %s15256_s12 }
  0xf5   :  { %p15263_p12 = por %p15262_p11, %p15261_p10 }
  0xf7   :  { %p15264_p13 = pnand %p15263_p12, %p15257_p9 }
  0xf9   :  { %15267 = shalt.err (!%p15264_p13)
}
  0xfa   :  { %s15326_s11 = smov 256   ;;  %s15327_s16 = smov 16  }
  0xfb   :  { %179 = dma.hbm_to_vmem [thread:$0]  %s16989_s13, 28672, %s15613_s10, [#allocation23], %s15326_s11, %s15326_s11, %s15327_s16  }
  0xfc   :  { %s15328_s7 = smov [#allocation27]   ;;  %s15268_s30 = scalar_lea.hbm %s16991_s15, 64 }
  0xfd   :  { %s196_s6 = sshll.u32 %s15328_s7, 4  ;;  %p15269_p0 = scmp.ne.s32.totalorder %s16991_s15, %s15268_s30  ;;  %s197_s6 = int_to_ptr.vmem [resolvable:$true] %s196_s6 }
  0xfe   :  { %p15272_p1 = scmp.lt.u32.totalorder %s15268_s30, %s16991_s15 }
 0x100   :  { %p15274_p2 = pnand %p15272_p1, %p15269_p0 }
 0x102   :  { %15277 = shalt.err (!%p15274_p2)
}
 0x103   :  { %s15278_s1 = scalar_lea.vmem %s197_s6, 64  ;;  %p15283_p4 = scmp.lt.s32.totalorder %s197_s6, %s197_s6 }
 0x104   :  { %p15279_p3 = scmp.ne.s32.totalorder %s197_s6, %s15278_s1  ;;  %p15284_p5 = scmp.lt.s32.totalorder %s15278_s1, %s15278_s1 }
 0x106   :  { %p15285_p6 = por %p15284_p5, %p15283_p4 }
 0x108   :  { %p15286_p7 = pnand %p15285_p6, %p15279_p3 }
 0x10a   :  { %15289 = shalt.err (!%p15286_p7)
}
 0x10b   :  { %199 = dma.hbm_to_vmem [thread:$0]  %s16991_s15, 64, %s197_s6, [#allocation26]  }
 0x10c   :  { %15290 = dma.done.wait [#allocation6], 12288  }
 0x10d   :  { %15291 = vsyncadd [#allocation6], 4294955008 }
 0x10e   :  { %15292 = dma.done.wait [#allocation8], 38912  }
 0x10f   :  { %15293 = vsyncadd [#allocation8], 4294928384 }
 0x110   :  { %15294 = dma.done.wait [#allocation11], 1632  }
 0x111   :  { %15295 = vsyncadd [#allocation11], 4294965664 }
 0x112   :  { %15296 = dma.done.wait [#allocation14], 160  }
 0x113   :  { %15297 = vsyncadd [#allocation14], 4294967136 }
 0x114   :  { %15298 = dma.done.wait [#allocation17], 43024  }
 0x115   :  { %15299 = vsyncadd [#allocation17], 4294924272 }
 0x116   :  { %15300 = dma.done.wait [#allocation20], 44800  }
 0x117   :  { %15301 = vsyncadd [#allocation20], 4294922496 }
 0x118   :  { %15302 = dma.done.wait [#allocation23], 28784  }
 0x119   :  { %15303 = vsyncadd [#allocation23], 4294938512 }
 0x11a   :  { %15304 = dma.done.wait [#allocation26], 128  }
 0x11b   :  { %15305 = vsyncadd [#allocation26], 4294967168  ;;  %v13183_v1 = vld [vmem:[#allocation9 + $0x4] ss:$24 sps:$4 sm:$0xff]   ;;  %v13187_v3 = vld [vmem:[#allocation9] ss:$24 sps:$4 sm:$0xff]  }
 0x11c   :  { %v13185_v2 = vld [vmem:[#allocation9 + $0x30c] ss:$24 sps:$4 sm:$0xff]   ;;  %3490 = vmatprep.subr.bf16.mxu0 %v13183_v1  ;;  %v13188_v4 = vld [vmem:[#allocation9 + $0x308] ss:$24 sps:$4 sm:$0xff]   ;;  %v13191_v6 = vld [vmem:[#allocation9 + $0x33c] ss:$24 sps:$4 sm:$0xff]  }
 0x11d   :  { %3662 = vmatprep.subr.bf16.mxu1 %v13185_v2  ;;  %v13189_v5 = vld [vmem:[#allocation9 + $0x34] ss:$24 sps:$4 sm:$0xff]   ;;  %3491 = vmatpush1.bf16.msra.mxu0 %v13187_v3  ;;  %v13193_v7 = vld [vmem:[#allocation9 + $0x30] ss:$24 sps:$4 sm:$0xff]   ;;  %v13195_v9 = vld [vmem:[#allocation9 + $0x64] ss:$24 sps:$4 sm:$0xff]  }
 0x11e   :  { %3663 = vmatpush1.bf16.msra.mxu1 %v13188_v4  ;;  %3492 = vmatprep.subr.bf16.mxu0 %v13189_v5  ;;  %v13194_v8 = vld [vmem:[#allocation9 + $0x338] ss:$24 sps:$4 sm:$0xff]   ;;  %v13197_v10 = vld [vmem:[#allocation9 + $0x36c] ss:$24 sps:$4 sm:$0xff]   ;;  %v13200_v12 = vld [vmem:[#allocation9 + $0x368] ss:$24 sps:$4 sm:$0xff]  }
 0x11f   :  { %3664 = vmatprep.subr.bf16.mxu1 %v13191_v6  ;;  %v13199_v11 = vld [vmem:[#allocation9 + $0x60] ss:$24 sps:$4 sm:$0xff]   ;;  %v13201_v13 = vld [vmem:[#allocation9 + $0x94] ss:$24 sps:$4 sm:$0xff]   ;;  %v13205_v15 = vld [vmem:[#allocation9 + $0x90] ss:$24 sps:$4 sm:$0xff]  }
 0x120   :  { %v13203_v14 = vld [vmem:[#allocation9 + $0x39c] ss:$24 sps:$4 sm:$0xff]   ;;  %v13206_v16 = vld [vmem:[#allocation9 + $0x398] ss:$24 sps:$4 sm:$0xff]   ;;  %v13209_v18 = vld [vmem:[#allocation9 + $0x3cc] ss:$24 sps:$4 sm:$0xff]  }
 0x121   :  { %3493 = vmatpush1.bf16.msra.mxu0 %v13193_v7  ;;  %v13207_v17 = vld [vmem:[#allocation9 + $0xc4] ss:$24 sps:$4 sm:$0xff]   ;;  %v13211_v19 = vld [vmem:[#allocation9 + $0xc0] ss:$24 sps:$4 sm:$0xff]   ;;  %v13213_v21 = vld [vmem:[#allocation9 + $0xf4] ss:$24 sps:$4 sm:$0xff]  }
 0x122   :  { %3665 = vmatpush1.bf16.msra.mxu1 %v13194_v8  ;;  %3494 = vmatprep.subr.bf16.mxu0 %v13195_v9  ;;  %v13212_v20 = vld [vmem:[#allocation9 + $0x3c8] ss:$24 sps:$4 sm:$0xff]   ;;  %v13215_v22 = vld [vmem:[#allocation9 + $0x3fc] ss:$24 sps:$4 sm:$0xff]   ;;  %v13218_v24 = vld [vmem:[#allocation9 + $0x3f8] ss:$24 sps:$4 sm:$0xff]  }
 0x123   :  { %3666 = vmatprep.subr.bf16.mxu1 %v13197_v10  ;;  %v13217_v23 = vld [vmem:[#allocation9 + $0xf0] ss:$24 sps:$4 sm:$0xff]   ;;  %v13219_v25 = vld [vmem:[#allocation9 + $0x124] ss:$24 sps:$4 sm:$0xff]   ;;  %v13223_v27 = vld [vmem:[#allocation9 + $0x120] ss:$24 sps:$4 sm:$0xff]  }
 0x124   :  { %v13221_v26 = vld [vmem:[#allocation9 + $0x42c] ss:$24 sps:$4 sm:$0xff]   ;;  %v13224_v28 = vld [vmem:[#allocation9 + $0x428] ss:$24 sps:$4 sm:$0xff]   ;;  %v13227_v30 = vld [vmem:[#allocation9 + $0x45c] ss:$24 sps:$4 sm:$0xff]  }
 0x125   :  { %3495 = vmatpush1.bf16.msra.mxu0 %v13199_v11  ;;  %v13225_v29 = vld [vmem:[#allocation9 + $0x154] ss:$24 sps:$4 sm:$0xff]   ;;  %v13229_v31 = vld [vmem:[#allocation9 + $0x150] ss:$24 sps:$4 sm:$0xff]   ;;  %v13231_v33 = vld [vmem:[#allocation9 + $0x184] ss:$24 sps:$4 sm:$0xff]  }
 0x126   :  { %3667 = vmatpush1.bf16.msra.mxu1 %v13200_v12  ;;  %3496 = vmatprep.subr.bf16.mxu0 %v13201_v13  ;;  %v13230_v32 = vld [vmem:[#allocation9 + $0x458] ss:$24 sps:$4 sm:$0xff]   ;;  %v13233_v34 = vld [vmem:[#allocation9 + $0x48c] ss:$24 sps:$4 sm:$0xff]   ;;  %v13236_v36 = vld [vmem:[#allocation9 + $0x488] ss:$24 sps:$4 sm:$0xff]  }
 0x127   :  { %3668 = vmatprep.subr.bf16.mxu1 %v13203_v14  ;;  %v13235_v35 = vld [vmem:[#allocation9 + $0x180] ss:$24 sps:$4 sm:$0xff]   ;;  %v13237_v37 = vld [vmem:[#allocation9 + $0x1b4] ss:$24 sps:$4 sm:$0xff]   ;;  %v13241_v39 = vld [vmem:[#allocation9 + $0x1b0] ss:$24 sps:$4 sm:$0xff]  }
 0x128   :  { %v13239_v38 = vld [vmem:[#allocation9 + $0x4bc] ss:$24 sps:$4 sm:$0xff]   ;;  %v13242_v40 = vld [vmem:[#allocation9 + $0x4b8] ss:$24 sps:$4 sm:$0xff]   ;;  %v13245_v42 = vld [vmem:[#allocation9 + $0x4ec] ss:$24 sps:$4 sm:$0xff]  }
 0x129   :  { %3497 = vmatpush1.bf16.msra.mxu0 %v13205_v15  ;;  %v13243_v41 = vld [vmem:[#allocation9 + $0x1e4] ss:$24 sps:$4 sm:$0xff]   ;;  %v13247_v43 = vld [vmem:[#allocation9 + $0x1e0] ss:$24 sps:$4 sm:$0xff]   ;;  %v13249_v45 = vld [vmem:[#allocation9 + $0x214] ss:$24 sps:$4 sm:$0xff]  }
 0x12a   :  { %3669 = vmatpush1.bf16.msra.mxu1 %v13206_v16  ;;  %3498 = vmatprep.subr.bf16.mxu0 %v13207_v17  ;;  %v13248_v44 = vld [vmem:[#allocation9 + $0x4e8] ss:$24 sps:$4 sm:$0xff]   ;;  %v13251_v46 = vld [vmem:[#allocation9 + $0x51c] ss:$24 sps:$4 sm:$0xff]   ;;  %v13254_v48 = vld [vmem:[#allocation9 + $0x518] ss:$24 sps:$4 sm:$0xff]  }
 0x12b   :  { %3670 = vmatprep.subr.bf16.mxu1 %v13209_v18  ;;  %v13253_v47 = vld [vmem:[#allocation9 + $0x210] ss:$24 sps:$4 sm:$0xff]   ;;  %v15659_v49 = vld [vmem:[#allocation5] sm:$0xff]  ;;  %v15661_v52 = vld [vmem:[#allocation5 + $0x18] sm:$0xff]  ;;  %vm1335_vm0 = vcmask 1041409   ;;  %vm1337_vm1 = vcmask 1042434  }
 0x12c   :  { %17071 = vst [vmem:[#allocation36_spill] sm:$0xff] %v15659_v49  ;;  %v13255_v50 = vld [vmem:[#allocation9 + $0x244] ss:$24 sps:$4 sm:$0xff]   ;;  %17072 = vst [vmem:[#allocation37_spill] sm:$0xff] %v15661_v52  ;;  %v15663_v53 = vld [vmem:[#allocation5 + $0x30] sm:$0xff]  ;;  %v376_v55 = vunpack.c.h.bf16 %v15659_v49  ;;  %v382_v59 = vunpack.c.h.bf16 %v15661_v52  ;;  %vm1339_vm2 = vcmask 1043459  }
 0x12d   :  { %3499 = vmatpush1.bf16.msra.mxu0 %v13211_v19  ;;  %v13257_v51 = vld [vmem:[#allocation9 + $0x54c] ss:$24 sps:$4 sm:$0xff]   ;;  %17073 = vst [vmem:[#allocation38_spill] sm:$0xff] %v15663_v53  ;;  %v15668_v57 = vld [vmem:[#allocation5 + $0x78] sm:$0xff]  ;;  %v15670_v58 = vld [vmem:[#allocation5 + $0x90] sm:$0xff]  ;;  %v388_v60 = vunpack.c.h.bf16 %v15663_v53  ;;  %vm1341_vm3 = vcmask 1044484  }
 0x12e   :  { %3671 = vmatpush1.bf16.msra.mxu1 %v13212_v20  ;;  %3500 = vmatprep.subr.bf16.mxu0 %v13213_v21  ;;  %v288_v54 = vld [vmem:[#allocation5 + $0x48] sm:$0xff]  ;;  %v15666_v56 = vld [vmem:[#allocation5 + $0x60] sm:$0xff]  ;;  %v15679_v1 = vld [vmem:[#allocation5 + $0xd8] sm:$0xff]  ;;  %v406_v3 = vunpack.c.h.bf16 %v15668_v57  ;;  %v412_v4 = vunpack.c.h.bf16 %v15670_v58  ;;  %v574_v14 = vadd.f32 %v382_v59, %v376_v55  ;;  %vm1343_vm4 = vcmask 1045509   ;;  %s17265_s9 = sld [smem:[#allocation76_spill]] }
 0x12f   :  { %3672 = vmatprep.subr.bf16.mxu1 %v13215_v22  ;;  %v394_v61 = vunpack.c.h.bf16 %v288_v54  ;;  %v15675_v63 = vld [vmem:[#allocation5 + $0xa8] sm:$0xff]  ;;  %v15677_v0 = vld [vmem:[#allocation5 + $0xc0] sm:$0xff]  ;;  %v400_v2 = vunpack.c.h.bf16 %v15666_v56  ;;  %v15685_v8 = vld [vmem:[#allocation5 + $0xf0] sm:$0xff]  ;;  %v430_v13 = vunpack.c.h.bf16 %v15679_v1  ;;  %vm1345_vm5 = vcmask 1046534  }
 0x130   :  { %v13259_v6 = vld [vmem:[#allocation9 + $0x240] ss:$24 sps:$4 sm:$0xff]   ;;  %v15687_v9 = vld [vmem:[#allocation5 + $0x108] sm:$0xff]  ;;  %v418_v11 = vunpack.c.h.bf16 %v15675_v63  ;;  %v424_v12 = vunpack.c.h.bf16 %v15677_v0  ;;  %v13263_v16 = vld [vmem:[#allocation9 + $0x57c] ss:$24 sps:$4 sm:$0xff]   ;;  %v436_v20 = vunpack.c.h.bf16 %v15685_v8  ;;  %vm1347_vm6 = vcmask 1047559  }
 0x131   :  { %3501 = vmatpush1.bf16.msra.mxu0 %v13217_v23  ;;  %v13260_v7 = vld [vmem:[#allocation9 + $0x548] ss:$24 sps:$4 sm:$0xff]   ;;  %v13261_v15 = vld [vmem:[#allocation9 + $0x274] ss:$24 sps:$4 sm:$0xff]   ;;  %v15694_v17 = vld [vmem:[#allocation5 + $0x138] sm:$0xff]  ;;  %v442_v21 = vunpack.c.h.bf16 %v15687_v9  ;;  %v616_v23 = vadd.f32 %v394_v61, %v388_v60  ;;  %vm264_vm7 = vcmask 261120  }
 0x132   :  { %3673 = vmatpush1.bf16.msra.mxu1 %v13218_v24  ;;  %3502 = vmatprep.subr.bf16.mxu0 %v13219_v25  ;;  %v15689_v10 = vld [vmem:[#allocation5 + $0x120] sm:$0xff]  ;;  %v15696_v18 = vld [vmem:[#allocation5 + $0x150] sm:$0xff]  ;;  %v15698_v19 = vld [vmem:[#allocation5 + $0x168] sm:$0xff]  ;;  %vm4135_vm8 = vcmask 1043456   ;;  %vm15331_vm9 = vmmov 0   ;;  %vm4131_vm10 = vcmask 64512  }
 0x133   :  { %3674 = vmatprep.subr.bf16.mxu1 %v13221_v26  ;;  %v448_v22 = vunpack.c.h.bf16 %v15689_v10  ;;  %v15703_v24 = vld [vmem:[#allocation5 + $0x180] sm:$0xff]  ;;  %v15705_v25 = vld [vmem:[#allocation5 + $0x198] sm:$0xff]  ;;  %v15707_v26 = vld [vmem:[#allocation5 + $0x1b0] sm:$0xff]  ;;  %v784_v56 = vadd.f32 %v442_v21, %v436_v20  ;;  %vm11551_vm11 = vcmask 7168  }
 0x134   :  { %v15734_v54 = vld [vmem:[#allocation5 + $0x288] sm:$0xff]  ;;  %v15739_v5 = vld [vmem:[#allocation5 + $0x2a0] sm:$0xff]  ;;  %v13275_v0 = vld [vmem:[#allocation9 + $0x5dc] ss:$24 sps:$4 sm:$0xff]  }
 0x135   :  { %3503 = vmatpush1.bf16.msra.mxu0 %v13223_v27  ;;  %v454_v27 = vunpack.c.h.bf16 %v15694_v17  ;;  %17077 = vst [vmem:[#allocation42_spill] sm:$0xff] %v15734_v54  ;;  %17078 = vst [vmem:[#allocation43_spill] sm:$0xff] %v15739_v5  ;;  %v15748_v59 = vld [vmem:[#allocation5 + $0x2e8] sm:$0xff] }
 0x136   :  { %3675 = vmatpush1.bf16.msra.mxu1 %v13224_v28  ;;  %3504 = vmatprep.subr.bf16.mxu0 %v13225_v29  ;;  %v460_v28 = vunpack.c.h.bf16 %v15696_v18  ;;  %v466_v29 = vunpack.c.h.bf16 %v15698_v19  ;;  %v562_v60 = vunpack.c.h.bf16 %v15748_v59  ;;  %v13273_v58 = vld [vmem:[#allocation9 + $0x2d4] ss:$24 sps:$4 sm:$0xff]  }
 0x137   :  { %3676 = vmatprep.subr.bf16.mxu1 %v13227_v30  ;;  %v575_v30 = vrot.slane %v574_v14, 4  ;;  %v826_v57 = vadd.f32 %v454_v27, %v448_v22 }
 0x139   :  { %3505 = vmatpush1.bf16.msra.mxu0 %v13229_v31  ;;  %v15712_v31 = vld [vmem:[#allocation5 + $0x1c8] sm:$0xff] }
 0x13a   :  { %3677 = vmatpush1.bf16.msra.mxu1 %v13230_v32  ;;  %3506 = vmatprep.subr.bf16.mxu0 %v13231_v33  ;;  %v15714_v32 = vld [vmem:[#allocation5 + $0x1e0] sm:$0xff]  ;;  %v15716_v33 = vld [vmem:[#allocation5 + $0x1f8] sm:$0xff] }
 0x13b   :  { %3678 = vmatprep.subr.bf16.mxu1 %v13233_v34  ;;  %v472_v34 = vunpack.c.h.bf16 %v15703_v24 }
 0x13d   :  { %3507 = vmatpush1.bf16.msra.mxu0 %v13235_v35  ;;  %v478_v35 = vunpack.c.h.bf16 %v15705_v25 }
 0x13e   :  { %3679 = vmatpush1.bf16.msra.mxu1 %v13236_v36  ;;  %3508 = vmatprep.subr.bf16.mxu0 %v13237_v37  ;;  %v484_v36 = vunpack.c.h.bf16 %v15707_v26  ;;  %v617_v37 = vrot.slane %v616_v23, 4 }
 0x13f   :  { %3680 = vmatprep.subr.bf16.mxu1 %v13239_v38  ;;  %v13265_v38 = vld [vmem:[#allocation9 + $0x270] ss:$24 sps:$4 sm:$0xff]  }
 0x140   :  { %v618_v61 = vadd.f32 %v617_v37, %v616_v23  ;;  %v742_v23 = vadd.f32 %v430_v13, %v424_v12  ;;  %v785_v12 = vrot.slane %v784_v56, 4  ;;  %v827_v13 = vrot.slane %v826_v57, 4 }
 0x141   :  { %3509 = vmatpush1.bf16.msra.mxu0 %v13241_v39  ;;  %v13266_v39 = vld [vmem:[#allocation9 + $0x578] ss:$24 sps:$4 sm:$0xff]  }
 0x142   :  { %3681 = vmatpush1.bf16.msra.mxu1 %v13242_v40  ;;  %3510 = vmatprep.subr.bf16.mxu0 %v13243_v41  ;;  %v15721_v40 = vld [vmem:[#allocation5 + $0x210] sm:$0xff]  ;;  %v15723_v41 = vld [vmem:[#allocation5 + $0x228] sm:$0xff]  ;;  %v619_v37 = vrot.slane %v618_v61, 2 }
 0x143   :  { %3682 = vmatprep.subr.bf16.mxu1 %v13245_v42  ;;  %v15725_v42 = vld [vmem:[#allocation5 + $0x240] sm:$0xff] }
 0x144   :  { %17074 = vst [vmem:[#allocation39_spill] sm:$0xff] %v15725_v42 }
 0x145   :  { %3511 = vmatpush1.bf16.msra.mxu0 %v13247_v43 }
 0x146   :  { %3683 = vmatpush1.bf16.msra.mxu1 %v13248_v44  ;;  %3512 = vmatprep.subr.bf16.mxu0 %v13249_v45  ;;  %v658_v44 = vadd.f32 %v406_v3, %v400_v2  ;;  %v620_v45 = vadd.f32 %v619_v37, %v618_v61  ;;  %v13281_v37 = vld [vmem:[#allocation9 + $0x304] ss:$24 sps:$4 sm:$0xff]  }
 0x147   :  { %3684 = vmatprep.subr.bf16.mxu1 %v13251_v46  ;;  %v576_v46 = vadd.f32 %v575_v30, %v574_v14  ;;  %v15741_v14 = vld [vmem:[#allocation5 + $0x2b8] sm:$0xff]  ;;  %v15743_v30 = vld [vmem:[#allocation5 + $0x2d0] sm:$0xff] }
 0x148   :  { %17079 = vst [vmem:[#allocation44_spill] sm:$0xff] %v15741_v14  ;;  %17080 = vst [vmem:[#allocation45_spill] sm:$0xff] %v15743_v30  ;;  %v659_v2 = vrot.slane %v658_v44, 4  ;;  %v621_v1 = vrot.slane %v620_v45, 1 }
 0x149   :  { %3513 = vmatpush1.bf16.msra.mxu0 %v13253_v47  ;;  %v13267_v47 = vld [vmem:[#allocation9 + $0x2a4] ss:$24 sps:$4 sm:$0xff]   ;;  %v577_v55 = vrot.slane %v576_v46, 2 }
 0x14a   :  { %3685 = vmatpush1.bf16.msra.mxu1 %v13254_v48  ;;  %3514 = vmatprep.subr.bf16.mxu0 %v13255_v50  ;;  %v13269_v48 = vld [vmem:[#allocation9 + $0x5ac] ss:$24 sps:$4 sm:$0xff]   ;;  %v15730_v50 = vld [vmem:[#allocation5 + $0x258] sm:$0xff]  ;;  %v660_v20 = vadd.f32 %v659_v2, %v658_v44  ;;  %v15774_v22 = vadd.f32 %v621_v1, %v620_v45 }
 0x14b   :  { %3686 = vmatprep.subr.bf16.mxu1 %v13257_v51  ;;  %17075 = vst [vmem:[#allocation40_spill] sm:$0xff] %v15730_v50  ;;  %v15732_v51 = vld [vmem:[#allocation5 + $0x270] sm:$0xff]  ;;  %v526_v62 = vunpack.c.h.bf16 %v15730_v50  ;;  %v578_v43 = vadd.f32 %v577_v55, %v576_v46 }
 0x14c   :  { %17076 = vst [vmem:[#allocation41_spill] sm:$0xff] %v15732_v51 }
 0x14d   :  { %3515 = vmatpush1.bf16.msra.mxu0 %v13259_v6  ;;  %v13272_v6 = vld [vmem:[#allocation9 + $0x5a8] ss:$24 sps:$4 sm:$0xff]   ;;  %v579_v63 = vrot.slane %v578_v43, 1 }
 0x14e   :  { %3687 = vmatpush1.bf16.msra.mxu1 %v13260_v7  ;;  %3516 = vmatprep.subr.bf16.mxu0 %v13261_v15  ;;  %v550_v7 = vunpack.c.h.bf16 %v15741_v14  ;;  %v700_v15 = vadd.f32 %v418_v11, %v412_v4  ;;  %v868_v4 = vadd.f32 %v466_v29, %v460_v28  ;;  %v743_v11 = vrot.slane %v742_v23, 4  ;;  %v13277_v28 = vld [vmem:[#allocation9 + $0x2d0] ss:$24 sps:$4 sm:$0xff]  }
 0x14f   :  { %3688 = vmatprep.subr.bf16.mxu1 %v13263_v16  ;;  %v13271_v16 = vld [vmem:[#allocation9 + $0x2a0] ss:$24 sps:$4 sm:$0xff]   ;;  %v15772_v46 = vadd.f32 %v579_v63, %v578_v43  ;;  %v910_v43 = vadd.f32 %v478_v35, %v472_v34 }
 0x150   :  { %v701_v3 = vrot.slane %v700_v15, 4  ;;  %v869_v10 = vrot.slane %v868_v4, 4  ;;  %v744_v27 = vadd.f32 %v743_v11, %v742_v23  ;;  %v13278_v29 = vld [vmem:[#allocation9 + $0x5d8] ss:$24 sps:$4 sm:$0xff]   ;;  %v17081_v23 = vunpack.c.h.bf16 %v15712_v31 }
 0x151   :  { %3517 = vmatpush1.bf16.msra.mxu0 %v13265_v38  ;;  %v786_v38 = vadd.f32 %v785_v12, %v784_v56  ;;  %v1349_v59 = vsel %vm1335_vm0, %v15774_v22, %v15772_v46 }
 0x152   :  { %3689 = vmatpush1.bf16.msra.mxu1 %v13266_v39  ;;  %3518 = vmatprep.subr.bf16.mxu0 %v13267_v47  ;;  %v702_v21 = vadd.f32 %v701_v3, %v700_v15  ;;  %v828_v39 = vadd.f32 %v827_v13, %v826_v57  ;;  %v661_v47 = vrot.slane %v660_v20, 2  ;;  %v870_v55 = vadd.f32 %v869_v10, %v868_v4 }
 0x153   :  { %3690 = vmatprep.subr.bf16.mxu1 %v13269_v48  ;;  %v745_v44 = vrot.slane %v744_v27, 2  ;;  %v787_v45 = vrot.slane %v786_v38, 2  ;;  %v911_v57 = vrot.slane %v910_v43, 4 }
 0x154   :  { %v703_v48 = vrot.slane %v702_v21, 2  ;;  %v829_v61 = vrot.slane %v828_v39, 2  ;;  %v662_v15 = vadd.f32 %v661_v47, %v660_v20  ;;  %v871_v56 = vrot.slane %v870_v55, 2 }
 0x155   :  { %3519 = vmatpush1.bf16.msra.mxu0 %v13271_v16  ;;  %v746_v63 = vadd.f32 %v745_v44, %v744_v27  ;;  %v788_v2 = vadd.f32 %v787_v45, %v786_v38  ;;  %v17084_v45 = vunpack.c.h.bf16 %v15721_v40 }
 0x156   :  { %3691 = vmatpush1.bf16.msra.mxu1 %v13272_v6  ;;  %3520 = vmatprep.subr.bf16.mxu0 %v13273_v58  ;;  %v952_v6 = vadd.f32 %v17081_v23, %v484_v36  ;;  %v704_v16 = vadd.f32 %v703_v48, %v702_v21  ;;  %v830_v3 = vadd.f32 %v829_v61, %v828_v39  ;;  %v663_v34 = vrot.slane %v662_v15, 1 }
 0x157   :  { %3692 = vmatprep.subr.bf16.mxu1 %v13275_v0  ;;  %v872_v58 = vadd.f32 %v871_v56, %v870_v55  ;;  %v912_v0 = vadd.f32 %v911_v57, %v910_v43  ;;  %v747_v1 = vrot.slane %v746_v63, 1  ;;  %v789_v11 = vrot.slane %v788_v2, 1 }
 0x158   :  { %v953_v4 = vrot.slane %v952_v6, 4  ;;  %v705_v35 = vrot.slane %v704_v16, 1  ;;  %v831_v36 = vrot.slane %v830_v3, 1  ;;  %v664_v13 = vadd.f32 %v663_v34, %v662_v15 }
 0x159   :  { %3521 = vmatpush1.bf16.msra.mxu0 %v13277_v28  ;;  %v873_v21 = vrot.slane %v872_v58, 1  ;;  %v913_v10 = vrot.slane %v912_v0, 2  ;;  %v748_v27 = vadd.f32 %v747_v1, %v746_v63  ;;  %v790_v38 = vadd.f32 %v789_v11, %v788_v2 }
 0x15a   :  { %3693 = vmatpush1.bf16.msra.mxu1 %v13278_v29  ;;  %v954_v12 = vadd.f32 %v953_v4, %v952_v6  ;;  %3533 = vmatprep.subr.bf16.mxu0 %v13281_v37  ;;  %v706_v20 = vadd.f32 %v705_v35, %v704_v16  ;;  %v832_v39 = vadd.f32 %v831_v36, %v830_v3  ;;  %v13284_v29 = vld [vmem:[#allocation9 + $0x60c] ss:$24 sps:$4 sm:$0xff]   ;;  %v17082_v55 = vunpack.c.h.bf16 %v15714_v32 }
 0x15b   :  { %v15784_v47 = vadd.f32 %v873_v21, %v872_v58  ;;  %v914_v48 = vadd.f32 %v913_v10, %v912_v0  ;;  %v17083_v43 = vunpack.c.h.bf16 %v15716_v33  ;;  %v17085_v61 = vunpack.c.h.bf16 %v15723_v41  ;;  %3705 = vmatprep.subr.bf16.mxu1 %v13284_v29 }
 0x15c   :  { %v955_v28 = vrot.slane %v954_v12, 2  ;;  %v17086_v37 = vunpack.c.h.bf16 %v15725_v42  ;;  %v17087_v16 = vunpack.c.h.bf16 %v15732_v51  ;;  %v17088_v56 = vunpack.c.h.bf16 %v15734_v54 }
 0x15d   :  { %v994_v44 = vadd.f32 %v17083_v43, %v17082_v55  ;;  %v1036_v23 = vadd.f32 %v17085_v61, %v17084_v45  ;;  %v17089_v63 = vunpack.c.h.bf16 %v15739_v5  ;;  %v915_v3 = vrot.slane %v914_v48, 1 }
 0x15e   :  { %v956_v6 = vadd.f32 %v955_v28, %v954_v12  ;;  %v1078_v15 = vadd.f32 %v526_v62, %v17086_v37  ;;  %v1120_v57 = vadd.f32 %v17088_v56, %v17087_v16  ;;  %v17090_v35 = vunpack.c.h.bf16 %v15743_v30 }
 0x15f   :  { %v1162_v2 = vadd.f32 %v550_v7, %v17089_v63  ;;  %v995_v4 = vrot.slane %v994_v44, 4  ;;  %v1037_v34 = vrot.slane %v1036_v23, 4  ;;  %v916_v36 = vadd.f32 %v915_v3, %v914_v48  ;;  %v15816_v3 = vld [vmem:[#allocation5 + $0x8] sm:$0xff] }
 0x160   :  { %v1204_v58 = vadd.f32 %v562_v60, %v17090_v35  ;;  %v957_v62 = vrot.slane %v956_v6, 1  ;;  %v1079_v0 = vrot.slane %v1078_v15, 4  ;;  %v1121_v1 = vrot.slane %v1120_v57, 4  ;;  %17091 = vst [vmem:[#allocation46_spill] sm:$0xff] %v15816_v3  ;;  %v15819_v35 = vld [vmem:[#allocation5 + $0x20] sm:$0xff] }
 0x161   :  { %v1163_v11 = vrot.slane %v1162_v2, 4  ;;  %v996_v12 = vadd.f32 %v995_v4, %v994_v44  ;;  %v1038_v21 = vadd.f32 %v1037_v34, %v1036_v23  ;;  %v1350_v56 = vsel %vm1337_vm1, %v664_v13, %v1349_v59  ;;  %17092 = vst [vmem:[#allocation47_spill] sm:$0xff] %v15819_v35  ;;  %v15821_v13 = vld [vmem:[#allocation5 + $0x38] sm:$0xff] }
 0x162   :  { %v1205_v10 = vrot.slane %v1204_v58, 4  ;;  %v958_v28 = vadd.f32 %v957_v62, %v956_v6  ;;  %v1080_v7 = vadd.f32 %v1079_v0, %v1078_v15  ;;  %v1122_v29 = vadd.f32 %v1121_v1, %v1120_v57  ;;  %17093 = vst [vmem:[#allocation48_spill] sm:$0xff] %v15821_v13 }
 0x163   :  { %v1164_v55 = vadd.f32 %v1163_v11, %v1162_v2  ;;  %v997_v43 = vrot.slane %v996_v12, 2  ;;  %v1039_v45 = vrot.slane %v1038_v21, 2  ;;  %v1351_v6 = vsel %vm1339_vm2, %v706_v20, %v1350_v56  ;;  %v15826_v11 = vld [vmem:[#allocation5 + $0x68] sm:$0xff] }
 0x164   :  { %v1206_v61 = vadd.f32 %v1205_v10, %v1204_v58  ;;  %v1081_v60 = vrot.slane %v1080_v7, 2  ;;  %v1123_v37 = vrot.slane %v1122_v29, 2  ;;  %v1352_v2 = vsel %vm1341_vm3, %v748_v27, %v1351_v6  ;;  %v15823_v58 = vld [vmem:[#allocation5 + $0x50] sm:$0xff]  ;;  %17095 = vst [vmem:[#allocation50_spill] sm:$0xff] %v15826_v11  ;;  %v15828_v27 = vld [vmem:[#allocation5 + $0x80] sm:$0xff]  ;;  %v15851_v6 = vld [vmem:[#allocation5 + $0x158] sm:$0xff] }
 0x165   :  { %v1165_v16 = vrot.slane %v1164_v55, 2  ;;  %v998_v48 = vadd.f32 %v997_v43, %v996_v12  ;;  %v1040_v44 = vadd.f32 %v1039_v45, %v1038_v21  ;;  %v1353_v22 = vsel %vm1343_vm4, %v790_v38, %v1352_v2  ;;  %17094 = vst [vmem:[#allocation49_spill] sm:$0xff] %v15823_v58  ;;  %17096 = vst [vmem:[#allocation51_spill] sm:$0xff] %v15828_v27  ;;  %v15830_v12 = vld [vmem:[#allocation5 + $0x98] sm:$0xff] }
 0x166   :  { %v1207_v23 = vrot.slane %v1206_v61, 2  ;;  %v1082_v15 = vadd.f32 %v1081_v60, %v1080_v7  ;;  %v1124_v57 = vadd.f32 %v1123_v37, %v1122_v29  ;;  %v1354_v1 = vsel %vm1345_vm5, %v832_v39, %v1353_v22  ;;  %17097 = vst [vmem:[#allocation52_spill] sm:$0xff] %v15830_v12  ;;  %v15832_v7 = vld [vmem:[#allocation5 + $0xb0] sm:$0xff]  ;;  %v15834_v29 = vld [vmem:[#allocation5 + $0xc8] sm:$0xff]  ;;  %v15842_v60 = vld [vmem:[#allocation5 + $0xf8] sm:$0xff] }
 0x167   :  { %v1166_v63 = vadd.f32 %v1165_v16, %v1164_v55  ;;  %v999_v4 = vrot.slane %v998_v48, 1  ;;  %v1041_v34 = vrot.slane %v1040_v44, 1  ;;  %17098 = vst [vmem:[#allocation53_spill] sm:$0xff] %v15832_v7  ;;  %17099 = vst [vmem:[#allocation54_spill] sm:$0xff] %v15834_v29  ;;  %v15836_v55 = vld [vmem:[#allocation5 + $0xe0] sm:$0xff]  ;;  %v1355_v39 = vsel %vm1347_vm6, %v15784_v47, %v1354_v1  ;;  %v15844_v37 = vld [vmem:[#allocation5 + $0x110] sm:$0xff] }
 0x168   :  { %v1208_v46 = vadd.f32 %v1207_v23, %v1206_v61  ;;  %v1083_v62 = vrot.slane %v1082_v15, 1  ;;  %v1125_v20 = vrot.slane %v1124_v57, 1  ;;  %17100 = vst [vmem:[#allocation55_spill] sm:$0xff] %v15836_v55  ;;  %v1391_v59 = vsel %vm1335_vm0, %v958_v28, %v916_v36  ;;  %17101 = vst [vmem:[#allocation56_spill] sm:$0xff] %v15842_v60  ;;  %v15846_v16 = vld [vmem:[#allocation5 + $0x128] sm:$0xff]  ;;  %v15849_v23 = vld [vmem:[#allocation5 + $0x140] sm:$0xff] }
 0x169   :  { %v1167_v0 = vrot.slane %v1166_v63, 1  ;;  %v1000_v21 = vadd.f32 %v999_v4, %v998_v48  ;;  %v1042_v10 = vadd.f32 %v1041_v34, %v1040_v44  ;;  %17102 = vst [vmem:[#allocation57_spill] sm:$0xff] %v15844_v37  ;;  %17103 = vst [vmem:[#allocation58_spill] sm:$0xff] %v15846_v16  ;;  %v378_v47 = vunpack.c.h.bf16 %v15816_v3  ;;  %v15857_v28 = vld [vmem:[#allocation5 + $0x188] sm:$0xff]  ;;  %v15861_v2 = vld [vmem:[#allocation5 + $0x1b8] sm:$0xff] }
 0x16a   :  { %v1209_v38 = vrot.slane %v1208_v46, 1  ;;  %v1084_v45 = vadd.f32 %v1083_v62, %v1082_v15  ;;  %v1126_v61 = vadd.f32 %v1125_v20, %v1124_v57  ;;  %17104 = vst [vmem:[#allocation59_spill] sm:$0xff] %v15849_v23  ;;  %17105 = vst [vmem:[#allocation60_spill] sm:$0xff] %v15851_v6  ;;  %v15853_v15 = vld [vmem:[#allocation5 + $0x170] sm:$0xff]  ;;  %v15859_v57 = vld [vmem:[#allocation5 + $0x1a0] sm:$0xff]  ;;  %v390_v4 = vunpack.c.h.bf16 %v15821_v13 }
 0x16b   :  { %v1168_v56 = vadd.f32 %v1167_v0, %v1166_v63  ;;  %v1392_v44 = vsel %vm1337_vm1, %v1000_v21, %v1391_v59  ;;  %17106 = vst [vmem:[#allocation61_spill] sm:$0xff] %v15853_v15  ;;  %v384_v63 = vunpack.c.h.bf16 %v15819_v35  ;;  %v396_v34 = vunpack.c.h.bf16 %v15823_v58  ;;  %v15867_v22 = vld [vmem:[#allocation5 + $0x1d0] sm:$0xff]  ;;  %v15869_v62 = vld [vmem:[#allocation5 + $0x1e8] sm:$0xff]  ;;  %v15871_v20 = vld [vmem:[#allocation5 + $0x200] sm:$0xff] }
 0x16c   :  { %v1210_v48 = vadd.f32 %v1209_v38, %v1208_v46  ;;  %v1393_v36 = vsel %vm1339_vm2, %v1042_v10, %v1392_v44  ;;  %v15873_v0 = vld [vmem:[#allocation5 + $0x218] sm:$0xff]  ;;  %v402_v1 = vunpack.c.h.bf16 %v15826_v11  ;;  %v408_v21 = vunpack.c.h.bf16 %v15828_v27  ;;  %v15879_v59 = vld [vmem:[#allocation5 + $0x230] sm:$0xff]  ;;  %v15881_v44 = vld [vmem:[#allocation5 + $0x248] sm:$0xff] }
 0x16d   :  { %v1394_v46 = vsel %vm1341_vm3, %v1084_v45, %v1393_v36  ;;  %17107 = vst [vmem:[#allocation62_spill] sm:$0xff] %v15873_v0  ;;  %v414_v10 = vunpack.c.h.bf16 %v15830_v12  ;;  %17108 = vst [vmem:[#allocation63_spill] sm:$0xff] %v15879_v59  ;;  %v15883_v45 = vld [vmem:[#allocation5 + $0x260] sm:$0xff]  ;;  %v15885_v36 = vld [vmem:[#allocation5 + $0x278] sm:$0xff]  ;;  %v420_v43 = vunpack.c.h.bf16 %v15832_v7  ;;  %v426_v58 = vunpack.c.h.bf16 %v15834_v29 }
 0x16e   :  { %v1395_v38 = vsel %vm1343_vm4, %v1126_v61, %v1394_v46  ;;  %17109 = vst [vmem:[#allocation64_spill] sm:$0xff] %v15881_v44  ;;  %17110 = vst [vmem:[#allocation65_spill] sm:$0xff] %v15883_v45  ;;  %v432_v11 = vunpack.c.h.bf16 %v15836_v55  ;;  %v15891_v13 = vld [vmem:[#allocation5 + $0x290] sm:$0xff]  ;;  %v15893_v12 = vld [vmem:[#allocation5 + $0x2a8] sm:$0xff]  ;;  %v438_v35 = vunpack.c.h.bf16 %v15842_v60  ;;  %v444_v3 = vunpack.c.h.bf16 %v15844_v37 }
 0x16f   :  { %17111 = vst [vmem:[#allocation66_spill] sm:$0xff] %v15885_v36  ;;  %v1396_v27 = vsel %vm1345_vm5, %v1168_v56, %v1395_v38  ;;  %17112 = vst [vmem:[#allocation67_spill] sm:$0xff] %v15891_v13  ;;  %v15895_v61 = vld [vmem:[#allocation5 + $0x2c0] sm:$0xff]  ;;  %v15897_v46 = vld [vmem:[#allocation5 + $0x2d8] sm:$0xff]  ;;  %v450_v7 = vunpack.c.h.bf16 %v15846_v16  ;;  %v456_v55 = vunpack.c.h.bf16 %v15849_v23  ;;  %v462_v56 = vunpack.c.h.bf16 %v15851_v6 }
 0x170   :  { %17113 = vst [vmem:[#allocation68_spill] sm:$0xff] %v15893_v12  ;;  %17114 = vst [vmem:[#allocation69_spill] sm:$0xff] %v15895_v61  ;;  %v1397_v29 = vsel %vm1347_vm6, %v1210_v48, %v1396_v27  ;;  %v468_v38 = vunpack.c.h.bf16 %v15853_v15  ;;  %v588_v52 = vadd.f32 %v384_v63, %v378_v47  ;;  %v630_v48 = vadd.f32 %v396_v34, %v390_v4 }
 0x171   :  { %17115 = vst [vmem:[#allocation70_spill] sm:$0xff] %v15897_v46  ;;  %v15906_v53 = vpack.c.bf16 %v1397_v29, %v1355_v39  ;;  %v672_v6 = vadd.f32 %v408_v21, %v402_v1  ;;  %v756_v23 = vadd.f32 %v432_v11, %v426_v58  ;;  %v798_v15 = vadd.f32 %v444_v3, %v438_v35  ;;  %v15924_v58 = vld [vmem:[#allocation5 + $0x2f0] sm:$0xff] }
 0x172   :  { %v840_v30 = vadd.f32 %v456_v55, %v450_v7  ;;  %v882_v29 = vadd.f32 %v468_v38, %v462_v56  ;;  %v589_v14 = vrot.slane %v588_v52, 4  ;;  %v631_v39 = vrot.slane %v630_v48, 4  ;;  %17117 = vst [vmem:[#allocation72_spill] sm:$0xff] %v15924_v58 }
 0x173   :  { %17116 = vst [vmem:[#allocation71_spill] sm:$0xff] %v15906_v53  ;;  %3522 = vmatprep.mubr.bf16.mxu0 %v15906_v53  ;;  %v714_v53 = vadd.f32 %v420_v43, %v414_v10  ;;  %v673_v5 = vrot.slane %v672_v6, 4  ;;  %v757_v54 = vrot.slane %v756_v23, 4  ;;  %v799_v60 = vrot.slane %v798_v15, 4 }
 0x174   :  { %v841_v51 = vrot.slane %v840_v30, 4  ;;  %v883_v37 = vrot.slane %v882_v29, 4  ;;  %v590_v50 = vadd.f32 %v589_v14, %v588_v52  ;;  %v632_v16 = vadd.f32 %v631_v39, %v630_v48 }
 0x175   :  { %v715_v49 = vrot.slane %v714_v53, 4  ;;  %v674_v42 = vadd.f32 %v673_v5, %v672_v6  ;;  %v758_v47 = vadd.f32 %v757_v54, %v756_v23  ;;  %v800_v63 = vadd.f32 %v799_v60, %v798_v15 }
 0x176   :  { %v842_v4 = vadd.f32 %v841_v51, %v840_v30  ;;  %v884_v43 = vadd.f32 %v883_v37, %v882_v29  ;;  %v591_v3 = vrot.slane %v590_v50, 2  ;;  %v633_v35 = vrot.slane %v632_v16, 2 }
 0x177   :  { %v716_v27 = vadd.f32 %v715_v49, %v714_v53  ;;  %v675_v11 = vrot.slane %v674_v42, 2  ;;  %v759_v55 = vrot.slane %v758_v47, 2  ;;  %v801_v34 = vrot.slane %v800_v63, 2 }
 0x178   :  { %v843_v1 = vrot.slane %v842_v4, 2  ;;  %v885_v21 = vrot.slane %v884_v43, 2  ;;  %v592_v10 = vadd.f32 %v591_v3, %v590_v50  ;;  %v634_v56 = vadd.f32 %v633_v35, %v632_v16 }
 0x179   :  { %v717_v7 = vrot.slane %v716_v27, 2  ;;  %v676_v52 = vadd.f32 %v675_v11, %v674_v42  ;;  %v760_v5 = vadd.f32 %v759_v55, %v758_v47  ;;  %v802_v49 = vadd.f32 %v801_v34, %v800_v63 }
 0x17a   :  { %v844_v53 = vadd.f32 %v843_v1, %v842_v4  ;;  %v15926_v54 = vadd.f32 %v885_v21, %v884_v43  ;;  %v593_v51 = vrot.slane %v592_v10, 1  ;;  %v635_v30 = vrot.slane %v634_v56, 1 }
 0x17b   :  { %v718_v14 = vadd.f32 %v717_v7, %v716_v27  ;;  %v677_v60 = vrot.slane %v676_v52, 1  ;;  %v564_v23 = vunpack.c.h.bf16 %v15924_v58  ;;  %v761_v6 = vrot.slane %v760_v5, 1 }
 0x17c   :  { %v803_v15 = vrot.slane %v802_v49, 1  ;;  %v845_v38 = vrot.slane %v844_v53, 1  ;;  %v15929_v48 = vadd.f32 %v593_v51, %v592_v10  ;;  %v15931_v50 = vadd.f32 %v635_v30, %v634_v56 }
 0x17d   :  { %v719_v37 = vrot.slane %v718_v14, 1  ;;  %v15933_v42 = vadd.f32 %v677_v60, %v676_v52  ;;  %v887_v16 = vrot.slane %v15926_v54, 1  ;;  %v15938_v29 = vadd.f32 %v761_v6, %v760_v5 }
 0x17e   :  { %v15940_v39 = vadd.f32 %v803_v15, %v802_v49  ;;  %v15942_v47 = vadd.f32 %v845_v38, %v844_v53  ;;  %v17118_v63 = vunpack.c.h.bf16 %v15857_v28  ;;  %v17119_v4 = vunpack.c.h.bf16 %v15859_v57 }
 0x17f   :  { %v15936_v27 = vadd.f32 %v719_v37, %v718_v14  ;;  %v17120_v3 = vunpack.c.h.bf16 %v15861_v2  ;;  %v17121_v35 = vunpack.c.h.bf16 %v15867_v22  ;;  %v17122_v7 = vunpack.c.h.bf16 %v15869_v62 }
 0x180   :  { %v924_v43 = vadd.f32 %v17119_v4, %v17118_v63  ;;  %v17123_v55 = vunpack.c.h.bf16 %v15871_v20  ;;  %v17124_v1 = vunpack.c.h.bf16 %v15873_v0  ;;  %v17125_v21 = vunpack.c.h.bf16 %v15879_v59 }
 0x181   :  { %v966_v11 = vadd.f32 %v17121_v35, %v17120_v3  ;;  %v17126_v56 = vunpack.c.h.bf16 %v15881_v44  ;;  %v17127_v52 = vunpack.c.h.bf16 %v15883_v45  ;;  %v17128_v5 = vunpack.c.h.bf16 %v15885_v36 }
 0x182   :  { %v1008_v34 = vadd.f32 %v17123_v55, %v17122_v7  ;;  %v1050_v10 = vadd.f32 %v17125_v21, %v17124_v1  ;;  %v17129_v49 = vunpack.c.h.bf16 %v15891_v13  ;;  %v17130_v51 = vunpack.c.h.bf16 %v15893_v12 }
 0x183   :  { %v1092_v14 = vadd.f32 %v17127_v52, %v17126_v56  ;;  %v17131_v30 = vunpack.c.h.bf16 %v15895_v61  ;;  %v17132_v37 = vunpack.c.h.bf16 %v15897_v46  ;;  %v925_v15 = vrot.slane %v924_v43, 4 }
 0x184   :  { %v1134_v53 = vadd.f32 %v17129_v49, %v17128_v5  ;;  %v967_v38 = vrot.slane %v966_v11, 4  ;;  %v1009_v63 = vrot.slane %v1008_v34, 4  ;;  %v1051_v4 = vrot.slane %v1050_v10, 4 }
 0x185   :  { %v1176_v60 = vadd.f32 %v17131_v30, %v17130_v51  ;;  %v1218_v6 = vadd.f32 %v564_v23, %v17132_v37  ;;  %v1093_v3 = vrot.slane %v1092_v14, 4  ;;  %v926_v1 = vadd.f32 %v925_v15, %v924_v43 }
 0x186   :  { %v1135_v35 = vrot.slane %v1134_v53, 4  ;;  %v968_v21 = vadd.f32 %v967_v38, %v966_v11  ;;  %v1010_v56 = vadd.f32 %v1009_v63, %v1008_v34  ;;  %v1052_v52 = vadd.f32 %v1051_v4, %v1050_v10 }
 0x187   :  { %v1177_v7 = vrot.slane %v1176_v60, 4  ;;  %v1219_v55 = vrot.slane %v1218_v6, 4  ;;  %v1094_v5 = vadd.f32 %v1093_v3, %v1092_v14  ;;  %v927_v51 = vrot.slane %v926_v1, 2 }
 0x188   :  { %v1136_v49 = vadd.f32 %v1135_v35, %v1134_v53  ;;  %v969_v30 = vrot.slane %v968_v21, 2  ;;  %v1011_v46 = vrot.slane %v1010_v56, 2  ;;  %v1053_v23 = vrot.slane %v1052_v52, 2 }
 0x189   :  { %v1178_v58 = vadd.f32 %v1177_v7, %v1176_v60  ;;  %v1220_v61 = vadd.f32 %v1219_v55, %v1218_v6  ;;  %v1095_v37 = vrot.slane %v1094_v5, 2  ;;  %v928_v45 = vadd.f32 %v927_v51, %v926_v1 }
 0x18a   :  { %v1137_v12 = vrot.slane %v1136_v49, 2  ;;  %v970_v44 = vadd.f32 %v969_v30, %v968_v21  ;;  %v1012_v59 = vadd.f32 %v1011_v46, %v1010_v56  ;;  %v1054_v0 = vadd.f32 %v1053_v23, %v1052_v52  ;;  %v14955_v23 = vld [vmem:[#allocation5 + $0xc0] sm:$0xff] }
 0x18b   :  { %v1179_v13 = vrot.slane %v1178_v58, 2  ;;  %v1221_v36 = vrot.slane %v1220_v61, 2  ;;  %v1096_v43 = vadd.f32 %v1095_v37, %v1094_v5  ;;  %v929_v14 = vrot.slane %v928_v45, 1 }
 0x18c   :  { %v1138_v11 = vadd.f32 %v1137_v12, %v1136_v49  ;;  %v971_v53 = vrot.slane %v970_v44, 1  ;;  %v1013_v60 = vrot.slane %v1012_v59, 1  ;;  %v1055_v6 = vrot.slane %v1054_v0, 1  ;;  %v14953_v49 = vld [vmem:[#allocation5 + $0x90] sm:$0xff] }
 0x18d   :  { %v1180_v34 = vadd.f32 %v1179_v13, %v1178_v58  ;;  %v1222_v10 = vadd.f32 %v1221_v36, %v1220_v61  ;;  %v1097_v15 = vrot.slane %v1096_v43, 1  ;;  %v930_v3 = vadd.f32 %v929_v14, %v928_v45  ;;  %v14950_v61 = vld [vmem:[#allocation5 + $0x48] sm:$0xff] }
 0x18e   :  { %v1139_v38 = vrot.slane %v1138_v11, 1  ;;  %v972_v35 = vadd.f32 %v971_v53, %v970_v44  ;;  %v1014_v7 = vadd.f32 %v1013_v60, %v1012_v59  ;;  %v1056_v55 = vadd.f32 %v1055_v6, %v1054_v0  ;;  %v14951_v0 = vld [vmem:[#allocation5 + $0x60] sm:$0xff] }
 0x18f   :  { %v1181_v63 = vrot.slane %v1180_v34, 1  ;;  %v1223_v4 = vrot.slane %v1222_v10, 1  ;;  %v888_v1 = vadd.f32 %v887_v16, %v15926_v54  ;;  %v1098_v46 = vadd.f32 %v1097_v15, %v1096_v43  ;;  %v14952_v54 = vld [vmem:[#allocation5 + $0x78] sm:$0xff]  ;;  %v14957_v60 = vld [vmem:[#allocation5 + $0x120] sm:$0xff] }
 0x190   :  { %v1140_v21 = vadd.f32 %v1139_v38, %v1138_v11  ;;  %v1363_v13 = vsel %vm1335_vm0, %v15931_v50, %v15929_v48  ;;  %v1405_v36 = vsel %vm1335_vm0, %v972_v35, %v930_v3  ;;  %v393_v58 = vunpack.c.l.bf16 %v14950_v61  ;;  %v14954_v50 = vld [vmem:[#allocation5 + $0xa8] sm:$0xff]  ;;  %v14956_v43 = vld [vmem:[#allocation5 + $0xd8] sm:$0xff] }
 0x191   :  { %v1182_v56 = vadd.f32 %v1181_v63, %v1180_v34  ;;  %v1224_v12 = vadd.f32 %v1223_v4, %v1222_v10  ;;  %v1364_v45 = vsel %vm1337_vm1, %v15933_v42, %v1363_v13  ;;  %v1406_v59 = vsel %vm1337_vm1, %v1014_v7, %v1405_v36  ;;  %v17137_v13 = vld [vmem:[#allocation42_spill] sm:$0xff]  ;;  %v17138_v61 = vld [vmem:[#allocation43_spill] sm:$0xff] }
 0x192   :  { %v399_v44 = vunpack.c.l.bf16 %v14951_v0  ;;  %v405_v16 = vunpack.c.l.bf16 %v14952_v54  ;;  %v1365_v52 = vsel %vm1339_vm2, %v15936_v27, %v1364_v45  ;;  %v1407_v5 = vsel %vm1339_vm2, %v1056_v55, %v1406_v59  ;;  %v17139_v59 = vld [vmem:[#allocation44_spill] sm:$0xff]  ;;  %v17140_v54 = vld [vmem:[#allocation45_spill] sm:$0xff] }
 0x193   :  { %v411_v48 = vunpack.c.l.bf16 %v14953_v49  ;;  %v417_v51 = vunpack.c.l.bf16 %v14954_v50  ;;  %v1366_v30 = vsel %vm1341_vm3, %v15938_v29, %v1365_v52  ;;  %v1408_v42 = vsel %vm1341_vm3, %v1098_v46, %v1407_v5  ;;  %v17135_v46 = vld [vmem:[#allocation40_spill] sm:$0xff]  ;;  %v17143_v50 = vld [vmem:[#allocation37_spill] sm:$0xff] }
 0x194   :  { %v423_v37 = vunpack.c.l.bf16 %v14955_v23  ;;  %v429_v11 = vunpack.c.l.bf16 %v14956_v43  ;;  %v1367_v34 = vsel %vm1343_vm4, %v15940_v39, %v1366_v30  ;;  %v1409_v27 = vsel %vm1343_vm4, %v1140_v21, %v1408_v42  ;;  %v17141_v5 = vld [vmem:[#allocation36_spill] sm:$0xff]  ;;  %v17145_v23 = vld [vmem:[#allocation38_spill] sm:$0xff] }
 0x195   :  { %v435_v10 = vunpack.c.l.bf16 %v15685_v8  ;;  %v441_v14 = vunpack.c.l.bf16 %v15687_v9  ;;  %v1368_v53 = vsel %vm1345_vm5, %v15942_v47, %v1367_v34  ;;  %v1410_v29 = vsel %vm1345_vm5, %v1182_v56, %v1409_v27  ;;  %v17136_v56 = vld [vmem:[#allocation41_spill] sm:$0xff] }
 0x196   :  { %v447_v6 = vunpack.c.l.bf16 %v14957_v60  ;;  %v453_v15 = vunpack.c.l.bf16 %v15694_v17  ;;  %v1369_v38 = vsel %vm1347_vm6, %v888_v1, %v1368_v53  ;;  %v1411_v63 = vsel %vm1347_vm6, %v1224_v12, %v1410_v29 }
 0x197   :  { %v459_v39 = vunpack.c.l.bf16 %v15696_v18  ;;  %v465_v4 = vunpack.c.l.bf16 %v15698_v19  ;;  %v16001_v8 = vpack.c.bf16 %v1411_v63, %v1369_v38  ;;  %v471_v9 = vunpack.c.l.bf16 %v15703_v24  ;;  %v17134_v19 = vld [vmem:[#allocation39_spill] sm:$0xff] }
 0x198   :  { %v477_v47 = vunpack.c.l.bf16 %v15705_v25  ;;  %v483_v3 = vunpack.c.l.bf16 %v15707_v26  ;;  %v489_v35 = vunpack.c.l.bf16 %v15712_v31  ;;  %v495_v17 = vunpack.c.l.bf16 %v15714_v32 }
 0x199   :  { %17133 = vst [vmem:[#allocation73_spill] sm:$0xff] %v16001_v8  ;;  %v501_v7 = vunpack.c.l.bf16 %v15716_v33  ;;  %3694 = vmatprep.mubr.bf16.mxu1 %v16001_v8  ;;  %v17142_v49 = vunpack.c.l.bf16 %v17141_v5  ;;  %v17144_v30 = vunpack.c.l.bf16 %v17143_v50  ;;  %v17146_v43 = vunpack.c.l.bf16 %v17145_v23 }
 0x19a   :  { %v651_v27 = vadd.f32 %v405_v16, %v399_v44  ;;  %v693_v53 = vadd.f32 %v417_v51, %v411_v48  ;;  %v735_v29 = vadd.f32 %v429_v11, %v423_v37  ;;  %v777_v60 = vadd.f32 %v441_v14, %v435_v10 }
 0x19b   :  { %v567_v42 = vadd.f32 %v17144_v30, %v17142_v49  ;;  %v609_v34 = vadd.f32 %v393_v58, %v17146_v43  ;;  %v819_v38 = vadd.f32 %v453_v15, %v447_v6  ;;  %v861_v63 = vadd.f32 %v465_v4, %v459_v39 }
 0x19c   :  { %v652_v12 = vrot.slane %v651_v27, 4  ;;  %v694_v0 = vrot.slane %v693_v53, 4  ;;  %v736_v21 = vrot.slane %v735_v29, 4  ;;  %v778_v52 = vrot.slane %v777_v60, 4 }
 0x19d   :  { %v568_v36 = vrot.slane %v567_v42, 4  ;;  %v610_v45 = vrot.slane %v609_v34, 4  ;;  %v820_v1 = vrot.slane %v819_v38, 4  ;;  %v862_v5 = vrot.slane %v861_v63, 4 }
 0x19e   :  { %v653_v49 = vadd.f32 %v652_v12, %v651_v27  ;;  %v695_v30 = vadd.f32 %v694_v0, %v693_v53  ;;  %v737_v23 = vadd.f32 %v736_v21, %v735_v29  ;;  %v779_v58 = vadd.f32 %v778_v52, %v777_v60 }
 0x19f   :  { %v569_v18 = vadd.f32 %v568_v36, %v567_v42  ;;  %v611_v50 = vadd.f32 %v610_v45, %v609_v34  ;;  %v821_v44 = vadd.f32 %v820_v1, %v819_v38  ;;  %v863_v16 = vadd.f32 %v862_v5, %v861_v63  ;;  %v14958_v34 = vld [vmem:[#allocation5 + $0x2e8] sm:$0xff] }
 0x1a0   :  { %v654_v37 = vrot.slane %v653_v49, 2  ;;  %v696_v11 = vrot.slane %v695_v30, 2  ;;  %v738_v10 = vrot.slane %v737_v23, 2  ;;  %v780_v14 = vrot.slane %v779_v58, 2 }
 0x1a1   :  { %v570_v48 = vrot.slane %v569_v18, 2  ;;  %v612_v51 = vrot.slane %v611_v50, 2  ;;  %v822_v6 = vrot.slane %v821_v44, 2  ;;  %v864_v15 = vrot.slane %v863_v16, 2 }
 0x1a2   :  { %v655_v43 = vadd.f32 %v654_v37, %v653_v49  ;;  %v697_v55 = vadd.f32 %v696_v11, %v695_v30  ;;  %v739_v36 = vadd.f32 %v738_v10, %v737_v23  ;;  %v781_v45 = vadd.f32 %v780_v14, %v779_v58 }
 0x1a3   :  { %v571_v39 = vadd.f32 %v570_v48, %v569_v18  ;;  %v613_v4 = vadd.f32 %v612_v51, %v611_v50  ;;  %v823_v12 = vadd.f32 %v822_v6, %v821_v44  ;;  %v16025_v0 = vadd.f32 %v864_v15, %v863_v16 }
 0x1a4   :  { %v656_v52 = vrot.slane %v655_v43, 1  ;;  %v698_v42 = vrot.slane %v697_v55, 1  ;;  %v561_v27 = vunpack.c.l.bf16 %v14958_v34  ;;  %v740_v53 = vrot.slane %v739_v36, 1 }
 0x1a5   :  { %v572_v21 = vrot.slane %v571_v39, 1  ;;  %v614_v1 = vrot.slane %v613_v4, 1  ;;  %v782_v29 = vrot.slane %v781_v45, 1  ;;  %v824_v60 = vrot.slane %v823_v12, 1 }
 0x1a6   :  { %v16031_v63 = vadd.f32 %v656_v52, %v655_v43  ;;  %v866_v5 = vrot.slane %v16025_v0, 1  ;;  %v16034_v50 = vadd.f32 %v698_v42, %v697_v55  ;;  %v16036_v49 = vadd.f32 %v740_v53, %v739_v36 }
 0x1a7   :  { %v16027_v38 = vadd.f32 %v572_v21, %v571_v39  ;;  %v16029_v18 = vadd.f32 %v614_v1, %v613_v4  ;;  %v16038_v30 = vadd.f32 %v782_v29, %v781_v45  ;;  %v16040_v23 = vadd.f32 %v824_v60, %v823_v12 }
 0x1a8   :  { %v903_v58 = vadd.f32 %v477_v47, %v471_v9  ;;  %v945_v44 = vadd.f32 %v489_v35, %v483_v3  ;;  %v987_v55 = vadd.f32 %v501_v7, %v495_v17  ;;  %v17147_v16 = vunpack.c.l.bf16 %v15721_v40 }
 0x1a9   :  { %v17148_v48 = vunpack.c.l.bf16 %v15723_v41  ;;  %v17149_v24 = vunpack.c.l.bf16 %v17134_v19  ;;  %v17150_v25 = vunpack.c.l.bf16 %v17135_v46  ;;  %v17151_v26 = vunpack.c.l.bf16 %v17136_v56 }
 0x1aa   :  { %v17152_v31 = vunpack.c.l.bf16 %v17137_v13  ;;  %v17153_v32 = vunpack.c.l.bf16 %v17138_v61  ;;  %v17154_v33 = vunpack.c.l.bf16 %v17139_v59  ;;  %v17155_v40 = vunpack.c.l.bf16 %v17140_v54 }
 0x1ab   :  { %v1029_v51 = vadd.f32 %v17148_v48, %v17147_v16  ;;  %v1071_v9 = vadd.f32 %v17150_v25, %v17149_v24  ;;  %v904_v41 = vrot.slane %v903_v58, 4  ;;  %v946_v17 = vrot.slane %v945_v44, 4 }
 0x1ac   :  { %v1113_v47 = vadd.f32 %v17152_v31, %v17151_v26  ;;  %v1155_v3 = vadd.f32 %v17154_v33, %v17153_v32  ;;  %v1197_v35 = vadd.f32 %v561_v27, %v17155_v40  ;;  %v988_v7 = vrot.slane %v987_v55, 4 }
 0x1ad   :  { %v1030_v19 = vrot.slane %v1029_v51, 4  ;;  %v1072_v37 = vrot.slane %v1071_v9, 4  ;;  %v905_v56 = vadd.f32 %v904_v41, %v903_v58  ;;  %v947_v14 = vadd.f32 %v946_v17, %v945_v44 }
 0x1ae   :  { %v1114_v46 = vrot.slane %v1113_v47, 4  ;;  %v1156_v11 = vrot.slane %v1155_v3, 4  ;;  %v1198_v10 = vrot.slane %v1197_v35, 4  ;;  %v989_v13 = vadd.f32 %v988_v7, %v987_v55 }
 0x1af   :  { %v1031_v6 = vadd.f32 %v1030_v19, %v1029_v51  ;;  %v1073_v15 = vadd.f32 %v1072_v37, %v1071_v9  ;;  %v906_v4 = vrot.slane %v905_v56, 2  ;;  %v948_v43 = vrot.slane %v947_v14, 2  ;;  %v17156_v19 = vld [vmem:[#allocation46_spill] sm:$0xff] }
 0x1b0   :  { %v1115_v61 = vadd.f32 %v1114_v46, %v1113_v47  ;;  %v1157_v39 = vadd.f32 %v1156_v11, %v1155_v3  ;;  %v1199_v59 = vadd.f32 %v1198_v10, %v1197_v35  ;;  %v990_v54 = vrot.slane %v989_v13, 2  ;;  %v17157_v10 = vld [vmem:[#allocation47_spill] sm:$0xff] }
 0x1b1   :  { %v1032_v36 = vrot.slane %v1031_v6, 2  ;;  %v1074_v45 = vrot.slane %v1073_v15, 2  ;;  %v907_v52 = vadd.f32 %v906_v4, %v905_v56  ;;  %v949_v42 = vadd.f32 %v948_v43, %v947_v14  ;;  %v17162_v4 = vld [vmem:[#allocation52_spill] sm:$0xff] }
 0x1b2   :  { %v1116_v12 = vrot.slane %v1115_v61, 2  ;;  %v1158_v21 = vrot.slane %v1157_v39, 2  ;;  %v1200_v1 = vrot.slane %v1199_v59, 2  ;;  %v991_v34 = vadd.f32 %v990_v54, %v989_v13 }
 0x1b3   :  { %v1033_v27 = vadd.f32 %v1032_v36, %v1031_v6  ;;  %v1075_v53 = vadd.f32 %v1074_v45, %v1073_v15  ;;  %v908_v44 = vrot.slane %v907_v52, 1  ;;  %v950_v55 = vrot.slane %v949_v42, 1  ;;  %v17159_v6 = vld [vmem:[#allocation49_spill] sm:$0xff] }
 0x1b4   :  { %v1117_v29 = vadd.f32 %v1116_v12, %v1115_v61  ;;  %v1159_v60 = vadd.f32 %v1158_v21, %v1157_v39  ;;  %v1201_v58 = vadd.f32 %v1200_v1, %v1199_v59  ;;  %v992_v16 = vrot.slane %v991_v34, 1  ;;  %v17161_v39 = vld [vmem:[#allocation51_spill] sm:$0xff]  ;;  %v17163_v36 = vld [vmem:[#allocation53_spill] sm:$0xff]  ;;  %v17164_v12 = vld [vmem:[#allocation54_spill] sm:$0xff] }
 0x1b5   :  { %v1034_v48 = vrot.slane %v1033_v27, 1  ;;  %v1076_v51 = vrot.slane %v1075_v53, 1  ;;  %v909_v26 = vadd.f32 %v908_v44, %v907_v52  ;;  %v951_v31 = vadd.f32 %v950_v55, %v949_v42  ;;  %v13279_v1 = vld [vmem:[#allocation9 + $0x300] ss:$24 sps:$4 sm:$0xff]   ;;  %v17165_v42 = vld [vmem:[#allocation55_spill] sm:$0xff] }
 0x1b6   :  { %v1118_v24 = vrot.slane %v1117_v29, 1  ;;  %v1160_v25 = vrot.slane %v1159_v60, 1  ;;  %v1202_v9 = vrot.slane %v1201_v58, 1  ;;  %v993_v47 = vadd.f32 %v992_v16, %v991_v34  ;;  %v17168_v55 = vld [vmem:[#allocation58_spill] sm:$0xff] }
 0x1b7   :  { %v1035_v32 = vadd.f32 %v1034_v48, %v1033_v27  ;;  %v867_v33 = vadd.f32 %v866_v5, %v16025_v0  ;;  %v1077_v3 = vadd.f32 %v1076_v51, %v1075_v53  ;;  %v1336_v17 = vsel %vm1335_vm0, %v16029_v18, %v16027_v38  ;;  %v17158_v0 = vld [vmem:[#allocation48_spill] sm:$0xff]  ;;  %v17160_v18 = vld [vmem:[#allocation50_spill] sm:$0xff]  ;;  %v17170_v51 = vld [vmem:[#allocation59_spill] sm:$0xff] }
 0x1b8   :  { %v1119_v40 = vadd.f32 %v1118_v24, %v1117_v29  ;;  %v1161_v35 = vadd.f32 %v1160_v25, %v1159_v60  ;;  %v1203_v41 = vadd.f32 %v1202_v9, %v1201_v58  ;;  %v1384_v7 = vsel %vm1335_vm0, %v951_v31, %v909_v26  ;;  %v17166_v27 = vld [vmem:[#allocation56_spill] sm:$0xff]  ;;  %v17167_v58 = vld [vmem:[#allocation57_spill] sm:$0xff] }
 0x1b9   :  { %v377_v37 = vunpack.c.l.bf16 %v17156_v19  ;;  %v1338_v46 = vsel %vm1337_vm1, %v16031_v63, %v1336_v17  ;;  %v1385_v11 = vsel %vm1337_vm1, %v993_v47, %v1384_v7  ;;  %v383_v56 = vunpack.c.l.bf16 %v17157_v10  ;;  %v13287_v29 = vld [vmem:[#allocation9 + $0x334] ss:$24 sps:$4 sm:$0xff]   ;;  %v17172_v9 = vld [vmem:[#allocation61_spill] sm:$0xff] }
 0x1ba   :  { %v389_v5 = vunpack.c.l.bf16 %v17158_v0  ;;  %v1340_v14 = vsel %vm1339_vm2, %v16034_v50, %v1338_v46  ;;  %v1386_v13 = vsel %vm1339_vm2, %v1035_v32, %v1385_v11  ;;  %v395_v38 = vunpack.c.l.bf16 %v17159_v6  ;;  %v17174_v7 = vld [vmem:[#allocation63_spill] sm:$0xff]  ;;  %v13293_v46 = vld [vmem:[#allocation9 + $0x364] ss:$24 sps:$4 sm:$0xff]   ;;  %v17175_v11 = vld [vmem:[#allocation64_spill] sm:$0xff] }
 0x1bb   :  { %v401_v15 = vunpack.c.l.bf16 %v17160_v18  ;;  %v1342_v61 = vsel %vm1341_vm3, %v16036_v49, %v1340_v14  ;;  %v1387_v63 = vsel %vm1341_vm3, %v1077_v3, %v1386_v13  ;;  %v407_v59 = vunpack.c.l.bf16 %v17161_v39  ;;  %v13285_v3 = vld [vmem:[#allocation9 + $0x330] ss:$24 sps:$4 sm:$0xff]   ;;  %v17176_v0 = vld [vmem:[#allocation65_spill] sm:$0xff] }
 0x1bc   :  { %v413_v43 = vunpack.c.l.bf16 %v17162_v4  ;;  %v1344_v54 = vsel %vm1343_vm4, %v16038_v30, %v1342_v61  ;;  %v1388_v50 = vsel %vm1343_vm4, %v1119_v40, %v1387_v63  ;;  %v419_v45 = vunpack.c.l.bf16 %v17163_v36  ;;  %v17177_v13 = vld [vmem:[#allocation66_spill] sm:$0xff]  ;;  %v17178_v18 = vld [vmem:[#allocation67_spill] sm:$0xff]  ;;  %v17179_v63 = vld [vmem:[#allocation68_spill] sm:$0xff] }
 0x1bd   :  { %v425_v21 = vunpack.c.l.bf16 %v17164_v12  ;;  %v1346_v52 = vsel %vm1345_vm5, %v16040_v23, %v1344_v54  ;;  %v1389_v49 = vsel %vm1345_vm5, %v1161_v35, %v1388_v50  ;;  %v431_v34 = vunpack.c.l.bf16 %v17165_v42  ;;  %v17171_v23 = vld [vmem:[#allocation60_spill] sm:$0xff]  ;;  %v17180_v4 = vld [vmem:[#allocation69_spill] sm:$0xff]  ;;  %v17181_v50 = vld [vmem:[#allocation70_spill] sm:$0xff] }
 0x1be   :  { %v437_v53 = vunpack.c.l.bf16 %v17166_v27  ;;  %v1348_v60 = vsel %vm1347_vm6, %v867_v33, %v1346_v52  ;;  %v1390_v30 = vsel %vm1347_vm6, %v1203_v41, %v1389_v49  ;;  %v443_v44 = vunpack.c.l.bf16 %v17167_v58  ;;  %v17173_v41 = vld [vmem:[#allocation62_spill] sm:$0xff] }
 0x1bf   :  { %v449_v16 = vunpack.c.l.bf16 %v17168_v55  ;;  %v16107_v48 = vpack.c.bf16 %v1390_v30, %v1348_v60  ;;  %v455_v24 = vunpack.c.l.bf16 %v17170_v51  ;;  %v461_v25 = vunpack.c.l.bf16 %v17171_v23  ;;  %v13291_v27 = vld [vmem:[#allocation9 + $0x360] ss:$24 sps:$4 sm:$0xff]   ;;  %v13299_v51 = vld [vmem:[#allocation9 + $0x394] ss:$24 sps:$4 sm:$0xff]  }
 0x1c0   :  { %v467_v26 = vunpack.c.l.bf16 %v17172_v9  ;;  %v473_v31 = vunpack.c.l.bf16 %v15857_v28  ;;  %v479_v47 = vunpack.c.l.bf16 %v15859_v57  ;;  %v485_v32 = vunpack.c.l.bf16 %v15861_v2 }
 0x1c1   :  { %17169 = vst [vmem:[#allocation39_spill] sm:$0xff] %v16107_v48  ;;  %v491_v33 = vunpack.c.l.bf16 %v15867_v22  ;;  %3523 = vmatmul.mubr.bf16.vlgmr.msra.gmra.mrb[0].mxu0 %v16107_v48  ;;  %v497_v40 = vunpack.c.l.bf16 %v15869_v62  ;;  %v503_v35 = vunpack.c.l.bf16 %v15871_v20  ;;  %v509_v17 = vunpack.c.l.bf16 %v17173_v41 }
 0x1c2   :  { %v515_v19 = vunpack.c.l.bf16 %v17174_v7  ;;  %3534 = vmatpush1.bf16.msra.mxu0 %v13279_v1  ;;  %v521_v10 = vunpack.c.l.bf16 %v17175_v11  ;;  %v527_v14 = vunpack.c.l.bf16 %v17176_v0  ;;  %3565 = vmatprep.mubr.bf16.mxu0 %v16001_v8  ;;  %v581_v12 = vadd.f32 %v383_v56, %v377_v37  ;;  %v13315_v7 = vld [vmem:[#allocation9 + $0x420] ss:$24 sps:$4 sm:$0xff]  }
 0x1c3   :  { %3535 = vmatprep.subr.bf16.mxu0 %v13287_v29  ;;  %v623_v52 = vadd.f32 %v395_v38, %v389_v5  ;;  %v665_v1 = vadd.f32 %v407_v59, %v401_v15  ;;  %v707_v49 = vadd.f32 %v419_v45, %v413_v43  ;;  %v749_v42 = vadd.f32 %v431_v34, %v425_v21  ;;  %v13297_v59 = vld [vmem:[#allocation9 + $0x390] ss:$24 sps:$4 sm:$0xff]  }
 0x1c4   :  { %v582_v60 = vrot.slane %v581_v12, 4  ;;  %v791_v30 = vadd.f32 %v443_v44, %v437_v53  ;;  %v833_v58 = vadd.f32 %v455_v24, %v449_v16  ;;  %v875_v55 = vadd.f32 %v467_v26, %v461_v25  ;;  %v13305_v53 = vld [vmem:[#allocation9 + $0x3c4] ss:$24 sps:$4 sm:$0xff]  }
 0x1c5   :  { %v624_v23 = vrot.slane %v623_v52, 4  ;;  %v666_v9 = vrot.slane %v665_v1, 4  ;;  %v708_v61 = vrot.slane %v707_v49, 4  ;;  %v750_v39 = vrot.slane %v749_v42, 4 }
 0x1c6   :  { %3536 = vmatpush1.bf16.msra.mxu0 %v13285_v3  ;;  %v583_v54 = vadd.f32 %v582_v60, %v581_v12  ;;  %v792_v6 = vrot.slane %v791_v30, 4  ;;  %v834_v36 = vrot.slane %v833_v58, 4  ;;  %v876_v37 = vrot.slane %v875_v55, 4  ;;  %v13311_v60 = vld [vmem:[#allocation9 + $0x3f4] ss:$24 sps:$4 sm:$0xff]  }
 0x1c7   :  { %3537 = vmatprep.subr.bf16.mxu0 %v13293_v46  ;;  %v625_v56 = vadd.f32 %v624_v23, %v623_v52  ;;  %v667_v5 = vadd.f32 %v666_v9, %v665_v1  ;;  %v709_v38 = vadd.f32 %v708_v61, %v707_v49  ;;  %v751_v15 = vadd.f32 %v750_v39, %v749_v42  ;;  %v13303_v1 = vld [vmem:[#allocation9 + $0x3c0] ss:$24 sps:$4 sm:$0xff]  }
 0x1c8   :  { %v584_v43 = vrot.slane %v583_v54, 2  ;;  %v793_v45 = vadd.f32 %v792_v6, %v791_v30  ;;  %v835_v21 = vadd.f32 %v834_v36, %v833_v58  ;;  %v877_v34 = vadd.f32 %v876_v37, %v875_v55 }
 0x1c9   :  { %v626_v29 = vrot.slane %v625_v56, 2  ;;  %v668_v44 = vrot.slane %v667_v5, 2  ;;  %v710_v16 = vrot.slane %v709_v38, 2  ;;  %v752_v24 = vrot.slane %v751_v15, 2 }
 0x1ca   :  { %3538 = vmatpush1.bf16.msra.mxu0 %v13291_v27  ;;  %v585_v25 = vadd.f32 %v584_v43, %v583_v54  ;;  %v794_v26 = vrot.slane %v793_v45, 2  ;;  %v836_v3 = vrot.slane %v835_v21, 2  ;;  %v878_v12 = vrot.slane %v877_v34, 2  ;;  %v17182_v54 = vld [vmem:[#allocation72_spill] sm:$0xff] }
 0x1cb   :  { %3539 = vmatprep.subr.bf16.mxu0 %v13299_v51  ;;  %v627_v46 = vadd.f32 %v626_v29, %v625_v56  ;;  %v669_v52 = vadd.f32 %v668_v44, %v667_v5  ;;  %v711_v61 = vadd.f32 %v710_v16, %v709_v38  ;;  %v753_v39 = vadd.f32 %v752_v24, %v751_v15  ;;  %v13309_v43 = vld [vmem:[#allocation9 + $0x3f0] ss:$24 sps:$4 sm:$0xff]  }
 0x1cc   :  { %v586_v49 = vrot.slane %v585_v25, 1  ;;  %v795_v6 = vadd.f32 %v794_v26, %v793_v45  ;;  %v837_v36 = vadd.f32 %v836_v3, %v835_v21  ;;  %v16129_v42 = vadd.f32 %v878_v12, %v877_v34 }
 0x1cd   :  { %v628_v30 = vrot.slane %v627_v46, 1  ;;  %v670_v58 = vrot.slane %v669_v52, 1  ;;  %v712_v55 = vrot.slane %v711_v61, 1  ;;  %v754_v27 = vrot.slane %v753_v39, 1 }
 0x1ce   :  { %3540 = vmatpush1.bf16.msra.mxu0 %v13297_v59  ;;  %v563_v23 = vunpack.c.l.bf16 %v17182_v54  ;;  %v16132_v9 = vadd.f32 %v586_v49, %v585_v25  ;;  %v796_v51 = vrot.slane %v795_v6, 1  ;;  %v838_v37 = vrot.slane %v837_v36, 1 }
 0x1cf   :  { %3541 = vmatprep.subr.bf16.mxu0 %v13305_v53  ;;  %v16134_v56 = vadd.f32 %v628_v30, %v627_v46  ;;  %v16136_v5 = vadd.f32 %v670_v58, %v669_v52  ;;  %v16138_v38 = vadd.f32 %v712_v55, %v711_v61  ;;  %v880_v15 = vrot.slane %v16129_v42, 1  ;;  %v13317_v53 = vld [vmem:[#allocation9 + $0x424] ss:$24 sps:$4 sm:$0xff]   ;;  %v13321_v61 = vld [vmem:[#allocation9 + $0x450] ss:$24 sps:$4 sm:$0xff]  }
 0x1d0   :  { %v16141_v45 = vadd.f32 %v754_v27, %v753_v39  ;;  %v16143_v21 = vadd.f32 %v796_v51, %v795_v6  ;;  %v16145_v59 = vadd.f32 %v838_v37, %v837_v36  ;;  %v917_v34 = vadd.f32 %v479_v47, %v473_v31  ;;  %v13329_v36 = vld [vmem:[#allocation9 + $0x484] ss:$24 sps:$4 sm:$0xff]   ;;  %v16177_v37 = vld [vmem:[#allocation5 + $0x10] sm:$0xff] }
 0x1d1   :  { %v959_v29 = vadd.f32 %v491_v33, %v485_v32  ;;  %v1001_v44 = vadd.f32 %v503_v35, %v497_v40  ;;  %v1043_v16 = vadd.f32 %v515_v19, %v509_v17  ;;  %v1085_v28 = vadd.f32 %v527_v14, %v521_v10  ;;  %v13323_v14 = vld [vmem:[#allocation9 + $0x454] ss:$24 sps:$4 sm:$0xff]  }
 0x1d2   :  { %3542 = vmatpush1.bf16.msra.mxu0 %v13303_v1  ;;  %v918_v57 = vrot.slane %v917_v34, 4  ;;  %v17183_v2 = vunpack.c.l.bf16 %v17177_v13  ;;  %v17184_v22 = vunpack.c.l.bf16 %v17178_v18  ;;  %v17185_v20 = vunpack.c.l.bf16 %v17179_v63 }
 0x1d3   :  { %v17186_v31 = vunpack.c.l.bf16 %v17180_v4  ;;  %v17187_v32 = vunpack.c.l.bf16 %v17181_v50  ;;  %3543 = vmatprep.subr.bf16.mxu0 %v13311_v60  ;;  %v960_v40 = vrot.slane %v959_v29, 4  ;;  %v1002_v35 = vrot.slane %v1001_v44, 4 }
 0x1d4   :  { %v1127_v62 = vadd.f32 %v17184_v22, %v17183_v2  ;;  %v1044_v41 = vrot.slane %v1043_v16, 4  ;;  %v1086_v17 = vrot.slane %v1085_v28, 4  ;;  %v919_v19 = vadd.f32 %v918_v57, %v917_v34 }
 0x1d5   :  { %v1169_v47 = vadd.f32 %v17186_v31, %v17185_v20  ;;  %v1211_v33 = vadd.f32 %v563_v23, %v17187_v32  ;;  %v961_v13 = vadd.f32 %v960_v40, %v959_v29  ;;  %v1003_v18 = vadd.f32 %v1002_v35, %v1001_v44  ;;  %v13327_v44 = vld [vmem:[#allocation9 + $0x480] ss:$24 sps:$4 sm:$0xff]  }
 0x1d6   :  { %v1128_v11 = vrot.slane %v1127_v62, 4  ;;  %v1045_v63 = vadd.f32 %v1044_v41, %v1043_v16  ;;  %v1087_v24 = vadd.f32 %v1086_v17, %v1085_v28  ;;  %3544 = vmatpush1.bf16.msra.mxu0 %v13309_v43  ;;  %v920_v4 = vrot.slane %v919_v19, 2  ;;  %v16179_v16 = vld [vmem:[#allocation5 + $0x28] sm:$0xff]  ;;  %v16181_v20 = vld [vmem:[#allocation5 + $0x40] sm:$0xff]  ;;  %v16186_v40 = vld [vmem:[#allocation5 + $0x58] sm:$0xff] }
 0x1d7   :  { %v1170_v10 = vrot.slane %v1169_v47, 4  ;;  %v1212_v0 = vrot.slane %v1211_v33, 4  ;;  %3545 = vmatprep.subr.bf16.mxu0 %v13317_v53  ;;  %v962_v3 = vrot.slane %v961_v13, 2  ;;  %v1004_v12 = vrot.slane %v1003_v18, 2 }
 0x1d8   :  { %v1129_v25 = vadd.f32 %v1128_v11, %v1127_v62  ;;  %v1046_v46 = vrot.slane %v1045_v63, 2  ;;  %v1088_v52 = vrot.slane %v1087_v24, 2  ;;  %v921_v39 = vadd.f32 %v920_v4, %v919_v19  ;;  %v13335_v62 = vld [vmem:[#allocation9 + $0x4b4] ss:$24 sps:$4 sm:$0xff]  }
 0x1d9   :  { %v1171_v50 = vadd.f32 %v1170_v10, %v1169_v47  ;;  %v1213_v26 = vadd.f32 %v1212_v0, %v1211_v33  ;;  %v963_v60 = vadd.f32 %v962_v3, %v961_v13  ;;  %v1005_v30 = vadd.f32 %v1004_v12, %v1003_v18  ;;  %v16191_v19 = vld [vmem:[#allocation5 + $0x70] sm:$0xff]  ;;  %v16196_v0 = vld [vmem:[#allocation5 + $0x88] sm:$0xff] }
 0x1da   :  { %v1130_v1 = vrot.slane %v1129_v25, 2  ;;  %v1047_v58 = vadd.f32 %v1046_v46, %v1045_v63  ;;  %v1089_v55 = vadd.f32 %v1088_v52, %v1087_v24  ;;  %3546 = vmatpush1.bf16.msra.mxu0 %v13315_v7  ;;  %v922_v27 = vrot.slane %v921_v39, 1  ;;  %v13333_v10 = vld [vmem:[#allocation9 + $0x4b0] ss:$24 sps:$4 sm:$0xff]   ;;  %v16301_v24 = vld [vmem:[#allocation5 + $0x2e0] sm:$0xff] }
 0x1db   :  { %v1172_v49 = vrot.slane %v1171_v50, 2  ;;  %v1214_v6 = vrot.slane %v1213_v26, 2  ;;  %3547 = vmatprep.subr.bf16.mxu0 %v13323_v14  ;;  %v964_v43 = vrot.slane %v963_v60, 1  ;;  %v1006_v34 = vrot.slane %v1005_v30, 1  ;;  %v16218_v46 = vld [vmem:[#allocation5 + $0xe8] sm:$0xff]  ;;  %17199 = vst [vmem:[#allocation48_spill] sm:$0xff] %v16301_v24 }
 0x1dc   :  { %v1131_v54 = vadd.f32 %v1130_v1, %v1129_v25  ;;  %v1048_v53 = vrot.slane %v1047_v58, 1  ;;  %v1090_v29 = vrot.slane %v1089_v55, 1  ;;  %v923_v28 = vadd.f32 %v922_v27, %v921_v39  ;;  %v16209_v25 = vld [vmem:[#allocation5 + $0xb8] sm:$0xff]  ;;  %v13282_v39 = vld [vmem:[#allocation9 + $0x608] ss:$24 sps:$4 sm:$0xff]  }
 0x1dd   :  { %v1173_v23 = vadd.f32 %v1172_v49, %v1171_v50  ;;  %v1215_v51 = vadd.f32 %v1214_v6, %v1213_v26  ;;  %v881_v31 = vadd.f32 %v880_v15, %v16129_v42  ;;  %v965_v47 = vadd.f32 %v964_v43, %v963_v60  ;;  %v16211_v50 = vld [vmem:[#allocation5 + $0xd0] sm:$0xff]  ;;  %v13339_v6 = vld [vmem:[#allocation9 + $0x4e0] ss:$24 sps:$4 sm:$0xff]   ;;  %v16299_v26 = vld [vmem:[#allocation5 + $0x2c8] sm:$0xff] }
 0x1de   :  { %v1132_v57 = vrot.slane %v1131_v54, 1  ;;  %v1007_v32 = vadd.f32 %v1006_v34, %v1005_v30  ;;  %v1049_v33 = vadd.f32 %v1048_v53, %v1047_v58  ;;  %3548 = vmatpush1.bf16.msra.mxu0 %v13321_v61  ;;  %v1091_v35 = vadd.f32 %v1090_v29, %v1089_v55  ;;  %v13290_v27 = vld [vmem:[#allocation9 + $0x63c] ss:$24 sps:$4 sm:$0xff]   ;;  %17198 = vst [vmem:[#allocation47_spill] sm:$0xff] %v16299_v26 }
 0x1df   :  { %v1174_v2 = vrot.slane %v1173_v23, 1  ;;  %v1216_v22 = vrot.slane %v1215_v51, 1  ;;  %v1356_v7 = vsel %vm1335_vm0, %v16134_v56, %v16132_v9  ;;  %3549 = vmatprep.subr.bf16.mxu0 %v13329_v36  ;;  %v1398_v15 = vsel %vm1335_vm0, %v965_v47, %v923_v28  ;;  %v13341_v9 = vld [vmem:[#allocation9 + $0x4e4] ss:$24 sps:$4 sm:$0xff]   ;;  %v16244_v29 = vld [vmem:[#allocation5 + $0x190] sm:$0xff] }
 0x1e0   :  { %v1133_v41 = vadd.f32 %v1132_v57, %v1131_v54  ;;  %v1357_v42 = vsel %vm1337_vm1, %v16136_v5, %v1356_v7  ;;  %v1399_v18 = vsel %vm1337_vm1, %v1007_v32, %v1398_v15  ;;  %v16202_v56 = vld [vmem:[#allocation5 + $0xa0] sm:$0xff]  ;;  %v380_v63 = vunpack.c.h.bf16 %v16177_v37  ;;  %v16227_v36 = vld [vmem:[#allocation5 + $0x118] sm:$0xff]  ;;  %v13347_v54 = vld [vmem:[#allocation9 + $0x514] ss:$24 sps:$4 sm:$0xff]  }
 0x1e1   :  { %v1175_v17 = vadd.f32 %v1174_v2, %v1173_v23  ;;  %v1217_v11 = vadd.f32 %v1216_v22, %v1215_v51  ;;  %v1358_v13 = vsel %vm1339_vm2, %v16138_v38, %v1357_v42  ;;  %v1400_v4 = vsel %vm1339_vm2, %v1049_v33, %v1399_v18  ;;  %17188 = vst [vmem:[#allocation40_spill] sm:$0xff] %v16227_v36  ;;  %v16235_v23 = vld [vmem:[#allocation5 + $0x148] sm:$0xff]  ;;  %v16242_v53 = vld [vmem:[#allocation5 + $0x178] sm:$0xff]  ;;  %v16293_v43 = vld [vmem:[#allocation5 + $0x2b0] sm:$0xff] }
 0x1e2   :  { %v1359_v5 = vsel %vm1341_vm3, %v16141_v45, %v1358_v13  ;;  %3550 = vmatpush1.bf16.msra.mxu0 %v13327_v44  ;;  %v386_v38 = vunpack.c.h.bf16 %v16179_v16  ;;  %v1401_v12 = vsel %vm1341_vm3, %v1091_v35, %v1400_v4  ;;  %v16220_v45 = vld [vmem:[#allocation5 + $0x100] sm:$0xff]  ;;  %v392_v52 = vunpack.c.h.bf16 %v16181_v20  ;;  %17190 = vst [vmem:[#allocation42_spill] sm:$0xff] %v16235_v23  ;;  %17192 = vst [vmem:[#allocation44_spill] sm:$0xff] %v16242_v53  ;;  %v16251_v22 = vld [vmem:[#allocation5 + $0x1a8] sm:$0xff] }
 0x1e3   :  { %v1360_v3 = vsel %vm1343_vm4, %v16143_v21, %v1359_v5  ;;  %3551 = vmatprep.subr.bf16.mxu0 %v13335_v62  ;;  %v1402_v49 = vsel %vm1343_vm4, %v1133_v41, %v1401_v12  ;;  %v16229_v21 = vld [vmem:[#allocation5 + $0x130] sm:$0xff]  ;;  %v398_v60 = vunpack.c.h.bf16 %v16186_v40  ;;  %v404_v51 = vunpack.c.h.bf16 %v16191_v19  ;;  %v16253_v62 = vld [vmem:[#allocation5 + $0x1c0] sm:$0xff]  ;;  %v16258_v41 = vld [vmem:[#allocation5 + $0x1d8] sm:$0xff]  ;;  %17197 = vst [vmem:[#allocation46_spill] sm:$0xff] %v16293_v43 }
 0x1e4   :  { %v1361_v1 = vsel %vm1345_vm5, %v16145_v59, %v1360_v3  ;;  %17189 = vst [vmem:[#allocation41_spill] sm:$0xff] %v16229_v21  ;;  %v1403_v55 = vsel %vm1345_vm5, %v1175_v17, %v1402_v49  ;;  %v16237_v59 = vld [vmem:[#allocation5 + $0x160] sm:$0xff]  ;;  %v410_v44 = vunpack.c.h.bf16 %v16196_v0  ;;  %v416_v57 = vunpack.c.h.bf16 %v16202_v56  ;;  %v13288_v33 = vld [vmem:[#allocation9 + $0x638] ss:$24 sps:$4 sm:$0xff]   ;;  %v16267_v18 = vld [vmem:[#allocation5 + $0x208] sm:$0xff] }
 0x1e5   :  { %v1362_v58 = vsel %vm1347_vm6, %v881_v31, %v1361_v1  ;;  %17191 = vst [vmem:[#allocation43_spill] sm:$0xff] %v16237_v59  ;;  %v1404_v34 = vsel %vm1347_vm6, %v1217_v11, %v1403_v55  ;;  %v422_v47 = vunpack.c.h.bf16 %v16209_v25  ;;  %v13345_v35 = vld [vmem:[#allocation9 + $0x510] ss:$24 sps:$4 sm:$0xff]   ;;  %v428_v7 = vunpack.c.h.bf16 %v16211_v50  ;;  %v13353_v13 = vld [vmem:[#allocation9 + $0x544] ss:$24 sps:$4 sm:$0xff]  }
 0x1e6   :  { %3552 = vmatpush1.bf16.msra.mxu0 %v13333_v10  ;;  %v16249_v2 = vpack.c.bf16 %v1404_v34, %v1362_v58  ;;  %v16260_v17 = vld [vmem:[#allocation5 + $0x1f0] sm:$0xff]  ;;  %v434_v42 = vunpack.c.h.bf16 %v16218_v46  ;;  %v13296_v10 = vld [vmem:[#allocation9 + $0x66c] ss:$24 sps:$4 sm:$0xff]   ;;  %v440_v5 = vunpack.c.h.bf16 %v16220_v45  ;;  %v446_v3 = vunpack.c.h.bf16 %v16227_v36  ;;  %v16275_v1 = vld [vmem:[#allocation5 + $0x238] sm:$0xff] }
 0x1e7   :  { %3553 = vmatprep.subr.bf16.mxu0 %v13341_v9  ;;  %v16269_v9 = vld [vmem:[#allocation5 + $0x220] sm:$0xff]  ;;  %v16277_v49 = vld [vmem:[#allocation5 + $0x250] sm:$0xff]  ;;  %v452_v58 = vunpack.c.h.bf16 %v16229_v21  ;;  %v16283_v4 = vld [vmem:[#allocation5 + $0x268] sm:$0xff] }
 0x1e8   :  { %17193 = vst [vmem:[#allocation45_spill] sm:$0xff] %v16249_v2  ;;  %3695 = vmatmul.mubr.bf16.vlgmr.msra.gmra.mrb[0].mxu1 %v16249_v2  ;;  %17194 = vst [vmem:[#allocation36_spill] sm:$0xff] %v16283_v4  ;;  %v16285_v11 = vld [vmem:[#allocation5 + $0x280] sm:$0xff]  ;;  %v16291_v28 = vld [vmem:[#allocation5 + $0x298] sm:$0xff] }
 0x1e9   :  { %3706 = vmatpush1.bf16.msra.mxu1 %v13282_v39  ;;  %17195 = vst [vmem:[#allocation37_spill] sm:$0xff] %v16285_v11  ;;  %v13294_v31 = vld [vmem:[#allocation9 + $0x668] ss:$24 sps:$4 sm:$0xff]   ;;  %17196 = vst [vmem:[#allocation38_spill] sm:$0xff] %v16291_v28  ;;  %v13302_v61 = vld [vmem:[#allocation9 + $0x69c] ss:$24 sps:$4 sm:$0xff]  }
 0x1ea   :  { %3554 = vmatpush1.bf16.msra.mxu0 %v13339_v6  ;;  %3707 = vmatprep.subr.bf16.mxu1 %v13290_v27  ;;  %v13351_v55 = vld [vmem:[#allocation9 + $0x540] ss:$24 sps:$4 sm:$0xff]   ;;  %v13359_v6 = vld [vmem:[#allocation9 + $0x574] ss:$24 sps:$4 sm:$0xff]   ;;  %v13357_v32 = vld [vmem:[#allocation9 + $0x570] ss:$24 sps:$4 sm:$0xff]  }
 0x1eb   :  { %3555 = vmatprep.subr.bf16.mxu0 %v13347_v54  ;;  %v16307_v54 = vld [vmem:[#allocation5 + $0x2f8] sm:$0xff]  ;;  %v13371_v14 = vld [vmem:[#allocation9 + $0x5d4] ss:$24 sps:$4 sm:$0xff]  }
 0x1ed   :  { %3708 = vmatpush1.bf16.msra.mxu1 %v13288_v33 }
 0x1ee   :  { %3556 = vmatpush1.bf16.msra.mxu0 %v13345_v35  ;;  %3709 = vmatprep.subr.bf16.mxu1 %v13296_v10  ;;  %v13300_v35 = vld [vmem:[#allocation9 + $0x698] ss:$24 sps:$4 sm:$0xff]   ;;  %v13308_v10 = vld [vmem:[#allocation9 + $0x6cc] ss:$24 sps:$4 sm:$0xff]  }
 0x1ef   :  { %3557 = vmatprep.subr.bf16.mxu0 %v13353_v13  ;;  %v13365_v13 = vld [vmem:[#allocation9 + $0x5a4] ss:$24 sps:$4 sm:$0xff]  }
 0x1f1   :  { %3710 = vmatpush1.bf16.msra.mxu1 %v13294_v31  ;;  %v602_v31 = vadd.f32 %v386_v38, %v380_v63  ;;  %v770_v63 = vadd.f32 %v434_v42, %v428_v7  ;;  %v812_v38 = vadd.f32 %v446_v3, %v440_v5  ;;  %v13363_v7 = vld [vmem:[#allocation9 + $0x5a0] ss:$24 sps:$4 sm:$0xff]   ;;  %v13314_v3 = vld [vmem:[#allocation9 + $0x6fc] ss:$24 sps:$4 sm:$0xff]  }
 0x1f2   :  { %3558 = vmatpush1.bf16.msra.mxu0 %v13351_v55  ;;  %3711 = vmatprep.subr.bf16.mxu1 %v13302_v61  ;;  %v644_v55 = vadd.f32 %v398_v60, %v392_v52  ;;  %v686_v61 = vadd.f32 %v410_v44, %v404_v51  ;;  %v13306_v52 = vld [vmem:[#allocation9 + $0x6c8] ss:$24 sps:$4 sm:$0xff]   ;;  %v17200_v51 = vunpack.c.h.bf16 %v16235_v23 }
 0x1f3   :  { %3559 = vmatprep.subr.bf16.mxu0 %v13359_v6  ;;  %v728_v6 = vadd.f32 %v422_v47, %v416_v57  ;;  %v603_v60 = vrot.slane %v602_v31, 4  ;;  %v17201_v57 = vunpack.c.h.bf16 %v16237_v59  ;;  %v17202_v47 = vunpack.c.h.bf16 %v16242_v53  ;;  %v13369_v23 = vld [vmem:[#allocation9 + $0x5d0] ss:$24 sps:$4 sm:$0xff]  }
 0x1f4   :  { %v645_v34 = vrot.slane %v644_v55, 4  ;;  %v854_v44 = vadd.f32 %v17200_v51, %v452_v58  ;;  %v687_v42 = vrot.slane %v686_v61, 4  ;;  %v771_v12 = vrot.slane %v770_v63, 4 }
 0x1f5   :  { %v896_v15 = vadd.f32 %v17202_v47, %v17201_v57  ;;  %3712 = vmatpush1.bf16.msra.mxu1 %v13300_v35  ;;  %v729_v33 = vrot.slane %v728_v6, 4  ;;  %v813_v5 = vrot.slane %v812_v38, 4  ;;  %v604_v39 = vadd.f32 %v603_v60, %v602_v31  ;;  %v13312_v57 = vld [vmem:[#allocation9 + $0x6f8] ss:$24 sps:$4 sm:$0xff]  }
 0x1f6   :  { %3560 = vmatpush1.bf16.msra.mxu0 %v13357_v32  ;;  %3713 = vmatprep.subr.bf16.mxu1 %v13308_v10  ;;  %v646_v30 = vadd.f32 %v645_v34, %v644_v55  ;;  %v855_v27 = vrot.slane %v854_v44, 4  ;;  %v688_v51 = vadd.f32 %v687_v42, %v686_v61  ;;  %v772_v48 = vadd.f32 %v771_v12, %v770_v63  ;;  %v13320_v34 = vld [vmem:[#allocation9 + $0x72c] ss:$24 sps:$4 sm:$0xff]  }
 0x1f7   :  { %3561 = vmatprep.subr.bf16.mxu0 %v13365_v13  ;;  %v897_v58 = vrot.slane %v896_v15, 4  ;;  %v730_v8 = vadd.f32 %v729_v33, %v728_v6  ;;  %v814_v53 = vadd.f32 %v813_v5, %v812_v38  ;;  %v605_v35 = vrot.slane %v604_v39, 2  ;;  %v13377_v61 = vld [vmem:[#allocation9 + $0x604] ss:$24 sps:$4 sm:$0xff]  }
 0x1f8   :  { %v647_v32 = vrot.slane %v646_v30, 2  ;;  %v856_v47 = vadd.f32 %v855_v27, %v854_v44  ;;  %v689_v10 = vrot.slane %v688_v51, 2  ;;  %v773_v13 = vrot.slane %v772_v48, 2 }
 0x1f9   :  { %v898_v59 = vadd.f32 %v897_v58, %v896_v15  ;;  %3714 = vmatpush1.bf16.msra.mxu1 %v13306_v52  ;;  %v731_v21 = vrot.slane %v730_v8, 2  ;;  %v815_v36 = vrot.slane %v814_v53, 2  ;;  %v606_v31 = vadd.f32 %v605_v35, %v604_v39 }
 0x1fa   :  { %3562 = vmatpush1.bf16.msra.mxu0 %v13363_v7  ;;  %3715 = vmatprep.subr.bf16.mxu1 %v13314_v3  ;;  %v648_v55 = vadd.f32 %v647_v32, %v646_v30  ;;  %v857_v33 = vrot.slane %v856_v47, 2  ;;  %v690_v6 = vadd.f32 %v689_v10, %v688_v51  ;;  %v774_v38 = vadd.f32 %v773_v13, %v772_v48  ;;  %v13318_v7 = vld [vmem:[#allocation9 + $0x728] ss:$24 sps:$4 sm:$0xff]   ;;  %v13326_v30 = vld [vmem:[#allocation9 + $0x75c] ss:$24 sps:$4 sm:$0xff]  }
 0x1fb   :  { %3563 = vmatprep.subr.bf16.mxu0 %v13371_v14  ;;  %v899_v12 = vrot.slane %v898_v59, 2  ;;  %v732_v63 = vadd.f32 %v731_v21, %v730_v8  ;;  %v816_v27 = vadd.f32 %v815_v36, %v814_v53  ;;  %v607_v15 = vrot.slane %v606_v31, 1  ;;  %v13375_v36 = vld [vmem:[#allocation9 + $0x600] ss:$24 sps:$4 sm:$0xff]   ;;  %v13383_v51 = vld [vmem:[#allocation9 + $0x634] ss:$24 sps:$4 sm:$0xff]  }
 0x1fc   :  { %v649_v52 = vrot.slane %v648_v55, 1  ;;  %v858_v60 = vadd.f32 %v857_v33, %v856_v47  ;;  %v691_v42 = vrot.slane %v690_v6, 1  ;;  %v775_v3 = vrot.slane %v774_v38, 1 }
 0x1fd   :  { %v900_v44 = vadd.f32 %v899_v12, %v898_v59  ;;  %3716 = vmatpush1.bf16.msra.mxu1 %v13312_v57  ;;  %v733_v5 = vrot.slane %v732_v63, 1  ;;  %v817_v14 = vrot.slane %v816_v27, 1  ;;  %v16363_v39 = vadd.f32 %v607_v15, %v606_v31 }
 0x1fe   :  { %3564 = vmatpush1.bf16.msra.mxu0 %v13369_v23  ;;  %3717 = vmatprep.subr.bf16.mxu1 %v13320_v34  ;;  %v16365_v58 = vadd.f32 %v649_v52, %v648_v55  ;;  %v859_v8 = vrot.slane %v858_v60, 1  ;;  %v16367_v21 = vadd.f32 %v691_v42, %v690_v6  ;;  %v16371_v53 = vadd.f32 %v775_v3, %v774_v38  ;;  %v13324_v55 = vld [vmem:[#allocation9 + $0x758] ss:$24 sps:$4 sm:$0xff]   ;;  %v13332_v42 = vld [vmem:[#allocation9 + $0x78c] ss:$24 sps:$4 sm:$0xff]  }
 0x1ff   :  { %v901_v48 = vrot.slane %v900_v44, 1  ;;  %3576 = vmatprep.subr.bf16.mxu0 %v13377_v61  ;;  %v16369_v59 = vadd.f32 %v733_v5, %v732_v63  ;;  %v16373_v23 = vadd.f32 %v817_v14, %v816_v27  ;;  %v17203_v32 = vunpack.c.h.bf16 %v16244_v29 }
 0x200   :  { %v16375_v57 = vadd.f32 %v859_v8, %v858_v60  ;;  %v17204_v47 = vunpack.c.h.bf16 %v16251_v22  ;;  %v17205_v13 = vunpack.c.h.bf16 %v16253_v62  ;;  %v17206_v34 = vunpack.c.h.bf16 %v16258_v41 }
 0x201   :  { %v16377_v35 = vadd.f32 %v901_v48, %v900_v44  ;;  %3566 = vmatmul.mubr.bf16.vlgmr.msra.gmra.mrb[0].mxu0 %v16249_v2  ;;  %3718 = vmatpush1.bf16.msra.mxu1 %v13318_v7  ;;  %v17207_v33 = vunpack.c.h.bf16 %v16260_v17  ;;  %v17208_v12 = vunpack.c.h.bf16 %v16267_v18  ;;  %v17209_v6 = vunpack.c.h.bf16 %v16269_v9  ;;  %v13330_v2 = vld [vmem:[#allocation9 + $0x788] ss:$24 sps:$4 sm:$0xff]  }
 0x202   :  { %v938_v10 = vadd.f32 %v17204_v47, %v17203_v32  ;;  %v980_v31 = vadd.f32 %v17206_v34, %v17205_v13  ;;  %v17210_v63 = vunpack.c.h.bf16 %v16275_v1  ;;  %v17211_v27 = vunpack.c.h.bf16 %v16277_v49  ;;  %3719 = vmatprep.subr.bf16.mxu1 %v13326_v30  ;;  %3577 = vmatpush1.bf16.msra.mxu0 %v13375_v36  ;;  %v13381_v34 = vld [vmem:[#allocation9 + $0x630] ss:$24 sps:$4 sm:$0xff]   ;;  %v13389_v30 = vld [vmem:[#allocation9 + $0x664] ss:$24 sps:$4 sm:$0xff]  }
 0x203   :  { %v1022_v61 = vadd.f32 %v17208_v12, %v17207_v33  ;;  %v17212_v15 = vunpack.c.h.bf16 %v16283_v4  ;;  %v17213_v60 = vunpack.c.h.bf16 %v16285_v11  ;;  %v17214_v44 = vunpack.c.h.bf16 %v16291_v28  ;;  %3578 = vmatprep.subr.bf16.mxu0 %v13383_v51  ;;  %v13387_v11 = vld [vmem:[#allocation9 + $0x660] ss:$24 sps:$4 sm:$0xff]  }
 0x204   :  { %v1064_v38 = vadd.f32 %v17210_v63, %v17209_v6  ;;  %v939_v5 = vrot.slane %v938_v10, 4  ;;  %v981_v3 = vrot.slane %v980_v31, 4  ;;  %v17215_v14 = vunpack.c.h.bf16 %v16293_v43 }
 0x205   :  { %v1106_v52 = vadd.f32 %v17212_v15, %v17211_v27  ;;  %v1148_v7 = vadd.f32 %v17214_v44, %v17213_v60  ;;  %v17216_v8 = vunpack.c.h.bf16 %v16299_v26  ;;  %v17217_v32 = vunpack.c.h.bf16 %v16301_v24  ;;  %3720 = vmatpush1.bf16.msra.mxu1 %v13324_v55 }
 0x206   :  { %v17218_v47 = vunpack.c.h.bf16 %v16307_v54  ;;  %v1023_v33 = vrot.slane %v1022_v61, 4  ;;  %v1065_v12 = vrot.slane %v1064_v38, 4  ;;  %v940_v27 = vadd.f32 %v939_v5, %v938_v10  ;;  %3721 = vmatprep.subr.bf16.mxu1 %v13332_v42  ;;  %3579 = vmatpush1.bf16.msra.mxu0 %v13381_v34  ;;  %v13392_v5 = vld [vmem:[#allocation9 + $0x694] ss:$24 sps:$4 sm:$0xff]  }
 0x207   :  { %v1190_v48 = vadd.f32 %v17216_v8, %v17215_v14  ;;  %v1107_v6 = vrot.slane %v1106_v52, 4  ;;  %v1149_v63 = vrot.slane %v1148_v7, 4  ;;  %v982_v15 = vadd.f32 %v981_v3, %v980_v31  ;;  %3580 = vmatprep.subr.bf16.mxu0 %v13389_v30 }
 0x208   :  { %v1232_v13 = vadd.f32 %v17218_v47, %v17217_v32  ;;  %v1024_v14 = vadd.f32 %v1023_v33, %v1022_v61  ;;  %v1066_v8 = vadd.f32 %v1065_v12, %v1064_v38  ;;  %v13338_v32 = vld [vmem:[#allocation9 + $0x7bc] ss:$24 sps:$4 sm:$0xff]   ;;  %v941_v36 = vrot.slane %v940_v27, 2 }
 0x209   :  { %v1191_v60 = vrot.slane %v1190_v48, 4  ;;  %v1108_v24 = vadd.f32 %v1107_v6, %v1106_v52  ;;  %v1150_v26 = vadd.f32 %v1149_v63, %v1148_v7  ;;  %v983_v47 = vrot.slane %v982_v15, 2  ;;  %3722 = vmatpush1.bf16.msra.mxu1 %v13330_v2  ;;  %v13336_v52 = vld [vmem:[#allocation9 + $0x7b8] ss:$24 sps:$4 sm:$0xff]  }
 0x20a   :  { %v1233_v44 = vrot.slane %v1232_v13, 4  ;;  %v1025_v51 = vrot.slane %v1024_v14, 2  ;;  %v1067_v4 = vrot.slane %v1066_v8, 2  ;;  %v942_v55 = vadd.f32 %v941_v36, %v940_v27  ;;  %3723 = vmatprep.subr.bf16.mxu1 %v13338_v32  ;;  %3581 = vmatpush1.bf16.msra.mxu0 %v13387_v11 }
 0x20b   :  { %v1192_v43 = vadd.f32 %v1191_v60, %v1190_v48  ;;  %v1109_v10 = vrot.slane %v1108_v24, 2  ;;  %v1151_v31 = vrot.slane %v1150_v26, 2  ;;  %v984_v3 = vadd.f32 %v983_v47, %v982_v15  ;;  %v13344_v48 = vld [vmem:[#allocation9 + $0x7ec] ss:$24 sps:$4 sm:$0xff]   ;;  %v13390_v15 = vld [vmem:[#allocation9 + $0x690] ss:$24 sps:$4 sm:$0xff]   ;;  %3582 = vmatprep.subr.bf16.mxu0 %v13392_v5 }
 0x20c   :  { %v1234_v28 = vadd.f32 %v1233_v44, %v1232_v13  ;;  %v1026_v7 = vadd.f32 %v1025_v51, %v1024_v14  ;;  %v1068_v42 = vadd.f32 %v1067_v4, %v1066_v8  ;;  %v943_v13 = vrot.slane %v942_v55, 1  ;;  %v13395_v4 = vld [vmem:[#allocation9 + $0x6c4] ss:$24 sps:$4 sm:$0xff]  }
 0x20d   :  { %v1193_v61 = vrot.slane %v1192_v43, 2  ;;  %v1110_v33 = vadd.f32 %v1109_v10, %v1108_v24  ;;  %v1152_v12 = vadd.f32 %v1151_v31, %v1150_v26  ;;  %v985_v34 = vrot.slane %v984_v3, 1  ;;  %3724 = vmatpush1.bf16.msra.mxu1 %v13336_v52  ;;  %v13342_v24 = vld [vmem:[#allocation9 + $0x7e8] ss:$24 sps:$4 sm:$0xff]  }
 0x20e   :  { %v1235_v38 = vrot.slane %v1234_v28, 2  ;;  %v1027_v60 = vrot.slane %v1026_v7, 1  ;;  %v1069_v30 = vrot.slane %v1068_v42, 1  ;;  %v944_v36 = vadd.f32 %v943_v13, %v942_v55  ;;  %3725 = vmatprep.subr.bf16.mxu1 %v13344_v48  ;;  %3583 = vmatpush1.bf16.msra.mxu0 %v13390_v15  ;;  %v13348_v13 = vld [vmem:[#allocation9 + $0x818] ss:$24 sps:$4 sm:$0xff]  }
 0x20f   :  { %v1194_v6 = vadd.f32 %v1193_v61, %v1192_v43  ;;  %v1111_v44 = vrot.slane %v1110_v33, 1  ;;  %v1153_v27 = vrot.slane %v1152_v12, 1  ;;  %v986_v2 = vadd.f32 %v985_v34, %v984_v3  ;;  %v13350_v43 = vld [vmem:[#allocation9 + $0x81c] ss:$24 sps:$4 sm:$0xff]   ;;  %3584 = vmatprep.subr.bf16.mxu0 %v13395_v4  ;;  %v13396_v15 = vld [vmem:[#allocation9 + $0x6f0] ss:$24 sps:$4 sm:$0xff]  }
 0x210   :  { %v1236_v63 = vadd.f32 %v1235_v38, %v1234_v28  ;;  %v1028_v26 = vadd.f32 %v1027_v60, %v1026_v7  ;;  %v1070_v8 = vadd.f32 %v1069_v30, %v1068_v42  ;;  %v1377_v10 = vsel %vm1335_vm0, %v16365_v58, %v16363_v39  ;;  %v13354_v4 = vld [vmem:[#allocation9 + $0x848] ss:$24 sps:$4 sm:$0xff]  }
 0x211   :  { %v1195_v47 = vrot.slane %v1194_v6, 1  ;;  %v1112_v32 = vadd.f32 %v1111_v44, %v1110_v33  ;;  %v1154_v51 = vadd.f32 %v1153_v27, %v1152_v12  ;;  %v1419_v31 = vsel %vm1335_vm0, %v986_v2, %v944_v36  ;;  %v13393_v33 = vld [vmem:[#allocation9 + $0x6c0] ss:$24 sps:$4 sm:$0xff]   ;;  %3726 = vmatpush1.bf16.msra.mxu1 %v13342_v24 }
 0x212   :  { %v1237_v14 = vrot.slane %v1236_v63, 1  ;;  %v1378_v5 = vsel %vm1337_vm1, %v16367_v21, %v1377_v10  ;;  %v1420_v55 = vsel %vm1337_vm1, %v1028_v26, %v1419_v31  ;;  %v17219_v3 = vunpack.c.l.bf16 %v16177_v37  ;;  %3727 = vmatprep.subr.bf16.mxu1 %v13350_v43  ;;  %3585 = vmatpush1.bf16.msra.mxu0 %v13393_v33  ;;  %v13362_v43 = vld [vmem:[#allocation9 + $0x87c] ss:$24 sps:$4 sm:$0xff]   ;;  %v17236_v33 = vld [vmem:[#allocation43_spill] sm:$0xff] }
 0x213   :  { %v1196_v28 = vadd.f32 %v1195_v47, %v1194_v6  ;;  %v17220_v61 = vunpack.c.l.bf16 %v16179_v16  ;;  %v17221_v52 = vunpack.c.l.bf16 %v16181_v20  ;;  %v17222_v7 = vunpack.c.l.bf16 %v16186_v40  ;;  %v13398_v40 = vld [vmem:[#allocation9 + $0x6f4] ss:$24 sps:$4 sm:$0xff]  }
 0x214   :  { %v1238_v11 = vadd.f32 %v1237_v14, %v1236_v63  ;;  %v1379_v39 = vsel %vm1339_vm2, %v16369_v59, %v1378_v5  ;;  %v1421_v58 = vsel %vm1339_vm2, %v1070_v8, %v1420_v55  ;;  %v17223_v21 = vunpack.c.l.bf16 %v16191_v19  ;;  %v13356_v19 = vld [vmem:[#allocation9 + $0x84c] ss:$24 sps:$4 sm:$0xff]   ;;  %3586 = vmatprep.subr.bf16.mxu0 %v13398_v40  ;;  %v17230_v10 = vld [vmem:[#allocation40_spill] sm:$0xff]  ;;  %v17232_v55 = vld [vmem:[#allocation41_spill] sm:$0xff] }
 0x215   :  { %v595_v38 = vadd.f32 %v17220_v61, %v17219_v3  ;;  %v637_v42 = vadd.f32 %v17222_v7, %v17221_v52  ;;  %v17224_v12 = vunpack.c.l.bf16 %v16196_v0  ;;  %v17225_v16 = vunpack.c.l.bf16 %v16202_v56  ;;  %v13401_v14 = vld [vmem:[#allocation9 + $0x724] ss:$24 sps:$4 sm:$0xff]   ;;  %3728 = vmatpush1.bf16.msra.mxu1 %v13348_v13  ;;  %v13360_v7 = vld [vmem:[#allocation9 + $0x878] ss:$24 sps:$4 sm:$0xff]   ;;  %v13404_v13 = vld [vmem:[#allocation9 + $0x754] ss:$24 sps:$4 sm:$0xff]  }
 0x216   :  { %v17226_v48 = vunpack.c.l.bf16 %v16209_v25  ;;  %v1380_v34 = vsel %vm1341_vm3, %v16371_v53, %v1379_v39  ;;  %v1422_v59 = vsel %vm1341_vm3, %v1112_v32, %v1421_v58  ;;  %v17227_v8 = vunpack.c.l.bf16 %v16211_v50  ;;  %3729 = vmatprep.subr.bf16.mxu1 %v13356_v19  ;;  %v17234_v61 = vld [vmem:[#allocation42_spill] sm:$0xff]  ;;  %v17238_v58 = vld [vmem:[#allocation44_spill] sm:$0xff]  ;;  %3587 = vmatpush1.bf16.msra.mxu0 %v13396_v15 }
 0x217   :  { %v679_v37 = vadd.f32 %v17224_v12, %v17223_v21  ;;  %v596_v6 = vrot.slane %v595_v38, 4  ;;  %v638_v63 = vrot.slane %v637_v42, 4  ;;  %v1381_v0 = vsel %vm1343_vm4, %v16373_v23, %v1380_v34  ;;  %3588 = vmatprep.subr.bf16.mxu0 %v13401_v14  ;;  %v13402_v19 = vld [vmem:[#allocation9 + $0x750] ss:$24 sps:$4 sm:$0xff]  }
 0x218   :  { %v721_v20 = vadd.f32 %v17226_v48, %v17225_v16  ;;  %v1423_v56 = vsel %vm1343_vm4, %v1154_v51, %v1422_v59  ;;  %v1382_v30 = vsel %vm1345_vm5, %v16375_v57, %v1381_v0  ;;  %v17228_v32 = vunpack.c.l.bf16 %v16218_v46 }
 0x219   :  { %v680_v25 = vrot.slane %v679_v37, 4  ;;  %v1424_v44 = vsel %vm1345_vm5, %v1196_v28, %v1423_v56  ;;  %v597_v27 = vadd.f32 %v596_v6, %v595_v38  ;;  %v639_v53 = vadd.f32 %v638_v63, %v637_v42  ;;  %3730 = vmatpush1.bf16.msra.mxu1 %v13354_v4 }
 0x21a   :  { %v722_v60 = vrot.slane %v721_v20, 4  ;;  %v1383_v36 = vsel %vm1347_vm6, %v16377_v35, %v1382_v30  ;;  %v1425_v2 = vsel %vm1347_vm6, %v1238_v11, %v1424_v44  ;;  %v763_v51 = vadd.f32 %v17228_v32, %v17227_v8  ;;  %3731 = vmatprep.subr.bf16.mxu1 %v13362_v43  ;;  %v13366_v30 = vld [vmem:[#allocation9 + $0x8a8] ss:$24 sps:$4 sm:$0xff]  }
 0x21b   :  { %v681_v47 = vadd.f32 %v680_v25, %v679_v37  ;;  %v16450_v24 = vpack.c.bf16 %v1425_v2, %v1383_v36  ;;  %v598_v57 = vrot.slane %v597_v27, 2  ;;  %v640_v26 = vrot.slane %v639_v53, 2  ;;  %v13368_v37 = vld [vmem:[#allocation9 + $0x8ac] ss:$24 sps:$4 sm:$0xff]   ;;  %v13374_v2 = vld [vmem:[#allocation9 + $0x8dc] ss:$24 sps:$4 sm:$0xff]  }
 0x21c   :  { %v723_v23 = vadd.f32 %v722_v60, %v721_v20  ;;  %v17229_v11 = vunpack.c.l.bf16 %v16220_v45  ;;  %v17231_v31 = vunpack.c.l.bf16 %v17230_v10  ;;  %v17233_v3 = vunpack.c.l.bf16 %v17232_v55  ;;  %v13399_v45 = vld [vmem:[#allocation9 + $0x720] ss:$24 sps:$4 sm:$0xff]   ;;  %v13407_v36 = vld [vmem:[#allocation9 + $0x784] ss:$24 sps:$4 sm:$0xff]  }
 0x21d   :  { %v682_v35 = vrot.slane %v681_v47, 2  ;;  %v17235_v38 = vunpack.c.l.bf16 %v17234_v61  ;;  %3737 = vmatprep.mubr.bf16.mxu1 %v16450_v24  ;;  %v599_v50 = vadd.f32 %v598_v57, %v597_v27  ;;  %v641_v46 = vadd.f32 %v640_v26, %v639_v53  ;;  %3608 = vmatprep.mubr.bf16.mxu0 %v16450_v24 }
 0x21e   :  { %v724_v28 = vrot.slane %v723_v23, 2  ;;  %v805_v5 = vadd.f32 %v17231_v31, %v17229_v11  ;;  %v764_v42 = vrot.slane %v763_v51, 4  ;;  %v17237_v39 = vunpack.c.l.bf16 %v17236_v33  ;;  %3589 = vmatpush1.bf16.msra.mxu0 %v13399_v45  ;;  %3732 = vmatpush1.bf16.msra.mxu1 %v13360_v7  ;;  %v13405_v7 = vld [vmem:[#allocation9 + $0x780] ss:$24 sps:$4 sm:$0xff]  }
 0x21f   :  { %v847_v52 = vadd.f32 %v17235_v38, %v17233_v3  ;;  %v17239_v21 = vunpack.c.l.bf16 %v17238_v58  ;;  %v683_v16 = vadd.f32 %v682_v35, %v681_v47  ;;  %v600_v34 = vrot.slane %v599_v50, 1  ;;  %3590 = vmatprep.subr.bf16.mxu0 %v13404_v13  ;;  %3733 = vmatprep.subr.bf16.mxu1 %v13368_v37  ;;  %v13380_v58 = vld [vmem:[#allocation12 + $0x4] ss:$24 sps:$4 sm:$0xff]  }
 0x220   :  { %v725_v48 = vadd.f32 %v724_v28, %v723_v23  ;;  %v806_v20 = vrot.slane %v805_v5, 4  ;;  %v642_v59 = vrot.slane %v641_v46, 1  ;;  %v765_v6 = vadd.f32 %v764_v42, %v763_v51 }
 0x221   :  { %v889_v12 = vadd.f32 %v17239_v21, %v17237_v39  ;;  %v848_v40 = vrot.slane %v847_v52, 4  ;;  %v565_v0 = vunpack.c.l.bf16 %v16307_v54  ;;  %v684_v56 = vrot.slane %v683_v16, 1 }
 0x222   :  { %v807_v25 = vadd.f32 %v806_v20, %v805_v5  ;;  %v16471_v44 = vadd.f32 %v600_v34, %v599_v50  ;;  %v726_v27 = vrot.slane %v725_v48, 1  ;;  %v766_v53 = vrot.slane %v765_v6, 2  ;;  %3591 = vmatpush1.bf16.msra.mxu0 %v13402_v19  ;;  %3734 = vmatpush1.bf16.msra.mxu1 %v13366_v30 }
 0x223   :  { %v890_v63 = vrot.slane %v889_v12, 4  ;;  %v849_v60 = vadd.f32 %v848_v40, %v847_v52  ;;  %v16473_v47 = vadd.f32 %v642_v59, %v641_v46  ;;  %v16475_v23 = vadd.f32 %v684_v56, %v683_v16  ;;  %3592 = vmatprep.subr.bf16.mxu0 %v13407_v36  ;;  %3735 = vmatprep.subr.bf16.mxu1 %v13374_v2  ;;  %v17251_v56 = vld [vmem:[#allocation37_spill] sm:$0xff]  ;;  %v17257_v36 = vld [vmem:[#allocation47_spill] sm:$0xff] }
 0x224   :  { %v808_v14 = vrot.slane %v807_v25, 2  ;;  %v767_v57 = vadd.f32 %v766_v53, %v765_v6  ;;  %v17240_v8 = vunpack.c.l.bf16 %v16244_v29  ;;  %v17241_v32 = vunpack.c.l.bf16 %v16251_v22  ;;  %v13372_v22 = vld [vmem:[#allocation9 + $0x8d8] ss:$24 sps:$4 sm:$0xff]   ;;  %v17255_v53 = vld [vmem:[#allocation46_spill] sm:$0xff] }
 0x225   :  { %v891_v15 = vadd.f32 %v890_v63, %v889_v12  ;;  %v850_v4 = vrot.slane %v849_v60, 2  ;;  %v17242_v43 = vunpack.c.l.bf16 %v16253_v62  ;;  %v17243_v35 = vunpack.c.l.bf16 %v16258_v41  ;;  %v13408_v6 = vld [vmem:[#allocation9 + $0x7b0] ss:$24 sps:$4 sm:$0xff]  }
 0x226   :  { %v931_v51 = vadd.f32 %v17241_v32, %v17240_v8  ;;  %v809_v11 = vadd.f32 %v808_v14, %v807_v25  ;;  %v17244_v31 = vunpack.c.l.bf16 %v16260_v17  ;;  %v17245_v5 = vunpack.c.l.bf16 %v16267_v18  ;;  %v13410_v18 = vld [vmem:[#allocation9 + $0x7b4] ss:$24 sps:$4 sm:$0xff]   ;;  %3593 = vmatpush1.bf16.msra.mxu0 %v13405_v7  ;;  %3736 = vmatpush1.bf16.msra.mxu1 %v13372_v22 }
 0x227   :  { %v892_v26 = vrot.slane %v891_v15, 2  ;;  %v973_v28 = vadd.f32 %v17243_v35, %v17242_v43  ;;  %v851_v10 = vadd.f32 %v850_v4, %v849_v60  ;;  %v17246_v3 = vunpack.c.l.bf16 %v16269_v9  ;;  %v17253_v60 = vld [vmem:[#allocation38_spill] sm:$0xff]  ;;  %3594 = vmatprep.subr.bf16.mxu0 %v13410_v18  ;;  %v17259_v8 = vld [vmem:[#allocation48_spill] sm:$0xff]  ;;  %3987 = vmatprep.subr.bf16.mxu1 %v13380_v58 }
 0x228   :  { %v1015_v55 = vadd.f32 %v17245_v5, %v17244_v31  ;;  %v17247_v29 = vunpack.c.l.bf16 %v16275_v1  ;;  %v768_v38 = vrot.slane %v767_v57, 1  ;;  %v932_v62 = vrot.slane %v931_v51, 4  ;;  %v13413_v4 = vld [vmem:[#allocation9 + $0x7e4] ss:$24 sps:$4 sm:$0xff]  }
 0x229   :  { %v16493_v52 = vadd.f32 %v892_v26, %v891_v15  ;;  %v974_v41 = vrot.slane %v973_v28, 4  ;;  %v810_v50 = vrot.slane %v809_v11, 1  ;;  %v852_v46 = vrot.slane %v851_v10, 1 }
 0x22a   :  { %v1057_v61 = vadd.f32 %v17247_v29, %v17246_v3  ;;  %v1016_v42 = vrot.slane %v1015_v55, 4  ;;  %v16495_v33 = vadd.f32 %v726_v27, %v725_v48  ;;  %v16497_v9 = vadd.f32 %v768_v38, %v767_v57  ;;  %v17249_v48 = vld [vmem:[#allocation36_spill] sm:$0xff]  ;;  %3595 = vmatpush1.bf16.msra.mxu0 %v13408_v6 }
 0x22b   :  { %v933_v1 = vadd.f32 %v932_v62, %v931_v51  ;;  %v975_v39 = vadd.f32 %v974_v41, %v973_v28  ;;  %v16499_v21 = vadd.f32 %v810_v50, %v809_v11  ;;  %v894_v12 = vrot.slane %v16493_v52, 1  ;;  %v13411_v3 = vld [vmem:[#allocation9 + $0x7e0] ss:$24 sps:$4 sm:$0xff]   ;;  %3596 = vmatprep.subr.bf16.mxu0 %v13413_v4  ;;  %v13416_v62 = vld [vmem:[#allocation9 + $0x814] ss:$24 sps:$4 sm:$0xff]  }
 0x22c   :  { %v1058_v17 = vrot.slane %v1057_v61, 4  ;;  %v1017_v45 = vadd.f32 %v1016_v42, %v1015_v55  ;;  %v16502_v16 = vadd.f32 %v852_v46, %v851_v10  ;;  %v17248_v13 = vunpack.c.l.bf16 %v16277_v49 }
 0x22d   :  { %v934_v20 = vrot.slane %v933_v1, 2  ;;  %v976_v40 = vrot.slane %v975_v39, 2  ;;  %v17250_v34 = vunpack.c.l.bf16 %v17249_v48  ;;  %v17252_v25 = vunpack.c.l.bf16 %v17251_v56  ;;  %v13419_v48 = vld [vmem:[#allocation9 + $0x844] ss:$24 sps:$4 sm:$0xff]  }
 0x22e   :  { %v1059_v37 = vadd.f32 %v1058_v17, %v1057_v61  ;;  %v1018_v63 = vrot.slane %v1017_v45, 2  ;;  %v17254_v30 = vunpack.c.l.bf16 %v17253_v60  ;;  %v17256_v15 = vunpack.c.l.bf16 %v17255_v53  ;;  %3597 = vmatpush1.bf16.msra.mxu0 %v13411_v3  ;;  %v16537_v60 = vld [vmem:[#allocation7 + $0x10] sm:$0xff]   ;;  %v13417_v53 = vld [vmem:[#allocation9 + $0x840] ss:$24 sps:$4 sm:$0xff]  }
 0x22f   :  { %v1099_v59 = vadd.f32 %v17250_v34, %v17248_v13  ;;  %v17258_v2 = vunpack.c.l.bf16 %v17257_v36  ;;  %v935_v49 = vadd.f32 %v934_v20, %v933_v1  ;;  %v977_v57 = vadd.f32 %v976_v40, %v975_v39  ;;  %3598 = vmatprep.subr.bf16.mxu0 %v13416_v62 }
 0x230   :  { %v1060_v19 = vrot.slane %v1059_v37, 2  ;;  %v1141_v27 = vadd.f32 %v17254_v30, %v17252_v25  ;;  %v17260_v32 = vunpack.c.l.bf16 %v17259_v8  ;;  %v1019_v43 = vadd.f32 %v1018_v63, %v1017_v45  ;;  %v13414_v45 = vld [vmem:[#allocation9 + $0x810] ss:$24 sps:$4 sm:$0xff]   ;;  %v16557_v8 = vld [vmem:[#allocation7 + $0x38] sm:$0xff]  }
 0x231   :  { %v1183_v14 = vadd.f32 %v17258_v2, %v17256_v15  ;;  %v1100_v26 = vrot.slane %v1099_v59, 4  ;;  %v936_v10 = vrot.slane %v935_v49, 1  ;;  %v978_v31 = vrot.slane %v977_v57, 1  ;;  %v16532_v63 = vld [vmem:[#allocation7 + $0x8] sm:$0xff]  }
 0x232   :  { %v1225_v51 = vadd.f32 %v565_v0, %v17260_v32  ;;  %v1061_v35 = vadd.f32 %v1060_v19, %v1059_v37  ;;  %v1142_v28 = vrot.slane %v1141_v27, 4  ;;  %v1020_v29 = vrot.slane %v1019_v43, 1  ;;  %3599 = vmatpush1.bf16.msra.mxu0 %v13414_v45  ;;  %v16547_v2 = vld [vmem:[#allocation7 + $0x28] sm:$0xff]  }
 0x233   :  { %v1184_v11 = vrot.slane %v1183_v14, 4  ;;  %v1101_v5 = vadd.f32 %v1100_v26, %v1099_v59  ;;  %v937_v41 = vadd.f32 %v936_v10, %v935_v49  ;;  %v979_v54 = vadd.f32 %v978_v31, %v977_v57  ;;  %3600 = vmatprep.subr.bf16.mxu0 %v13419_v48  ;;  %v16555_v26 = vld [vmem:[#allocation7 + $0x30] sm:$0xff]   ;;  %v13378_v32 = vld [vmem:[#allocation12] ss:$24 sps:$4 sm:$0xff]  }
 0x234   :  { %v1226_v55 = vrot.slane %v1225_v51, 4  ;;  %v1062_v61 = vrot.slane %v1061_v35, 1  ;;  %v1143_v22 = vadd.f32 %v1142_v28, %v1141_v27  ;;  %v1021_v50 = vadd.f32 %v1020_v29, %v1019_v43  ;;  %v16543_v27 = vld [vmem:[#allocation7 + $0x20] sm:$0xff]   ;;  %v13386_v31 = vld [vmem:[#allocation12 + $0x34] ss:$24 sps:$4 sm:$0xff]  }
 0x235   :  { %v1185_v38 = vadd.f32 %v1184_v11, %v1183_v14  ;;  %v1102_v0 = vrot.slane %v1101_v5, 2  ;;  %v1370_v39 = vsel %vm1335_vm0, %v16473_v47, %v16471_v44  ;;  %v1412_v58 = vsel %vm1335_vm0, %v979_v54, %v937_v41  ;;  %v16530_v47 = vld [vmem:[#allocation7] sm:$0xff]   ;;  %v13422_v14 = vld [vmem:[#allocation9 + $0x874] ss:$24 sps:$4 sm:$0xff]  }
 0x236   :  { %v1227_v7 = vadd.f32 %v1226_v55, %v1225_v51  ;;  %v1063_v46 = vadd.f32 %v1062_v61, %v1061_v35  ;;  %v1144_v42 = vrot.slane %v1143_v22, 2  ;;  %v1371_v40 = vsel %vm1337_vm1, %v16475_v23, %v1370_v39  ;;  %v16563_v28 = vld [vmem:[#allocation7 + $0x40] sm:$0xff]   ;;  %v16565_v11 = vld [vmem:[#allocation7 + $0x48] sm:$0xff]   ;;  %v16571_v29 = vld [vmem:[#allocation7 + $0x50] sm:$0xff]   ;;  %3601 = vmatpush1.bf16.msra.mxu0 %v13417_v53 }
 0x237   :  { %v1186_v17 = vrot.slane %v1185_v38, 2  ;;  %v1103_v18 = vadd.f32 %v1102_v0, %v1101_v5  ;;  %v1413_v13 = vsel %vm1337_vm1, %v1021_v50, %v1412_v58  ;;  %v895_v34 = vadd.f32 %v894_v12, %v16493_v52  ;;  %v16573_v61 = vld [vmem:[#allocation7 + $0x58] sm:$0xff]   ;;  %v16579_v0 = vld [vmem:[#allocation7 + $0x60] sm:$0xff]   ;;  %3602 = vmatprep.subr.bf16.mxu0 %v13422_v14  ;;  %v16597_v48 = vld [vmem:[#allocation7 + $0x70] sm:$0xff]  }
 0x238   :  { %v1228_v1 = vrot.slane %v1227_v7, 2  ;;  %v1145_v37 = vadd.f32 %v1144_v42, %v1143_v22  ;;  %v1372_v44 = vsel %vm1339_vm2, %v16495_v33, %v1371_v40  ;;  %v1414_v25 = vsel %vm1339_vm2, %v1063_v46, %v1413_v13  ;;  %v16541_v33 = vld [vmem:[#allocation7 + $0x18] sm:$0xff]   ;;  %v13420_v22 = vld [vmem:[#allocation9 + $0x870] ss:$24 sps:$4 sm:$0xff]  }
 0x239   :  { %v1187_v20 = vadd.f32 %v1186_v17, %v1185_v38  ;;  %v1104_v59 = vrot.slane %v1103_v18, 1  ;;  %v1373_v23 = vsel %vm1341_vm3, %v16497_v9, %v1372_v44  ;;  %v15329_v57 = vmov 0.0   ;;  %v13425_v50 = vld [vmem:[#allocation9 + $0x8a4] ss:$24 sps:$4 sm:$0xff]  }
 0x23a   :  { %v1229_v6 = vadd.f32 %v1228_v1, %v1227_v7  ;;  %v1146_v19 = vrot.slane %v1145_v37, 1  ;;  %v1374_v12 = vsel %vm1343_vm4, %v16499_v21, %v1373_v23  ;;  %265 = vst.msk [vmem:[#allocation3] sm:$0xff] %vm264_vm7, %v15329_v57  ;;  %266 = vst.msk [vmem:[#allocation3 + $0x8] sm:$0xff] %vm264_vm7, %v15329_v57  ;;  %v12789_v51 = vunpack.c.l.bf16 %v16530_v47  ;;  %v16581_v7 = vld [vmem:[#allocation7 + $0x68] sm:$0xff]   ;;  %3603 = vmatpush1.bf16.msra.mxu0 %v13420_v22 }
 0x23b   :  { %v1188_v56 = vrot.slane %v1187_v20, 1  ;;  %v1105_v30 = vadd.f32 %v1104_v59, %v1103_v18  ;;  %v1375_v9 = vsel %vm1345_vm5, %v16502_v16, %v1374_v12  ;;  %v12790_v43 = vunpack.c.h.bf16 %v16530_v47  ;;  %v13423_v59 = vld [vmem:[#allocation9 + $0x8a0] ss:$24 sps:$4 sm:$0xff]   ;;  %v13428_v23 = vld [vmem:[#allocation9 + $0x8d4] ss:$24 sps:$4 sm:$0xff]   ;;  %3604 = vmatprep.subr.bf16.mxu0 %v13425_v50 }
 0x23c   :  { %v1230_v52 = vrot.slane %v1229_v6, 1  ;;  %v1147_v15 = vadd.f32 %v1146_v19, %v1145_v37  ;;  %v1376_v49 = vsel %vm1347_vm6, %v895_v34, %v1375_v9  ;;  %v12793_v35 = vunpack.c.l.bf16 %v16532_v63  ;;  %v16599_v34 = vld [vmem:[#allocation7 + $0x78] sm:$0xff]  }
 0x23d   :  { %v1189_v36 = vadd.f32 %v1188_v56, %v1187_v20  ;;  %v1415_v21 = vsel %vm1341_vm3, %v1105_v30, %v1414_v25  ;;  %v12794_v5 = vunpack.c.h.bf16 %v16532_v63  ;;  %v12797_v55 = vunpack.c.l.bf16 %v16537_v60  ;;  %v13431_v25 = vld [vmem:[#allocation12 + $0xc] ss:$24 sps:$4 sm:$0xff]  }
 0x23e   :  { %v1231_v4 = vadd.f32 %v1230_v52, %v1229_v6  ;;  %v1416_v16 = vsel %vm1343_vm4, %v1147_v15, %v1415_v21  ;;  %v12798_v3 = vunpack.c.h.bf16 %v16537_v60  ;;  %v12801_v62 = vunpack.c.l.bf16 %v16541_v33  ;;  %v13384_v6 = vld [vmem:[#allocation12 + $0x30] ss:$24 sps:$4 sm:$0xff]   ;;  %3605 = vmatpush1.bf16.msra.mxu0 %v13423_v59 }
 0x23f   :  { %v1417_v10 = vsel %vm1345_vm5, %v1189_v36, %v1416_v16  ;;  %v12802_v41 = vunpack.c.h.bf16 %v16541_v33  ;;  %v12805_v54 = vunpack.c.l.bf16 %v16543_v27  ;;  %v12806_v42 = vunpack.c.h.bf16 %v16543_v27  ;;  %3606 = vmatprep.subr.bf16.mxu0 %v13428_v23 }
 0x240   :  { %v1418_v38 = vsel %vm1347_vm6, %v1231_v4, %v1417_v10  ;;  %v12809_v17 = vunpack.c.l.bf16 %v16547_v2  ;;  %v12810_v18 = vunpack.c.h.bf16 %v16547_v2  ;;  %v12813_v1 = vunpack.c.l.bf16 %v16555_v26  ;;  %v13426_v4 = vld [vmem:[#allocation9 + $0x8d0] ss:$24 sps:$4 sm:$0xff]   ;;  %v13434_v10 = vld [vmem:[#allocation9 + $0xc] ss:$24 sps:$4 sm:$0xff]  }
 0x241   :  { %v16583_v46 = vpack.c.bf16 %v1418_v38, %v1376_v49  ;;  %v12814_v39 = vunpack.c.h.bf16 %v16555_v26  ;;  %v12817_v58 = vunpack.c.l.bf16 %v16557_v8  ;;  %v12818_v45 = vunpack.c.h.bf16 %v16557_v8  ;;  %v13438_v26 = vld [vmem:[#allocation9 + $0x38] ss:$24 sps:$4 sm:$0xff]  }
 0x242   :  { %v12821_v37 = vunpack.c.l.bf16 %v16563_v28  ;;  %v12822_v20 = vunpack.c.h.bf16 %v16563_v28  ;;  %v12825_v40 = vunpack.c.l.bf16 %v16565_v11  ;;  %v12826_v13 = vunpack.c.h.bf16 %v16565_v11  ;;  %3607 = vmatpush1.bf16.msra.mxu0 %v13426_v4 }
 0x243   :  { %3738 = vmatmul.mubr.bf16.vlgmr.msra.gmra.mrb[0].mxu1 %v16583_v46  ;;  %v15330_v44 = vmov 0   ;;  %v12829_v47 = vunpack.c.l.bf16 %v16571_v29  ;;  %v12830_v63 = vunpack.c.h.bf16 %v16571_v29  ;;  %v12833_v19 = vunpack.c.l.bf16 %v16573_v61  ;;  %3619 = vmatprep.subr.bf16.mxu0 %v13434_v10 }
 0x244   :  { %3988 = vmatpush1.bf16.msra.mxu1 %v13378_v32  ;;  %4019 = vmatprep.mubr.bf16.mxu1 %v15330_v44  ;;  %v12834_v56 = vunpack.c.h.bf16 %v16573_v61  ;;  %v12837_v60 = vunpack.c.l.bf16 %v16579_v0  ;;  %v12838_v30 = vunpack.c.h.bf16 %v16579_v0  ;;  %v12841_v52 = vunpack.c.l.bf16 %v16581_v7 }
 0x245   :  { %3989 = vmatprep.subr.bf16.mxu1 %v13386_v31  ;;  %v12842_v12 = vunpack.c.h.bf16 %v16581_v7  ;;  %v12845_v33 = vunpack.c.l.bf16 %v16597_v48  ;;  %v12846_v27 = vunpack.c.h.bf16 %v16597_v48  ;;  %v12849_v53 = vunpack.c.l.bf16 %v16599_v34  ;;  %3609 = vmatmul.mubr.bf16.vlgmr.msra.gmra.mrb[0].mxu0 %v16583_v46 }
 0x246   :  { %v1529_v15 = vsel %vm264_vm7, %v12789_v51, 0.0  ;;  %v1530_v36 = vsel %vm264_vm7, %v12790_v43, 0.0  ;;  %v1538_v9 = vsel %vm264_vm7, %v12793_v35, 0.0  ;;  %v1539_v2 = vsel %vm264_vm7, %v12794_v5, 0.0 }
 0x247   :  { %v1547_v14 = vsel %vm264_vm7, %v12797_v55, 0.0  ;;  %v1531_v49 = vadd.f32 %v1530_v36, %v1529_v15  ;;  %v1540_v21 = vadd.f32 %v1539_v2, %v1538_v9  ;;  %v1548_v16 = vsel %vm264_vm7, %v12798_v3, 0.0 }
 0x248   :  { %3990 = vmatpush1.bf16.msra.mxu1 %v13384_v6  ;;  %v1556_v32 = vsel %vm264_vm7, %v12801_v62, 0.0  ;;  %v1549_v51 = vadd.f32 %v1548_v16, %v1547_v14  ;;  %v1557_v43 = vsel %vm264_vm7, %v12802_v41, 0.0  ;;  %v1565_v35 = vsel %vm264_vm7, %v12805_v54, 0.0  ;;  %v13432_v6 = vld [vmem:[#allocation9 + $0x8] ss:$24 sps:$4 sm:$0xff]  }
 0x249   :  { %v1566_v31 = vsel %vm264_vm7, %v12806_v42, 0.0  ;;  %4030 = vmatprep.subr.bf16.mxu1 %v13431_v25  ;;  %v1532_v5 = vrot.slane %v1531_v49, 4  ;;  %v1541_v55 = vrot.slane %v1540_v21, 4  ;;  %v1558_v22 = vadd.f32 %v1557_v43, %v1556_v32  ;;  %v13440_v42 = vld [vmem:[#allocation9 + $0x3c] ss:$24 sps:$4 sm:$0xff]   ;;  %3620 = vmatpush1.bf16.msra.mxu0 %v13432_v6 }
 0x24a   :  { %v1567_v38 = vadd.f32 %v1566_v31, %v1565_v35  ;;  %v1550_v50 = vrot.slane %v1549_v51, 4  ;;  %v1574_v59 = vsel %vm264_vm7, %v12809_v17, 0.0  ;;  %v1575_v3 = vsel %vm264_vm7, %v12810_v18, 0.0  ;;  %3621 = vmatprep.subr.bf16.mxu0 %v13440_v42  ;;  %v13443_v43 = vld [vmem:[#allocation9 + $0x6c] ss:$24 sps:$4 sm:$0xff]  }
 0x24b   :  { %v1583_v62 = vsel %vm264_vm7, %v12813_v1, 0.0  ;;  %v1533_v23 = vadd.f32 %v1532_v5, %v1531_v49  ;;  %v1542_v41 = vadd.f32 %v1541_v55, %v1540_v21  ;;  %v1559_v15 = vrot.slane %v1558_v22, 4  ;;  %v13441_v6 = vld [vmem:[#allocation9 + $0x68] ss:$24 sps:$4 sm:$0xff]   ;;  %v13446_v42 = vld [vmem:[#allocation9 + $0x9c] ss:$24 sps:$4 sm:$0xff]  }
 0x24c   :  { %v1568_v54 = vrot.slane %v1567_v38, 4  ;;  %v1551_v25 = vadd.f32 %v1550_v50, %v1549_v51  ;;  %v1576_v36 = vadd.f32 %v1575_v3, %v1574_v59  ;;  %v1584_v9 = vsel %vm264_vm7, %v12814_v39, 0.0  ;;  %v17261_v39 = vld [vmem:[#allocation71_spill] sm:$0xff] }
 0x24d   :  { %v1592_v17 = vsel %vm264_vm7, %v12817_v58, 0.0  ;;  %v1534_v18 = vrot.slane %v1533_v23, 2  ;;  %v1543_v1 = vrot.slane %v1542_v41, 2  ;;  %v1560_v2 = vadd.f32 %v1559_v15, %v1558_v22  ;;  %3651 = vmatprep.mubr.bf16.mxu0 %v17261_v39  ;;  %3622 = vmatpush1.bf16.msra.mxu0 %v13438_v26  ;;  %v13444_v26 = vld [vmem:[#allocation9 + $0x98] ss:$24 sps:$4 sm:$0xff]  }
 0x24e   :  { %v1569_v14 = vadd.f32 %v1568_v54, %v1567_v38  ;;  %v1552_v4 = vrot.slane %v1551_v25, 2  ;;  %v1577_v49 = vrot.slane %v1576_v36, 4  ;;  %v1585_v21 = vadd.f32 %v1584_v9, %v1583_v62  ;;  %3623 = vmatprep.subr.bf16.mxu0 %v13443_v43 }
 0x24f   :  { %v1593_v16 = vsel %vm264_vm7, %v12818_v45, 0.0  ;;  %v1535_v32 = vadd.f32 %v1534_v18, %v1533_v23  ;;  %v1544_v10 = vadd.f32 %v1543_v1, %v1542_v41  ;;  %v1561_v58 = vrot.slane %v1560_v2, 2 }
 0x250   :  { %v1570_v51 = vrot.slane %v1569_v14, 2  ;;  %v1553_v35 = vadd.f32 %v1552_v4, %v1551_v25  ;;  %v1578_v31 = vadd.f32 %v1577_v49, %v1576_v36  ;;  %v1586_v5 = vrot.slane %v1585_v21, 4 }
 0x251   :  { %v1594_v55 = vadd.f32 %v1593_v16, %v1592_v17  ;;  %v1536_v22 = vrot.slane %v1535_v32, 1  ;;  %v1545_v38 = vrot.slane %v1544_v10, 1  ;;  %v1562_v50 = vadd.f32 %v1561_v58, %v1560_v2  ;;  %3624 = vmatpush1.bf16.msra.mxu0 %v13441_v6 }
 0x252   :  { %v1571_v8 = vadd.f32 %v1570_v51, %v1569_v14  ;;  %v1554_v59 = vrot.slane %v1553_v35, 1  ;;  %v1579_v45 = vrot.slane %v1578_v31, 2  ;;  %v1587_v3 = vadd.f32 %v1586_v5, %v1585_v21  ;;  %3625 = vmatprep.subr.bf16.mxu0 %v13446_v42 }
 0x253   :  { %v1595_v62 = vrot.slane %v1594_v55, 4  ;;  %v12850_v23 = vunpack.c.h.bf16 %v16599_v34  ;;  %v16638_v41 = vadd.f32 %v1536_v22, %v1535_v32  ;;  %v16640_v15 = vadd.f32 %v1545_v38, %v1544_v10 }
 0x254   :  { %v1563_v54 = vrot.slane %v1562_v50, 1  ;;  %v1572_v25 = vrot.slane %v1571_v8, 1  ;;  %v1580_v36 = vadd.f32 %v1579_v45, %v1578_v31  ;;  %v1588_v9 = vrot.slane %v1587_v3, 2 }
 0x255   :  { %v1596_v17 = vadd.f32 %v1595_v62, %v1594_v55  ;;  %v16642_v18 = vadd.f32 %v1554_v59, %v1553_v35  ;;  %v1601_v2 = vsel %vm264_vm7, %v12821_v37, 0.0  ;;  %v1602_v14 = vsel %vm264_vm7, %v12822_v20, 0.0  ;;  %v13449_v20 = vld [vmem:[#allocation9 + $0xcc] ss:$24 sps:$4 sm:$0xff]   ;;  %3626 = vmatpush1.bf16.msra.mxu0 %v13444_v26  ;;  %v13447_v55 = vld [vmem:[#allocation9 + $0xc8] ss:$24 sps:$4 sm:$0xff]  }
 0x256   :  { %v16644_v1 = vadd.f32 %v1563_v54, %v1562_v50  ;;  %v1581_v4 = vrot.slane %v1580_v36, 1  ;;  %v1589_v49 = vadd.f32 %v1588_v9, %v1587_v3  ;;  %v1603_v16 = vadd.f32 %v1602_v14, %v1601_v2  ;;  %3627 = vmatprep.subr.bf16.mxu0 %v13449_v20  ;;  %v13450_v3 = vld [vmem:[#allocation9 + $0xf8] ss:$24 sps:$4 sm:$0xff]  }
 0x257   :  { %v1597_v21 = vrot.slane %v1596_v17, 2  ;;  %v1610_v32 = vsel %vm264_vm7, %v12825_v40, 0.0  ;;  %v1611_v10 = vsel %vm264_vm7, %v12826_v13, 0.0  ;;  %v1619_v28 = vsel %vm264_vm7, %v12829_v47, 0.0 }
 0x258   :  { %v1620_v37 = vsel %vm264_vm7, %v12830_v63, 0.0  ;;  %v16664_v58 = vadd.f32 %v1572_v25, %v1571_v8  ;;  %v1590_v51 = vrot.slane %v1589_v49, 1  ;;  %v1604_v40 = vrot.slane %v1603_v16, 4 }
 0x259   :  { %v16666_v43 = vadd.f32 %v1597_v21, %v1596_v17  ;;  %v1612_v35 = vadd.f32 %v1611_v10, %v1610_v32  ;;  %v1621_v11 = vadd.f32 %v1620_v37, %v1619_v28  ;;  %v1628_v13 = vsel %vm264_vm7, %v12833_v19, 0.0  ;;  %v13452_v19 = vld [vmem:[#allocation9 + $0xfc] ss:$24 sps:$4 sm:$0xff]   ;;  %3628 = vmatpush1.bf16.msra.mxu0 %v13447_v55 }
 0x25a   :  { %v1629_v29 = vsel %vm264_vm7, %v12834_v56, 0.0  ;;  %v16674_v47 = vadd.f32 %v1581_v4, %v1580_v36  ;;  %v16676_v63 = vadd.f32 %v1590_v51, %v1589_v49  ;;  %v1605_v31 = vadd.f32 %v1604_v40, %v1603_v16  ;;  %3629 = vmatprep.subr.bf16.mxu0 %v13452_v19  ;;  %v13453_v49 = vld [vmem:[#allocation9 + $0x128] ss:$24 sps:$4 sm:$0xff]   ;;  %v13458_v10 = vld [vmem:[#allocation9 + $0x15c] ss:$24 sps:$4 sm:$0xff]  }
 0x25b   :  { %v1630_v5 = vadd.f32 %v1629_v29, %v1628_v13  ;;  %v1613_v22 = vrot.slane %v1612_v35, 4  ;;  %v1622_v38 = vrot.slane %v1621_v11, 4  ;;  %v1637_v50 = vsel %vm264_vm7, %v12837_v60, 0.0  ;;  %v13455_v60 = vld [vmem:[#allocation9 + $0x12c] ss:$24 sps:$4 sm:$0xff]  }
 0x25c   :  { %v1638_v61 = vsel %vm264_vm7, %v12838_v30, 0.0  ;;  %v1599_v56 = vrot.slane %v16666_v43, 1  ;;  %v1606_v8 = vrot.slane %v1605_v31, 2  ;;  %v1646_v54 = vsel %vm264_vm7, %v12841_v52, 0.0 }
 0x25d   :  { %v1631_v59 = vrot.slane %v1630_v5, 4  ;;  %v1639_v45 = vadd.f32 %v1638_v61, %v1637_v50  ;;  %v1614_v62 = vadd.f32 %v1613_v22, %v1612_v35  ;;  %v1623_v6 = vadd.f32 %v1622_v38, %v1621_v11  ;;  %3630 = vmatpush1.bf16.msra.mxu0 %v13450_v3  ;;  %v13461_v38 = vld [vmem:[#allocation9 + $0x18c] ss:$24 sps:$4 sm:$0xff]  }
 0x25e   :  { %v1647_v0 = vsel %vm264_vm7, %v12842_v12, 0.0  ;;  %v1607_v30 = vadd.f32 %v1606_v8, %v1605_v31  ;;  %v1655_v2 = vsel %vm264_vm7, %v12845_v33, 0.0  ;;  %v1656_v52 = vsel %vm264_vm7, %v12846_v27, 0.0  ;;  %3631 = vmatprep.subr.bf16.mxu0 %v13455_v60  ;;  %v13456_v31 = vld [vmem:[#allocation9 + $0x158] ss:$24 sps:$4 sm:$0xff]  }
 0x25f   :  { %v1632_v42 = vadd.f32 %v1631_v59, %v1630_v5  ;;  %v1640_v25 = vrot.slane %v1639_v45, 4  ;;  %v1648_v36 = vadd.f32 %v1647_v0, %v1646_v54  ;;  %v1615_v9 = vrot.slane %v1614_v62, 2  ;;  %v1462_v3 = vld [vmem:[#allocation3] sm:$0xff] }
 0x260   :  { %v1624_v17 = vrot.slane %v1623_v6, 2  ;;  %v1608_v7 = vrot.slane %v1607_v30, 1  ;;  %v1657_v26 = vadd.f32 %v1656_v52, %v1655_v2  ;;  %v1664_v32 = vsel %vm264_vm7, %v12849_v53, 0.0  ;;  %v13462_v52 = vld [vmem:[#allocation9 + $0x1b8] ss:$24 sps:$4 sm:$0xff]  }
 0x261   :  { %v1633_v14 = vrot.slane %v1632_v42, 2  ;;  %v1641_v12 = vadd.f32 %v1640_v25, %v1639_v45  ;;  %v1649_v4 = vrot.slane %v1648_v36, 4  ;;  %v1616_v21 = vadd.f32 %v1615_v9, %v1614_v62  ;;  %3632 = vmatpush1.bf16.msra.mxu0 %v13453_v49 }
 0x262   :  { %v1625_v16 = vadd.f32 %v1624_v17, %v1623_v6  ;;  %v1609_v28 = vadd.f32 %v1608_v7, %v1607_v30  ;;  %v1658_v51 = vrot.slane %v1657_v26, 4  ;;  %v1665_v40 = vsel %vm264_vm7, %v12850_v23, 0.0  ;;  %3633 = vmatprep.subr.bf16.mxu0 %v13458_v10  ;;  %v13468_v10 = vld [vmem:[#allocation9 + $0x218] ss:$24 sps:$4 sm:$0xff]  }
 0x263   :  { %v1634_v33 = vadd.f32 %v1633_v14, %v1632_v42  ;;  %v1642_v37 = vrot.slane %v1641_v12, 2  ;;  %v1650_v48 = vadd.f32 %v1649_v4, %v1648_v36  ;;  %v1617_v27 = vrot.slane %v1616_v21, 1 }
 0x264   :  { %v1626_v20 = vrot.slane %v1625_v16, 1  ;;  %v1666_v29 = vadd.f32 %v1665_v40, %v1664_v32  ;;  %v1659_v55 = vadd.f32 %v1658_v51, %v1657_v26  ;;  %v1689_v22 = vsel %vm1335_vm0, %v16640_v15, %v16638_v41  ;;  %v13459_v15 = vld [vmem:[#allocation9 + $0x188] ss:$24 sps:$4 sm:$0xff]   ;;  %v13474_v40 = vld [vmem:[#allocation9 + $0x278] ss:$24 sps:$4 sm:$0xff]  }
 0x265   :  { %v1635_v35 = vrot.slane %v1634_v33, 1  ;;  %v1643_v11 = vadd.f32 %v1642_v37, %v1641_v12  ;;  %v1651_v13 = vrot.slane %v1650_v48, 2  ;;  %v1618_v53 = vadd.f32 %v1617_v27, %v1616_v21  ;;  %3634 = vmatpush1.bf16.msra.mxu0 %v13456_v31  ;;  %v13467_v12 = vld [vmem:[#allocation9 + $0x1ec] ss:$24 sps:$4 sm:$0xff]   ;;  %v13465_v21 = vld [vmem:[#allocation9 + $0x1e8] ss:$24 sps:$4 sm:$0xff]  }
 0x266   :  { %v1627_v5 = vadd.f32 %v1626_v20, %v1625_v16  ;;  %v1667_v34 = vrot.slane %v1666_v29, 4  ;;  %v1600_v23 = vadd.f32 %v1599_v56, %v16666_v43  ;;  %v1660_v8 = vrot.slane %v1659_v55, 2  ;;  %v13464_v56 = vld [vmem:[#allocation9 + $0x1bc] ss:$24 sps:$4 sm:$0xff]   ;;  %3635 = vmatprep.subr.bf16.mxu0 %v13461_v38  ;;  %v13471_v37 = vld [vmem:[#allocation9 + $0x248] ss:$24 sps:$4 sm:$0xff]  }
 0x267   :  { %v1636_v50 = vadd.f32 %v1635_v35, %v1634_v33  ;;  %v1644_v61 = vrot.slane %v1643_v11, 1  ;;  %v1652_v19 = vadd.f32 %v1651_v13, %v1650_v48  ;;  %v1690_v59 = vsel %vm1337_vm1, %v16642_v18, %v1689_v22  ;;  %v13470_v16 = vld [vmem:[#allocation9 + $0x21c] ss:$24 sps:$4 sm:$0xff]   ;;  %v13429_v27 = vld [vmem:[#allocation12 + $0x8] ss:$24 sps:$4 sm:$0xff]  }
 0x268   :  { %v1696_v45 = vsel %vm1335_vm0, %v1618_v53, %v1609_v28  ;;  %v1668_v54 = vadd.f32 %v1667_v34, %v1666_v29  ;;  %v1691_v41 = vsel %vm1339_vm2, %v16644_v1, %v1690_v59  ;;  %v1661_v0 = vadd.f32 %v1660_v8, %v1659_v55  ;;  %v13473_v28 = vld [vmem:[#allocation9 + $0x24c] ss:$24 sps:$4 sm:$0xff]   ;;  %v13476_v48 = vld [vmem:[#allocation9 + $0x27c] ss:$24 sps:$4 sm:$0xff]   ;;  %v13477_v31 = vld [vmem:[#allocation9 + $0x2a8] ss:$24 sps:$4 sm:$0xff]  }
 0x269   :  { %v1645_v62 = vadd.f32 %v1644_v61, %v1643_v11  ;;  %v1653_v6 = vrot.slane %v1652_v19, 1  ;;  %v1692_v60 = vsel %vm1341_vm3, %v16664_v58, %v1691_v41  ;;  %v1697_v43 = vsel %vm1337_vm1, %v1627_v5, %v1696_v45  ;;  %3636 = vmatpush1.bf16.msra.mxu0 %v13459_v15  ;;  %v13437_v20 = vld [vmem:[#allocation12 + $0x3c] ss:$24 sps:$4 sm:$0xff]   ;;  %v13435_v13 = vld [vmem:[#allocation12 + $0x38] ss:$24 sps:$4 sm:$0xff]   ;;  %v17262_v59 = vld [vmem:[#allocation39_spill] sm:$0xff] }
 0x26a   :  { %v1669_v18 = vrot.slane %v1668_v54, 2  ;;  %v1693_v42 = vsel %vm1343_vm4, %v16674_v47, %v1692_v60  ;;  %v1698_v25 = vsel %vm1339_vm2, %v1636_v50, %v1697_v43  ;;  %v1662_v36 = vrot.slane %v1661_v0, 1  ;;  %v1463_v47 = vld [vmem:[#allocation3 + $0x8] sm:$0xff]  ;;  %3637 = vmatprep.subr.bf16.mxu0 %v13464_v56  ;;  %v13479_v11 = vld [vmem:[#allocation9 + $0x2ac] ss:$24 sps:$4 sm:$0xff]  }
 0x26b   :  { %v1654_v30 = vadd.f32 %v1653_v6, %v1652_v19  ;;  %v1694_v1 = vsel %vm1345_vm5, %v16676_v63, %v1693_v42  ;;  %v1699_v9 = vsel %vm1341_vm3, %v1645_v62, %v1698_v25  ;;  %v13485_v29 = vld [vmem:[#allocation12 + $0x14] ss:$24 sps:$4 sm:$0xff]   ;;  %v13483_v5 = vld [vmem:[#allocation12 + $0x10] ss:$24 sps:$4 sm:$0xff]   ;;  %v13491_v55 = vld [vmem:[#allocation12 + $0x44] ss:$24 sps:$4 sm:$0xff]  }
 0x26c   :  { %v1670_v17 = vadd.f32 %v1669_v18, %v1668_v54  ;;  %v1695_v58 = vsel %vm1347_vm6, %v1600_v23, %v1694_v1  ;;  %v1663_v7 = vadd.f32 %v1662_v36, %v1661_v0  ;;  %v13482_v53 = vld [vmem:[#allocation9 + $0x2dc] ss:$24 sps:$4 sm:$0xff]   ;;  %v13480_v22 = vld [vmem:[#allocation9 + $0x2d8] ss:$24 sps:$4 sm:$0xff]   ;;  %v4118_v19 = vld [vmem:[#allocation15] sm:$0xf] }
 0x26d   :  { %v1700_v2 = vsel %vm1343_vm4, %v1654_v30, %v1699_v9  ;;  %v1705_v14 = vadd.f32 %v1695_v58, %v1462_v3  ;;  %3638 = vmatpush1.bf16.msra.mxu0 %v13462_v52  ;;  %v13488_v38 = vld [vmem:[#allocation9 + $0x14] ss:$24 sps:$4 sm:$0xff]   ;;  %v13489_v50 = vld [vmem:[#allocation12 + $0x40] ss:$24 sps:$4 sm:$0xff]   ;;  %v4137_v3 = vsel %vm4135_vm8, %v4118_v19, 0 }
 0x26e   :  { %v1671_v4 = vrot.slane %v1670_v17, 1  ;;  %v1701_v49 = vsel %vm1345_vm5, %v1663_v7, %v1700_v2  ;;  %3639 = vmatprep.subr.bf16.mxu0 %v13467_v12  ;;  %v13486_v61 = vld [vmem:[#allocation9 + $0x10] ss:$24 sps:$4 sm:$0xff]   ;;  %v13494_v34 = vld [vmem:[#allocation9 + $0x44] ss:$24 sps:$4 sm:$0xff]  }
 0x26f   :  { %1707 = vst.msk [vmem:[#allocation3] sm:$0xff] %vm264_vm7, %v1705_v14  ;;  %v13519_v23 = vld [vmem:[#allocation19 + $0x4] ss:$28 sps:$4 sm:$0xff]   ;;  %v13500_v6 = vld [vmem:[#allocation9 + $0xa4] ss:$24 sps:$4 sm:$0xff]  }
 0x270   :  { %v1672_v63 = vadd.f32 %v1671_v4, %v1670_v17  ;;  %v13492_v8 = vld [vmem:[#allocation9 + $0x40] ss:$24 sps:$4 sm:$0xff]   ;;  %v13497_v45 = vld [vmem:[#allocation9 + $0x74] ss:$24 sps:$4 sm:$0xff]   ;;  %v13495_v62 = vld [vmem:[#allocation9 + $0x70] ss:$24 sps:$4 sm:$0xff]  }
 0x271   :  { %3640 = vmatpush1.bf16.msra.mxu0 %v13465_v21  ;;  %v13516_v54 = vld [vmem:[%s16978_s2] sm:$0xff]   ;;  %v13498_v15 = vld [vmem:[#allocation9 + $0xa0] ss:$24 sps:$4 sm:$0xff]   ;;  %v13523_v43 = vld [vmem:[#allocation19 + $0x38] ss:$28 sps:$4 sm:$0xff]  }
 0x272   :  { %v1702_v26 = vsel %vm1347_vm6, %v1672_v63, %v1701_v49  ;;  %3641 = vmatprep.subr.bf16.mxu0 %v13470_v16  ;;  %v13517_v41 = vld [vmem:[#allocation19] ss:$28 sps:$4 sm:$0xff]   ;;  %v13506_v56 = vld [vmem:[#allocation9 + $0x104] ss:$24 sps:$4 sm:$0xff]   ;;  %v13504_v25 = vld [vmem:[#allocation9 + $0x100] ss:$24 sps:$4 sm:$0xff]  }
 0x273   :  { %v1706_v32 = vadd.f32 %v1702_v26, %v1463_v47  ;;  %v13503_v0 = vld [vmem:[#allocation9 + $0xd4] ss:$24 sps:$4 sm:$0xff]   ;;  %v13501_v60 = vld [vmem:[#allocation9 + $0xd0] ss:$24 sps:$4 sm:$0xff]   ;;  %v13529_v18 = vld [vmem:[#allocation19 + $0x70] ss:$28 sps:$4 sm:$0xff]  }
 0x274   :  { %v13531_v30 = vld [vmem:[#allocation19 + $0x74] ss:$28 sps:$4 sm:$0xff]   ;;  %v13537_v42 = vld [vmem:[#allocation19 + $0xac] ss:$28 sps:$4 sm:$0xff]   ;;  %v13509_v36 = vld [vmem:[#allocation9 + $0x134] ss:$24 sps:$4 sm:$0xff]  }
 0x275   :  { %1708 = vst.msk [vmem:[#allocation3 + $0x8] sm:$0xff] %vm264_vm7, %v1706_v32  ;;  %3642 = vmatpush1.bf16.msra.mxu0 %v13468_v10  ;;  %v13535_v1 = vld [vmem:[#allocation19 + $0xa8] ss:$28 sps:$4 sm:$0xff]   ;;  %v13507_v17 = vld [vmem:[#allocation9 + $0x130] ss:$24 sps:$4 sm:$0xff]  }
 0x276   :  { %v3877_v33 = vld [vmem:[#allocation3] sm:$0xff]  ;;  %3643 = vmatprep.subr.bf16.mxu0 %v13473_v28  ;;  %v13512_v58 = vld [vmem:[#allocation9 + $0x164] ss:$24 sps:$4 sm:$0xff]   ;;  %v13510_v7 = vld [vmem:[#allocation9 + $0x160] ss:$24 sps:$4 sm:$0xff]  }
 0x277   :  { %v13543_v9 = vld [vmem:[#allocation19 + $0xe4] ss:$28 sps:$4 sm:$0xff]   ;;  %v13549_v52 = vld [vmem:[#allocation19 + $0x11c] ss:$28 sps:$4 sm:$0xff]   ;;  %v13555_v47 = vld [vmem:[#allocation19 + $0x154] ss:$28 sps:$4 sm:$0xff]  }
 0x278   :  { %v13541_v2 = vld [vmem:[#allocation19 + $0xe0] ss:$28 sps:$4 sm:$0xff]   ;;  %v13547_v12 = vld [vmem:[#allocation19 + $0x118] ss:$28 sps:$4 sm:$0xff]   ;;  %v13553_v63 = vld [vmem:[#allocation19 + $0x150] ss:$28 sps:$4 sm:$0xff]  }
 0x279   :  { %3644 = vmatpush1.bf16.msra.mxu0 %v13471_v37  ;;  %v13515_v14 = vld [vmem:[#allocation9 + $0x194] ss:$24 sps:$4 sm:$0xff]   ;;  %v13513_v4 = vld [vmem:[#allocation9 + $0x190] ss:$24 sps:$4 sm:$0xff]   ;;  %v13522_v49 = vld [vmem:[#allocation9 + $0x1c4] ss:$24 sps:$4 sm:$0xff]  }
 0x27a   :  { %3645 = vmatprep.subr.bf16.mxu0 %v13476_v48  ;;  %v13561_v21 = vld [vmem:[#allocation19 + $0x18c] ss:$28 sps:$4 sm:$0xff]   ;;  %v13528_v26 = vld [vmem:[#allocation9 + $0x1f4] ss:$24 sps:$4 sm:$0xff]   ;;  %v13526_v28 = vld [vmem:[#allocation9 + $0x1f0] ss:$24 sps:$4 sm:$0xff]  }
 0x27b   :  { %v13520_v16 = vld [vmem:[#allocation9 + $0x1c0] ss:$24 sps:$4 sm:$0xff]   ;;  %v13565_v37 = vld [vmem:[#allocation19 + $0x1c0] ss:$28 sps:$4 sm:$0xff]  }
 0x27c   :  { %v3878_v51 = vld [vmem:[#allocation3 + $0x8] sm:$0xff]  ;;  %v13573_v48 = vld [vmem:[#allocation19 + $0x1fc] ss:$28 sps:$4 sm:$0xff]  }
 0x27d   :  { %v3879_v35 = vpack.c.bf16 %v3878_v51, %v3877_v33  ;;  %3646 = vmatpush1.bf16.msra.mxu0 %v13474_v40  ;;  %v13559_v32 = vld [vmem:[#allocation19 + $0x188] ss:$28 sps:$4 sm:$0xff]   ;;  %v13571_v51 = vld [vmem:[#allocation19 + $0x1f8] ss:$28 sps:$4 sm:$0xff]  }
 0x27e   :  { %3647 = vmatprep.subr.bf16.mxu0 %v13479_v11  ;;  %v13567_v10 = vld [vmem:[#allocation19 + $0x1c4] ss:$28 sps:$4 sm:$0xff]   ;;  %v13534_v33 = vld [vmem:[#allocation9 + $0x224] ss:$24 sps:$4 sm:$0xff]  }
 0x27f   :  { %11866 = vmatmul.mubr.msk.bf16.vlgmr.msra.gmra.mrb[4].mxu1 %vm264_vm7, %v3879_v35  ;;  %v13579_v40 = vld [vmem:[#allocation19 + $0x234] ss:$28 sps:$4 sm:$0xff]  }
 0x280   :  { %4031 = vmatpush1.bf16.msra.mxu1 %v13429_v27  ;;  %4062 = vmatprep.mubr.bf16.mxu1 %v15330_v44  ;;  %v13532_v27 = vld [vmem:[#allocation9 + $0x220] ss:$24 sps:$4 sm:$0xff]   ;;  %v13546_v11 = vld [vmem:[#allocation9 + $0x284] ss:$24 sps:$4 sm:$0xff]  }
 0x281   :  { %4032 = vmatprep.subr.bf16.mxu1 %v13437_v20  ;;  %3648 = vmatpush1.bf16.msra.mxu0 %v13477_v31  ;;  %v13540_v20 = vld [vmem:[#allocation9 + $0x254] ss:$24 sps:$4 sm:$0xff]   ;;  %v13544_v31 = vld [vmem:[#allocation9 + $0x280] ss:$24 sps:$4 sm:$0xff]  }
 0x282   :  { %3649 = vmatprep.subr.bf16.mxu0 %v13482_v53  ;;  %v13552_v53 = vld [vmem:[#allocation9 + $0x2b4] ss:$24 sps:$4 sm:$0xff]   ;;  %v13556_v19 = vld [vmem:[#allocation9 + $0x2e0] ss:$24 sps:$4 sm:$0xff]  }
 0x284   :  { %4033 = vmatpush1.bf16.msra.mxu1 %v13435_v13  ;;  %v13577_v13 = vld [vmem:[#allocation19 + $0x230] ss:$28 sps:$4 sm:$0xff]  }
 0x285   :  { %4073 = vmatprep.subr.bf16.mxu1 %v13485_v29  ;;  %3650 = vmatpush1.bf16.msra.mxu0 %v13480_v22  ;;  %v13585_v29 = vld [vmem:[#allocation19 + $0x26c] ss:$28 sps:$4 sm:$0xff]   ;;  %v13550_v22 = vld [vmem:[#allocation9 + $0x2b0] ss:$24 sps:$4 sm:$0xff]  }
 0x286   :  { %3748 = vmatprep.subr.bf16.mxu0 %v13488_v38  ;;  %v13558_v38 = vld [vmem:[#allocation9 + $0x2e4] ss:$24 sps:$4 sm:$0xff]  }
 0x287   :  { %11867 = vmatmul.mubr.msk.bf16.vlgmr.msra.gmra.mrb[8].mxu1 %vm264_vm7, %v3879_v35 }
 0x288   :  { %4074 = vmatpush1.bf16.msra.mxu1 %v13483_v5  ;;  %4105 = vmatprep.mubr.bf16.mxu1 %v15330_v44  ;;  %v13583_v5 = vld [vmem:[#allocation19 + $0x268] ss:$28 sps:$4 sm:$0xff]  }
 0x289   :  { %4075 = vmatprep.subr.bf16.mxu1 %v13491_v55  ;;  %3652 = vmatmul.mubr.bf16.vlgmr.msra.gmra.mrb[4].mxu0 %v17262_v59  ;;  %v13591_v55 = vld [vmem:[#allocation19 + $0x2a4] ss:$28 sps:$4 sm:$0xff]  }
 0x28a   :  { %3749 = vmatpush1.bf16.msra.mxu0 %v13486_v61  ;;  %3780 = vmatprep.mubr.bf16.mxu0 %v17261_v39  ;;  %v13525_v39 = vld [vmem:[#allocation19 + $0x3c] ss:$28 sps:$4 sm:$0xff]  }
 0x28b   :  { %3750 = vmatprep.subr.bf16.mxu0 %v13494_v34  ;;  %v13597_v61 = vld [vmem:[#allocation19 + $0x2dc] ss:$28 sps:$4 sm:$0xff]  }
 0x28c   :  { %4076 = vmatpush1.bf16.msra.mxu1 %v13489_v50  ;;  %v13589_v50 = vld [vmem:[#allocation19 + $0x2a0] ss:$28 sps:$4 sm:$0xff]  }
 0x28d   :  { %13003 = vmatprep.subr.bf16.mxu1 %v15329_v57  ;;  %v13564_v34 = vld [vmem:[#allocation9 + $0x314] ss:$24 sps:$4 sm:$0xff]  }
 0x28e   :  { %3751 = vmatpush1.bf16.msra.mxu0 %v13492_v8  ;;  %v13562_v8 = vld [vmem:[#allocation9 + $0x310] ss:$24 sps:$4 sm:$0xff]  }
 0x28f   :  { %11868 = vmatmul.mubr.msk.bf16.vlgmr.msra.gmra.mrb[12].mxu1 %vm264_vm7, %v3879_v35  ;;  %3752 = vmatprep.subr.bf16.mxu0 %v13497_v45  ;;  %v13538_v35 = vld [vmem:[#allocation9 + $0x250] ss:$24 sps:$4 sm:$0xff]   ;;  %v13570_v45 = vld [vmem:[#allocation9 + $0x344] ss:$24 sps:$4 sm:$0xff]  }
 0x290   :  { %13004 = vmatpush3.bf16.msra.mxu1 %v4137_v3  ;;  %13005 = vmatprep.mubr.msk.bf16.mxu1 %vm15331_vm9, %v15329_v57  ;;  %v13568_v3 = vld [vmem:[#allocation9 + $0x340] ss:$24 sps:$4 sm:$0xff]  }
 0x291   :  { %6688 = vmatprep.subr.bf16.mxu1 %v13519_v23  ;;  %v13595_v23 = vld [vmem:[#allocation19 + $0x2d8] ss:$28 sps:$4 sm:$0xff]  }
 0x292   :  { %3753 = vmatpush1.bf16.msra.mxu0 %v13495_v62  ;;  %v13576_v62 = vld [vmem:[#allocation9 + $0x374] ss:$24 sps:$4 sm:$0xff]  }
 0x293   :  { %3754 = vmatprep.subr.bf16.mxu0 %v13500_v6  ;;  %v17263_v6 = vld [vmem:[#allocation73_spill] sm:$0xff] }
 0x296   :  { %3755 = vmatpush1.bf16.msra.mxu0 %v13498_v15  ;;  %v13582_v15 = vld [vmem:[#allocation9 + $0x3a4] ss:$24 sps:$4 sm:$0xff]  }
 0x297   :  { %13006 = vmatmul.mubr.msk.bf16.vlgmr.msra.gmra.mrb[16].mxu1 %vm4131_vm10, %v13516_v54  ;;  %3756 = vmatprep.subr.bf16.mxu0 %v13503_v0  ;;  %v13603_v54 = vld [vmem:[#allocation19 + $0x314] ss:$28 sps:$4 sm:$0xff]   ;;  %v13609_v0 = vld [vmem:[#allocation19 + $0x34c] ss:$28 sps:$4 sm:$0xff]  }
 0x298   :  { %6689 = vmatpush1.bf16.msra.mxu1 %v13517_v41  ;;  %v13574_v41 = vld [vmem:[#allocation9 + $0x370] ss:$24 sps:$4 sm:$0xff]  }
 0x299   :  { %6690 = vmatprep.subr.bf16.mxu1 %v13525_v39  ;;  %v13601_v39 = vld [vmem:[#allocation19 + $0x310] ss:$28 sps:$4 sm:$0xff]  }
 0x29a   :  { %3757 = vmatpush1.bf16.msra.mxu0 %v13501_v60  ;;  %v13580_v60 = vld [vmem:[#allocation9 + $0x3a0] ss:$24 sps:$4 sm:$0xff]  }
 0x29b   :  { %3758 = vmatprep.subr.bf16.mxu0 %v13506_v56  ;;  %v13588_v56 = vld [vmem:[#allocation9 + $0x3d4] ss:$24 sps:$4 sm:$0xff]  }
 0x29c   :  { %6691 = vmatpush1.bf16.msra.mxu1 %v13523_v43  ;;  %v13607_v43 = vld [vmem:[#allocation19 + $0x348] ss:$28 sps:$4 sm:$0xff]  }
 0x29d   :  { %6692 = vmatprep.subr.bf16.mxu1 %v13531_v30  ;;  %v13586_v30 = vld [vmem:[#allocation9 + $0x3d0] ss:$24 sps:$4 sm:$0xff]  }
 0x29e   :  { %3759 = vmatpush1.bf16.msra.mxu0 %v13504_v25  ;;  %v13600_v25 = vld [vmem:[#allocation9 + $0x434] ss:$24 sps:$4 sm:$0xff]  }
 0x29f   :  { %3760 = vmatprep.subr.bf16.mxu0 %v13509_v36  ;;  %v13598_v36 = vld [vmem:[#allocation9 + $0x430] ss:$24 sps:$4 sm:$0xff]  }
 0x2a0   :  { %6693 = vmatpush1.bf16.msra.mxu1 %v13529_v18  ;;  %v13594_v18 = vld [vmem:[#allocation9 + $0x404] ss:$24 sps:$4 sm:$0xff]  }
 0x2a1   :  { %6694 = vmatprep.subr.bf16.mxu1 %v13537_v42  ;;  %v13592_v42 = vld [vmem:[#allocation9 + $0x400] ss:$24 sps:$4 sm:$0xff]  }
 0x2a2   :  { %3761 = vmatpush1.bf16.msra.mxu0 %v13507_v17  ;;  %v13612_v17 = vld [vmem:[#allocation9 + $0x494] ss:$24 sps:$4 sm:$0xff]  }
 0x2a3   :  { %3762 = vmatprep.subr.bf16.mxu0 %v13512_v58  ;;  %v13610_v58 = vld [vmem:[#allocation9 + $0x490] ss:$24 sps:$4 sm:$0xff]  }
 0x2a4   :  { %6695 = vmatpush1.bf16.msra.mxu1 %v13535_v1  ;;  %v13606_v1 = vld [vmem:[#allocation9 + $0x464] ss:$24 sps:$4 sm:$0xff]  }
 0x2a5   :  { %6696 = vmatprep.subr.bf16.mxu1 %v13543_v9  ;;  %v13604_v9 = vld [vmem:[#allocation9 + $0x460] ss:$24 sps:$4 sm:$0xff]  }
 0x2a6   :  { %3763 = vmatpush1.bf16.msra.mxu0 %v13510_v7  ;;  %v13624_v7 = vld [vmem:[#allocation9 + $0x4f4] ss:$24 sps:$4 sm:$0xff]  }
 0x2a7   :  { %3764 = vmatprep.subr.bf16.mxu0 %v13515_v14  ;;  %v13622_v14 = vld [vmem:[#allocation9 + $0x4f0] ss:$24 sps:$4 sm:$0xff]  }
 0x2a8   :  { %6697 = vmatpush1.bf16.msra.mxu1 %v13541_v2  ;;  %v13618_v2 = vld [vmem:[#allocation9 + $0x4c4] ss:$24 sps:$4 sm:$0xff]  }
 0x2a9   :  { %6698 = vmatprep.subr.bf16.mxu1 %v13549_v52  ;;  %v13616_v52 = vld [vmem:[#allocation9 + $0x4c0] ss:$24 sps:$4 sm:$0xff]  }
 0x2aa   :  { %3765 = vmatpush1.bf16.msra.mxu0 %v13513_v4  ;;  %v13636_v4 = vld [vmem:[#allocation9 + $0x554] ss:$24 sps:$4 sm:$0xff]  }
 0x2ab   :  { %3766 = vmatprep.subr.bf16.mxu0 %v13522_v49  ;;  %v13634_v49 = vld [vmem:[#allocation9 + $0x550] ss:$24 sps:$4 sm:$0xff]  }
 0x2ac   :  { %6699 = vmatpush1.bf16.msra.mxu1 %v13547_v12  ;;  %v13630_v12 = vld [vmem:[#allocation9 + $0x524] ss:$24 sps:$4 sm:$0xff]  }
 0x2ad   :  { %6700 = vmatprep.subr.bf16.mxu1 %v13555_v47  ;;  %v13628_v47 = vld [vmem:[#allocation9 + $0x520] ss:$24 sps:$4 sm:$0xff]  }
 0x2ae   :  { %3767 = vmatpush1.bf16.msra.mxu0 %v13520_v16  ;;  %v13648_v16 = vld [vmem:[#allocation9 + $0x5b4] ss:$24 sps:$4 sm:$0xff]  }
 0x2af   :  { %3768 = vmatprep.subr.bf16.mxu0 %v13528_v26  ;;  %v13646_v26 = vld [vmem:[#allocation9 + $0x5b0] ss:$24 sps:$4 sm:$0xff]  }
 0x2b0   :  { %6701 = vmatpush1.bf16.msra.mxu1 %v13553_v63  ;;  %v13642_v63 = vld [vmem:[#allocation9 + $0x584] ss:$24 sps:$4 sm:$0xff]  }
 0x2b1   :  { %6702 = vmatprep.subr.bf16.mxu1 %v13561_v21  ;;  %v13640_v21 = vld [vmem:[#allocation9 + $0x580] ss:$24 sps:$4 sm:$0xff]  }
 0x2b2   :  { %3769 = vmatpush1.bf16.msra.mxu0 %v13526_v28  ;;  %v13660_v28 = vld [vmem:[#allocation9 + $0x614] ss:$24 sps:$4 sm:$0xff]  }
 0x2b3   :  { %3770 = vmatprep.subr.bf16.mxu0 %v13534_v33  ;;  %v13658_v33 = vld [vmem:[#allocation9 + $0x610] ss:$24 sps:$4 sm:$0xff]  }
 0x2b4   :  { %6703 = vmatpush1.bf16.msra.mxu1 %v13559_v32  ;;  %v13654_v32 = vld [vmem:[#allocation9 + $0x5e4] ss:$24 sps:$4 sm:$0xff]  }
 0x2b5   :  { %6704 = vmatprep.subr.bf16.mxu1 %v13567_v10  ;;  %v13652_v10 = vld [vmem:[#allocation9 + $0x5e0] ss:$24 sps:$4 sm:$0xff]  }
 0x2b6   :  { %3771 = vmatpush1.bf16.msra.mxu0 %v13532_v27  ;;  %v13664_v27 = vld [vmem:[#allocation9 + $0x640] ss:$24 sps:$4 sm:$0xff]  }
 0x2b7   :  { %3772 = vmatprep.subr.bf16.mxu0 %v13540_v20  ;;  %v13672_v20 = vld [vmem:[#allocation9 + $0x674] ss:$24 sps:$4 sm:$0xff]  }
 0x2b8   :  { %6705 = vmatpush1.bf16.msra.mxu1 %v13565_v37  ;;  %v13666_v37 = vld [vmem:[#allocation9 + $0x644] ss:$24 sps:$4 sm:$0xff]  }
 0x2b9   :  { %6706 = vmatprep.subr.bf16.mxu1 %v13573_v48  ;;  %v17264_v48 = vld [vmem:[#allocation45_spill] sm:$0xff] }
 0x2ba   :  { %3773 = vmatpush1.bf16.msra.mxu0 %v13538_v35 }
 0x2bb   :  { %3774 = vmatprep.subr.bf16.mxu0 %v13546_v11  ;;  %v13676_v11 = vld [vmem:[#allocation9 + $0x6a0] ss:$24 sps:$4 sm:$0xff]  }
 0x2bc   :  { %6707 = vmatpush1.bf16.msra.mxu1 %v13571_v51  ;;  %v13670_v51 = vld [vmem:[#allocation9 + $0x670] ss:$24 sps:$4 sm:$0xff]  }
 0x2bd   :  { %6708 = vmatprep.subr.bf16.mxu1 %v13579_v40  ;;  %v13678_v40 = vld [vmem:[#allocation9 + $0x6a4] ss:$24 sps:$4 sm:$0xff]  }
 0x2be   :  { %3775 = vmatpush1.bf16.msra.mxu0 %v13544_v31 }
 0x2bf   :  { %3776 = vmatprep.subr.bf16.mxu0 %v13552_v53 }
 0x2c0   :  { %6709 = vmatpush1.bf16.msra.mxu1 %v13577_v13  ;;  %v13684_v13 = vld [vmem:[#allocation9 + $0x6d4] ss:$24 sps:$4 sm:$0xff]  }
 0x2c1   :  { %6710 = vmatprep.subr.bf16.mxu1 %v13585_v29 }
 0x2c2   :  { %3777 = vmatpush1.bf16.msra.mxu0 %v13550_v22  ;;  %v13696_v22 = vld [vmem:[#allocation9 + $0x734] ss:$24 sps:$4 sm:$0xff]  }
 0x2c3   :  { %3778 = vmatprep.subr.bf16.mxu0 %v13558_v38  ;;  %v13694_v38 = vld [vmem:[#allocation9 + $0x730] ss:$24 sps:$4 sm:$0xff]  }
 0x2c4   :  { %6711 = vmatpush1.bf16.msra.mxu1 %v13583_v5  ;;  %v13682_v5 = vld [vmem:[#allocation9 + $0x6d0] ss:$24 sps:$4 sm:$0xff]  }
 0x2c5   :  { %6712 = vmatprep.subr.bf16.mxu1 %v13591_v55  ;;  %v13688_v55 = vld [vmem:[#allocation9 + $0x700] ss:$24 sps:$4 sm:$0xff]  }
 0x2c6   :  { %3779 = vmatpush1.bf16.msra.mxu0 %v13556_v19  ;;  %v13708_v19 = vld [vmem:[#allocation9 + $0x794] ss:$24 sps:$4 sm:$0xff]  }
 0x2c7   :  { %3791 = vmatprep.subr.bf16.mxu0 %v13564_v34  ;;  %v13706_v34 = vld [vmem:[#allocation9 + $0x790] ss:$24 sps:$4 sm:$0xff]  }
 0x2c8   :  { %6713 = vmatpush1.bf16.msra.mxu1 %v13589_v50  ;;  %v13702_v50 = vld [vmem:[#allocation9 + $0x764] ss:$24 sps:$4 sm:$0xff]  }
 0x2c9   :  { %6714 = vmatprep.subr.bf16.mxu1 %v13597_v61  ;;  %3781 = vmatmul.mubr.bf16.vlgmr.msra.gmra.mrb[8].mxu0 %v17262_v59  ;;  %v13615_v59 = vld [vmem:[#allocation19 + $0x384] ss:$28 sps:$4 sm:$0xff]  }
 0x2ca   :  { %3792 = vmatpush1.bf16.msra.mxu0 %v13562_v8  ;;  %3823 = vmatprep.mubr.bf16.mxu0 %v17263_v6  ;;  %v13700_v61 = vld [vmem:[#allocation9 + $0x760] ss:$24 sps:$4 sm:$0xff]  }
 0x2cb   :  { %3793 = vmatprep.subr.bf16.mxu0 %v13570_v45  ;;  %v13712_v8 = vld [vmem:[#allocation9 + $0x7c0] ss:$24 sps:$4 sm:$0xff]   ;;  %v13720_v45 = vld [vmem:[#allocation9 + $0x7f4] ss:$24 sps:$4 sm:$0xff]  }
 0x2cc   :  { %6715 = vmatpush1.bf16.msra.mxu1 %v13595_v23  ;;  %v13714_v23 = vld [vmem:[#allocation9 + $0x7c4] ss:$24 sps:$4 sm:$0xff]   ;;  %v13724_v6 = vld [vmem:[#allocation9 + $0x820] ss:$24 sps:$4 sm:$0xff]  }
 0x2cd   :  { %6716 = vmatprep.subr.bf16.mxu1 %v13603_v54  ;;  %v13732_v54 = vld [vmem:[#allocation9 + $0x854] ss:$24 sps:$4 sm:$0xff]  }
 0x2ce   :  { %3794 = vmatpush1.bf16.msra.mxu0 %v13568_v3  ;;  %v13718_v3 = vld [vmem:[#allocation9 + $0x7f0] ss:$24 sps:$4 sm:$0xff]  }
 0x2cf   :  { %3795 = vmatprep.subr.bf16.mxu0 %v13576_v62  ;;  %v13726_v62 = vld [vmem:[#allocation9 + $0x824] ss:$24 sps:$4 sm:$0xff]  }
 0x2d0   :  { %6717 = vmatpush1.bf16.msra.mxu1 %v13601_v39  ;;  %v2020_v39 = vlaneseq }
 0x2d1   :  { %6718 = vmatprep.subr.bf16.mxu1 %v13609_v0  ;;  %v13736_v0 = vld [vmem:[#allocation9 + $0x880] ss:$24 sps:$4 sm:$0xff]  }
 0x2d2   :  { %3796 = vmatpush1.bf16.msra.mxu0 %v13574_v41  ;;  %v13730_v41 = vld [vmem:[#allocation9 + $0x850] ss:$24 sps:$4 sm:$0xff]  }
 0x2d3   :  { %3797 = vmatprep.subr.bf16.mxu0 %v13582_v15  ;;  %v13738_v15 = vld [vmem:[#allocation9 + $0x884] ss:$24 sps:$4 sm:$0xff]  }
 0x2d4   :  { %6719 = vmatpush1.bf16.msra.mxu1 %v13607_v43  ;;  %v13744_v43 = vld [vmem:[#allocation9 + $0x8b4] ss:$24 sps:$4 sm:$0xff]  }
 0x2d5   :  { %6731 = vmatprep.subr.bf16.mxu1 %v13615_v59 }
 0x2d6   :  { %3798 = vmatpush1.bf16.msra.mxu0 %v13580_v60  ;;  %v16752_v60 = vshrl.u32 %v2020_v39, 7 }
 0x2d7   :  { %3799 = vmatprep.subr.bf16.mxu0 %v13588_v56  ;;  %v13742_v56 = vld [vmem:[#allocation9 + $0x8b0] ss:$24 sps:$4 sm:$0xff]  }
 0x2d8   :  { %v16755_v59 = vsub.s32 0, %v16752_v60 }
 0x2da   :  { %3800 = vmatpush1.bf16.msra.mxu0 %v13586_v30  ;;  %v16758_v30 = vsub.s32 1, %v16752_v60 }
 0x2db   :  { %3801 = vmatprep.subr.bf16.mxu0 %v13594_v18  ;;  %v13750_v18 = vld [vmem:[#allocation9 + $0x8e4] ss:$24 sps:$4 sm:$0xff]  }
 0x2de   :  { %3802 = vmatpush1.bf16.msra.mxu0 %v13592_v42  ;;  %v16760_v42 = vld [vmem:[#allocation10] sm:$0x3f] }
 0x2df   :  { %3803 = vmatprep.subr.bf16.mxu0 %v13600_v25 }
 0x2e2   :  { %3804 = vmatpush1.bf16.msra.mxu0 %v13598_v36  ;;  %v2023_v36 = vrot.slane %v16760_v42, %v16755_v59 }
 0x2e3   :  { %3805 = vmatprep.subr.bf16.mxu0 %v13606_v1  ;;  %v2027_v1 = vrot.slane %v16760_v42, %v16758_v30 }
 0x2e6   :  { %3806 = vmatpush1.bf16.msra.mxu0 %v13604_v9 }
 0x2e7   :  { %3807 = vmatprep.subr.bf16.mxu0 %v13612_v17  ;;  %v13748_v17 = vld [vmem:[#allocation9 + $0x8e0] ss:$24 sps:$4 sm:$0xff]  }
 0x2ea   :  { %3808 = vmatpush1.bf16.msra.mxu0 %v13610_v58  ;;  %v13756_v58 = vld [vmem:[#allocation19 + $0xc] ss:$28 sps:$4 sm:$0xff]  }
 0x2eb   :  { %3809 = vmatprep.subr.bf16.mxu0 %v13618_v2 }
 0x2ee   :  { %3810 = vmatpush1.bf16.msra.mxu0 %v13616_v52 }
 0x2ef   :  { %3811 = vmatprep.subr.bf16.mxu0 %v13624_v7 }
 0x2f2   :  { %3812 = vmatpush1.bf16.msra.mxu0 %v13622_v14 }
 0x2f3   :  { %3813 = vmatprep.subr.bf16.mxu0 %v13630_v12 }
 0x2f6   :  { %3814 = vmatpush1.bf16.msra.mxu0 %v13628_v47  ;;  %v13754_v47 = vld [vmem:[#allocation19 + $0x8] ss:$28 sps:$4 sm:$0xff]  }
 0x2f7   :  { %3815 = vmatprep.subr.bf16.mxu0 %v13636_v4 }
 0x2fa   :  { %3816 = vmatpush1.bf16.msra.mxu0 %v13634_v49  ;;  %v13762_v49 = vld [vmem:[#allocation19 + $0x44] ss:$28 sps:$4 sm:$0xff]  }
 0x2fb   :  { %3817 = vmatprep.subr.bf16.mxu0 %v13642_v63 }
 0x2fe   :  { %3818 = vmatpush1.bf16.msra.mxu0 %v13640_v21  ;;  %v16768_v21 = vld [vmem:[#allocation13] sm:$0x3f] }
 0x2ff   :  { %3819 = vmatprep.subr.bf16.mxu0 %v13648_v16 }
 0x302   :  { %3820 = vmatpush1.bf16.msra.mxu0 %v13646_v26  ;;  %v13760_v26 = vld [vmem:[#allocation19 + $0x40] ss:$28 sps:$4 sm:$0xff]  }
 0x303   :  { %3821 = vmatprep.subr.bf16.mxu0 %v13654_v32  ;;  %v13768_v32 = vld [vmem:[#allocation19 + $0x7c] ss:$28 sps:$4 sm:$0xff]  }
 0x306   :  { %3822 = vmatpush1.bf16.msra.mxu0 %v13652_v10  ;;  %v3897_v10 = vrot.slane %v16768_v21, %v16755_v59 }
 0x307   :  { %3834 = vmatprep.subr.bf16.mxu0 %v13660_v28 }
 0x309   :  { %3824 = vmatmul.mubr.bf16.vlgmr.msra.gmra.mrb[8].mxu0 %v17264_v48 }
 0x30a   :  { %3835 = vmatpush1.bf16.msra.mxu0 %v13658_v33  ;;  %3866 = vmatprep.mubr.bf16.mxu0 %v16450_v24  ;;  %v13690_v24 = vld [vmem:[#allocation9 + $0x704] ss:$24 sps:$4 sm:$0xff]   ;;  %v3901_v33 = vrot.slane %v16768_v21, %v16758_v30 }
 0x30b   :  { %3836 = vmatprep.subr.bf16.mxu0 %v13666_v37  ;;  %v13766_v37 = vld [vmem:[#allocation19 + $0x78] ss:$28 sps:$4 sm:$0xff]  }
 0x30e   :  { %3837 = vmatpush1.bf16.msra.mxu0 %v13664_v27  ;;  %v16778_v27 = vsub.s32 2, %v16752_v60 }
 0x30f   :  { %3838 = vmatprep.subr.bf16.mxu0 %v13672_v20  ;;  %v13774_v20 = vld [vmem:[#allocation19 + $0xb4] ss:$28 sps:$4 sm:$0xff]  }
 0x312   :  { %3839 = vmatpush1.bf16.msra.mxu0 %v13670_v51  ;;  %v16781_v51 = vsub.s32 3, %v16752_v60 }
 0x313   :  { %3840 = vmatprep.subr.bf16.mxu0 %v13678_v40 }
 0x316   :  { %v16744_v35 = vpop.f32.mrb[0].mxu1  ;;  %3841 = vmatpush1.bf16.msra.mxu0 %v13676_v11 }
 0x317   :  { %v16746_v29 = vpop.f32.mrb[1].mxu1  ;;  %3842 = vmatprep.subr.bf16.mxu0 %v13684_v13 }
 0x318   :  { %v16748_v31 = vpop.f32.mrb[2].mxu1  ;;  %v3610_v25 = vpop.f32.mrb[0].mxu0 }
 0x319   :  { %v16750_v53 = vpop.f32.mrb[3].mxu1  ;;  %v3612_v9 = vpop.f32.mrb[1].mxu0  ;;  %v13017_v2 = vadd.f32 %v3610_v25, %v2023_v36  ;;  %v2031_v25 = vrot.slane %v16760_v42, %v16778_v27 }
 0x31a   :  { %3843 = vmatpush1.bf16.msra.mxu0 %v13682_v5  ;;  %v13018_v52 = vadd.f32 %v3612_v9, %v2027_v1  ;;  %v3614_v7 = vpop.f32.mrb[2].mxu0  ;;  %v2035_v9 = vrot.slane %v16760_v42, %v16781_v51 }
 0x31b   :  { %3844 = vmatprep.subr.bf16.mxu0 %v13690_v24  ;;  %v13019_v14 = vadd.f32 %v3614_v7, %v2023_v36  ;;  %v3616_v12 = vpop.f32.mrb[3].mxu0  ;;  %v13784_v36 = vld [vmem:[#allocation19 + $0x120] ss:$28 sps:$4 sm:$0xff]  }
 0x31c   :  { %v13020_v4 = vadd.f32 %v3616_v12, %v2027_v1 }
 0x31d   :  { %v16766_v63 = vpack.c.bf16 %v13019_v14, %v13017_v2  ;;  %v13625_v2 = vld [vmem:[#allocation19 + $0x3f0] ss:$28 sps:$4 sm:$0xff]   ;;  %v13792_v14 = vld [vmem:[#allocation19 + $0x15c] ss:$28 sps:$4 sm:$0xff]  }
 0x31e   :  { %3845 = vmatpush1.bf16.msra.mxu0 %v13688_v55  ;;  %v16770_v16 = vpack.c.bf16 %v13020_v4, %v13018_v52  ;;  %v13613_v55 = vld [vmem:[#allocation19 + $0x380] ss:$28 sps:$4 sm:$0xff]  }
 0x31f   :  { %3846 = vmatprep.subr.bf16.mxu0 %v13696_v22  ;;  %v13772_v22 = vld [vmem:[#allocation19 + $0xb0] ss:$28 sps:$4 sm:$0xff]  }
 0x322   :  { %3847 = vmatpush1.bf16.msra.mxu0 %v13694_v38 }
 0x323   :  { %3848 = vmatprep.subr.bf16.mxu0 %v13702_v50  ;;  %v3905_v50 = vrot.slane %v16768_v21, %v16778_v27 }
 0x326   :  { %3849 = vmatpush1.bf16.msra.mxu0 %v13700_v61  ;;  %v13780_v61 = vld [vmem:[#allocation19 + $0xec] ss:$28 sps:$4 sm:$0xff]  }
 0x327   :  { %3850 = vmatprep.subr.bf16.mxu0 %v13708_v19 }
 0x32a   :  { %3851 = vmatpush1.bf16.msra.mxu0 %v13706_v34  ;;  %v3909_v34 = vrot.slane %v16768_v21, %v16781_v51 }
 0x32b   :  { %3852 = vmatprep.subr.bf16.mxu0 %v13714_v23  ;;  %v13621_v23 = vld [vmem:[#allocation19 + $0x3bc] ss:$28 sps:$4 sm:$0xff]  }
 0x32e   :  { %3853 = vmatpush1.bf16.msra.mxu0 %v13712_v8  ;;  %v13619_v8 = vld [vmem:[#allocation19 + $0x3b8] ss:$28 sps:$4 sm:$0xff]  }
 0x32f   :  { %3854 = vmatprep.subr.bf16.mxu0 %v13720_v45 }
 0x332   :  { %3855 = vmatpush1.bf16.msra.mxu0 %v13718_v3 }
 0x333   :  { %3856 = vmatprep.subr.bf16.mxu0 %v13726_v62 }
 0x336   :  { %3857 = vmatpush1.bf16.msra.mxu0 %v13724_v6  ;;  %v13778_v6 = vld [vmem:[#allocation19 + $0xe8] ss:$28 sps:$4 sm:$0xff]  }
 0x337   :  { %3858 = vmatprep.subr.bf16.mxu0 %v13732_v54  ;;  %v16795_v54 = vsub.s32 4, %v16752_v60 }
 0x33a   :  { %3859 = vmatpush1.bf16.msra.mxu0 %v13730_v41 }
 0x33b   :  { %3860 = vmatprep.subr.bf16.mxu0 %v13738_v15  ;;  %v13786_v15 = vld [vmem:[#allocation19 + $0x124] ss:$28 sps:$4 sm:$0xff]  }
 0x33e   :  { %3861 = vmatpush1.bf16.msra.mxu0 %v13736_v0  ;;  %v16798_v0 = vsub.s32 5, %v16752_v60 }
 0x33f   :  { %3862 = vmatprep.subr.bf16.mxu0 %v13744_v43  ;;  %v13627_v43 = vld [vmem:[#allocation19 + $0x3f4] ss:$28 sps:$4 sm:$0xff]  }
 0x340   :  { %v3917_v12 = vrot.slane %v16768_v21, %v16798_v0 }
 0x342   :  { %3863 = vmatpush1.bf16.msra.mxu0 %v13742_v56 }
 0x343   :  { %3864 = vmatprep.subr.bf16.mxu0 %v13750_v18 }
 0x346   :  { %3865 = vmatpush1.bf16.msra.mxu0 %v13748_v17 }
 0x347   :  { %6817 = vmatprep.subr.bf16.mxu0 %v13756_v58  ;;  %v3913_v58 = vrot.slane %v16768_v21, %v16795_v54 }
 0x349   :  { %3867 = vmatmul.mubr.bf16.vlgmr.msra.gmra.mrb[8].mxu0 %v16583_v46 }
 0x34a   :  { %6818 = vmatpush1.bf16.msra.mxu0 %v13754_v47  ;;  %v13633_v47 = vld [vmem:[#allocation19 + $0x42c] ss:$28 sps:$4 sm:$0xff]  }
 0x34b   :  { %6819 = vmatprep.subr.bf16.mxu0 %v13762_v49  ;;  %v13790_v49 = vld [vmem:[#allocation19 + $0x158] ss:$28 sps:$4 sm:$0xff]  }
 0x34e   :  { %6820 = vmatpush1.bf16.msra.mxu0 %v13760_v26 }
 0x34f   :  { %6821 = vmatprep.subr.bf16.mxu0 %v13768_v32 }
 0x352   :  { %v4021_v28 = vpop.f32.mrb[4].mxu1  ;;  %6822 = vmatpush1.bf16.msra.mxu0 %v13766_v37 }
 0x353   :  { %v4023_v48 = vpop.f32.mrb[5].mxu1  ;;  %v4022_v40 = vadd.f32 %v4021_v28, %v3897_v10  ;;  %6823 = vmatprep.subr.bf16.mxu0 %v13774_v20 }
 0x354   :  { %v4025_v46 = vpop.f32.mrb[6].mxu1  ;;  %v4024_v5 = vadd.f32 %v4023_v48, %v3901_v33 }
 0x355   :  { %v4026_v11 = vadd.f32 %v4025_v46, %v3897_v10  ;;  %v4027_v13 = vpop.f32.mrb[7].mxu1  ;;  %v13631_v46 = vld [vmem:[#allocation19 + $0x428] ss:$28 sps:$4 sm:$0xff]  }
 0x356   :  { %v4028_v24 = vadd.f32 %v4027_v13, %v3901_v33  ;;  %6824 = vmatpush1.bf16.msra.mxu0 %v13772_v22 }
 0x357   :  { %v16783_v38 = vpack.c.bf16 %v4026_v11, %v4022_v40  ;;  %6825 = vmatprep.subr.bf16.mxu0 %v13780_v61 }
 0x358   :  { %v16787_v19 = vpack.c.bf16 %v4028_v24, %v4024_v5  ;;  %v13798_v5 = vld [vmem:[#allocation19 + $0x194] ss:$28 sps:$4 sm:$0xff]   ;;  %v13639_v24 = vld [vmem:[#allocation19 + $0x464] ss:$28 sps:$4 sm:$0xff]  }
 0x35a   :  { %6720 = vmatprep.mubr.bf16.mxu1 %v16787_v19  ;;  %v4064_v45 = vpop.f32.mrb[8].mxu1  ;;  %6849 = vmatprep.mubr.bf16.mxu0 %v16787_v19 }
 0x35b   :  { %6721 = vmatmul.mubr.bf16.vlgmr.msra.gmra.mrb[20].mxu1 %v16783_v38  ;;  %v4065_v3 = vadd.f32 %v4064_v45, %v3905_v50  ;;  %v4066_v62 = vpop.f32.mrb[9].mxu1  ;;  %6826 = vmatpush1.bf16.msra.mxu0 %v13778_v6  ;;  %v13802_v6 = vld [vmem:[#allocation19 + $0x1c8] ss:$28 sps:$4 sm:$0xff]  }
 0x35c   :  { %6732 = vmatpush1.bf16.msra.mxu1 %v13613_v55  ;;  %v4067_v41 = vadd.f32 %v4066_v62, %v3909_v34  ;;  %v4068_v39 = vpop.f32.mrb[10].mxu1  ;;  %v3653_v7 = vpop.f32.mrb[4].mxu0  ;;  %6827 = vmatprep.subr.bf16.mxu0 %v13786_v15  ;;  %v13804_v62 = vld [vmem:[#allocation19 + $0x1cc] ss:$28 sps:$4 sm:$0xff]  }
 0x35d   :  { %6733 = vmatprep.subr.bf16.mxu1 %v13621_v23  ;;  %v4069_v56 = vadd.f32 %v4068_v39, %v3905_v50  ;;  %v4070_v18 = vpop.f32.mrb[11].mxu1  ;;  %v3654_v4 = vadd.f32 %v3653_v7, %v2031_v25  ;;  %v3655_v42 = vpop.f32.mrb[5].mxu0  ;;  %v13796_v50 = vld [vmem:[#allocation19 + $0x190] ss:$28 sps:$4 sm:$0xff]   ;;  %v13816_v7 = vld [vmem:[#allocation19 + $0x23c] ss:$28 sps:$4 sm:$0xff]  }
 0x35e   :  { %v4071_v1 = vadd.f32 %v4070_v18, %v3909_v34  ;;  %v3656_v26 = vadd.f32 %v3655_v42, %v2035_v9  ;;  %v3657_v32 = vpop.f32.mrb[6].mxu0  ;;  %v13663_v42 = vld [vmem:[#allocation19 + $0x544] ss:$28 sps:$4 sm:$0xff]  }
 0x35f   :  { %v16804_v17 = vpack.c.bf16 %v4069_v56, %v4065_v3  ;;  %v13022_v28 = vadd.f32 %v16744_v35, %v3654_v4  ;;  %v3658_v33 = vadd.f32 %v3657_v32, %v2031_v25  ;;  %6828 = vmatpush1.bf16.msra.mxu0 %v13784_v36  ;;  %v3659_v37 = vpop.f32.mrb[7].mxu0  ;;  %v13810_v56 = vld [vmem:[#allocation19 + $0x204] ss:$28 sps:$4 sm:$0xff]   ;;  %v13651_v25 = vld [vmem:[#allocation19 + $0x4d4] ss:$28 sps:$4 sm:$0xff]  }
 0x360   :  { %6734 = vmatpush1.bf16.msra.mxu1 %v13619_v8  ;;  %v16808_v52 = vpack.c.bf16 %v4071_v1, %v4067_v41  ;;  %v13024_v21 = vadd.f32 %v16746_v29, %v3656_v26  ;;  %v3660_v40 = vadd.f32 %v3659_v37, %v2035_v9  ;;  %6829 = vmatprep.subr.bf16.mxu0 %v13792_v14  ;;  %v13637_v29 = vld [vmem:[#allocation19 + $0x460] ss:$28 sps:$4 sm:$0xff]   ;;  %v13657_v14 = vld [vmem:[#allocation19 + $0x50c] ss:$28 sps:$4 sm:$0xff]   ;;  %v13822_v4 = vld [vmem:[#allocation19 + $0x274] ss:$28 sps:$4 sm:$0xff]  }
 0x361   :  { %6735 = vmatprep.subr.bf16.mxu1 %v13627_v43  ;;  %v13026_v55 = vadd.f32 %v16748_v31, %v3658_v33  ;;  %v13645_v31 = vld [vmem:[#allocation19 + $0x49c] ss:$28 sps:$4 sm:$0xff]   ;;  %v13828_v32 = vld [vmem:[#allocation19 + $0x2ac] ss:$28 sps:$4 sm:$0xff]   ;;  %v13834_v37 = vld [vmem:[#allocation19 + $0x2e4] ss:$28 sps:$4 sm:$0xff]  }
 0x362   :  { %6763 = vmatprep.mubr.bf16.mxu1 %v16808_v52  ;;  %v4107_v10 = vpop.f32.mrb[12].mxu1  ;;  %v13028_v61 = vadd.f32 %v16750_v53, %v3660_v40  ;;  %v11869_v41 = vld [vmem:[#allocation16] ss:$0 sm:$0xff]  ;;  %v13643_v43 = vld [vmem:[#allocation19 + $0x498] ss:$28 sps:$4 sm:$0xff]  }
 0x363   :  { %v4108_v48 = vadd.f32 %v4107_v10, %v3913_v58  ;;  %v4109_v20 = vpop.f32.mrb[13].mxu1  ;;  %v16817_v23 = vpack.c.bf16 %v13026_v55, %v13022_v28  ;;  %6830 = vmatpush1.bf16.msra.mxu0 %v13790_v49  ;;  %v13808_v36 = vld [vmem:[#allocation19 + $0x200] ss:$28 sps:$4 sm:$0xff]   ;;  %v13820_v49 = vld [vmem:[#allocation19 + $0x270] ss:$28 sps:$4 sm:$0xff]  }
 0x364   :  { %6736 = vmatpush1.bf16.msra.mxu1 %v13625_v2  ;;  %v4110_v11 = vadd.f32 %v4109_v20, %v3917_v12  ;;  %v4111_v13 = vpop.f32.mrb[14].mxu1  ;;  %v16821_v45 = vpack.c.bf16 %v13028_v61, %v13024_v21  ;;  %6831 = vmatprep.subr.bf16.mxu0 %v13798_v5  ;;  %v13649_v2 = vld [vmem:[#allocation19 + $0x4d0] ss:$28 sps:$4 sm:$0xff]   ;;  %v13661_v26 = vld [vmem:[#allocation19 + $0x540] ss:$28 sps:$4 sm:$0xff]  }
 0x365   :  { %6737 = vmatprep.subr.bf16.mxu1 %v13633_v47  ;;  %v4112_v22 = vadd.f32 %v4111_v13, %v3913_v58  ;;  %v4113_v35 = vpop.f32.mrb[15].mxu1  ;;  %v13655_v47 = vld [vmem:[#allocation19 + $0x508] ss:$28 sps:$4 sm:$0xff]   ;;  %v13669_v10 = vld [vmem:[#allocation19 + $0x57c] ss:$28 sps:$4 sm:$0xff]  }
 0x366   :  { %v4114_v34 = vadd.f32 %v4113_v35, %v3917_v12  ;;  %v13814_v12 = vld [vmem:[#allocation19 + $0x238] ss:$28 sps:$4 sm:$0xff]   ;;  %v13826_v28 = vld [vmem:[#allocation19 + $0x2a8] ss:$28 sps:$4 sm:$0xff]   ;;  %v13832_v20 = vld [vmem:[#allocation19 + $0x2e0] ss:$28 sps:$4 sm:$0xff]  }
 0x367   :  { %v16819_v8 = vpack.c.bf16 %v4112_v22, %v4108_v48  ;;  %6832 = vmatpush1.bf16.msra.mxu0 %v13796_v50  ;;  %v13667_v33 = vld [vmem:[#allocation19 + $0x578] ss:$28 sps:$4 sm:$0xff]   ;;  %v13681_v40 = vld [vmem:[#allocation19 + $0x5ec] ss:$28 sps:$4 sm:$0xff]   ;;  %v13685_v22 = vld [vmem:[#allocation19 + $0x620] ss:$28 sps:$4 sm:$0xff]  }
 0x368   :  { %6738 = vmatpush1.bf16.msra.mxu1 %v13631_v46  ;;  %v16823_v3 = vpack.c.bf16 %v4114_v34, %v4110_v11  ;;  %6833 = vmatprep.subr.bf16.mxu0 %v13804_v62  ;;  %v13675_v48 = vld [vmem:[#allocation19 + $0x5b4] ss:$28 sps:$4 sm:$0xff]   ;;  %v13840_v21 = vld [vmem:[#allocation19 + $0x31c] ss:$28 sps:$4 sm:$0xff]   ;;  %v13679_v13 = vld [vmem:[#allocation19 + $0x5e8] ss:$28 sps:$4 sm:$0xff]  }
 0x369   :  { %6739 = vmatprep.subr.bf16.mxu1 %v13639_v24  ;;  %v13673_v46 = vld [vmem:[#allocation19 + $0x5b0] ss:$28 sps:$4 sm:$0xff]   ;;  %v13838_v11 = vld [vmem:[#allocation19 + $0x318] ss:$28 sps:$4 sm:$0xff]   ;;  %v13687_v24 = vld [vmem:[#allocation19 + $0x624] ss:$28 sps:$4 sm:$0xff]  }
 0x36a   :  { %v4173_v39 = vpop.f32.mrb[16].mxu1  ;;  %v13846_v5 = vld [vmem:[#allocation19 + $0x354] ss:$28 sps:$4 sm:$0xff]   ;;  %v13852_v35 = vld [vmem:[#allocation19 + $0x38c] ss:$28 sps:$4 sm:$0xff]  }
 0x36b   :  { %v4174_v53 = vadd.f32 %v11869_v41, %v4173_v39  ;;  %v13007_v15 = vpop.f32.mrb[17].mxu1  ;;  %6834 = vmatpush1.bf16.msra.mxu0 %v13802_v6  ;;  %v13844_v55 = vld [vmem:[#allocation19 + $0x350] ss:$28 sps:$4 sm:$0xff]   ;;  %v13693_v50 = vld [vmem:[#allocation19 + $0x65c] ss:$28 sps:$4 sm:$0xff]  }
 0x36c   :  { %6740 = vmatpush1.bf16.msra.mxu1 %v13637_v29  ;;  %v4176_v18 = vpop.f32.mrb[18].mxu1  ;;  %6835 = vmatprep.subr.bf16.mxu0 %v13810_v56  ;;  %v13850_v61 = vld [vmem:[#allocation19 + $0x388] ss:$28 sps:$4 sm:$0xff]   ;;  %v13691_v34 = vld [vmem:[#allocation19 + $0x658] ss:$28 sps:$4 sm:$0xff]  }
 0x36d   :  { %6741 = vmatprep.subr.bf16.mxu1 %v13645_v31  ;;  %v4177_v1 = vadd.f32 %v11869_v41, %v4176_v18  ;;  %v13008_v9 = vpop.f32.mrb[19].mxu1  ;;  %v13858_v29 = vld [vmem:[#allocation19 + $0x3c4] ss:$28 sps:$4 sm:$0xff]   ;;  %v13699_v62 = vld [vmem:[#allocation19 + $0x694] ss:$28 sps:$4 sm:$0xff]  }
 0x36e   :  { %v13856_v31 = vld [vmem:[#allocation19 + $0x3c0] ss:$28 sps:$4 sm:$0xff]   ;;  %v13697_v6 = vld [vmem:[#allocation19 + $0x690] ss:$28 sps:$4 sm:$0xff]   ;;  %v13703_v15 = vld [vmem:[#allocation19 + $0x6c8] ss:$28 sps:$4 sm:$0xff]  }
 0x36f   :  { %v16825_v58 = vpack.c.bf16 %v4177_v1, %v4174_v53  ;;  %6836 = vmatpush1.bf16.msra.mxu0 %v13808_v36  ;;  %v13864_v41 = vld [vmem:[#allocation19 + $0x3fc] ss:$28 sps:$4 sm:$0xff]   ;;  %v13705_v39 = vld [vmem:[#allocation19 + $0x6cc] ss:$28 sps:$4 sm:$0xff]   ;;  %v13711_v56 = vld [vmem:[#allocation19 + $0x704] ss:$28 sps:$4 sm:$0xff]  }
 0x370   :  { %6742 = vmatpush1.bf16.msra.mxu1 %v13643_v43  ;;  %6837 = vmatprep.subr.bf16.mxu0 %v13816_v7  ;;  %v13862_v53 = vld [vmem:[#allocation19 + $0x3f8] ss:$28 sps:$4 sm:$0xff]   ;;  %v13868_v18 = vld [vmem:[#allocation19 + $0x430] ss:$28 sps:$4 sm:$0xff]   ;;  %v13874_v9 = vld [vmem:[#allocation19 + $0x468] ss:$28 sps:$4 sm:$0xff]  }
 0x371   :  { %6743 = vmatprep.subr.bf16.mxu1 %v13651_v25  ;;  %v13870_v43 = vld [vmem:[#allocation19 + $0x434] ss:$28 sps:$4 sm:$0xff]   ;;  %v13709_v25 = vld [vmem:[#allocation19 + $0x700] ss:$28 sps:$4 sm:$0xff]   ;;  %v13876_v1 = vld [vmem:[#allocation19 + $0x46c] ss:$28 sps:$4 sm:$0xff]  }
 0x372   :  { %v13717_v36 = vld [vmem:[#allocation19 + $0x73c] ss:$28 sps:$4 sm:$0xff]   ;;  %v13882_v7 = vld [vmem:[#allocation19 + $0x4a4] ss:$28 sps:$4 sm:$0xff]  }
 0x373   :  { %6838 = vmatpush1.bf16.msra.mxu0 %v13814_v12  ;;  %v13880_v12 = vld [vmem:[#allocation19 + $0x4a0] ss:$28 sps:$4 sm:$0xff]  }
 0x374   :  { %6744 = vmatpush1.bf16.msra.mxu1 %v13649_v2  ;;  %6839 = vmatprep.subr.bf16.mxu0 %v13822_v4  ;;  %v13715_v2 = vld [vmem:[#allocation19 + $0x738] ss:$28 sps:$4 sm:$0xff]  }
 0x375   :  { %6745 = vmatprep.subr.bf16.mxu1 %v13657_v14  ;;  %v13723_v14 = vld [vmem:[#allocation19 + $0x774] ss:$28 sps:$4 sm:$0xff]   ;;  %v13888_v4 = vld [vmem:[#allocation19 + $0x4dc] ss:$28 sps:$4 sm:$0xff]  }
 0x377   :  { %6840 = vmatpush1.bf16.msra.mxu0 %v13820_v49  ;;  %v13886_v49 = vld [vmem:[#allocation19 + $0x4d8] ss:$28 sps:$4 sm:$0xff]  }
 0x378   :  { %6746 = vmatpush1.bf16.msra.mxu1 %v13655_v47  ;;  %6841 = vmatprep.subr.bf16.mxu0 %v13828_v32  ;;  %v13721_v47 = vld [vmem:[#allocation19 + $0x770] ss:$28 sps:$4 sm:$0xff]  }
 0x379   :  { %6747 = vmatprep.subr.bf16.mxu1 %v13663_v42  ;;  %v13729_v42 = vld [vmem:[#allocation19 + $0x7ac] ss:$28 sps:$4 sm:$0xff]   ;;  %v13894_v32 = vld [vmem:[#allocation19 + $0x514] ss:$28 sps:$4 sm:$0xff]  }
 0x37b   :  { %6842 = vmatpush1.bf16.msra.mxu0 %v13826_v28  ;;  %v13892_v28 = vld [vmem:[#allocation19 + $0x510] ss:$28 sps:$4 sm:$0xff]  }
 0x37c   :  { %6748 = vmatpush1.bf16.msra.mxu1 %v13661_v26  ;;  %6843 = vmatprep.subr.bf16.mxu0 %v13834_v37  ;;  %v13727_v26 = vld [vmem:[#allocation19 + $0x7a8] ss:$28 sps:$4 sm:$0xff]  }
 0x37d   :  { %6749 = vmatprep.subr.bf16.mxu1 %v13669_v10  ;;  %v13735_v10 = vld [vmem:[#allocation19 + $0x7e4] ss:$28 sps:$4 sm:$0xff]   ;;  %v13900_v37 = vld [vmem:[#allocation19 + $0x54c] ss:$28 sps:$4 sm:$0xff]  }
 0x37f   :  { %6844 = vmatpush1.bf16.msra.mxu0 %v13832_v20  ;;  %v13898_v20 = vld [vmem:[#allocation19 + $0x548] ss:$28 sps:$4 sm:$0xff]  }
 0x380   :  { %6750 = vmatpush1.bf16.msra.mxu1 %v13667_v33  ;;  %6845 = vmatprep.subr.bf16.mxu0 %v13840_v21  ;;  %v13733_v33 = vld [vmem:[#allocation19 + $0x7e0] ss:$28 sps:$4 sm:$0xff]  }
 0x381   :  { %6751 = vmatprep.subr.bf16.mxu1 %v13675_v48  ;;  %v13741_v48 = vld [vmem:[#allocation19 + $0x81c] ss:$28 sps:$4 sm:$0xff]   ;;  %v13906_v21 = vld [vmem:[#allocation19 + $0x584] ss:$28 sps:$4 sm:$0xff]  }
 0x383   :  { %6846 = vmatpush1.bf16.msra.mxu0 %v13838_v11  ;;  %v13904_v11 = vld [vmem:[#allocation19 + $0x580] ss:$28 sps:$4 sm:$0xff]  }
 0x384   :  { %6752 = vmatpush1.bf16.msra.mxu1 %v13673_v46  ;;  %6847 = vmatprep.subr.bf16.mxu0 %v13846_v5  ;;  %v13739_v46 = vld [vmem:[#allocation19 + $0x818] ss:$28 sps:$4 sm:$0xff]  }
 0x385   :  { %6753 = vmatprep.subr.bf16.mxu1 %v13681_v40  ;;  %v13747_v40 = vld [vmem:[#allocation19 + $0x854] ss:$28 sps:$4 sm:$0xff]   ;;  %v13912_v5 = vld [vmem:[#allocation19 + $0x5bc] ss:$28 sps:$4 sm:$0xff]  }
 0x387   :  { %6848 = vmatpush1.bf16.msra.mxu0 %v13844_v55  ;;  %v13910_v55 = vld [vmem:[#allocation19 + $0x5b8] ss:$28 sps:$4 sm:$0xff]  }
 0x388   :  { %6754 = vmatpush1.bf16.msra.mxu1 %v13679_v13  ;;  %6860 = vmatprep.subr.bf16.mxu0 %v13852_v35  ;;  %v13745_v13 = vld [vmem:[#allocation19 + $0x850] ss:$28 sps:$4 sm:$0xff]  }
 0x389   :  { %6755 = vmatprep.subr.bf16.mxu1 %v13687_v24  ;;  %v13753_v24 = vld [vmem:[#allocation19 + $0x88c] ss:$28 sps:$4 sm:$0xff]   ;;  %v13918_v35 = vld [vmem:[#allocation19 + $0x5f4] ss:$28 sps:$4 sm:$0xff]  }
 0x38a   :  { %6850 = vmatmul.mubr.bf16.vlgmr.msra.gmra.mrb[12].mxu0 %v16783_v38 }
 0x38b   :  { %6861 = vmatpush1.bf16.msra.mxu0 %v13850_v61  ;;  %6892 = vmatprep.mubr.bf16.mxu0 %v16808_v52  ;;  %v13916_v61 = vld [vmem:[#allocation19 + $0x5f0] ss:$28 sps:$4 sm:$0xff]  }
 0x38c   :  { %6756 = vmatpush1.bf16.msra.mxu1 %v13685_v22  ;;  %6862 = vmatprep.subr.bf16.mxu0 %v13858_v29  ;;  %v13751_v22 = vld [vmem:[#allocation19 + $0x888] ss:$28 sps:$4 sm:$0xff]  }
 0x38d   :  { %6757 = vmatprep.subr.bf16.mxu1 %v13693_v50  ;;  %v13759_v50 = vld [vmem:[#allocation19 + $0x8c4] ss:$28 sps:$4 sm:$0xff]   ;;  %v13924_v29 = vld [vmem:[#allocation19 + $0x62c] ss:$28 sps:$4 sm:$0xff]  }
 0x38f   :  { %6863 = vmatpush1.bf16.msra.mxu0 %v13856_v31  ;;  %v13922_v31 = vld [vmem:[#allocation19 + $0x628] ss:$28 sps:$4 sm:$0xff]  }
 0x390   :  { %6758 = vmatpush1.bf16.msra.mxu1 %v13691_v34  ;;  %6864 = vmatprep.subr.bf16.mxu0 %v13864_v41  ;;  %v13757_v34 = vld [vmem:[#allocation19 + $0x8c0] ss:$28 sps:$4 sm:$0xff]  }
 0x391   :  { %6759 = vmatprep.subr.bf16.mxu1 %v13699_v62  ;;  %v13765_v62 = vld [vmem:[#allocation19 + $0x8fc] ss:$28 sps:$4 sm:$0xff]   ;;  %v13930_v41 = vld [vmem:[#allocation19 + $0x664] ss:$28 sps:$4 sm:$0xff]  }
 0x393   :  { %6865 = vmatpush1.bf16.msra.mxu0 %v13862_v53  ;;  %v13928_v53 = vld [vmem:[#allocation19 + $0x660] ss:$28 sps:$4 sm:$0xff]  }
 0x394   :  { %6760 = vmatpush1.bf16.msra.mxu1 %v13697_v6  ;;  %6866 = vmatprep.subr.bf16.mxu0 %v13870_v43  ;;  %v13763_v6 = vld [vmem:[#allocation19 + $0x8f8] ss:$28 sps:$4 sm:$0xff]  }
 0x395   :  { %6761 = vmatprep.subr.bf16.mxu1 %v13705_v39  ;;  %v13771_v39 = vld [vmem:[#allocation19 + $0x934] ss:$28 sps:$4 sm:$0xff]   ;;  %v13936_v43 = vld [vmem:[#allocation19 + $0x69c] ss:$28 sps:$4 sm:$0xff]  }
 0x397   :  { %6867 = vmatpush1.bf16.msra.mxu0 %v13868_v18  ;;  %v13934_v18 = vld [vmem:[#allocation19 + $0x698] ss:$28 sps:$4 sm:$0xff]  }
 0x398   :  { %6762 = vmatpush1.bf16.msra.mxu1 %v13703_v15  ;;  %6868 = vmatprep.subr.bf16.mxu0 %v13876_v1  ;;  %v13769_v15 = vld [vmem:[#allocation19 + $0x930] ss:$28 sps:$4 sm:$0xff]   ;;  %v13783_v1 = vld [vmem:[#allocation19 + $0x9a4] ss:$28 sps:$4 sm:$0xff]  }
 0x399   :  { %6774 = vmatprep.subr.bf16.mxu1 %v13711_v56  ;;  %v13777_v56 = vld [vmem:[#allocation19 + $0x96c] ss:$28 sps:$4 sm:$0xff]  }
 0x39b   :  { %6764 = vmatmul.mubr.bf16.vlgmr.msra.gmra.mrb[20].mxu1 %v16804_v17  ;;  %6869 = vmatpush1.bf16.msra.mxu0 %v13874_v9  ;;  %v13940_v9 = vld [vmem:[#allocation19 + $0x6d0] ss:$28 sps:$4 sm:$0xff]  }
 0x39c   :  { %6775 = vmatpush1.bf16.msra.mxu1 %v13709_v25  ;;  %6806 = vmatprep.mubr.bf16.mxu1 %v16823_v3  ;;  %v13775_v25 = vld [vmem:[#allocation19 + $0x968] ss:$28 sps:$4 sm:$0xff]  }
 0x39d   :  { %6776 = vmatprep.subr.bf16.mxu1 %v13717_v36  ;;  %6870 = vmatprep.subr.bf16.mxu0 %v13882_v7  ;;  %v13942_v36 = vld [vmem:[#allocation19 + $0x6d4] ss:$28 sps:$4 sm:$0xff]   ;;  %v13948_v7 = vld [vmem:[#allocation19 + $0x70c] ss:$28 sps:$4 sm:$0xff]  }
 0x39f   :  { %6871 = vmatpush1.bf16.msra.mxu0 %v13880_v12  ;;  %v13946_v12 = vld [vmem:[#allocation19 + $0x708] ss:$28 sps:$4 sm:$0xff]  }
 0x3a0   :  { %6777 = vmatpush1.bf16.msra.mxu1 %v13715_v2  ;;  %6872 = vmatprep.subr.bf16.mxu0 %v13888_v4  ;;  %v13781_v2 = vld [vmem:[#allocation19 + $0x9a0] ss:$28 sps:$4 sm:$0xff]  }
 0x3a1   :  { %6778 = vmatprep.subr.bf16.mxu1 %v13723_v14  ;;  %v13789_v14 = vld [vmem:[#allocation19 + $0x9dc] ss:$28 sps:$4 sm:$0xff]   ;;  %v13954_v4 = vld [vmem:[#allocation19 + $0x744] ss:$28 sps:$4 sm:$0xff]  }
 0x3a3   :  { %6873 = vmatpush1.bf16.msra.mxu0 %v13886_v49  ;;  %v13952_v49 = vld [vmem:[#allocation19 + $0x740] ss:$28 sps:$4 sm:$0xff]  }
 0x3a4   :  { %6779 = vmatpush1.bf16.msra.mxu1 %v13721_v47  ;;  %6874 = vmatprep.subr.bf16.mxu0 %v13894_v32  ;;  %v13787_v47 = vld [vmem:[#allocation19 + $0x9d8] ss:$28 sps:$4 sm:$0xff]  }
 0x3a5   :  { %6780 = vmatprep.subr.bf16.mxu1 %v13729_v42  ;;  %v13795_v42 = vld [vmem:[#allocation19 + $0xa14] ss:$28 sps:$4 sm:$0xff]   ;;  %v13960_v32 = vld [vmem:[#allocation19 + $0x77c] ss:$28 sps:$4 sm:$0xff]  }
 0x3a7   :  { %6875 = vmatpush1.bf16.msra.mxu0 %v13892_v28  ;;  %v13958_v28 = vld [vmem:[#allocation19 + $0x778] ss:$28 sps:$4 sm:$0xff]  }
 0x3a8   :  { %6781 = vmatpush1.bf16.msra.mxu1 %v13727_v26  ;;  %6876 = vmatprep.subr.bf16.mxu0 %v13900_v37  ;;  %v13793_v26 = vld [vmem:[#allocation19 + $0xa10] ss:$28 sps:$4 sm:$0xff]  }
 0x3a9   :  { %6782 = vmatprep.subr.bf16.mxu1 %v13735_v10  ;;  %v13801_v10 = vld [vmem:[#allocation19 + $0xa4c] ss:$28 sps:$4 sm:$0xff]   ;;  %v13966_v37 = vld [vmem:[#allocation19 + $0x7b4] ss:$28 sps:$4 sm:$0xff]  }
 0x3ab   :  { %6877 = vmatpush1.bf16.msra.mxu0 %v13898_v20  ;;  %v13964_v20 = vld [vmem:[#allocation19 + $0x7b0] ss:$28 sps:$4 sm:$0xff]  }
 0x3ac   :  { %6783 = vmatpush1.bf16.msra.mxu1 %v13733_v33  ;;  %6878 = vmatprep.subr.bf16.mxu0 %v13906_v21  ;;  %v13799_v33 = vld [vmem:[#allocation19 + $0xa48] ss:$28 sps:$4 sm:$0xff]  }
 0x3ad   :  { %6784 = vmatprep.subr.bf16.mxu1 %v13741_v48  ;;  %v13807_v48 = vld [vmem:[#allocation19 + $0x14] ss:$28 sps:$4 sm:$0xff]   ;;  %v13813_v21 = vld [vmem:[#allocation19 + $0x4c] ss:$28 sps:$4 sm:$0xff]  }
 0x3af   :  { %6879 = vmatpush1.bf16.msra.mxu0 %v13904_v11  ;;  %v13970_v11 = vld [vmem:[#allocation19 + $0x7e8] ss:$28 sps:$4 sm:$0xff]  }
 0x3b0   :  { %6785 = vmatpush1.bf16.msra.mxu1 %v13739_v46  ;;  %6880 = vmatprep.subr.bf16.mxu0 %v13912_v5  ;;  %v13805_v46 = vld [vmem:[#allocation19 + $0x10] ss:$28 sps:$4 sm:$0xff]   ;;  %v13978_v5 = vld [vmem:[#allocation19 + $0x824] ss:$28 sps:$4 sm:$0xff]  }
 0x3b1   :  { %6786 = vmatprep.subr.bf16.mxu1 %v13747_v40  ;;  %v13972_v40 = vld [vmem:[#allocation19 + $0x7ec] ss:$28 sps:$4 sm:$0xff]  }
 0x3b3   :  { %6881 = vmatpush1.bf16.msra.mxu0 %v13910_v55  ;;  %v13976_v55 = vld [vmem:[#allocation19 + $0x820] ss:$28 sps:$4 sm:$0xff]  }
 0x3b4   :  { %6787 = vmatpush1.bf16.msra.mxu1 %v13745_v13  ;;  %6882 = vmatprep.subr.bf16.mxu0 %v13918_v35  ;;  %v13811_v13 = vld [vmem:[#allocation19 + $0x48] ss:$28 sps:$4 sm:$0xff]   ;;  %v13984_v35 = vld [vmem:[#allocation19 + $0x85c] ss:$28 sps:$4 sm:$0xff]  }
 0x3b5   :  { %6788 = vmatprep.subr.bf16.mxu1 %v13753_v24  ;;  %v13819_v24 = vld [vmem:[#allocation19 + $0x84] ss:$28 sps:$4 sm:$0xff]  }
 0x3b7   :  { %6883 = vmatpush1.bf16.msra.mxu0 %v13916_v61  ;;  %v13982_v61 = vld [vmem:[#allocation19 + $0x858] ss:$28 sps:$4 sm:$0xff]  }
 0x3b8   :  { %6789 = vmatpush1.bf16.msra.mxu1 %v13751_v22  ;;  %6884 = vmatprep.subr.bf16.mxu0 %v13924_v29  ;;  %v13817_v22 = vld [vmem:[#allocation19 + $0x80] ss:$28 sps:$4 sm:$0xff]   ;;  %v13990_v29 = vld [vmem:[#allocation19 + $0x894] ss:$28 sps:$4 sm:$0xff]  }
 0x3b9   :  { %6790 = vmatprep.subr.bf16.mxu1 %v13759_v50  ;;  %v13825_v50 = vld [vmem:[#allocation19 + $0xbc] ss:$28 sps:$4 sm:$0xff]  }
 0x3bb   :  { %6885 = vmatpush1.bf16.msra.mxu0 %v13922_v31  ;;  %v13988_v31 = vld [vmem:[#allocation19 + $0x890] ss:$28 sps:$4 sm:$0xff]  }
 0x3bc   :  { %6791 = vmatpush1.bf16.msra.mxu1 %v13757_v34  ;;  %6886 = vmatprep.subr.bf16.mxu0 %v13930_v41  ;;  %v13823_v34 = vld [vmem:[#allocation19 + $0xb8] ss:$28 sps:$4 sm:$0xff]   ;;  %v13996_v41 = vld [vmem:[#allocation19 + $0x8cc] ss:$28 sps:$4 sm:$0xff]  }
 0x3bd   :  { %6792 = vmatprep.subr.bf16.mxu1 %v13765_v62  ;;  %v13831_v62 = vld [vmem:[#allocation19 + $0xf4] ss:$28 sps:$4 sm:$0xff]  }
 0x3bf   :  { %6887 = vmatpush1.bf16.msra.mxu0 %v13928_v53  ;;  %v13994_v53 = vld [vmem:[#allocation19 + $0x8c8] ss:$28 sps:$4 sm:$0xff]  }
 0x3c0   :  { %6793 = vmatpush1.bf16.msra.mxu1 %v13763_v6  ;;  %6888 = vmatprep.subr.bf16.mxu0 %v13936_v43  ;;  %v13829_v6 = vld [vmem:[#allocation19 + $0xf0] ss:$28 sps:$4 sm:$0xff]   ;;  %v14002_v43 = vld [vmem:[#allocation19 + $0x904] ss:$28 sps:$4 sm:$0xff]  }
 0x3c1   :  { %6794 = vmatprep.subr.bf16.mxu1 %v13771_v39  ;;  %v13837_v39 = vld [vmem:[#allocation19 + $0x12c] ss:$28 sps:$4 sm:$0xff]  }
 0x3c3   :  { %6889 = vmatpush1.bf16.msra.mxu0 %v13934_v18  ;;  %v14000_v18 = vld [vmem:[#allocation19 + $0x900] ss:$28 sps:$4 sm:$0xff]  }
 0x3c4   :  { %6795 = vmatpush1.bf16.msra.mxu1 %v13769_v15  ;;  %6890 = vmatprep.subr.bf16.mxu0 %v13942_v36  ;;  %v13835_v15 = vld [vmem:[#allocation19 + $0x128] ss:$28 sps:$4 sm:$0xff]   ;;  %v14008_v36 = vld [vmem:[#allocation19 + $0x93c] ss:$28 sps:$4 sm:$0xff]  }
 0x3c5   :  { %6796 = vmatprep.subr.bf16.mxu1 %v13777_v56  ;;  %v13843_v56 = vld [vmem:[#allocation19 + $0x164] ss:$28 sps:$4 sm:$0xff]  }
 0x3c7   :  { %6891 = vmatpush1.bf16.msra.mxu0 %v13940_v9  ;;  %v14006_v9 = vld [vmem:[#allocation19 + $0x938] ss:$28 sps:$4 sm:$0xff]  }
 0x3c8   :  { %6797 = vmatpush1.bf16.msra.mxu1 %v13775_v25  ;;  %6903 = vmatprep.subr.bf16.mxu0 %v13948_v7  ;;  %v13841_v25 = vld [vmem:[#allocation19 + $0x160] ss:$28 sps:$4 sm:$0xff]   ;;  %v14014_v7 = vld [vmem:[#allocation19 + $0x974] ss:$28 sps:$4 sm:$0xff]  }
 0x3c9   :  { %6798 = vmatprep.subr.bf16.mxu1 %v13783_v1  ;;  %v13849_v1 = vld [vmem:[#allocation19 + $0x19c] ss:$28 sps:$4 sm:$0xff]  }
 0x3ca   :  { %6893 = vmatmul.mubr.bf16.vlgmr.msra.gmra.mrb[12].mxu0 %v16804_v17 }
 0x3cb   :  { %6904 = vmatpush1.bf16.msra.mxu0 %v13946_v12  ;;  %6935 = vmatprep.mubr.bf16.mxu0 %v16823_v3  ;;  %v14012_v12 = vld [vmem:[#allocation19 + $0x970] ss:$28 sps:$4 sm:$0xff]  }
 0x3cc   :  { %6799 = vmatpush1.bf16.msra.mxu1 %v13781_v2  ;;  %6905 = vmatprep.subr.bf16.mxu0 %v13954_v4  ;;  %v13847_v2 = vld [vmem:[#allocation19 + $0x198] ss:$28 sps:$4 sm:$0xff]   ;;  %v14020_v4 = vld [vmem:[#allocation19 + $0x9ac] ss:$28 sps:$4 sm:$0xff]  }
 0x3cd   :  { %6800 = vmatprep.subr.bf16.mxu1 %v13789_v14  ;;  %v13855_v14 = vld [vmem:[#allocation19 + $0x1d4] ss:$28 sps:$4 sm:$0xff]  }
 0x3cf   :  { %6906 = vmatpush1.bf16.msra.mxu0 %v13952_v49  ;;  %v14018_v49 = vld [vmem:[#allocation19 + $0x9a8] ss:$28 sps:$4 sm:$0xff]  }
 0x3d0   :  { %6801 = vmatpush1.bf16.msra.mxu1 %v13787_v47  ;;  %6907 = vmatprep.subr.bf16.mxu0 %v13960_v32  ;;  %v13853_v47 = vld [vmem:[#allocation19 + $0x1d0] ss:$28 sps:$4 sm:$0xff]   ;;  %v14026_v32 = vld [vmem:[#allocation19 + $0x9e4] ss:$28 sps:$4 sm:$0xff]  }
 0x3d1   :  { %6802 = vmatprep.subr.bf16.mxu1 %v13795_v42  ;;  %v13861_v42 = vld [vmem:[#allocation19 + $0x20c] ss:$28 sps:$4 sm:$0xff]  }
 0x3d3   :  { %6908 = vmatpush1.bf16.msra.mxu0 %v13958_v28  ;;  %v14024_v28 = vld [vmem:[#allocation19 + $0x9e0] ss:$28 sps:$4 sm:$0xff]  }
 0x3d4   :  { %6803 = vmatpush1.bf16.msra.mxu1 %v13793_v26  ;;  %6909 = vmatprep.subr.bf16.mxu0 %v13966_v37  ;;  %v13859_v26 = vld [vmem:[#allocation19 + $0x208] ss:$28 sps:$4 sm:$0xff]   ;;  %v14032_v37 = vld [vmem:[#allocation19 + $0xa1c] ss:$28 sps:$4 sm:$0xff]  }
 0x3d5   :  { %6804 = vmatprep.subr.bf16.mxu1 %v13801_v10  ;;  %v13867_v10 = vld [vmem:[#allocation19 + $0x244] ss:$28 sps:$4 sm:$0xff]  }
 0x3d7   :  { %6910 = vmatpush1.bf16.msra.mxu0 %v13964_v20  ;;  %v14030_v20 = vld [vmem:[#allocation19 + $0xa18] ss:$28 sps:$4 sm:$0xff]  }
 0x3d8   :  { %6805 = vmatpush1.bf16.msra.mxu1 %v13799_v33  ;;  %6911 = vmatprep.subr.bf16.mxu0 %v13972_v40  ;;  %v13865_v33 = vld [vmem:[#allocation19 + $0x240] ss:$28 sps:$4 sm:$0xff]   ;;  %v13879_v40 = vld [vmem:[#allocation19 + $0x2b4] ss:$28 sps:$4 sm:$0xff]  }
 0x3d9   :  { %6946 = vmatprep.subr.bf16.mxu1 %v13807_v48  ;;  %v13873_v48 = vld [vmem:[#allocation19 + $0x27c] ss:$28 sps:$4 sm:$0xff]  }
 0x3db   :  { %6807 = vmatmul.mubr.bf16.vlgmr.msra.gmra.mrb[20].mxu1 %v16819_v8  ;;  %6912 = vmatpush1.bf16.msra.mxu0 %v13970_v11  ;;  %v14036_v11 = vld [vmem:[#allocation19 + $0xa50] ss:$28 sps:$4 sm:$0xff]  }
 0x3dc   :  { %6947 = vmatpush1.bf16.msra.mxu1 %v13805_v46  ;;  %6978 = vmatprep.mubr.bf16.mxu1 %v16787_v19  ;;  %v13871_v46 = vld [vmem:[#allocation19 + $0x278] ss:$28 sps:$4 sm:$0xff]  }
 0x3dd   :  { %6948 = vmatprep.subr.bf16.mxu1 %v13813_v21  ;;  %6913 = vmatprep.subr.bf16.mxu0 %v13978_v5  ;;  %v14038_v21 = vld [vmem:[#allocation19 + $0xa54] ss:$28 sps:$4 sm:$0xff]  }
 0x3de   :  { %v14042_v5 = vld [vmem:[#allocation19 + $0x1d8] ss:$28 sps:$4 sm:$0xff]  }
 0x3df   :  { %6914 = vmatpush1.bf16.msra.mxu0 %v13976_v55  ;;  %v14043_v55 = vld [vmem:[#allocation19 + $0x18] ss:$28 sps:$4 sm:$0xff]  }
 0x3e0   :  { %6949 = vmatpush1.bf16.msra.mxu1 %v13811_v13  ;;  %6915 = vmatprep.subr.bf16.mxu0 %v13984_v35  ;;  %v13877_v13 = vld [vmem:[#allocation19 + $0x2b0] ss:$28 sps:$4 sm:$0xff]  }
 0x3e1   :  { %6950 = vmatprep.subr.bf16.mxu1 %v13819_v24  ;;  %v13885_v24 = vld [vmem:[#allocation19 + $0x2ec] ss:$28 sps:$4 sm:$0xff]  }
 0x3e2   :  { %v14047_v35 = vld [vmem:[#allocation19 + $0x210] ss:$28 sps:$4 sm:$0xff]  }
 0x3e3   :  { %6916 = vmatpush1.bf16.msra.mxu0 %v13982_v61  ;;  %v14048_v61 = vld [vmem:[#allocation19 + $0x50] ss:$28 sps:$4 sm:$0xff]  }
 0x3e4   :  { %6951 = vmatpush1.bf16.msra.mxu1 %v13817_v22  ;;  %6917 = vmatprep.subr.bf16.mxu0 %v13990_v29  ;;  %v13883_v22 = vld [vmem:[#allocation19 + $0x2e8] ss:$28 sps:$4 sm:$0xff]  }
 0x3e5   :  { %6952 = vmatprep.subr.bf16.mxu1 %v13825_v50  ;;  %v13891_v50 = vld [vmem:[#allocation19 + $0x324] ss:$28 sps:$4 sm:$0xff]  }
 0x3e6   :  { %v14052_v29 = vld [vmem:[#allocation19 + $0x248] ss:$28 sps:$4 sm:$0xff]  }
 0x3e7   :  { %6918 = vmatpush1.bf16.msra.mxu0 %v13988_v31  ;;  %v14053_v31 = vld [vmem:[#allocation19 + $0x88] ss:$28 sps:$4 sm:$0xff]  }
 0x3e8   :  { %6953 = vmatpush1.bf16.msra.mxu1 %v13823_v34  ;;  %6919 = vmatprep.subr.bf16.mxu0 %v13996_v41  ;;  %v13889_v34 = vld [vmem:[#allocation19 + $0x320] ss:$28 sps:$4 sm:$0xff]  }
 0x3e9   :  { %6954 = vmatprep.subr.bf16.mxu1 %v13831_v62  ;;  %v13897_v62 = vld [vmem:[#allocation19 + $0x35c] ss:$28 sps:$4 sm:$0xff]  }
 0x3ea   :  { %v14057_v41 = vld [vmem:[#allocation19 + $0x280] ss:$28 sps:$4 sm:$0xff]  }
 0x3eb   :  { %6920 = vmatpush1.bf16.msra.mxu0 %v13994_v53  ;;  %v14058_v53 = vld [vmem:[#allocation19 + $0xc0] ss:$28 sps:$4 sm:$0xff]  }
 0x3ec   :  { %6955 = vmatpush1.bf16.msra.mxu1 %v13829_v6  ;;  %6921 = vmatprep.subr.bf16.mxu0 %v14002_v43  ;;  %v13895_v6 = vld [vmem:[#allocation19 + $0x358] ss:$28 sps:$4 sm:$0xff]  }
 0x3ed   :  { %6956 = vmatprep.subr.bf16.mxu1 %v13837_v39  ;;  %v13903_v39 = vld [vmem:[#allocation19 + $0x394] ss:$28 sps:$4 sm:$0xff]  }
 0x3ee   :  { %v14062_v43 = vld [vmem:[#allocation19 + $0x2b8] ss:$28 sps:$4 sm:$0xff]  }
 0x3ef   :  { %6922 = vmatpush1.bf16.msra.mxu0 %v14000_v18  ;;  %v13907_v18 = vld [vmem:[#allocation19 + $0x3c8] ss:$28 sps:$4 sm:$0xff]  }
 0x3f0   :  { %6957 = vmatpush1.bf16.msra.mxu1 %v13835_v15  ;;  %6923 = vmatprep.subr.bf16.mxu0 %v14008_v36  ;;  %v13901_v15 = vld [vmem:[#allocation19 + $0x390] ss:$28 sps:$4 sm:$0xff]   ;;  %v13915_v36 = vld [vmem:[#allocation19 + $0x404] ss:$28 sps:$4 sm:$0xff]  }
 0x3f1   :  { %6958 = vmatprep.subr.bf16.mxu1 %v13843_v56  ;;  %v14063_v56 = vld [vmem:[#allocation19 + $0xf8] ss:$28 sps:$4 sm:$0xff]  }
 0x3f3   :  { %6924 = vmatpush1.bf16.msra.mxu0 %v14006_v9  ;;  %v13913_v9 = vld [vmem:[#allocation19 + $0x400] ss:$28 sps:$4 sm:$0xff]  }
 0x3f4   :  { %6959 = vmatpush1.bf16.msra.mxu1 %v13841_v25  ;;  %6925 = vmatprep.subr.bf16.mxu0 %v14014_v7  ;;  %v14067_v25 = vld [vmem:[#allocation19 + $0x2f0] ss:$28 sps:$4 sm:$0xff]   ;;  %v13921_v7 = vld [vmem:[#allocation19 + $0x43c] ss:$28 sps:$4 sm:$0xff]  }
 0x3f5   :  { %6960 = vmatprep.subr.bf16.mxu1 %v13849_v1  ;;  %v14068_v1 = vld [vmem:[#allocation19 + $0x130] ss:$28 sps:$4 sm:$0xff]  }
 0x3f7   :  { %6926 = vmatpush1.bf16.msra.mxu0 %v14012_v12  ;;  %v13919_v12 = vld [vmem:[#allocation19 + $0x438] ss:$28 sps:$4 sm:$0xff]  }
 0x3f8   :  { %6961 = vmatpush1.bf16.msra.mxu1 %v13847_v2  ;;  %6927 = vmatprep.subr.bf16.mxu0 %v14020_v4  ;;  %v14072_v2 = vld [vmem:[#allocation19 + $0x328] ss:$28 sps:$4 sm:$0xff]   ;;  %v13927_v4 = vld [vmem:[#allocation19 + $0x474] ss:$28 sps:$4 sm:$0xff]  }
 0x3f9   :  { %6962 = vmatprep.subr.bf16.mxu1 %v13855_v14  ;;  %v14073_v14 = vld [vmem:[#allocation19 + $0x168] ss:$28 sps:$4 sm:$0xff]  }
 0x3fb   :  { %6928 = vmatpush1.bf16.msra.mxu0 %v14018_v49  ;;  %v13925_v49 = vld [vmem:[#allocation19 + $0x470] ss:$28 sps:$4 sm:$0xff]  }
 0x3fc   :  { %6963 = vmatpush1.bf16.msra.mxu1 %v13853_v47  ;;  %6929 = vmatprep.subr.bf16.mxu0 %v14026_v32  ;;  %v14077_v47 = vld [vmem:[#allocation19 + $0x360] ss:$28 sps:$4 sm:$0xff]   ;;  %v13933_v32 = vld [vmem:[#allocation19 + $0x4ac] ss:$28 sps:$4 sm:$0xff]  }
 0x3fd   :  { %6964 = vmatprep.subr.bf16.mxu1 %v13861_v42  ;;  %v14078_v42 = vld [vmem:[#allocation19 + $0x1a0] ss:$28 sps:$4 sm:$0xff]  }
 0x3ff   :  { %6930 = vmatpush1.bf16.msra.mxu0 %v14024_v28  ;;  %v13931_v28 = vld [vmem:[#allocation19 + $0x4a8] ss:$28 sps:$4 sm:$0xff]  }
 0x400   :  { %6965 = vmatpush1.bf16.msra.mxu1 %v13859_v26  ;;  %6931 = vmatprep.subr.bf16.mxu0 %v14032_v37  ;;  %v14082_v26 = vld [vmem:[#allocation19 + $0x558] ss:$28 sps:$4 sm:$0xff]   ;;  %v13939_v37 = vld [vmem:[#allocation19 + $0x4e4] ss:$28 sps:$4 sm:$0xff]  }
 0x401   :  { %6966 = vmatprep.subr.bf16.mxu1 %v13867_v10  ;;  %v14083_v10 = vld [vmem:[#allocation19 + $0x398] ss:$28 sps:$4 sm:$0xff]  }
 0x403   :  { %6932 = vmatpush1.bf16.msra.mxu0 %v14030_v20  ;;  %v13937_v20 = vld [vmem:[#allocation19 + $0x4e0] ss:$28 sps:$4 sm:$0xff]  }
 0x404   :  { %6967 = vmatpush1.bf16.msra.mxu1 %v13865_v33  ;;  %6933 = vmatprep.subr.bf16.mxu0 %v14038_v21  ;;  %v14085_v33 = vld [vmem:[#allocation19 + $0x590] ss:$28 sps:$4 sm:$0xff]   ;;  %v13945_v21 = vld [vmem:[#allocation19 + $0x51c] ss:$28 sps:$4 sm:$0xff]  }
 0x405   :  { %6968 = vmatprep.subr.bf16.mxu1 %v13873_v48  ;;  %v14087_v48 = vld [vmem:[#allocation19 + $0x3d0] ss:$28 sps:$4 sm:$0xff]  }
 0x407   :  { %6934 = vmatpush1.bf16.msra.mxu0 %v14036_v11  ;;  %v13943_v11 = vld [vmem:[#allocation19 + $0x518] ss:$28 sps:$4 sm:$0xff]  }
 0x408   :  { %6969 = vmatpush1.bf16.msra.mxu1 %v13871_v46  ;;  %12868 = vmatprep.subr.bf16.mxu0 %v14042_v5  ;;  %v14089_v46 = vld [vmem:[#allocation19 + $0x5c8] ss:$28 sps:$4 sm:$0xff]   ;;  %v13951_v5 = vld [vmem:[#allocation19 + $0x554] ss:$28 sps:$4 sm:$0xff]  }
 0x409   :  { %6970 = vmatprep.subr.bf16.mxu1 %v13879_v40  ;;  %v14091_v40 = vld [vmem:[#allocation19 + $0x408] ss:$28 sps:$4 sm:$0xff]  }
 0x40a   :  { %6936 = vmatmul.mubr.bf16.vlgmr.msra.gmra.mrb[12].mxu0 %v16819_v8 }
 0x40b   :  { %12869 = vmatpush3.bf16.msra.mxu0 %v14043_v55  ;;  %7107 = vmatprep.mubr.bf16.mxu0 %v16787_v19  ;;  %v13909_v19 = vld [vmem:[#allocation19 + $0x3cc] ss:$28 sps:$4 sm:$0xff]  }
 0x40c   :  { %6971 = vmatpush1.bf16.msra.mxu1 %v13877_v13  ;;  %12870 = vmatprep.subr.bf16.mxu0 %v14047_v35  ;;  %v14093_v13 = vld [vmem:[#allocation19 + $0x600] ss:$28 sps:$4 sm:$0xff]   ;;  %v13957_v55 = vld [vmem:[#allocation19 + $0x58c] ss:$28 sps:$4 sm:$0xff]  }
 0x40d   :  { %6972 = vmatprep.subr.bf16.mxu1 %v13885_v24  ;;  %v13949_v24 = vld [vmem:[#allocation19 + $0x550] ss:$28 sps:$4 sm:$0xff]   ;;  %v13955_v35 = vld [vmem:[#allocation19 + $0x588] ss:$28 sps:$4 sm:$0xff]  }
 0x40f   :  { %12871 = vmatpush3.bf16.msra.mxu0 %v14048_v61  ;;  %v13963_v61 = vld [vmem:[#allocation19 + $0x5c4] ss:$28 sps:$4 sm:$0xff]  }
 0x410   :  { %6973 = vmatpush1.bf16.msra.mxu1 %v13883_v22  ;;  %12872 = vmatprep.subr.bf16.mxu0 %v14052_v29  ;;  %v14099_v22 = vld [vmem:[#allocation19 + $0x478] ss:$28 sps:$4 sm:$0xff]   ;;  %v13961_v29 = vld [vmem:[#allocation19 + $0x5c0] ss:$28 sps:$4 sm:$0xff]  }
 0x411   :  { %6974 = vmatprep.subr.bf16.mxu1 %v13891_v50  ;;  %v14101_v50 = vld [vmem:[#allocation19 + $0x670] ss:$28 sps:$4 sm:$0xff]  }
 0x413   :  { %12873 = vmatpush3.bf16.msra.mxu0 %v14053_v31  ;;  %v13969_v31 = vld [vmem:[#allocation19 + $0x5fc] ss:$28 sps:$4 sm:$0xff]  }
 0x414   :  { %6975 = vmatpush1.bf16.msra.mxu1 %v13889_v34  ;;  %12874 = vmatprep.subr.bf16.mxu0 %v14057_v41  ;;  %v14103_v34 = vld [vmem:[#allocation19 + $0x4b0] ss:$28 sps:$4 sm:$0xff]   ;;  %v13967_v41 = vld [vmem:[#allocation19 + $0x5f8] ss:$28 sps:$4 sm:$0xff]  }
 0x415   :  { %6976 = vmatprep.subr.bf16.mxu1 %v13897_v62  ;;  %v14105_v62 = vld [vmem:[#allocation19 + $0x6a8] ss:$28 sps:$4 sm:$0xff]  }
 0x417   :  { %12875 = vmatpush3.bf16.msra.mxu0 %v14058_v53  ;;  %v13975_v53 = vld [vmem:[#allocation19 + $0x634] ss:$28 sps:$4 sm:$0xff]  }
 0x418   :  { %6977 = vmatpush1.bf16.msra.mxu1 %v13895_v6  ;;  %12876 = vmatprep.subr.bf16.mxu0 %v14062_v43  ;;  %v14107_v6 = vld [vmem:[#allocation19 + $0x4e8] ss:$28 sps:$4 sm:$0xff]  }
 0x419   :  { %6989 = vmatprep.subr.bf16.mxu1 %v13903_v39  ;;  %v14109_v39 = vld [vmem:[#allocation19 + $0x6e0] ss:$28 sps:$4 sm:$0xff]   ;;  %v14116_v43 = vld [vmem:[#allocation18 + $0xc] ss:$28 sps:$4 sm:$0xff]  }
 0x41b   :  { %6979 = vmatmul.mubr.bf16.vlgmr.msra.gmra.mrb[24].mxu1 %v16783_v38  ;;  %12877 = vmatpush3.bf16.msra.mxu0 %v14063_v56  ;;  %v13981_v56 = vld [vmem:[#allocation19 + $0x66c] ss:$28 sps:$4 sm:$0xff]  }
 0x41c   :  { %6990 = vmatpush1.bf16.msra.mxu1 %v13901_v15  ;;  %7021 = vmatprep.mubr.bf16.mxu1 %v16808_v52  ;;  %v14111_v15 = vld [vmem:[#allocation19 + $0x520] ss:$28 sps:$4 sm:$0xff]  }
 0x41d   :  { %6991 = vmatprep.subr.bf16.mxu1 %v13909_v19  ;;  %12878 = vmatprep.subr.bf16.mxu0 %v14067_v25  ;;  %v13973_v19 = vld [vmem:[#allocation19 + $0x630] ss:$28 sps:$4 sm:$0xff]   ;;  %v13979_v25 = vld [vmem:[#allocation19 + $0x668] ss:$28 sps:$4 sm:$0xff]  }
 0x41f   :  { %12879 = vmatpush3.bf16.msra.mxu0 %v14068_v1  ;;  %v13987_v1 = vld [vmem:[#allocation19 + $0x6a4] ss:$28 sps:$4 sm:$0xff]  }
 0x420   :  { %6992 = vmatpush1.bf16.msra.mxu1 %v13907_v18  ;;  %12880 = vmatprep.subr.bf16.mxu0 %v14072_v2  ;;  %v14114_v18 = vld [vmem:[#allocation18 + $0x8] ss:$28 sps:$4 sm:$0xff]   ;;  %v13985_v2 = vld [vmem:[#allocation19 + $0x6a0] ss:$28 sps:$4 sm:$0xff]  }
 0x421   :  { %6993 = vmatprep.subr.bf16.mxu1 %v13915_v36  ;;  %v14122_v36 = vld [vmem:[#allocation18 + $0x44] ss:$28 sps:$4 sm:$0xff]  }
 0x423   :  { %12881 = vmatpush3.bf16.msra.mxu0 %v14073_v14  ;;  %v13993_v14 = vld [vmem:[#allocation19 + $0x6dc] ss:$28 sps:$4 sm:$0xff]  }
 0x424   :  { %6994 = vmatpush1.bf16.msra.mxu1 %v13913_v9  ;;  %12882 = vmatprep.subr.bf16.mxu0 %v14077_v47  ;;  %v14120_v9 = vld [vmem:[#allocation18 + $0x40] ss:$28 sps:$4 sm:$0xff]   ;;  %v13991_v47 = vld [vmem:[#allocation19 + $0x6d8] ss:$28 sps:$4 sm:$0xff]  }
 0x425   :  { %6995 = vmatprep.subr.bf16.mxu1 %v13921_v7  ;;  %v14128_v7 = vld [vmem:[#allocation18 + $0x7c] ss:$28 sps:$4 sm:$0xff]  }
 0x427   :  { %12883 = vmatpush3.bf16.msra.mxu0 %v14078_v42  ;;  %v13999_v42 = vld [vmem:[#allocation19 + $0x714] ss:$28 sps:$4 sm:$0xff]  }
 0x428   :  { %6996 = vmatpush1.bf16.msra.mxu1 %v13919_v12  ;;  %12890 = vmatprep.subr.bf16.mxu0 %v14082_v26  ;;  %v14126_v12 = vld [vmem:[#allocation18 + $0x78] ss:$28 sps:$4 sm:$0xff]   ;;  %v13997_v26 = vld [vmem:[#allocation19 + $0x710] ss:$28 sps:$4 sm:$0xff]  }
 0x429   :  { %6997 = vmatprep.subr.bf16.mxu1 %v13927_v4  ;;  %v14134_v4 = vld [vmem:[#allocation18 + $0xb4] ss:$28 sps:$4 sm:$0xff]  }
 0x42a   :  { %7108 = vmatmul.mubr.bf16.vlgmr.msra.gmra.mrb[16].mxu0 %v16783_v38  ;;  %v14095_v38 = vld [vmem:[#allocation19 + $0x440] ss:$28 sps:$4 sm:$0xff]  }
 0x42b   :  { %12891 = vmatpush3.bf16.msra.mxu0 %v14083_v10  ;;  %7148 = vmatprep.mubr.bf16.mxu0 %v16808_v52  ;;  %v14097_v52 = vld [vmem:[#allocation19 + $0x638] ss:$28 sps:$4 sm:$0xff]   ;;  %v14140_v10 = vld [vmem:[#allocation18 + $0xec] ss:$28 sps:$4 sm:$0xff]  }
 0x42c   :  { %6998 = vmatpush1.bf16.msra.mxu1 %v13925_v49  ;;  %12892 = vmatprep.subr.bf16.mxu0 %v14085_v33  ;;  %v14132_v49 = vld [vmem:[#allocation18 + $0xb0] ss:$28 sps:$4 sm:$0xff]   ;;  %v14003_v33 = vld [vmem:[#allocation19 + $0x748] ss:$28 sps:$4 sm:$0xff]  }
 0x42d   :  { %6999 = vmatprep.subr.bf16.mxu1 %v13933_v32  ;;  %v14005_v32 = vld [vmem:[#allocation19 + $0x74c] ss:$28 sps:$4 sm:$0xff]  }
 0x42f   :  { %12893 = vmatpush3.bf16.msra.mxu0 %v14087_v48  ;;  %v14011_v48 = vld [vmem:[#allocation19 + $0x784] ss:$28 sps:$4 sm:$0xff]  }
 0x430   :  { %7000 = vmatpush1.bf16.msra.mxu1 %v13931_v28  ;;  %12894 = vmatprep.subr.bf16.mxu0 %v14089_v46  ;;  %v14138_v28 = vld [vmem:[#allocation18 + $0xe8] ss:$28 sps:$4 sm:$0xff]   ;;  %v14009_v46 = vld [vmem:[#allocation19 + $0x780] ss:$28 sps:$4 sm:$0xff]  }
 0x431   :  { %7001 = vmatprep.subr.bf16.mxu1 %v13939_v37  ;;  %v14146_v37 = vld [vmem:[#allocation18 + $0x124] ss:$28 sps:$4 sm:$0xff]  }
 0x433   :  { %12895 = vmatpush3.bf16.msra.mxu0 %v14091_v40  ;;  %v14017_v40 = vld [vmem:[#allocation19 + $0x7bc] ss:$28 sps:$4 sm:$0xff]  }
 0x434   :  { %7002 = vmatpush1.bf16.msra.mxu1 %v13937_v20  ;;  %12896 = vmatprep.subr.bf16.mxu0 %v14093_v13  ;;  %v14144_v20 = vld [vmem:[#allocation18 + $0x120] ss:$28 sps:$4 sm:$0xff]   ;;  %v14158_v13 = vld [vmem:[#allocation18 + $0x194] ss:$28 sps:$4 sm:$0xff]  }
 0x435   :  { %7003 = vmatprep.subr.bf16.mxu1 %v13945_v21  ;;  %v14152_v21 = vld [vmem:[#allocation18 + $0x15c] ss:$28 sps:$4 sm:$0xff]  }
 0x437   :  { %12897 = vmatpush3.bf16.msra.mxu0 %v14095_v38  ;;  %v14156_v38 = vld [vmem:[#allocation18 + $0x190] ss:$28 sps:$4 sm:$0xff]  }
 0x438   :  { %7004 = vmatpush1.bf16.msra.mxu1 %v13943_v11  ;;  %12898 = vmatprep.subr.bf16.mxu0 %v14097_v52  ;;  %v14015_v11 = vld [vmem:[#allocation19 + $0x7b8] ss:$28 sps:$4 sm:$0xff]   ;;  %v14164_v52 = vld [vmem:[#allocation18 + $0x1cc] ss:$28 sps:$4 sm:$0xff]  }
 0x439   :  { %7005 = vmatprep.subr.bf16.mxu1 %v13951_v5  ;;  %v14023_v5 = vld [vmem:[#allocation19 + $0x7f4] ss:$28 sps:$4 sm:$0xff]  }
 0x43b   :  { %12899 = vmatpush3.bf16.msra.mxu0 %v14099_v22  ;;  %v14162_v22 = vld [vmem:[#allocation18 + $0x1c8] ss:$28 sps:$4 sm:$0xff]  }
 0x43c   :  { %7006 = vmatpush1.bf16.msra.mxu1 %v13949_v24  ;;  %12900 = vmatprep.subr.bf16.mxu0 %v14101_v50  ;;  %v14021_v24 = vld [vmem:[#allocation19 + $0x7f0] ss:$28 sps:$4 sm:$0xff]   ;;  %v14170_v50 = vld [vmem:[#allocation18 + $0x204] ss:$28 sps:$4 sm:$0xff]  }
 0x43d   :  { %7007 = vmatprep.subr.bf16.mxu1 %v13957_v55  ;;  %v14029_v55 = vld [vmem:[#allocation19 + $0x82c] ss:$28 sps:$4 sm:$0xff]  }
 0x43f   :  { %12901 = vmatpush3.bf16.msra.mxu0 %v14103_v34  ;;  %v14168_v34 = vld [vmem:[#allocation18 + $0x200] ss:$28 sps:$4 sm:$0xff]  }
 0x440   :  { %7008 = vmatpush1.bf16.msra.mxu1 %v13955_v35  ;;  %12902 = vmatprep.subr.bf16.mxu0 %v14105_v62  ;;  %v14027_v35 = vld [vmem:[#allocation19 + $0x828] ss:$28 sps:$4 sm:$0xff]   ;;  %v14176_v62 = vld [vmem:[#allocation18 + $0x23c] ss:$28 sps:$4 sm:$0xff]  }
 0x441   :  { %7009 = vmatprep.subr.bf16.mxu1 %v13963_v61  ;;  %v14035_v61 = vld [vmem:[#allocation19 + $0x864] ss:$28 sps:$4 sm:$0xff]  }
 0x443   :  { %12903 = vmatpush3.bf16.msra.mxu0 %v14107_v6 }
 0x444   :  { %7010 = vmatpush1.bf16.msra.mxu1 %v13961_v29  ;;  %12904 = vmatprep.subr.bf16.mxu0 %v14109_v39  ;;  %v14033_v29 = vld [vmem:[#allocation19 + $0x860] ss:$28 sps:$4 sm:$0xff]  }
 0x445   :  { %7011 = vmatprep.subr.bf16.mxu1 %v13969_v31  ;;  %v14959_v31 = vld [vmem:[#allocation10] sm:$0x3f] }
 0x446   :  { %v2039_v6 = vrot.slane %v14959_v31, %v16795_v54  ;;  %v2043_v39 = vrot.slane %v14959_v31, %v16798_v0  ;;  %v14230_v31 = vld [vmem:[#allocation18 + $0x434] ss:$28 sps:$4 sm:$0xff]  }
 0x447   :  { %12905 = vmatpush3.bf16.msra.mxu0 %v14111_v15 }
 0x448   :  { %7012 = vmatpush1.bf16.msra.mxu1 %v13967_v41  ;;  %9055 = vmatprep.subr.bf16.mxu0 %v14116_v43  ;;  %v3868_v41 = vpop.f32.mrb[8].mxu0 }
 0x449   :  { %7013 = vmatprep.subr.bf16.mxu1 %v13975_v53  ;;  %v14041_v53 = vld [vmem:[#allocation19 + $0x89c] ss:$28 sps:$4 sm:$0xff]   ;;  %v3870_v15 = vpop.f32.mrb[9].mxu0 }
 0x44a   :  { %7149 = vmatmul.mubr.bf16.vlgmr.msra.gmra.mrb[20].mxu0 %v16804_v17  ;;  %v13030_v43 = vadd.f32 %v3870_v15, %v2043_v39  ;;  %v14236_v15 = vld [vmem:[#allocation18 + $0x46c] ss:$28 sps:$4 sm:$0xff]  }
 0x44b   :  { %9056 = vmatpush1.bf16.msra.mxu0 %v14114_v18  ;;  %9087 = vmatprep.mubr.bf16.mxu0 %v16770_v16  ;;  %v14174_v18 = vld [vmem:[#allocation18 + $0x238] ss:$28 sps:$4 sm:$0xff]  }
 0x44c   :  { %7014 = vmatpush1.bf16.msra.mxu1 %v13973_v19  ;;  %9057 = vmatprep.subr.bf16.mxu0 %v14122_v36  ;;  %v13029_v19 = vadd.f32 %v3868_v41, %v2039_v6  ;;  %v14228_v41 = vld [vmem:[#allocation18 + $0x430] ss:$28 sps:$4 sm:$0xff]  }
 0x44d   :  { %7015 = vmatprep.subr.bf16.mxu1 %v13981_v56  ;;  %v3872_v56 = vpop.f32.mrb[10].mxu0 }
 0x44e   :  { %v3874_v36 = vpop.f32.mrb[11].mxu0 }
 0x44f   :  { %9058 = vmatpush1.bf16.msra.mxu0 %v14120_v9  ;;  %v14182_v9 = vld [vmem:[#allocation18 + $0x274] ss:$28 sps:$4 sm:$0xff]  }
 0x450   :  { %7016 = vmatpush1.bf16.msra.mxu1 %v13979_v25  ;;  %9059 = vmatprep.subr.bf16.mxu0 %v14128_v7  ;;  %v13031_v25 = vadd.f32 %v3872_v56, %v2039_v6  ;;  %v14046_v7 = vld [vmem:[#allocation19 + $0x8d4] ss:$28 sps:$4 sm:$0xff]   ;;  %v14242_v56 = vld [vmem:[#allocation18 + $0x4a4] ss:$28 sps:$4 sm:$0xff]  }
 0x451   :  { %7017 = vmatprep.subr.bf16.mxu1 %v13987_v1  ;;  %v14039_v1 = vld [vmem:[#allocation19 + $0x898] ss:$28 sps:$4 sm:$0xff]  }
 0x452   :  { %v14084_v6 = vld [vmem:[#allocation19 + $0x8d8] ss:$28 sps:$4 sm:$0xff]  }
 0x453   :  { %9060 = vmatpush1.bf16.msra.mxu0 %v14126_v12 }
 0x454   :  { %7018 = vmatpush1.bf16.msra.mxu1 %v13985_v2  ;;  %9061 = vmatprep.subr.bf16.mxu0 %v14134_v4  ;;  %v13032_v2 = vadd.f32 %v3874_v36, %v2043_v39  ;;  %v14044_v4 = vld [vmem:[#allocation19 + $0x8d0] ss:$28 sps:$4 sm:$0xff]   ;;  %v14086_v39 = vld [vmem:[#allocation19 + $0x718] ss:$28 sps:$4 sm:$0xff]   ;;  %v14094_v36 = vld [vmem:[#allocation19 + $0x788] ss:$28 sps:$4 sm:$0xff]  }
 0x455   :  { %7019 = vmatprep.subr.bf16.mxu1 %v13993_v14  ;;  %v16847_v14 = vpack.c.bf16 %v13031_v25, %v13029_v19  ;;  %v14234_v19 = vld [vmem:[#allocation18 + $0x468] ss:$28 sps:$4 sm:$0xff]   ;;  %v14240_v25 = vld [vmem:[#allocation18 + $0x4a0] ss:$28 sps:$4 sm:$0xff]  }
 0x456   :  { %v16849_v12 = vpack.c.bf16 %v13032_v2, %v13030_v43  ;;  %v14090_v43 = vld [vmem:[#allocation19 + $0x750] ss:$28 sps:$4 sm:$0xff]   ;;  %v14246_v2 = vld [vmem:[#allocation18 + $0x4d8] ss:$28 sps:$4 sm:$0xff]  }
 0x457   :  { %9062 = vmatpush1.bf16.msra.mxu0 %v14132_v49  ;;  %v14051_v49 = vld [vmem:[#allocation19 + $0x90c] ss:$28 sps:$4 sm:$0xff]  }
 0x458   :  { %7020 = vmatpush1.bf16.msra.mxu1 %v13991_v47  ;;  %9063 = vmatprep.subr.bf16.mxu0 %v14140_v10  ;;  %v14180_v47 = vld [vmem:[#allocation18 + $0x270] ss:$28 sps:$4 sm:$0xff]   ;;  %v14194_v10 = vld [vmem:[#allocation18 + $0x2e4] ss:$28 sps:$4 sm:$0xff]  }
 0x459   :  { %7032 = vmatprep.subr.bf16.mxu1 %v13999_v42  ;;  %v14188_v42 = vld [vmem:[#allocation18 + $0x2ac] ss:$28 sps:$4 sm:$0xff]  }
 0x45b   :  { %7022 = vmatmul.mubr.bf16.vlgmr.msra.gmra.mrb[24].mxu1 %v16804_v17  ;;  %9064 = vmatpush1.bf16.msra.mxu0 %v14138_v28  ;;  %v14150_v17 = vld [vmem:[#allocation18 + $0x158] ss:$28 sps:$4 sm:$0xff]   ;;  %v14056_v28 = vld [vmem:[#allocation19 + $0x944] ss:$28 sps:$4 sm:$0xff]  }
 0x45c   :  { %7033 = vmatpush1.bf16.msra.mxu1 %v13997_v26  ;;  %7064 = vmatprep.mubr.bf16.mxu1 %v16823_v3  ;;  %v14186_v26 = vld [vmem:[#allocation18 + $0x2a8] ss:$28 sps:$4 sm:$0xff]  }
 0x45d   :  { %7034 = vmatprep.subr.bf16.mxu1 %v14005_v32  ;;  %9065 = vmatprep.subr.bf16.mxu0 %v14146_v37  ;;  %v14049_v32 = vld [vmem:[#allocation19 + $0x908] ss:$28 sps:$4 sm:$0xff]   ;;  %v14054_v37 = vld [vmem:[#allocation19 + $0x940] ss:$28 sps:$4 sm:$0xff]  }
 0x45f   :  { %9066 = vmatpush1.bf16.msra.mxu0 %v14144_v20  ;;  %v14061_v20 = vld [vmem:[#allocation19 + $0x97c] ss:$28 sps:$4 sm:$0xff]  }
 0x460   :  { %7035 = vmatpush1.bf16.msra.mxu1 %v14003_v33  ;;  %9067 = vmatprep.subr.bf16.mxu0 %v14152_v21  ;;  %v14192_v33 = vld [vmem:[#allocation18 + $0x2e0] ss:$28 sps:$4 sm:$0xff]   ;;  %v14059_v21 = vld [vmem:[#allocation19 + $0x978] ss:$28 sps:$4 sm:$0xff]  }
 0x461   :  { %7036 = vmatprep.subr.bf16.mxu1 %v14011_v48  ;;  %v14200_v48 = vld [vmem:[#allocation18 + $0x31c] ss:$28 sps:$4 sm:$0xff]  }
 0x463   :  { %9068 = vmatpush1.bf16.msra.mxu0 %v14150_v17  ;;  %v14066_v17 = vld [vmem:[#allocation19 + $0x9b4] ss:$28 sps:$4 sm:$0xff]  }
 0x464   :  { %7037 = vmatpush1.bf16.msra.mxu1 %v14009_v46  ;;  %9069 = vmatprep.subr.bf16.mxu0 %v14158_v13  ;;  %v14198_v46 = vld [vmem:[#allocation18 + $0x318] ss:$28 sps:$4 sm:$0xff]   ;;  %v14064_v13 = vld [vmem:[#allocation19 + $0x9b0] ss:$28 sps:$4 sm:$0xff]  }
 0x465   :  { %7038 = vmatprep.subr.bf16.mxu1 %v14017_v40  ;;  %v14206_v40 = vld [vmem:[#allocation18 + $0x354] ss:$28 sps:$4 sm:$0xff]  }
 0x467   :  { %9070 = vmatpush1.bf16.msra.mxu0 %v14156_v38  ;;  %v14071_v38 = vld [vmem:[#allocation19 + $0x9ec] ss:$28 sps:$4 sm:$0xff]  }
 0x468   :  { %7039 = vmatpush1.bf16.msra.mxu1 %v14015_v11  ;;  %9071 = vmatprep.subr.bf16.mxu0 %v14164_v52  ;;  %v14204_v11 = vld [vmem:[#allocation18 + $0x350] ss:$28 sps:$4 sm:$0xff]   ;;  %v14069_v52 = vld [vmem:[#allocation19 + $0x9e8] ss:$28 sps:$4 sm:$0xff]  }
 0x469   :  { %7040 = vmatprep.subr.bf16.mxu1 %v14023_v5  ;;  %v14212_v5 = vld [vmem:[#allocation18 + $0x38c] ss:$28 sps:$4 sm:$0xff]  }
 0x46b   :  { %9072 = vmatpush1.bf16.msra.mxu0 %v14162_v22  ;;  %v14076_v22 = vld [vmem:[#allocation19 + $0xa24] ss:$28 sps:$4 sm:$0xff]  }
 0x46c   :  { %7041 = vmatpush1.bf16.msra.mxu1 %v14021_v24  ;;  %9073 = vmatprep.subr.bf16.mxu0 %v14170_v50  ;;  %v14210_v24 = vld [vmem:[#allocation18 + $0x388] ss:$28 sps:$4 sm:$0xff]   ;;  %v14074_v50 = vld [vmem:[#allocation19 + $0xa20] ss:$28 sps:$4 sm:$0xff]  }
 0x46d   :  { %7042 = vmatprep.subr.bf16.mxu1 %v14029_v55  ;;  %v14218_v55 = vld [vmem:[#allocation18 + $0x3c4] ss:$28 sps:$4 sm:$0xff]  }
 0x46f   :  { %9074 = vmatpush1.bf16.msra.mxu0 %v14168_v34  ;;  %v14081_v34 = vld [vmem:[#allocation19 + $0xa5c] ss:$28 sps:$4 sm:$0xff]  }
 0x470   :  { %7043 = vmatpush1.bf16.msra.mxu1 %v14027_v35  ;;  %9075 = vmatprep.subr.bf16.mxu0 %v14176_v62  ;;  %v14216_v35 = vld [vmem:[#allocation18 + $0x3c0] ss:$28 sps:$4 sm:$0xff]   ;;  %v14079_v62 = vld [vmem:[#allocation19 + $0xa58] ss:$28 sps:$4 sm:$0xff]  }
 0x471   :  { %7044 = vmatprep.subr.bf16.mxu1 %v14035_v61  ;;  %v14224_v61 = vld [vmem:[#allocation18 + $0x3fc] ss:$28 sps:$4 sm:$0xff]  }
 0x473   :  { %9076 = vmatpush1.bf16.msra.mxu0 %v14174_v18  ;;  %v14092_v18 = vld [vmem:[#allocation19 + $0x948] ss:$28 sps:$4 sm:$0xff]  }
 0x474   :  { %7045 = vmatpush1.bf16.msra.mxu1 %v14033_v29  ;;  %9077 = vmatprep.subr.bf16.mxu0 %v14182_v9  ;;  %v14222_v29 = vld [vmem:[#allocation18 + $0x3f8] ss:$28 sps:$4 sm:$0xff]   ;;  %v14096_v9 = vld [vmem:[#allocation19 + $0x980] ss:$28 sps:$4 sm:$0xff]  }
 0x475   :  { %7046 = vmatprep.subr.bf16.mxu1 %v14041_v53  ;;  %v14088_v53 = vld [vmem:[#allocation19 + $0x910] ss:$28 sps:$4 sm:$0xff]  }
 0x477   :  { %9078 = vmatpush1.bf16.msra.mxu0 %v14180_v47  ;;  %v14254_v47 = vld [vmem:[#allocation18 + $0x514] ss:$28 sps:$4 sm:$0xff]  }
 0x478   :  { %7047 = vmatpush1.bf16.msra.mxu1 %v14039_v1  ;;  %9079 = vmatprep.subr.bf16.mxu0 %v14188_v42  ;;  %v14248_v1 = vld [vmem:[#allocation18 + $0x4dc] ss:$28 sps:$4 sm:$0xff]  }
 0x479   :  { %7048 = vmatprep.subr.bf16.mxu1 %v14046_v7  ;;  %v14098_v7 = vld [vmem:[#allocation19 + $0x7c0] ss:$28 sps:$4 sm:$0xff]   ;;  %v14102_v42 = vld [vmem:[#allocation19 + $0x7f8] ss:$28 sps:$4 sm:$0xff]  }
 0x47b   :  { %9080 = vmatpush1.bf16.msra.mxu0 %v14186_v26  ;;  %v14104_v26 = vld [vmem:[#allocation19 + $0x9f0] ss:$28 sps:$4 sm:$0xff]  }
 0x47c   :  { %7049 = vmatpush1.bf16.msra.mxu1 %v14044_v4  ;;  %9081 = vmatprep.subr.bf16.mxu0 %v14194_v10  ;;  %v14252_v4 = vld [vmem:[#allocation18 + $0x510] ss:$28 sps:$4 sm:$0xff]  }
 0x47d   :  { %7050 = vmatprep.subr.bf16.mxu1 %v14051_v49  ;;  %v14260_v49 = vld [vmem:[#allocation18 + $0x54c] ss:$28 sps:$4 sm:$0xff]  }
 0x47e   :  { %v14106_v10 = vld [vmem:[#allocation19 + $0x830] ss:$28 sps:$4 sm:$0xff]  }
 0x47f   :  { %9082 = vmatpush1.bf16.msra.mxu0 %v14192_v33  ;;  %v14108_v33 = vld [vmem:[#allocation19 + $0xa28] ss:$28 sps:$4 sm:$0xff]  }
 0x480   :  { %7051 = vmatpush1.bf16.msra.mxu1 %v14049_v32  ;;  %9083 = vmatprep.subr.bf16.mxu0 %v14200_v48  ;;  %v14258_v32 = vld [vmem:[#allocation18 + $0x548] ss:$28 sps:$4 sm:$0xff]  }
 0x481   :  { %7052 = vmatprep.subr.bf16.mxu1 %v14056_v28  ;;  %v14266_v28 = vld [vmem:[#allocation18 + $0x584] ss:$28 sps:$4 sm:$0xff]  }
 0x482   :  { %v14110_v48 = vld [vmem:[#allocation19 + $0x868] ss:$28 sps:$4 sm:$0xff]  }
 0x483   :  { %9084 = vmatpush1.bf16.msra.mxu0 %v14198_v46  ;;  %v14112_v46 = vld [vmem:[#allocation19 + $0xa60] ss:$28 sps:$4 sm:$0xff]  }
 0x484   :  { %7053 = vmatpush1.bf16.msra.mxu1 %v14054_v37  ;;  %9085 = vmatprep.subr.bf16.mxu0 %v14206_v40  ;;  %v14264_v37 = vld [vmem:[#allocation18 + $0x580] ss:$28 sps:$4 sm:$0xff]  }
 0x485   :  { %7054 = vmatprep.subr.bf16.mxu1 %v14061_v20  ;;  %v14272_v20 = vld [vmem:[#allocation18 + $0x5bc] ss:$28 sps:$4 sm:$0xff]  }
 0x486   :  { %v14113_v40 = vld [vmem:[#allocation19 + $0x8a0] ss:$28 sps:$4 sm:$0xff]  }
 0x487   :  { %9086 = vmatpush1.bf16.msra.mxu0 %v14204_v11  ;;  %v14119_v11 = vld [vmem:[#allocation18 + $0x4] ss:$28 sps:$4 sm:$0xff]  }
 0x488   :  { %7055 = vmatpush1.bf16.msra.mxu1 %v14059_v21  ;;  %9098 = vmatprep.subr.bf16.mxu0 %v14212_v5  ;;  %v14270_v21 = vld [vmem:[#allocation18 + $0x5b8] ss:$28 sps:$4 sm:$0xff]   ;;  %v14117_v5 = vld [vmem:[#allocation18] ss:$28 sps:$4 sm:$0xff]  }
 0x489   :  { %7056 = vmatprep.subr.bf16.mxu1 %v14066_v17  ;;  %v14278_v17 = vld [vmem:[#allocation18 + $0x5f4] ss:$28 sps:$4 sm:$0xff]  }
 0x48a   :  { %9088 = vmatmul.mubr.bf16.vlgmr.msra.gmra.mrb[12].mxu0 %v16766_v63 }
 0x48b   :  { %9099 = vmatpush1.bf16.msra.mxu0 %v14210_v24  ;;  %9130 = vmatprep.mubr.bf16.mxu0 %v16821_v45  ;;  %v14284_v24 = vld [vmem:[#allocation18 + $0x62c] ss:$28 sps:$4 sm:$0xff]  }
 0x48c   :  { %7057 = vmatpush1.bf16.msra.mxu1 %v14064_v13  ;;  %9100 = vmatprep.subr.bf16.mxu0 %v14218_v55  ;;  %v14276_v13 = vld [vmem:[#allocation18 + $0x5f0] ss:$28 sps:$4 sm:$0xff]   ;;  %v14123_v55 = vld [vmem:[#allocation18 + $0x38] ss:$28 sps:$4 sm:$0xff]  }
 0x48d   :  { %7058 = vmatprep.subr.bf16.mxu1 %v14071_v38  ;;  %v14125_v38 = vld [vmem:[#allocation18 + $0x3c] ss:$28 sps:$4 sm:$0xff]  }
 0x48f   :  { %9101 = vmatpush1.bf16.msra.mxu0 %v14216_v35  ;;  %v14131_v35 = vld [vmem:[#allocation18 + $0x74] ss:$28 sps:$4 sm:$0xff]  }
 0x490   :  { %7059 = vmatpush1.bf16.msra.mxu1 %v14069_v52  ;;  %9102 = vmatprep.subr.bf16.mxu0 %v14224_v61  ;;  %v14282_v52 = vld [vmem:[#allocation18 + $0x628] ss:$28 sps:$4 sm:$0xff]   ;;  %v14129_v61 = vld [vmem:[#allocation18 + $0x70] ss:$28 sps:$4 sm:$0xff]  }
 0x491   :  { %7060 = vmatprep.subr.bf16.mxu1 %v14076_v22  ;;  %v14290_v22 = vld [vmem:[#allocation18 + $0x664] ss:$28 sps:$4 sm:$0xff]  }
 0x493   :  { %9103 = vmatpush1.bf16.msra.mxu0 %v14222_v29  ;;  %v14137_v29 = vld [vmem:[#allocation18 + $0xac] ss:$28 sps:$4 sm:$0xff]  }
 0x494   :  { %7061 = vmatpush1.bf16.msra.mxu1 %v14074_v50  ;;  %9104 = vmatprep.subr.bf16.mxu0 %v14230_v31  ;;  %v14288_v50 = vld [vmem:[#allocation18 + $0x660] ss:$28 sps:$4 sm:$0xff]   ;;  %v14302_v31 = vld [vmem:[#allocation18 + $0x6d4] ss:$28 sps:$4 sm:$0xff]  }
 0x495   :  { %7062 = vmatprep.subr.bf16.mxu1 %v14081_v34  ;;  %v14296_v34 = vld [vmem:[#allocation18 + $0x69c] ss:$28 sps:$4 sm:$0xff]  }
 0x497   :  { %9105 = vmatpush1.bf16.msra.mxu0 %v14228_v41  ;;  %v14300_v41 = vld [vmem:[#allocation18 + $0x6d0] ss:$28 sps:$4 sm:$0xff]  }
 0x498   :  { %7063 = vmatpush1.bf16.msra.mxu1 %v14079_v62  ;;  %9106 = vmatprep.subr.bf16.mxu0 %v14236_v15  ;;  %v14135_v62 = vld [vmem:[#allocation18 + $0xa8] ss:$28 sps:$4 sm:$0xff]   ;;  %v14149_v15 = vld [vmem:[#allocation18 + $0x11c] ss:$28 sps:$4 sm:$0xff]  }
 0x499   :  { %12912 = vmatprep.subr.bf16.mxu1 %v14084_v6  ;;  %v14143_v6 = vld [vmem:[#allocation18 + $0xe4] ss:$28 sps:$4 sm:$0xff]  }
 0x49b   :  { %7065 = vmatmul.mubr.bf16.vlgmr.msra.gmra.mrb[24].mxu1 %v16819_v8  ;;  %9107 = vmatpush1.bf16.msra.mxu0 %v14234_v19  ;;  %v14306_v19 = vld [vmem:[#allocation18 + $0x708] ss:$28 sps:$4 sm:$0xff]  }
 0x49c   :  { %12913 = vmatpush3.bf16.msra.mxu1 %v14086_v39  ;;  %7189 = vmatprep.mubr.bf16.mxu1 %v16823_v3  ;;  %v14100_v3 = vld [vmem:[#allocation19 + $0x9b8] ss:$28 sps:$4 sm:$0xff]   ;;  %v14141_v39 = vld [vmem:[#allocation18 + $0xe0] ss:$28 sps:$4 sm:$0xff]  }
 0x49d   :  { %12914 = vmatprep.subr.bf16.mxu1 %v14088_v53  ;;  %9108 = vmatprep.subr.bf16.mxu0 %v14242_v56  ;;  %v14308_v53 = vld [vmem:[#allocation18 + $0x70c] ss:$28 sps:$4 sm:$0xff]   ;;  %v14314_v56 = vld [vmem:[#allocation18 + $0x744] ss:$28 sps:$4 sm:$0xff]  }
 0x49f   :  { %9109 = vmatpush1.bf16.msra.mxu0 %v14240_v25  ;;  %v14312_v25 = vld [vmem:[#allocation18 + $0x740] ss:$28 sps:$4 sm:$0xff]  }
 0x4a0   :  { %12915 = vmatpush3.bf16.msra.mxu1 %v14090_v43  ;;  %9110 = vmatprep.subr.bf16.mxu0 %v14248_v1  ;;  %v14147_v43 = vld [vmem:[#allocation18 + $0x118] ss:$28 sps:$4 sm:$0xff]  }
 0x4a1   :  { %12916 = vmatprep.subr.bf16.mxu1 %v14092_v18  ;;  %v14155_v18 = vld [vmem:[#allocation18 + $0x154] ss:$28 sps:$4 sm:$0xff]   ;;  %v14320_v1 = vld [vmem:[#allocation18 + $0x77c] ss:$28 sps:$4 sm:$0xff]  }
 0x4a3   :  { %9111 = vmatpush1.bf16.msra.mxu0 %v14246_v2  ;;  %v14318_v2 = vld [vmem:[#allocation18 + $0x778] ss:$28 sps:$4 sm:$0xff]  }
 0x4a4   :  { %12917 = vmatpush3.bf16.msra.mxu1 %v14094_v36  ;;  %9112 = vmatprep.subr.bf16.mxu0 %v14254_v47  ;;  %v14153_v36 = vld [vmem:[#allocation18 + $0x150] ss:$28 sps:$4 sm:$0xff]  }
 0x4a5   :  { %12918 = vmatprep.subr.bf16.mxu1 %v14096_v9  ;;  %v14161_v9 = vld [vmem:[#allocation18 + $0x18c] ss:$28 sps:$4 sm:$0xff]   ;;  %v14326_v47 = vld [vmem:[#allocation18 + $0x7b4] ss:$28 sps:$4 sm:$0xff]  }
 0x4a7   :  { %9113 = vmatpush1.bf16.msra.mxu0 %v14252_v4  ;;  %v14324_v4 = vld [vmem:[#allocation18 + $0x7b0] ss:$28 sps:$4 sm:$0xff]  }
 0x4a8   :  { %12919 = vmatpush3.bf16.msra.mxu1 %v14098_v7  ;;  %9114 = vmatprep.subr.bf16.mxu0 %v14260_v49  ;;  %v14159_v7 = vld [vmem:[#allocation18 + $0x188] ss:$28 sps:$4 sm:$0xff]  }
 0x4a9   :  { %12920 = vmatprep.subr.bf16.mxu1 %v14100_v3  ;;  %v14167_v3 = vld [vmem:[#allocation18 + $0x1c4] ss:$28 sps:$4 sm:$0xff]   ;;  %v14332_v49 = vld [vmem:[#allocation18 + $0x7ec] ss:$28 sps:$4 sm:$0xff]  }
 0x4ab   :  { %9115 = vmatpush1.bf16.msra.mxu0 %v14258_v32  ;;  %v14330_v32 = vld [vmem:[#allocation18 + $0x7e8] ss:$28 sps:$4 sm:$0xff]  }
 0x4ac   :  { %12921 = vmatpush3.bf16.msra.mxu1 %v14102_v42  ;;  %9116 = vmatprep.subr.bf16.mxu0 %v14266_v28  ;;  %v14165_v42 = vld [vmem:[#allocation18 + $0x1c0] ss:$28 sps:$4 sm:$0xff]  }
 0x4ad   :  { %12922 = vmatprep.subr.bf16.mxu1 %v14104_v26  ;;  %v14173_v26 = vld [vmem:[#allocation18 + $0x1fc] ss:$28 sps:$4 sm:$0xff]   ;;  %v14338_v28 = vld [vmem:[#allocation18 + $0x824] ss:$28 sps:$4 sm:$0xff]  }
 0x4af   :  { %9117 = vmatpush1.bf16.msra.mxu0 %v14264_v37  ;;  %v14336_v37 = vld [vmem:[#allocation18 + $0x820] ss:$28 sps:$4 sm:$0xff]  }
 0x4b0   :  { %12923 = vmatpush3.bf16.msra.mxu1 %v14106_v10  ;;  %9118 = vmatprep.subr.bf16.mxu0 %v14272_v20  ;;  %v14171_v10 = vld [vmem:[#allocation18 + $0x1f8] ss:$28 sps:$4 sm:$0xff]  }
 0x4b1   :  { %12924 = vmatprep.subr.bf16.mxu1 %v14108_v33  ;;  %v14179_v33 = vld [vmem:[#allocation18 + $0x234] ss:$28 sps:$4 sm:$0xff]   ;;  %v14344_v20 = vld [vmem:[#allocation18 + $0x85c] ss:$28 sps:$4 sm:$0xff]  }
 0x4b3   :  { %9119 = vmatpush1.bf16.msra.mxu0 %v14270_v21  ;;  %v14342_v21 = vld [vmem:[#allocation18 + $0x858] ss:$28 sps:$4 sm:$0xff]  }
 0x4b4   :  { %12925 = vmatpush3.bf16.msra.mxu1 %v14110_v48  ;;  %9120 = vmatprep.subr.bf16.mxu0 %v14278_v17  ;;  %v14177_v48 = vld [vmem:[#allocation18 + $0x230] ss:$28 sps:$4 sm:$0xff]  }
 0x4b5   :  { %12926 = vmatprep.subr.bf16.mxu1 %v14112_v46  ;;  %v14185_v46 = vld [vmem:[#allocation18 + $0x26c] ss:$28 sps:$4 sm:$0xff]   ;;  %v14350_v17 = vld [vmem:[#allocation18 + $0x894] ss:$28 sps:$4 sm:$0xff]  }
 0x4b7   :  { %9121 = vmatpush1.bf16.msra.mxu0 %v14276_v13  ;;  %v14348_v13 = vld [vmem:[#allocation18 + $0x890] ss:$28 sps:$4 sm:$0xff]  }
 0x4b8   :  { %12927 = vmatpush3.bf16.msra.mxu1 %v14113_v40  ;;  %9122 = vmatprep.subr.bf16.mxu0 %v14284_v24  ;;  %v14183_v40 = vld [vmem:[#allocation18 + $0x268] ss:$28 sps:$4 sm:$0xff]   ;;  %v14197_v24 = vld [vmem:[#allocation18 + $0x2dc] ss:$28 sps:$4 sm:$0xff]  }
 0x4b9   :  { %8926 = vmatprep.subr.bf16.mxu1 %v14119_v11  ;;  %v14191_v11 = vld [vmem:[#allocation18 + $0x2a4] ss:$28 sps:$4 sm:$0xff]  }
 0x4bb   :  { %7190 = vmatmul.mubr.bf16.vlgmr.msra.gmra.mrb[28].mxu1 %v16819_v8  ;;  %9123 = vmatpush1.bf16.msra.mxu0 %v14282_v52  ;;  %v14294_v8 = vld [vmem:[#allocation18 + $0x698] ss:$28 sps:$4 sm:$0xff]   ;;  %v14354_v52 = vld [vmem:[#allocation18 + $0x8c8] ss:$28 sps:$4 sm:$0xff]  }
 0x4bc   :  { %8927 = vmatpush1.bf16.msra.mxu1 %v14117_v5  ;;  %8958 = vmatprep.mubr.bf16.mxu1 %v16770_v16  ;;  %v14189_v5 = vld [vmem:[#allocation18 + $0x2a0] ss:$28 sps:$4 sm:$0xff]  }
 0x4bd   :  { %8928 = vmatprep.subr.bf16.mxu1 %v14125_v38  ;;  %9124 = vmatprep.subr.bf16.mxu0 %v14290_v22  ;;  %v14356_v38 = vld [vmem:[#allocation18 + $0x8cc] ss:$28 sps:$4 sm:$0xff]   ;;  %v14362_v22 = vld [vmem:[#allocation18 + $0x904] ss:$28 sps:$4 sm:$0xff]  }
 0x4bf   :  { %9125 = vmatpush1.bf16.msra.mxu0 %v14288_v50  ;;  %v14360_v50 = vld [vmem:[#allocation18 + $0x900] ss:$28 sps:$4 sm:$0xff]  }
 0x4c0   :  { %8929 = vmatpush1.bf16.msra.mxu1 %v14123_v55  ;;  %9126 = vmatprep.subr.bf16.mxu0 %v14296_v34  ;;  %v14195_v55 = vld [vmem:[#allocation18 + $0x2d8] ss:$28 sps:$4 sm:$0xff]  }
 0x4c1   :  { %8930 = vmatprep.subr.bf16.mxu1 %v14131_v35  ;;  %v14203_v35 = vld [vmem:[#allocation18 + $0x314] ss:$28 sps:$4 sm:$0xff]   ;;  %v14368_v34 = vld [vmem:[#allocation18 + $0x93c] ss:$28 sps:$4 sm:$0xff]  }
 0x4c3   :  { %9127 = vmatpush1.bf16.msra.mxu0 %v14294_v8  ;;  %v14366_v8 = vld [vmem:[#allocation18 + $0x938] ss:$28 sps:$4 sm:$0xff]  }
 0x4c4   :  { %8931 = vmatpush1.bf16.msra.mxu1 %v14129_v61  ;;  %9128 = vmatprep.subr.bf16.mxu0 %v14302_v31  ;;  %v14201_v61 = vld [vmem:[#allocation18 + $0x310] ss:$28 sps:$4 sm:$0xff]  }
 0x4c5   :  { %8932 = vmatprep.subr.bf16.mxu1 %v14137_v29  ;;  %v14209_v29 = vld [vmem:[#allocation18 + $0x34c] ss:$28 sps:$4 sm:$0xff]   ;;  %v14374_v31 = vld [vmem:[#allocation18 + $0x974] ss:$28 sps:$4 sm:$0xff]  }
 0x4c7   :  { %9129 = vmatpush1.bf16.msra.mxu0 %v14300_v41  ;;  %v14372_v41 = vld [vmem:[#allocation18 + $0x970] ss:$28 sps:$4 sm:$0xff]  }
 0x4c8   :  { %8933 = vmatpush1.bf16.msra.mxu1 %v14135_v62  ;;  %9141 = vmatprep.subr.bf16.mxu0 %v14308_v53  ;;  %v14207_v62 = vld [vmem:[#allocation18 + $0x348] ss:$28 sps:$4 sm:$0xff]   ;;  %v14221_v53 = vld [vmem:[#allocation18 + $0x3bc] ss:$28 sps:$4 sm:$0xff]  }
 0x4c9   :  { %8934 = vmatprep.subr.bf16.mxu1 %v14143_v6  ;;  %v14215_v6 = vld [vmem:[#allocation18 + $0x384] ss:$28 sps:$4 sm:$0xff]  }
 0x4ca   :  { %9131 = vmatmul.mubr.bf16.vlgmr.msra.gmra.mrb[12].mxu0 %v16817_v23 }
 0x4cb   :  { %9142 = vmatpush1.bf16.msra.mxu0 %v14306_v19  ;;  %9173 = vmatprep.mubr.bf16.mxu0 %v16849_v12  ;;  %v14378_v19 = vld [vmem:[#allocation18 + $0x9a8] ss:$28 sps:$4 sm:$0xff]  }
 0x4cc   :  { %8935 = vmatpush1.bf16.msra.mxu1 %v14141_v39  ;;  %9143 = vmatprep.subr.bf16.mxu0 %v14314_v56  ;;  %v14213_v39 = vld [vmem:[#allocation18 + $0x380] ss:$28 sps:$4 sm:$0xff]  }
 0x4cd   :  { %8936 = vmatprep.subr.bf16.mxu1 %v14149_v15  ;;  %v14380_v15 = vld [vmem:[#allocation18 + $0x9ac] ss:$28 sps:$4 sm:$0xff]   ;;  %v14386_v56 = vld [vmem:[#allocation18 + $0x9e4] ss:$28 sps:$4 sm:$0xff]  }
 0x4cf   :  { %9144 = vmatpush1.bf16.msra.mxu0 %v14312_v25  ;;  %v14384_v25 = vld [vmem:[#allocation18 + $0x9e0] ss:$28 sps:$4 sm:$0xff]  }
 0x4d0   :  { %8937 = vmatpush1.bf16.msra.mxu1 %v14147_v43  ;;  %9145 = vmatprep.subr.bf16.mxu0 %v14320_v1  ;;  %v14219_v43 = vld [vmem:[#allocation18 + $0x3b8] ss:$28 sps:$4 sm:$0xff]  }
 0x4d1   :  { %8938 = vmatprep.subr.bf16.mxu1 %v14155_v18  ;;  %v14227_v18 = vld [vmem:[#allocation18 + $0x3f4] ss:$28 sps:$4 sm:$0xff]   ;;  %v14392_v1 = vld [vmem:[#allocation18 + $0xa1c] ss:$28 sps:$4 sm:$0xff]  }
 0x4d3   :  { %9146 = vmatpush1.bf16.msra.mxu0 %v14318_v2 }
 0x4d4   :  { %8939 = vmatpush1.bf16.msra.mxu1 %v14153_v36  ;;  %9147 = vmatprep.subr.bf16.mxu0 %v14326_v47  ;;  %v14225_v36 = vld [vmem:[#allocation18 + $0x3f0] ss:$28 sps:$4 sm:$0xff]  }
 0x4d5   :  { %8940 = vmatprep.subr.bf16.mxu1 %v14161_v9  ;;  %v14233_v9 = vld [vmem:[#allocation18 + $0x42c] ss:$28 sps:$4 sm:$0xff]  }
 0x4d7   :  { %9148 = vmatpush1.bf16.msra.mxu0 %v14324_v4  ;;  %v14390_v4 = vld [vmem:[#allocation18 + $0xa18] ss:$28 sps:$4 sm:$0xff]  }
 0x4d8   :  { %8941 = vmatpush1.bf16.msra.mxu1 %v14159_v7  ;;  %9149 = vmatprep.subr.bf16.mxu0 %v14332_v49 }
 0x4d9   :  { %8942 = vmatprep.subr.bf16.mxu1 %v14167_v3 }
 0x4db   :  { %9150 = vmatpush1.bf16.msra.mxu0 %v14330_v32  ;;  %v14239_v32 = vld [vmem:[#allocation18 + $0x464] ss:$28 sps:$4 sm:$0xff]  }
 0x4dc   :  { %8943 = vmatpush1.bf16.msra.mxu1 %v14165_v42  ;;  %9151 = vmatprep.subr.bf16.mxu0 %v14338_v28  ;;  %v14231_v42 = vld [vmem:[#allocation18 + $0x428] ss:$28 sps:$4 sm:$0xff]   ;;  %v14396_v28 = vld [vmem:[#allocation18 + $0xa50] ss:$28 sps:$4 sm:$0xff]  }
 0x4dd   :  { %8944 = vmatprep.subr.bf16.mxu1 %v14173_v26  ;;  %v14398_v26 = vld [vmem:[#allocation18 + $0xa54] ss:$28 sps:$4 sm:$0xff]  }
 0x4df   :  { %9152 = vmatpush1.bf16.msra.mxu0 %v14336_v37  ;;  %v14402_v37 = vld [vmem:[#allocation18 + $0x1d8] ss:$28 sps:$4 sm:$0xff]  }
 0x4e0   :  { %8945 = vmatpush1.bf16.msra.mxu1 %v14171_v10  ;;  %9153 = vmatprep.subr.bf16.mxu0 %v14344_v20  ;;  %v14403_v20 = vld [vmem:[#allocation18 + $0x18] ss:$28 sps:$4 sm:$0xff]  }
 0x4e1   :  { %8946 = vmatprep.subr.bf16.mxu1 %v14179_v33  ;;  %v14237_v33 = vld [vmem:[#allocation18 + $0x460] ss:$28 sps:$4 sm:$0xff]  }
 0x4e3   :  { %9154 = vmatpush1.bf16.msra.mxu0 %v14342_v21  ;;  %v14407_v21 = vld [vmem:[#allocation18 + $0x210] ss:$28 sps:$4 sm:$0xff]  }
 0x4e4   :  { %8947 = vmatpush1.bf16.msra.mxu1 %v14177_v48  ;;  %9155 = vmatprep.subr.bf16.mxu0 %v14350_v17  ;;  %v14245_v48 = vld [vmem:[#allocation18 + $0x49c] ss:$28 sps:$4 sm:$0xff]   ;;  %v14408_v17 = vld [vmem:[#allocation18 + $0x50] ss:$28 sps:$4 sm:$0xff]  }
 0x4e5   :  { %8948 = vmatprep.subr.bf16.mxu1 %v14185_v46  ;;  %v14243_v46 = vld [vmem:[#allocation18 + $0x498] ss:$28 sps:$4 sm:$0xff]  }
 0x4e7   :  { %9156 = vmatpush1.bf16.msra.mxu0 %v14348_v13  ;;  %v14412_v13 = vld [vmem:[#allocation18 + $0x248] ss:$28 sps:$4 sm:$0xff]  }
 0x4e8   :  { %8949 = vmatpush1.bf16.msra.mxu1 %v14183_v40  ;;  %9157 = vmatprep.subr.bf16.mxu0 %v14356_v38  ;;  %v14251_v40 = vld [vmem:[#allocation18 + $0x4d4] ss:$28 sps:$4 sm:$0xff]   ;;  %v14413_v38 = vld [vmem:[#allocation18 + $0x88] ss:$28 sps:$4 sm:$0xff]  }
 0x4e9   :  { %8950 = vmatprep.subr.bf16.mxu1 %v14191_v11  ;;  %v14249_v11 = vld [vmem:[#allocation18 + $0x4d0] ss:$28 sps:$4 sm:$0xff]  }
 0x4eb   :  { %9158 = vmatpush1.bf16.msra.mxu0 %v14354_v52  ;;  %v14417_v52 = vld [vmem:[#allocation18 + $0x280] ss:$28 sps:$4 sm:$0xff]  }
 0x4ec   :  { %8951 = vmatpush1.bf16.msra.mxu1 %v14189_v5  ;;  %9159 = vmatprep.subr.bf16.mxu0 %v14362_v22  ;;  %v14257_v5 = vld [vmem:[#allocation18 + $0x50c] ss:$28 sps:$4 sm:$0xff]   ;;  %v14418_v22 = vld [vmem:[#allocation18 + $0xc0] ss:$28 sps:$4 sm:$0xff]  }
 0x4ed   :  { %8952 = vmatprep.subr.bf16.mxu1 %v14197_v24  ;;  %v14255_v24 = vld [vmem:[#allocation18 + $0x508] ss:$28 sps:$4 sm:$0xff]  }
 0x4ef   :  { %9160 = vmatpush1.bf16.msra.mxu0 %v14360_v50  ;;  %v14422_v50 = vld [vmem:[#allocation18 + $0x2b8] ss:$28 sps:$4 sm:$0xff]  }
 0x4f0   :  { %8953 = vmatpush1.bf16.msra.mxu1 %v14195_v55  ;;  %9161 = vmatprep.subr.bf16.mxu0 %v14368_v34  ;;  %v14263_v55 = vld [vmem:[#allocation18 + $0x544] ss:$28 sps:$4 sm:$0xff]   ;;  %v14423_v34 = vld [vmem:[#allocation18 + $0xf8] ss:$28 sps:$4 sm:$0xff]  }
 0x4f1   :  { %8954 = vmatprep.subr.bf16.mxu1 %v14203_v35  ;;  %v14261_v35 = vld [vmem:[#allocation18 + $0x540] ss:$28 sps:$4 sm:$0xff]  }
 0x4f3   :  { %9162 = vmatpush1.bf16.msra.mxu0 %v14366_v8  ;;  %v14427_v8 = vld [vmem:[#allocation18 + $0x2f0] ss:$28 sps:$4 sm:$0xff]  }
 0x4f4   :  { %8955 = vmatpush1.bf16.msra.mxu1 %v14201_v61  ;;  %9163 = vmatprep.subr.bf16.mxu0 %v14374_v31  ;;  %v14269_v61 = vld [vmem:[#allocation18 + $0x57c] ss:$28 sps:$4 sm:$0xff]   ;;  %v14428_v31 = vld [vmem:[#allocation18 + $0x130] ss:$28 sps:$4 sm:$0xff]  }
 0x4f5   :  { %8956 = vmatprep.subr.bf16.mxu1 %v14209_v29  ;;  %v14267_v29 = vld [vmem:[#allocation18 + $0x578] ss:$28 sps:$4 sm:$0xff]  }
 0x4f7   :  { %9164 = vmatpush1.bf16.msra.mxu0 %v14372_v41  ;;  %v14432_v41 = vld [vmem:[#allocation18 + $0x328] ss:$28 sps:$4 sm:$0xff]  }
 0x4f8   :  { %8957 = vmatpush1.bf16.msra.mxu1 %v14207_v62  ;;  %9165 = vmatprep.subr.bf16.mxu0 %v14380_v15  ;;  %v14275_v62 = vld [vmem:[#allocation18 + $0x5b4] ss:$28 sps:$4 sm:$0xff]  }
 0x4f9   :  { %8969 = vmatprep.subr.bf16.mxu1 %v14215_v6  ;;  %v14273_v6 = vld [vmem:[#allocation18 + $0x5b0] ss:$28 sps:$4 sm:$0xff]  }
 0x4fb   :  { %8959 = vmatmul.mubr.bf16.vlgmr.msra.gmra.mrb[20].mxu1 %v16766_v63  ;;  %9166 = vmatpush1.bf16.msra.mxu0 %v14378_v19 }
 0x4fc   :  { %8970 = vmatpush1.bf16.msra.mxu1 %v14213_v39  ;;  %9001 = vmatprep.mubr.bf16.mxu1 %v16821_v45  ;;  %v14281_v39 = vld [vmem:[#allocation18 + $0x5ec] ss:$28 sps:$4 sm:$0xff]  }
 0x4fd   :  { %8971 = vmatprep.subr.bf16.mxu1 %v14221_v53  ;;  %9167 = vmatprep.subr.bf16.mxu0 %v14386_v56  ;;  %v12884_v2 = vpop.f32.mrb[16].mxu0  ;;  %v14433_v56 = vld [vmem:[#allocation18 + $0x168] ss:$28 sps:$4 sm:$0xff]  }
 0x4fe   :  { %v12885_v7 = vpop.f32.mrb[17].mxu0 }
 0x4ff   :  { %v16861_v47 = vadd.f32 %v12885_v7, %v12884_v2  ;;  %v12887_v3 = vpop.f32.mrb[18].mxu0  ;;  %9168 = vmatpush1.bf16.msra.mxu0 %v14384_v25 }
 0x500   :  { %8972 = vmatpush1.bf16.msra.mxu1 %v14219_v43  ;;  %v12888_v49 = vpop.f32.mrb[19].mxu0  ;;  %9169 = vmatprep.subr.bf16.mxu0 %v14392_v1  ;;  %v14287_v1 = vld [vmem:[#allocation18 + $0x624] ss:$28 sps:$4 sm:$0xff]  }
 0x501   :  { %8973 = vmatprep.subr.bf16.mxu1 %v14227_v18  ;;  %v16863_v10 = vadd.f32 %v12888_v49, %v12887_v3  ;;  %v14279_v18 = vld [vmem:[#allocation18 + $0x5e8] ss:$28 sps:$4 sm:$0xff]   ;;  %v14438_v3 = vld [vmem:[#allocation18 + $0x1a0] ss:$28 sps:$4 sm:$0xff]  }
 0x502   :  { %v14293_v49 = vld [vmem:[#allocation18 + $0x65c] ss:$28 sps:$4 sm:$0xff]  }
 0x503   :  { %9170 = vmatpush1.bf16.msra.mxu0 %v14390_v4  ;;  %v14285_v4 = vld [vmem:[#allocation18 + $0x620] ss:$28 sps:$4 sm:$0xff]  }
 0x504   :  { %8974 = vmatpush1.bf16.msra.mxu1 %v14225_v36  ;;  %9171 = vmatprep.subr.bf16.mxu0 %v14398_v26  ;;  %v14437_v36 = vld [vmem:[#allocation18 + $0x360] ss:$28 sps:$4 sm:$0xff]   ;;  %v14443_v26 = vld [vmem:[#allocation18 + $0x398] ss:$28 sps:$4 sm:$0xff]  }
 0x505   :  { %8975 = vmatprep.subr.bf16.mxu1 %v14233_v9 }
 0x507   :  { %9172 = vmatpush1.bf16.msra.mxu0 %v14396_v28  ;;  %v14447_v28 = vld [vmem:[#allocation18 + $0x590] ss:$28 sps:$4 sm:$0xff]  }
 0x508   :  { %8976 = vmatpush1.bf16.msra.mxu1 %v14231_v42  ;;  %12934 = vmatprep.subr.bf16.mxu0 %v14402_v37  ;;  %v14442_v42 = vld [vmem:[#allocation18 + $0x558] ss:$28 sps:$4 sm:$0xff]   ;;  %v14452_v37 = vld [vmem:[#allocation18 + $0x5c8] ss:$28 sps:$4 sm:$0xff]  }
 0x509   :  { %8977 = vmatprep.subr.bf16.mxu1 %v14239_v32  ;;  %v14291_v32 = vld [vmem:[#allocation18 + $0x658] ss:$28 sps:$4 sm:$0xff]  }
 0x50a   :  { %9174 = vmatmul.mubr.bf16.vlgmr.msra.gmra.mrb[12].mxu0 %v16847_v14 }
 0x50b   :  { %12935 = vmatpush3.bf16.msra.mxu0 %v14403_v20  ;;  %9345 = vmatprep.mubr.bf16.mxu0 %v16770_v16  ;;  %v14453_v20 = vld [vmem:[#allocation18 + $0x408] ss:$28 sps:$4 sm:$0xff]  }
 0x50c   :  { %8978 = vmatpush1.bf16.msra.mxu1 %v14237_v33  ;;  %12936 = vmatprep.subr.bf16.mxu0 %v14407_v21  ;;  %v14297_v33 = vld [vmem:[#allocation18 + $0x690] ss:$28 sps:$4 sm:$0xff]   ;;  %v14457_v21 = vld [vmem:[#allocation18 + $0x600] ss:$28 sps:$4 sm:$0xff]  }
 0x50d   :  { %8979 = vmatprep.subr.bf16.mxu1 %v14245_v48  ;;  %v14305_v48 = vld [vmem:[#allocation18 + $0x6cc] ss:$28 sps:$4 sm:$0xff]  }
 0x50f   :  { %12937 = vmatpush3.bf16.msra.mxu0 %v14408_v17  ;;  %v14458_v17 = vld [vmem:[#allocation18 + $0x440] ss:$28 sps:$4 sm:$0xff]  }
 0x510   :  { %8980 = vmatpush1.bf16.msra.mxu1 %v14243_v46  ;;  %12938 = vmatprep.subr.bf16.mxu0 %v14412_v13  ;;  %v14303_v46 = vld [vmem:[#allocation18 + $0x6c8] ss:$28 sps:$4 sm:$0xff]   ;;  %v14317_v13 = vld [vmem:[#allocation18 + $0x73c] ss:$28 sps:$4 sm:$0xff]  }
 0x511   :  { %8981 = vmatprep.subr.bf16.mxu1 %v14251_v40  ;;  %v14311_v40 = vld [vmem:[#allocation18 + $0x704] ss:$28 sps:$4 sm:$0xff]  }
 0x513   :  { %12939 = vmatpush3.bf16.msra.mxu0 %v14413_v38  ;;  %v14463_v38 = vld [vmem:[#allocation18 + $0x478] ss:$28 sps:$4 sm:$0xff]  }
 0x514   :  { %8982 = vmatpush1.bf16.msra.mxu1 %v14249_v11  ;;  %12940 = vmatprep.subr.bf16.mxu0 %v14417_v52  ;;  %v14309_v11 = vld [vmem:[#allocation18 + $0x700] ss:$28 sps:$4 sm:$0xff]   ;;  %v14467_v52 = vld [vmem:[#allocation18 + $0x670] ss:$28 sps:$4 sm:$0xff]  }
 0x515   :  { %8983 = vmatprep.subr.bf16.mxu1 %v14257_v5  ;;  %v14462_v5 = vld [vmem:[#allocation18 + $0x638] ss:$28 sps:$4 sm:$0xff]  }
 0x517   :  { %12941 = vmatpush3.bf16.msra.mxu0 %v14418_v22  ;;  %v14468_v22 = vld [vmem:[#allocation18 + $0x4b0] ss:$28 sps:$4 sm:$0xff]  }
 0x518   :  { %8984 = vmatpush1.bf16.msra.mxu1 %v14255_v24  ;;  %12942 = vmatprep.subr.bf16.mxu0 %v14422_v50  ;;  %v14315_v24 = vld [vmem:[#allocation18 + $0x738] ss:$28 sps:$4 sm:$0xff]   ;;  %v14472_v50 = vld [vmem:[#allocation18 + $0x6a8] ss:$28 sps:$4 sm:$0xff]  }
 0x519   :  { %8985 = vmatprep.subr.bf16.mxu1 %v14263_v55  ;;  %v14323_v55 = vld [vmem:[#allocation18 + $0x774] ss:$28 sps:$4 sm:$0xff]  }
 0x51b   :  { %12943 = vmatpush3.bf16.msra.mxu0 %v14423_v34  ;;  %v14473_v34 = vld [vmem:[#allocation18 + $0x4e8] ss:$28 sps:$4 sm:$0xff]  }
 0x51c   :  { %8986 = vmatpush1.bf16.msra.mxu1 %v14261_v35  ;;  %12944 = vmatprep.subr.bf16.mxu0 %v14427_v8  ;;  %v14321_v35 = vld [vmem:[#allocation18 + $0x770] ss:$28 sps:$4 sm:$0xff]   ;;  %v14477_v8 = vld [vmem:[#allocation18 + $0x6e0] ss:$28 sps:$4 sm:$0xff]  }
 0x51d   :  { %8987 = vmatprep.subr.bf16.mxu1 %v14269_v61  ;;  %v12906_v53 = vpop.f32.mrb[20].mxu0  ;;  %v14329_v61 = vld [vmem:[#allocation18 + $0x7ac] ss:$28 sps:$4 sm:$0xff]  }
 0x51e   :  { %v12907_v15 = vpop.f32.mrb[21].mxu0 }
 0x51f   :  { %v12908_v19 = vadd.f32 %v12907_v15, %v12906_v53  ;;  %v12909_v43 = vpop.f32.mrb[22].mxu0  ;;  %12945 = vmatpush3.bf16.msra.mxu0 %v14428_v31  ;;  %v14478_v31 = vld [vmem:[#allocation18 + $0x520] ss:$28 sps:$4 sm:$0xff]   ;;  %v14483_v53 = vld [vmem:[#allocation18 + $0x718] ss:$28 sps:$4 sm:$0xff]  }
 0x520   :  { %8988 = vmatpush1.bf16.msra.mxu1 %v14267_v29  ;;  %v12910_v25 = vpop.f32.mrb[23].mxu0  ;;  %12946 = vmatprep.subr.bf16.mxu0 %v14432_v41  ;;  %v14327_v29 = vld [vmem:[#allocation18 + $0x7a8] ss:$28 sps:$4 sm:$0xff]   ;;  %v14482_v41 = vld [vmem:[#allocation18 + $0x8d8] ss:$28 sps:$4 sm:$0xff]  }
 0x521   :  { %8989 = vmatprep.subr.bf16.mxu1 %v14275_v62  ;;  %v16868_v9 = vadd.f32 %v12908_v19, %v16861_v47  ;;  %v12911_v2 = vadd.f32 %v12910_v25, %v12909_v43  ;;  %v14299_v47 = vld [vmem:[#allocation18 + $0x694] ss:$28 sps:$4 sm:$0xff]   ;;  %v14335_v62 = vld [vmem:[#allocation18 + $0x7e4] ss:$28 sps:$4 sm:$0xff]  }
 0x522   :  { %v14339_v15 = vld [vmem:[#allocation18 + $0x818] ss:$28 sps:$4 sm:$0xff]   ;;  %v14487_v19 = vld [vmem:[#allocation18 + $0x910] ss:$28 sps:$4 sm:$0xff]   ;;  %v14492_v25 = vld [vmem:[#allocation18 + $0x948] ss:$28 sps:$4 sm:$0xff]  }
 0x523   :  { %v16871_v7 = vadd.f32 %v12911_v2, %v16863_v10  ;;  %12947 = vmatpush3.bf16.msra.mxu0 %v14433_v56  ;;  %v14448_v10 = vld [vmem:[#allocation18 + $0x3d0] ss:$28 sps:$4 sm:$0xff]   ;;  %v14351_v2 = vld [vmem:[#allocation18 + $0x888] ss:$28 sps:$4 sm:$0xff]  }
 0x524   :  { %8990 = vmatpush1.bf16.msra.mxu1 %v14273_v6  ;;  %12948 = vmatprep.subr.bf16.mxu0 %v14437_v36  ;;  %v14333_v6 = vld [vmem:[#allocation18 + $0x7e0] ss:$28 sps:$4 sm:$0xff]   ;;  %v14347_v43 = vld [vmem:[#allocation18 + $0x854] ss:$28 sps:$4 sm:$0xff]   ;;  %v14353_v36 = vld [vmem:[#allocation18 + $0x88c] ss:$28 sps:$4 sm:$0xff]  }
 0x525   :  { %8991 = vmatprep.subr.bf16.mxu1 %v14281_v39  ;;  %v14341_v39 = vld [vmem:[#allocation18 + $0x81c] ss:$28 sps:$4 sm:$0xff]   ;;  %v14488_v56 = vld [vmem:[#allocation18 + $0x750] ss:$28 sps:$4 sm:$0xff]  }
 0x527   :  { %12949 = vmatpush3.bf16.msra.mxu0 %v14438_v3  ;;  %v14497_v3 = vld [vmem:[#allocation18 + $0x980] ss:$28 sps:$4 sm:$0xff]  }
 0x528   :  { %8992 = vmatpush1.bf16.msra.mxu1 %v14279_v18  ;;  %12956 = vmatprep.subr.bf16.mxu0 %v14442_v42  ;;  %v14345_v18 = vld [vmem:[#allocation18 + $0x850] ss:$28 sps:$4 sm:$0xff]   ;;  %v14498_v42 = vld [vmem:[#allocation18 + $0x7c0] ss:$28 sps:$4 sm:$0xff]  }
 0x529   :  { %8993 = vmatprep.subr.bf16.mxu1 %v14287_v1  ;;  %v14493_v1 = vld [vmem:[#allocation18 + $0x788] ss:$28 sps:$4 sm:$0xff]  }
 0x52a   :  { %9346 = vmatmul.mubr.bf16.vlgmr.msra.gmra.mrb[24].mxu0 %v16766_v63 }
 0x52b   :  { %12957 = vmatpush3.bf16.msra.mxu0 %v14443_v26  ;;  %9386 = vmatprep.mubr.bf16.mxu0 %v16821_v45  ;;  %v14502_v26 = vld [vmem:[#allocation18 + $0x9b8] ss:$28 sps:$4 sm:$0xff]  }
 0x52c   :  { %8994 = vmatpush1.bf16.msra.mxu1 %v14285_v4  ;;  %12958 = vmatprep.subr.bf16.mxu0 %v14447_v28  ;;  %v14359_v4 = vld [vmem:[#allocation18 + $0x8c4] ss:$28 sps:$4 sm:$0xff]   ;;  %v14503_v28 = vld [vmem:[#allocation18 + $0x7f8] ss:$28 sps:$4 sm:$0xff]  }
 0x52d   :  { %8995 = vmatprep.subr.bf16.mxu1 %v14293_v49  ;;  %v14357_v49 = vld [vmem:[#allocation18 + $0x8c0] ss:$28 sps:$4 sm:$0xff]  }
 0x52f   :  { %12959 = vmatpush3.bf16.msra.mxu0 %v14448_v10  ;;  %v14507_v10 = vld [vmem:[#allocation18 + $0x9f0] ss:$28 sps:$4 sm:$0xff]  }
 0x530   :  { %8996 = vmatpush1.bf16.msra.mxu1 %v14291_v32  ;;  %12960 = vmatprep.subr.bf16.mxu0 %v14452_v37  ;;  %v14365_v32 = vld [vmem:[#allocation18 + $0x8fc] ss:$28 sps:$4 sm:$0xff]   ;;  %v14508_v37 = vld [vmem:[#allocation18 + $0x830] ss:$28 sps:$4 sm:$0xff]  }
 0x531   :  { %8997 = vmatprep.subr.bf16.mxu1 %v14299_v47  ;;  %v14363_v47 = vld [vmem:[#allocation18 + $0x8f8] ss:$28 sps:$4 sm:$0xff]  }
 0x533   :  { %12961 = vmatpush3.bf16.msra.mxu0 %v14453_v20  ;;  %v14512_v20 = vld [vmem:[#allocation18 + $0xa28] ss:$28 sps:$4 sm:$0xff]  }
 0x534   :  { %8998 = vmatpush1.bf16.msra.mxu1 %v14297_v33  ;;  %12962 = vmatprep.subr.bf16.mxu0 %v14457_v21  ;;  %v14371_v33 = vld [vmem:[#allocation18 + $0x934] ss:$28 sps:$4 sm:$0xff]   ;;  %v14513_v21 = vld [vmem:[#allocation18 + $0x868] ss:$28 sps:$4 sm:$0xff]  }
 0x535   :  { %8999 = vmatprep.subr.bf16.mxu1 %v14305_v48  ;;  %v14369_v48 = vld [vmem:[#allocation18 + $0x930] ss:$28 sps:$4 sm:$0xff]  }
 0x537   :  { %12963 = vmatpush3.bf16.msra.mxu0 %v14458_v17  ;;  %v14517_v17 = vld [vmem:[#allocation18 + $0xa60] ss:$28 sps:$4 sm:$0xff]  }
 0x538   :  { %9000 = vmatpush1.bf16.msra.mxu1 %v14303_v46  ;;  %12964 = vmatprep.subr.bf16.mxu0 %v14462_v5  ;;  %v14377_v46 = vld [vmem:[#allocation18 + $0x96c] ss:$28 sps:$4 sm:$0xff]   ;;  %v14381_v5 = vld [vmem:[#allocation18 + $0x9a0] ss:$28 sps:$4 sm:$0xff]  }
 0x539   :  { %9012 = vmatprep.subr.bf16.mxu1 %v14311_v40  ;;  %v14375_v40 = vld [vmem:[#allocation18 + $0x968] ss:$28 sps:$4 sm:$0xff]  }
 0x53b   :  { %9002 = vmatmul.mubr.bf16.vlgmr.msra.gmra.mrb[20].mxu1 %v16817_v23  ;;  %12965 = vmatpush3.bf16.msra.mxu0 %v14463_v38  ;;  %v14389_v38 = vld [vmem:[#allocation18 + $0x9dc] ss:$28 sps:$4 sm:$0xff]  }
 0x53c   :  { %9013 = vmatpush1.bf16.msra.mxu1 %v14309_v11  ;;  %9044 = vmatprep.mubr.bf16.mxu1 %v16849_v12  ;;  %v14383_v11 = vld [vmem:[#allocation18 + $0x9a4] ss:$28 sps:$4 sm:$0xff]  }
 0x53d   :  { %9014 = vmatprep.subr.bf16.mxu1 %v14317_v13  ;;  %12966 = vmatprep.subr.bf16.mxu0 %v14467_v52  ;;  %v14518_v13 = vld [vmem:[#allocation18 + $0x8a0] ss:$28 sps:$4 sm:$0xff]   ;;  %v14395_v52 = vld [vmem:[#allocation18 + $0xa14] ss:$28 sps:$4 sm:$0xff]  }
 0x53f   :  { %12967 = vmatpush3.bf16.msra.mxu0 %v14468_v22  ;;  %v14401_v22 = vld [vmem:[#allocation18 + $0xa4c] ss:$28 sps:$4 sm:$0xff]  }
 0x540   :  { %9015 = vmatpush1.bf16.msra.mxu1 %v14315_v24  ;;  %12968 = vmatprep.subr.bf16.mxu0 %v14472_v50  ;;  %v14387_v24 = vld [vmem:[#allocation18 + $0x9d8] ss:$28 sps:$4 sm:$0xff]  }
 0x541   :  { %9016 = vmatprep.subr.bf16.mxu1 %v14323_v55  ;;  %v14393_v55 = vld [vmem:[#allocation18 + $0xa10] ss:$28 sps:$4 sm:$0xff]  }
 0x542   :  { %v14406_v50 = vld [vmem:[#allocation18 + $0x14] ss:$28 sps:$4 sm:$0xff]  }
 0x543   :  { %12969 = vmatpush3.bf16.msra.mxu0 %v14473_v34  ;;  %v14411_v34 = vld [vmem:[#allocation18 + $0x4c] ss:$28 sps:$4 sm:$0xff]  }
 0x544   :  { %9017 = vmatpush1.bf16.msra.mxu1 %v14321_v35  ;;  %12970 = vmatprep.subr.bf16.mxu0 %v14477_v8  ;;  %v14399_v35 = vld [vmem:[#allocation18 + $0xa48] ss:$28 sps:$4 sm:$0xff]  }
 0x545   :  { %9018 = vmatprep.subr.bf16.mxu1 %v14329_v61  ;;  %v14404_v61 = vld [vmem:[#allocation18 + $0x10] ss:$28 sps:$4 sm:$0xff]   ;;  %v14416_v8 = vld [vmem:[#allocation18 + $0x84] ss:$28 sps:$4 sm:$0xff]  }
 0x547   :  { %12971 = vmatpush3.bf16.msra.mxu0 %v14478_v31  ;;  %v14421_v31 = vld [vmem:[#allocation18 + $0xbc] ss:$28 sps:$4 sm:$0xff]  }
 0x548   :  { %9019 = vmatpush1.bf16.msra.mxu1 %v14327_v29  ;;  %12978 = vmatprep.subr.bf16.mxu0 %v14482_v41  ;;  %v14409_v29 = vld [vmem:[#allocation18 + $0x48] ss:$28 sps:$4 sm:$0xff]   ;;  %v14426_v41 = vld [vmem:[#allocation18 + $0xf4] ss:$28 sps:$4 sm:$0xff]  }
 0x549   :  { %9020 = vmatprep.subr.bf16.mxu1 %v14335_v62  ;;  %v14414_v62 = vld [vmem:[#allocation18 + $0x80] ss:$28 sps:$4 sm:$0xff]  }
 0x54a   :  { %9387 = vmatmul.mubr.bf16.vlgmr.msra.gmra.mrb[28].mxu0 %v16817_v23 }
 0x54b   :  { %12979 = vmatpush3.bf16.msra.mxu0 %v14483_v53  ;;  %9427 = vmatprep.mubr.bf16.mxu0 %v16849_v12  ;;  %v14431_v53 = vld [vmem:[#allocation18 + $0x12c] ss:$28 sps:$4 sm:$0xff]  }
 0x54c   :  { %9021 = vmatpush1.bf16.msra.mxu1 %v14333_v6  ;;  %12980 = vmatprep.subr.bf16.mxu0 %v14487_v19  ;;  %v14419_v6 = vld [vmem:[#allocation18 + $0xb8] ss:$28 sps:$4 sm:$0xff]   ;;  %v14436_v19 = vld [vmem:[#allocation18 + $0x164] ss:$28 sps:$4 sm:$0xff]  }
 0x54d   :  { %9022 = vmatprep.subr.bf16.mxu1 %v14341_v39  ;;  %v14424_v39 = vld [vmem:[#allocation18 + $0xf0] ss:$28 sps:$4 sm:$0xff]  }
 0x54f   :  { %12981 = vmatpush3.bf16.msra.mxu0 %v14488_v56 }
 0x550   :  { %9023 = vmatpush1.bf16.msra.mxu1 %v14339_v15  ;;  %12982 = vmatprep.subr.bf16.mxu0 %v14492_v25  ;;  %v14429_v15 = vld [vmem:[#allocation18 + $0x128] ss:$28 sps:$4 sm:$0xff]   ;;  %v14434_v25 = vld [vmem:[#allocation18 + $0x160] ss:$28 sps:$4 sm:$0xff]  }
 0x551   :  { %9024 = vmatprep.subr.bf16.mxu1 %v14347_v43 }
 0x553   :  { %12983 = vmatpush3.bf16.msra.mxu0 %v14493_v1  ;;  %v14441_v1 = vld [vmem:[#allocation18 + $0x19c] ss:$28 sps:$4 sm:$0xff]  }
 0x554   :  { %9025 = vmatpush1.bf16.msra.mxu1 %v14345_v18  ;;  %12984 = vmatprep.subr.bf16.mxu0 %v14497_v3 }
 0x555   :  { %9026 = vmatprep.subr.bf16.mxu1 %v14353_v36 }
 0x557   :  { %12985 = vmatpush3.bf16.msra.mxu0 %v14498_v42  ;;  %v14439_v42 = vld [vmem:[#allocation18 + $0x198] ss:$28 sps:$4 sm:$0xff]  }
 0x558   :  { %9027 = vmatpush1.bf16.msra.mxu1 %v14351_v2  ;;  %12986 = vmatprep.subr.bf16.mxu0 %v14502_v26  ;;  %v14444_v26 = vld [vmem:[#allocation18 + $0x1d0] ss:$28 sps:$4 sm:$0xff]  }
 0x559   :  { %9028 = vmatprep.subr.bf16.mxu1 %v14359_v4 }
 0x55b   :  { %12987 = vmatpush3.bf16.msra.mxu0 %v14503_v28  ;;  %v14449_v28 = vld [vmem:[#allocation18 + $0x208] ss:$28 sps:$4 sm:$0xff]  }
 0x55c   :  { %9029 = vmatpush1.bf16.msra.mxu1 %v14357_v49  ;;  %12988 = vmatprep.subr.bf16.mxu0 %v14507_v10  ;;  %v14446_v49 = vld [vmem:[#allocation18 + $0x1d4] ss:$28 sps:$4 sm:$0xff]   ;;  %v14454_v10 = vld [vmem:[#allocation18 + $0x240] ss:$28 sps:$4 sm:$0xff]  }
 0x55d   :  { %9030 = vmatprep.subr.bf16.mxu1 %v14365_v32  ;;  %v14451_v32 = vld [vmem:[#allocation18 + $0x20c] ss:$28 sps:$4 sm:$0xff]  }
 0x55f   :  { %12989 = vmatpush3.bf16.msra.mxu0 %v14508_v37  ;;  %v14464_v37 = vld [vmem:[#allocation18 + $0x2b0] ss:$28 sps:$4 sm:$0xff]  }
 0x560   :  { %9031 = vmatpush1.bf16.msra.mxu1 %v14363_v47  ;;  %12990 = vmatprep.subr.bf16.mxu0 %v14512_v20  ;;  %v14456_v47 = vld [vmem:[#allocation18 + $0x244] ss:$28 sps:$4 sm:$0xff]  }
 0x561   :  { %9032 = vmatprep.subr.bf16.mxu1 %v14371_v33  ;;  %v14459_v33 = vld [vmem:[#allocation18 + $0x278] ss:$28 sps:$4 sm:$0xff]   ;;  %v14469_v20 = vld [vmem:[#allocation18 + $0x2e8] ss:$28 sps:$4 sm:$0xff]  }
 0x563   :  { %12991 = vmatpush3.bf16.msra.mxu0 %v14513_v21  ;;  %v14474_v21 = vld [vmem:[#allocation18 + $0x320] ss:$28 sps:$4 sm:$0xff]  }
 0x564   :  { %9033 = vmatpush1.bf16.msra.mxu1 %v14369_v48  ;;  %12992 = vmatprep.subr.bf16.mxu0 %v14517_v17  ;;  %v14471_v48 = vld [vmem:[#allocation18 + $0x2ec] ss:$28 sps:$4 sm:$0xff]   ;;  %v14479_v17 = vld [vmem:[#allocation18 + $0x358] ss:$28 sps:$4 sm:$0xff]  }
 0x565   :  { %9034 = vmatprep.subr.bf16.mxu1 %v14377_v46  ;;  %v14476_v46 = vld [vmem:[#allocation18 + $0x324] ss:$28 sps:$4 sm:$0xff]  }
 0x567   :  { %12993 = vmatpush3.bf16.msra.mxu0 %v14518_v13  ;;  %v14484_v13 = vld [vmem:[#allocation18 + $0x390] ss:$28 sps:$4 sm:$0xff]  }
 0x568   :  { %9035 = vmatpush1.bf16.msra.mxu1 %v14375_v40  ;;  %v14481_v40 = vld [vmem:[#allocation18 + $0x35c] ss:$28 sps:$4 sm:$0xff]  }
 0x569   :  { %9036 = vmatprep.subr.bf16.mxu1 %v14383_v11  ;;  %v14486_v11 = vld [vmem:[#allocation18 + $0x394] ss:$28 sps:$4 sm:$0xff]  }
 0x56a   :  { %9428 = vmatmul.mubr.bf16.vlgmr.msra.gmra.mrb[32].mxu0 %v16847_v14 }
 0x56c   :  { %9037 = vmatpush1.bf16.msra.mxu1 %v14381_v5  ;;  %v14491_v5 = vld [vmem:[#allocation18 + $0x3cc] ss:$28 sps:$4 sm:$0xff]  }
 0x56d   :  { %9038 = vmatprep.subr.bf16.mxu1 %v14389_v38  ;;  %v14489_v38 = vld [vmem:[#allocation18 + $0x3c8] ss:$28 sps:$4 sm:$0xff]  }
 0x570   :  { %9039 = vmatpush1.bf16.msra.mxu1 %v14387_v24  ;;  %v14496_v24 = vld [vmem:[#allocation18 + $0x404] ss:$28 sps:$4 sm:$0xff]  }
 0x571   :  { %9040 = vmatprep.subr.bf16.mxu1 %v14395_v52  ;;  %v14494_v52 = vld [vmem:[#allocation18 + $0x400] ss:$28 sps:$4 sm:$0xff]  }
 0x574   :  { %9041 = vmatpush1.bf16.msra.mxu1 %v14393_v55  ;;  %v14501_v55 = vld [vmem:[#allocation18 + $0x43c] ss:$28 sps:$4 sm:$0xff]  }
 0x575   :  { %9042 = vmatprep.subr.bf16.mxu1 %v14401_v22  ;;  %v14499_v22 = vld [vmem:[#allocation18 + $0x438] ss:$28 sps:$4 sm:$0xff]  }
 0x578   :  { %9043 = vmatpush1.bf16.msra.mxu1 %v14399_v35  ;;  %v14506_v35 = vld [vmem:[#allocation18 + $0x474] ss:$28 sps:$4 sm:$0xff]  }
 0x579   :  { %9184 = vmatprep.subr.bf16.mxu1 %v14406_v50  ;;  %v14504_v50 = vld [vmem:[#allocation18 + $0x470] ss:$28 sps:$4 sm:$0xff]  }
 0x57b   :  { %9045 = vmatmul.mubr.bf16.vlgmr.msra.gmra.mrb[20].mxu1 %v16847_v14 }
 0x57c   :  { %9185 = vmatpush1.bf16.msra.mxu1 %v14404_v61  ;;  %9216 = vmatprep.mubr.bf16.mxu1 %v16770_v16  ;;  %v14511_v61 = vld [vmem:[#allocation18 + $0x4ac] ss:$28 sps:$4 sm:$0xff]  }
 0x57d   :  { %9186 = vmatprep.subr.bf16.mxu1 %v14411_v34  ;;  %v14516_v34 = vld [vmem:[#allocation18 + $0x4e4] ss:$28 sps:$4 sm:$0xff]  }
 0x580   :  { %9187 = vmatpush1.bf16.msra.mxu1 %v14409_v29  ;;  %v14521_v29 = vld [vmem:[#allocation18 + $0x51c] ss:$28 sps:$4 sm:$0xff]  }
 0x581   :  { %9188 = vmatprep.subr.bf16.mxu1 %v14416_v8  ;;  %v14519_v8 = vld [vmem:[#allocation18 + $0x518] ss:$28 sps:$4 sm:$0xff]  }
 0x584   :  { %9189 = vmatpush1.bf16.msra.mxu1 %v14414_v62  ;;  %v14524_v62 = vld [vmem:[#allocation18 + $0x554] ss:$28 sps:$4 sm:$0xff]  }
 0x585   :  { %9190 = vmatprep.subr.bf16.mxu1 %v14421_v31  ;;  %v14522_v31 = vld [vmem:[#allocation18 + $0x550] ss:$28 sps:$4 sm:$0xff]  }
 0x588   :  { %9191 = vmatpush1.bf16.msra.mxu1 %v14419_v6  ;;  %v14527_v6 = vld [vmem:[#allocation18 + $0x58c] ss:$28 sps:$4 sm:$0xff]  }
 0x589   :  { %9192 = vmatprep.subr.bf16.mxu1 %v14426_v41  ;;  %v14614_v41 = vld [vmem:[#allocation24] ss:$16 sps:$4 sm:$0xff]  }
 0x58c   :  { %9193 = vmatpush1.bf16.msra.mxu1 %v14424_v39  ;;  %v14616_v39 = vld [vmem:[#allocation24 + $0x4] ss:$16 sps:$4 sm:$0xff]  }
 0x58d   :  { %9194 = vmatprep.subr.bf16.mxu1 %v14431_v53  ;;  %v14525_v53 = vld [vmem:[#allocation18 + $0x588] ss:$28 sps:$4 sm:$0xff]   ;;  %11150 = vmatprep.subr.bf16.mxu0 %v14616_v39  ;;  %v14682_v39 = vld [vmem:[#allocation24 + $0x164] ss:$16 sps:$4 sm:$0xff]  }
 0x58e   :  { %v12928_v16 = vpop.f32.mrb[28].mxu1  ;;  %11151 = vmatpush1.bf16.msra.mxu0 %v14614_v41 }
 0x58f   :  { %v12929_v43 = vpop.f32.mrb[29].mxu1 }
 0x590   :  { %v12930_v56 = vadd.f32 %v12929_v43, %v12928_v16  ;;  %v12931_v18 = vpop.f32.mrb[30].mxu1  ;;  %9195 = vmatpush1.bf16.msra.mxu1 %v14429_v15  ;;  %v14622_v15 = vld [vmem:[#allocation24 + $0x24] ss:$16 sps:$4 sm:$0xff]   ;;  %v14620_v16 = vld [vmem:[#allocation24 + $0x20] ss:$16 sps:$4 sm:$0xff]  }
 0x591   :  { %v12932_v36 = vpop.f32.mrb[31].mxu1  ;;  %9196 = vmatprep.subr.bf16.mxu1 %v14436_v19  ;;  %v14530_v19 = vld [vmem:[#allocation18 + $0x5c4] ss:$28 sps:$4 sm:$0xff]   ;;  %11152 = vmatprep.subr.bf16.mxu0 %v14622_v15 }
 0x592   :  { %v16883_v2 = vadd.f32 %v12930_v56, %v16868_v9  ;;  %v12933_v3 = vadd.f32 %v12932_v36, %v12931_v18  ;;  %v14461_v9 = vld [vmem:[#allocation18 + $0x27c] ss:$28 sps:$4 sm:$0xff]   ;;  %11153 = vmatpush1.bf16.msra.mxu0 %v14620_v16 }
 0x593   :  { %v14528_v43 = vld [vmem:[#allocation18 + $0x5c0] ss:$28 sps:$4 sm:$0xff]   ;;  %v14680_v16 = vld [vmem:[#allocation24 + $0x160] ss:$16 sps:$4 sm:$0xff]  }
 0x594   :  { %v16886_v4 = vadd.f32 %v12933_v3, %v16871_v7  ;;  %9197 = vmatpush1.bf16.msra.mxu1 %v14434_v25  ;;  %v14466_v7 = vld [vmem:[#allocation18 + $0x2b4] ss:$28 sps:$4 sm:$0xff]   ;;  %v14628_v56 = vld [vmem:[#allocation24 + $0x44] ss:$16 sps:$4 sm:$0xff]  }
 0x595   :  { %9198 = vmatprep.subr.bf16.mxu1 %v14441_v1  ;;  %v14533_v18 = vld [vmem:[#allocation18 + $0x5fc] ss:$28 sps:$4 sm:$0xff]   ;;  %11154 = vmatprep.subr.bf16.mxu0 %v14628_v56  ;;  %v14558_v56 = vld [vmem:[#allocation18 + $0x7f0] ss:$28 sps:$4 sm:$0xff]  }
 0x596   :  { %v14626_v1 = vld [vmem:[#allocation24 + $0x40] ss:$16 sps:$4 sm:$0xff]  }
 0x597   :  { %11155 = vmatpush1.bf16.msra.mxu0 %v14626_v1  ;;  %v14563_v1 = vld [vmem:[#allocation18 + $0x82c] ss:$28 sps:$4 sm:$0xff]  }
 0x598   :  { %9199 = vmatpush1.bf16.msra.mxu1 %v14439_v42  ;;  %v14531_v42 = vld [vmem:[#allocation18 + $0x5f8] ss:$28 sps:$4 sm:$0xff]  }
 0x599   :  { %9200 = vmatprep.subr.bf16.mxu1 %v14446_v49 }
 0x59c   :  { %9201 = vmatpush1.bf16.msra.mxu1 %v14444_v26  ;;  %v14634_v26 = vld [vmem:[#allocation24 + $0x64] ss:$16 sps:$4 sm:$0xff]  }
 0x59d   :  { %9202 = vmatprep.subr.bf16.mxu1 %v14451_v32  ;;  %v14536_v32 = vld [vmem:[#allocation18 + $0x634] ss:$28 sps:$4 sm:$0xff]   ;;  %11156 = vmatprep.subr.bf16.mxu0 %v14634_v26  ;;  %v14561_v26 = vld [vmem:[#allocation18 + $0x828] ss:$28 sps:$4 sm:$0xff]  }
 0x5a0   :  { %9203 = vmatpush1.bf16.msra.mxu1 %v14449_v28  ;;  %v14632_v28 = vld [vmem:[#allocation24 + $0x60] ss:$16 sps:$4 sm:$0xff]  }
 0x5a1   :  { %9204 = vmatprep.subr.bf16.mxu1 %v14456_v47  ;;  %v14534_v47 = vld [vmem:[#allocation18 + $0x630] ss:$28 sps:$4 sm:$0xff]   ;;  %11157 = vmatpush1.bf16.msra.mxu0 %v14632_v28  ;;  %v14566_v28 = vld [vmem:[#allocation18 + $0x864] ss:$28 sps:$4 sm:$0xff]  }
 0x5a4   :  { %9205 = vmatpush1.bf16.msra.mxu1 %v14454_v10  ;;  %v14640_v10 = vld [vmem:[#allocation24 + $0x84] ss:$16 sps:$4 sm:$0xff]  }
 0x5a5   :  { %9206 = vmatprep.subr.bf16.mxu1 %v14461_v9  ;;  %v14539_v9 = vld [vmem:[#allocation18 + $0x66c] ss:$28 sps:$4 sm:$0xff]   ;;  %11158 = vmatprep.subr.bf16.mxu0 %v14640_v10  ;;  %v14567_v10 = vld [vmem:[#allocation18 + $0x898] ss:$28 sps:$4 sm:$0xff]  }
 0x5a8   :  { %9207 = vmatpush1.bf16.msra.mxu1 %v14459_v33  ;;  %v14638_v33 = vld [vmem:[#allocation24 + $0x80] ss:$16 sps:$4 sm:$0xff]  }
 0x5a9   :  { %9208 = vmatprep.subr.bf16.mxu1 %v14466_v7  ;;  %v14537_v7 = vld [vmem:[#allocation18 + $0x668] ss:$28 sps:$4 sm:$0xff]   ;;  %11159 = vmatpush1.bf16.msra.mxu0 %v14638_v33  ;;  %v14570_v33 = vld [vmem:[#allocation18 + $0x8d0] ss:$28 sps:$4 sm:$0xff]  }
 0x5ac   :  { %9209 = vmatpush1.bf16.msra.mxu1 %v14464_v37  ;;  %v14646_v37 = vld [vmem:[#allocation24 + $0xa4] ss:$16 sps:$4 sm:$0xff]  }
 0x5ad   :  { %9210 = vmatprep.subr.bf16.mxu1 %v14471_v48  ;;  %v14542_v48 = vld [vmem:[#allocation18 + $0x6a4] ss:$28 sps:$4 sm:$0xff]   ;;  %11160 = vmatprep.subr.bf16.mxu0 %v14646_v37 }
 0x5ae   :  { %v14573_v37 = vld [vmem:[#allocation18 + $0x908] ss:$28 sps:$4 sm:$0xff]  }
 0x5b0   :  { %9211 = vmatpush1.bf16.msra.mxu1 %v14469_v20  ;;  %v14644_v20 = vld [vmem:[#allocation24 + $0xa0] ss:$16 sps:$4 sm:$0xff]  }
 0x5b1   :  { %9212 = vmatprep.subr.bf16.mxu1 %v14476_v46  ;;  %v14540_v46 = vld [vmem:[#allocation18 + $0x6a0] ss:$28 sps:$4 sm:$0xff]   ;;  %11161 = vmatpush1.bf16.msra.mxu0 %v14644_v20 }
 0x5b2   :  { %v14576_v20 = vld [vmem:[#allocation18 + $0x940] ss:$28 sps:$4 sm:$0xff]  }
 0x5b4   :  { %9213 = vmatpush1.bf16.msra.mxu1 %v14474_v21  ;;  %v14652_v21 = vld [vmem:[#allocation24 + $0xc4] ss:$16 sps:$4 sm:$0xff]  }
 0x5b5   :  { %9214 = vmatprep.subr.bf16.mxu1 %v14481_v40  ;;  %v14545_v40 = vld [vmem:[#allocation18 + $0x6dc] ss:$28 sps:$4 sm:$0xff]   ;;  %11162 = vmatprep.subr.bf16.mxu0 %v14652_v21 }
 0x5b8   :  { %9215 = vmatpush1.bf16.msra.mxu1 %v14479_v17  ;;  %v14650_v17 = vld [vmem:[#allocation24 + $0xc0] ss:$16 sps:$4 sm:$0xff]  }
 0x5b9   :  { %9227 = vmatprep.subr.bf16.mxu1 %v14486_v11  ;;  %v14543_v11 = vld [vmem:[#allocation18 + $0x6d8] ss:$28 sps:$4 sm:$0xff]   ;;  %11163 = vmatpush1.bf16.msra.mxu0 %v14650_v17 }
 0x5bb   :  { %9217 = vmatmul.mubr.bf16.vlgmr.msra.gmra.mrb[24].mxu1 %v16766_v63  ;;  %v14509_v63 = vld [vmem:[#allocation18 + $0x4a8] ss:$28 sps:$4 sm:$0xff]  }
 0x5bc   :  { %9228 = vmatpush1.bf16.msra.mxu1 %v14484_v13  ;;  %9259 = vmatprep.mubr.bf16.mxu1 %v16821_v45  ;;  %v14514_v45 = vld [vmem:[#allocation18 + $0x4e0] ss:$28 sps:$4 sm:$0xff]  }
 0x5bd   :  { %9229 = vmatprep.subr.bf16.mxu1 %v14491_v5  ;;  %v14658_v13 = vld [vmem:[#allocation24 + $0xe4] ss:$16 sps:$4 sm:$0xff]   ;;  %v14548_v5 = vld [vmem:[#allocation18 + $0x714] ss:$28 sps:$4 sm:$0xff]  }
 0x5be   :  { %11164 = vmatprep.subr.bf16.mxu0 %v14658_v13  ;;  %v14579_v13 = vld [vmem:[#allocation18 + $0x978] ss:$28 sps:$4 sm:$0xff]  }
 0x5c0   :  { %9230 = vmatpush1.bf16.msra.mxu1 %v14489_v38  ;;  %v14656_v38 = vld [vmem:[#allocation24 + $0xe0] ss:$16 sps:$4 sm:$0xff]  }
 0x5c1   :  { %9231 = vmatprep.subr.bf16.mxu1 %v14496_v24  ;;  %v14546_v24 = vld [vmem:[#allocation18 + $0x710] ss:$28 sps:$4 sm:$0xff]   ;;  %11165 = vmatpush1.bf16.msra.mxu0 %v14656_v38 }
 0x5c2   :  { %v14584_v38 = vld [vmem:[#allocation18 + $0x9b4] ss:$28 sps:$4 sm:$0xff]  }
 0x5c4   :  { %9232 = vmatpush1.bf16.msra.mxu1 %v14494_v52  ;;  %v14664_v52 = vld [vmem:[#allocation24 + $0x104] ss:$16 sps:$4 sm:$0xff]  }
 0x5c5   :  { %9233 = vmatprep.subr.bf16.mxu1 %v14501_v55  ;;  %v14551_v55 = vld [vmem:[#allocation18 + $0x74c] ss:$28 sps:$4 sm:$0xff]   ;;  %11166 = vmatprep.subr.bf16.mxu0 %v14664_v52 }
 0x5c8   :  { %9234 = vmatpush1.bf16.msra.mxu1 %v14499_v22  ;;  %v14662_v22 = vld [vmem:[#allocation24 + $0x100] ss:$16 sps:$4 sm:$0xff]  }
 0x5c9   :  { %9235 = vmatprep.subr.bf16.mxu1 %v14506_v35  ;;  %v14549_v35 = vld [vmem:[#allocation18 + $0x748] ss:$28 sps:$4 sm:$0xff]   ;;  %11167 = vmatpush1.bf16.msra.mxu0 %v14662_v22  ;;  %v14582_v22 = vld [vmem:[#allocation18 + $0x9b0] ss:$28 sps:$4 sm:$0xff]  }
 0x5cc   :  { %9236 = vmatpush1.bf16.msra.mxu1 %v14504_v50  ;;  %v14670_v50 = vld [vmem:[#allocation24 + $0x124] ss:$16 sps:$4 sm:$0xff]  }
 0x5cd   :  { %9237 = vmatprep.subr.bf16.mxu1 %v14511_v61  ;;  %v14554_v61 = vld [vmem:[#allocation18 + $0x784] ss:$28 sps:$4 sm:$0xff]   ;;  %11168 = vmatprep.subr.bf16.mxu0 %v14670_v50 }
 0x5ce   :  { %v14585_v50 = vld [vmem:[#allocation18 + $0x9e8] ss:$28 sps:$4 sm:$0xff]  }
 0x5d0   :  { %9238 = vmatpush1.bf16.msra.mxu1 %v14509_v63  ;;  %v14668_v63 = vld [vmem:[#allocation24 + $0x120] ss:$16 sps:$4 sm:$0xff]  }
 0x5d1   :  { %9239 = vmatprep.subr.bf16.mxu1 %v14516_v34  ;;  %v14552_v34 = vld [vmem:[#allocation18 + $0x780] ss:$28 sps:$4 sm:$0xff]   ;;  %11169 = vmatpush1.bf16.msra.mxu0 %v14668_v63 }
 0x5d2   :  { %v14588_v63 = vld [vmem:[#allocation18 + $0xa20] ss:$28 sps:$4 sm:$0xff]  }
 0x5d4   :  { %9240 = vmatpush1.bf16.msra.mxu1 %v14514_v45  ;;  %v14676_v45 = vld [vmem:[#allocation24 + $0x144] ss:$16 sps:$4 sm:$0xff]  }
 0x5d5   :  { %9241 = vmatprep.subr.bf16.mxu1 %v14521_v29  ;;  %v14557_v29 = vld [vmem:[#allocation18 + $0x7bc] ss:$28 sps:$4 sm:$0xff]   ;;  %11170 = vmatprep.subr.bf16.mxu0 %v14676_v45 }
 0x5d6   :  { %v14591_v45 = vld [vmem:[#allocation18 + $0xa58] ss:$28 sps:$4 sm:$0xff]  }
 0x5d8   :  { %9242 = vmatpush1.bf16.msra.mxu1 %v14519_v8 }
 0x5d9   :  { %9243 = vmatprep.subr.bf16.mxu1 %v14524_v62 }
 0x5dc   :  { %9244 = vmatpush1.bf16.msra.mxu1 %v14522_v31 }
 0x5dd   :  { %9245 = vmatprep.subr.bf16.mxu1 %v14527_v6  ;;  %v16890_v25 = vpop.f32.mrb[12].mxu0 }
 0x5de   :  { %v16892_v36 = vpop.f32.mrb[13].mxu0 }
 0x5df   :  { %v16894_v3 = vpop.f32.mrb[14].mxu0 }
 0x5e0   :  { %9246 = vmatpush1.bf16.msra.mxu1 %v14525_v53  ;;  %v16896_v49 = vpop.f32.mrb[15].mxu0  ;;  %v14560_v53 = vld [vmem:[#allocation18 + $0x7f4] ss:$28 sps:$4 sm:$0xff]  }
 0x5e1   :  { %9247 = vmatprep.subr.bf16.mxu1 %v14530_v19 }
 0x5e4   :  { %9248 = vmatpush1.bf16.msra.mxu1 %v14528_v43 }
 0x5e5   :  { %9249 = vmatprep.subr.bf16.mxu1 %v14533_v18  ;;  %v14688_v18 = vld [vmem:[#allocation24 + $0x184] ss:$16 sps:$4 sm:$0xff]  }
 0x5e8   :  { %9250 = vmatpush1.bf16.msra.mxu1 %v14531_v42  ;;  %v14686_v42 = vld [vmem:[#allocation24 + $0x180] ss:$16 sps:$4 sm:$0xff]  }
 0x5e9   :  { %9251 = vmatprep.subr.bf16.mxu1 %v14536_v32  ;;  %v14694_v32 = vld [vmem:[#allocation24 + $0x1a4] ss:$16 sps:$4 sm:$0xff]  }
 0x5ec   :  { %9252 = vmatpush1.bf16.msra.mxu1 %v14534_v47  ;;  %v14564_v47 = vld [vmem:[#allocation18 + $0x860] ss:$28 sps:$4 sm:$0xff]  }
 0x5ed   :  { %9253 = vmatprep.subr.bf16.mxu1 %v14539_v9  ;;  %v14572_v9 = vld [vmem:[#allocation18 + $0x8d4] ss:$28 sps:$4 sm:$0xff]  }
 0x5f0   :  { %9254 = vmatpush1.bf16.msra.mxu1 %v14537_v7  ;;  %v14575_v7 = vld [vmem:[#allocation18 + $0x90c] ss:$28 sps:$4 sm:$0xff]  }
 0x5f1   :  { %9255 = vmatprep.subr.bf16.mxu1 %v14542_v48  ;;  %v14578_v48 = vld [vmem:[#allocation18 + $0x944] ss:$28 sps:$4 sm:$0xff]  }
 0x5f4   :  { %9256 = vmatpush1.bf16.msra.mxu1 %v14540_v46  ;;  %v14581_v46 = vld [vmem:[#allocation18 + $0x97c] ss:$28 sps:$4 sm:$0xff]  }
 0x5f5   :  { %9257 = vmatprep.subr.bf16.mxu1 %v14545_v40 }
 0x5f8   :  { %9258 = vmatpush1.bf16.msra.mxu1 %v14543_v11 }
 0x5f9   :  { %9270 = vmatprep.subr.bf16.mxu1 %v14548_v5 }
 0x5fb   :  { %9260 = vmatmul.mubr.bf16.vlgmr.msra.gmra.mrb[24].mxu1 %v16817_v23  ;;  %v14674_v23 = vld [vmem:[#allocation24 + $0x140] ss:$16 sps:$4 sm:$0xff]  }
 0x5fc   :  { %9271 = vmatpush1.bf16.msra.mxu1 %v14546_v24  ;;  %9302 = vmatprep.mubr.bf16.mxu1 %v16849_v12  ;;  %v14555_v12 = vld [vmem:[#allocation18 + $0x7b8] ss:$28 sps:$4 sm:$0xff]  }
 0x5fd   :  { %9272 = vmatprep.subr.bf16.mxu1 %v14551_v55  ;;  %v12950_v8 = vpop.f32.mrb[24].mxu0  ;;  %11171 = vmatpush1.bf16.msra.mxu0 %v14674_v23  ;;  %v14597_v23 = vld [vmem:[#allocation21 + $0x38] ss:$28 sps:$4 sm:$0xff]  }
 0x5fe   :  { %v12951_v62 = vpop.f32.mrb[25].mxu0  ;;  %11172 = vmatprep.subr.bf16.mxu0 %v14682_v39 }
 0x5ff   :  { %v12952_v31 = vadd.f32 %v12951_v62, %v12950_v8  ;;  %v12953_v6 = vpop.f32.mrb[26].mxu0  ;;  %v14594_v8 = vld [vmem:[#allocation21] ss:$28 sps:$4 sm:$0xff]  }
 0x600   :  { %9273 = vmatpush1.bf16.msra.mxu1 %v14549_v35  ;;  %v12954_v41 = vpop.f32.mrb[27].mxu0  ;;  %v14587_v35 = vld [vmem:[#allocation18 + $0x9ec] ss:$28 sps:$4 sm:$0xff]   ;;  %v14599_v62 = vld [vmem:[#allocation21 + $0x3c] ss:$28 sps:$4 sm:$0xff]  }
 0x601   :  { %9274 = vmatprep.subr.bf16.mxu1 %v14554_v61  ;;  %v9348_v15 = vadd.f32 %v12952_v31, %v16883_v2  ;;  %v12955_v19 = vadd.f32 %v12954_v41, %v12953_v6  ;;  %11173 = vmatpush1.bf16.msra.mxu0 %v14680_v16  ;;  %v14692_v2 = vld [vmem:[#allocation24 + $0x1a0] ss:$16 sps:$4 sm:$0xff]   ;;  %v14590_v61 = vld [vmem:[#allocation18 + $0xa24] ss:$28 sps:$4 sm:$0xff]   ;;  %v14608_v16 = vld [vmem:[#allocation21 + $0x14] ss:$28 sps:$4 sm:$0xff]  }
 0x602   :  { %11174 = vmatprep.subr.bf16.mxu0 %v14688_v18  ;;  %v14602_v31 = vld [vmem:[#allocation21 + $0xc] ss:$28 sps:$4 sm:$0xff]  }
 0x603   :  { %v9351_v43 = vadd.f32 %v12955_v19, %v16886_v4  ;;  %v14569_v4 = vld [vmem:[#allocation18 + $0x89c] ss:$28 sps:$4 sm:$0xff]   ;;  %v14600_v6 = vld [vmem:[#allocation21 + $0x8] ss:$28 sps:$4 sm:$0xff]  }
 0x604   :  { %9275 = vmatpush1.bf16.msra.mxu1 %v14552_v34  ;;  %v14593_v34 = vld [vmem:[#allocation18 + $0xa5c] ss:$28 sps:$4 sm:$0xff]  }
 0x605   :  { %9276 = vmatprep.subr.bf16.mxu1 %v14557_v29  ;;  %11175 = vmatpush1.bf16.msra.mxu0 %v14686_v42  ;;  %v14596_v29 = vld [vmem:[#allocation21 + $0x4] ss:$28 sps:$4 sm:$0xff]   ;;  %v14611_v42 = vld [vmem:[#allocation21 + $0x4c] ss:$28 sps:$4 sm:$0xff]  }
 0x606   :  { %11176 = vmatprep.subr.bf16.mxu0 %v14694_v32  ;;  %v14603_v19 = vld [vmem:[#allocation21 + $0x40] ss:$28 sps:$4 sm:$0xff]   ;;  %v14612_v32 = vld [vmem:[#allocation21 + $0x18] ss:$28 sps:$4 sm:$0xff]  }
 0x608   :  { %9277 = vmatpush1.bf16.msra.mxu1 %v14555_v12  ;;  %v14605_v12 = vld [vmem:[#allocation21 + $0x44] ss:$28 sps:$4 sm:$0xff]  }
 0x609   :  { %9278 = vmatprep.subr.bf16.mxu1 %v14560_v53  ;;  %11177 = vmatpush1.bf16.msra.mxu0 %v14692_v2  ;;  %v14619_v2 = vld [vmem:[#allocation24 + $0xc] ss:$16 sps:$4 sm:$0xff]  }
 0x60c   :  { %9279 = vmatpush1.bf16.msra.mxu1 %v14558_v56 }
 0x60d   :  { %9280 = vmatprep.subr.bf16.mxu1 %v14563_v1  ;;  %v14606_v1 = vld [vmem:[#allocation21 + $0x10] ss:$28 sps:$4 sm:$0xff]  }
 0x610   :  { %9281 = vmatpush1.bf16.msra.mxu1 %v14561_v26  ;;  %v14609_v26 = vld [vmem:[#allocation21 + $0x48] ss:$28 sps:$4 sm:$0xff]  }
 0x611   :  { %9282 = vmatprep.subr.bf16.mxu1 %v14566_v28  ;;  %v14613_v28 = vld [vmem:[#allocation21 + $0x50] ss:$28 sps:$4 sm:$0xff]  }
 0x614   :  { %9283 = vmatpush1.bf16.msra.mxu1 %v14564_v47  ;;  %v14617_v47 = vld [vmem:[#allocation24 + $0x8] ss:$16 sps:$4 sm:$0xff]  }
 0x615   :  { %9284 = vmatprep.subr.bf16.mxu1 %v14569_v4  ;;  %v14625_v4 = vld [vmem:[#allocation24 + $0x2c] ss:$16 sps:$4 sm:$0xff]  }
 0x618   :  { %9285 = vmatpush1.bf16.msra.mxu1 %v14567_v10  ;;  %v14623_v10 = vld [vmem:[#allocation24 + $0x28] ss:$16 sps:$4 sm:$0xff]  }
 0x619   :  { %9286 = vmatprep.subr.bf16.mxu1 %v14572_v9  ;;  %v14631_v9 = vld [vmem:[#allocation24 + $0x4c] ss:$16 sps:$4 sm:$0xff]  }
 0x61c   :  { %9287 = vmatpush1.bf16.msra.mxu1 %v14570_v33  ;;  %v14629_v33 = vld [vmem:[#allocation24 + $0x48] ss:$16 sps:$4 sm:$0xff]  }
 0x61d   :  { %9288 = vmatprep.subr.bf16.mxu1 %v14575_v7  ;;  %v12972_v21 = vpop.f32.mrb[28].mxu0  ;;  %v14637_v7 = vld [vmem:[#allocation24 + $0x6c] ss:$16 sps:$4 sm:$0xff]  }
 0x61e   :  { %v12973_v40 = vpop.f32.mrb[29].mxu0 }
 0x61f   :  { %v12974_v17 = vadd.f32 %v12973_v40, %v12972_v21  ;;  %v12975_v11 = vpop.f32.mrb[30].mxu0  ;;  %v14653_v21 = vld [vmem:[#allocation24 + $0xc8] ss:$16 sps:$4 sm:$0xff]   ;;  %v14661_v40 = vld [vmem:[#allocation24 + $0xec] ss:$16 sps:$4 sm:$0xff]  }
 0x620   :  { %9289 = vmatpush1.bf16.msra.mxu1 %v14573_v37  ;;  %v12976_v5 = vpop.f32.mrb[31].mxu0  ;;  %v14635_v37 = vld [vmem:[#allocation24 + $0x68] ss:$16 sps:$4 sm:$0xff]  }
 0x621   :  { %9290 = vmatprep.subr.bf16.mxu1 %v14578_v48  ;;  %v9389_v24 = vadd.f32 %v12974_v17, %v9348_v15  ;;  %v12977_v52 = vadd.f32 %v12976_v5, %v12975_v11  ;;  %v14641_v48 = vld [vmem:[#allocation24 + $0x88] ss:$16 sps:$4 sm:$0xff]   ;;  %v14667_v11 = vld [vmem:[#allocation24 + $0x10c] ss:$16 sps:$4 sm:$0xff]  }
 0x622   :  { %v14659_v17 = vld [vmem:[#allocation24 + $0xe8] ss:$16 sps:$4 sm:$0xff]   ;;  %v14673_v5 = vld [vmem:[#allocation24 + $0x12c] ss:$16 sps:$4 sm:$0xff]  }
 0x623   :  { %v9392_v55 = vadd.f32 %v12977_v52, %v9351_v43  ;;  %v14677_v52 = vld [vmem:[#allocation24 + $0x148] ss:$16 sps:$4 sm:$0xff]  }
 0x624   :  { %9291 = vmatpush1.bf16.msra.mxu1 %v14576_v20  ;;  %v14649_v20 = vld [vmem:[#allocation24 + $0xac] ss:$16 sps:$4 sm:$0xff]  }
 0x625   :  { %9292 = vmatprep.subr.bf16.mxu1 %v14581_v46  ;;  %v14647_v46 = vld [vmem:[#allocation24 + $0xa8] ss:$16 sps:$4 sm:$0xff]  }
 0x628   :  { %9293 = vmatpush1.bf16.msra.mxu1 %v14579_v13  ;;  %v14665_v13 = vld [vmem:[#allocation24 + $0x108] ss:$16 sps:$4 sm:$0xff]  }
 0x629   :  { %9294 = vmatprep.subr.bf16.mxu1 %v14584_v38  ;;  %v14671_v38 = vld [vmem:[#allocation24 + $0x128] ss:$16 sps:$4 sm:$0xff]  }
 0x62c   :  { %9295 = vmatpush1.bf16.msra.mxu1 %v14582_v22  ;;  %v14683_v22 = vld [vmem:[#allocation24 + $0x168] ss:$16 sps:$4 sm:$0xff]  }
 0x62d   :  { %9296 = vmatprep.subr.bf16.mxu1 %v14587_v35  ;;  %v14691_v35 = vld [vmem:[#allocation24 + $0x18c] ss:$16 sps:$4 sm:$0xff]  }
 0x630   :  { %9297 = vmatpush1.bf16.msra.mxu1 %v14585_v50  ;;  %v14689_v50 = vld [vmem:[#allocation24 + $0x188] ss:$16 sps:$4 sm:$0xff]  }
 0x631   :  { %9298 = vmatprep.subr.bf16.mxu1 %v14590_v61  ;;  %v14697_v61 = vld [vmem:[#allocation24 + $0x1ac] ss:$16 sps:$4 sm:$0xff]  }
 0x634   :  { %9299 = vmatpush1.bf16.msra.mxu1 %v14588_v63  ;;  %v14695_v63 = vld [vmem:[#allocation24 + $0x1a8] ss:$16 sps:$4 sm:$0xff]  }
 0x635   :  { %9300 = vmatprep.subr.bf16.mxu1 %v14593_v34  ;;  %v14700_v34 = vld [vmem:[#allocation24 + $0x1c4] ss:$16 sps:$4 sm:$0xff]  }
 0x636   :  { %11178 = vmatprep.subr.bf16.mxu0 %v14700_v34  ;;  %v14722_v34 = vld [vmem:[#allocation24 + $0x240] ss:$16 sps:$4 sm:$0xff]  }
 0x638   :  { %9301 = vmatpush1.bf16.msra.mxu1 %v14591_v45  ;;  %v14703_v45 = vld [vmem:[#allocation24 + $0x1cc] ss:$16 sps:$4 sm:$0xff]  }
 0x639   :  { %9528 = vmatprep.subr.bf16.mxu1 %v14596_v29  ;;  %v14698_v29 = vld [vmem:[#allocation24 + $0x1c0] ss:$16 sps:$4 sm:$0xff]  }
 0x63a   :  { %11179 = vmatpush1.bf16.msra.mxu0 %v14698_v29 }
 0x63b   :  { %9303 = vmatmul.mubr.bf16.vlgmr.msra.gmra.mrb[24].mxu1 %v16847_v14 }
 0x63c   :  { %9529 = vmatpush1.bf16.msra.mxu1 %v14594_v8  ;;  %9560 = vmatprep.mubr.bf16.mxu1 %v15330_v44  ;;  %v14701_v8 = vld [vmem:[#allocation24 + $0x1c8] ss:$16 sps:$4 sm:$0xff]  }
 0x63d   :  { %9530 = vmatprep.subr.bf16.mxu1 %v14599_v62  ;;  %v12994_v41 = vpop.f32.mrb[32].mxu0  ;;  %v14706_v62 = vld [vmem:[#allocation24 + $0x1e4] ss:$16 sps:$4 sm:$0xff]  }
 0x63e   :  { %v12995_v39 = vpop.f32.mrb[33].mxu0  ;;  %11180 = vmatprep.subr.bf16.mxu0 %v14706_v62 }
 0x63f   :  { %v12996_v53 = vadd.f32 %v12995_v39, %v12994_v41  ;;  %v12997_v15 = vpop.f32.mrb[34].mxu0  ;;  %v14715_v41 = vld [vmem:[#allocation24 + $0x20c] ss:$16 sps:$4 sm:$0xff]  }
 0x640   :  { %9531 = vmatpush1.bf16.msra.mxu1 %v14597_v23  ;;  %v12998_v14 = vpop.f32.mrb[35].mxu0  ;;  %v14709_v23 = vld [vmem:[#allocation24 + $0x1ec] ss:$16 sps:$4 sm:$0xff]  }
 0x641   :  { %9571 = vmatprep.subr.bf16.mxu1 %v14602_v31  ;;  %v12999_v43 = vadd.f32 %v12998_v14, %v12997_v15  ;;  %v16907_v56 = vadd.f32 %v12996_v53, %v9389_v24  ;;  %v14679_v24 = vld [vmem:[#allocation24 + $0x14c] ss:$16 sps:$4 sm:$0xff]   ;;  %v14704_v31 = vld [vmem:[#allocation24 + $0x1e0] ss:$16 sps:$4 sm:$0xff]  }
 0x642   :  { %11181 = vmatpush1.bf16.msra.mxu0 %v14704_v31  ;;  %v16922_v39 = vld [vmem:[#allocation22] sm:$0xff] }
 0x643   :  { %12558 = vmatmul.mubr.msk.bf16.vlgmr.msra.gmra.mrb[20].mxu1 %vm264_vm7, %v16825_v58  ;;  %v16909_v18 = vadd.f32 %v12999_v43, %v9392_v55  ;;  %v14685_v55 = vld [vmem:[#allocation24 + $0x16c] ss:$16 sps:$4 sm:$0xff]   ;;  %v9717_v53 = vrot.slane %v16922_v39, %v16755_v59  ;;  %v9721_v15 = vrot.slane %v16922_v39, %v16758_v30 }
 0x644   :  { %9572 = vmatpush1.bf16.msra.mxu1 %v14600_v6  ;;  %9603 = vmatprep.mubr.bf16.mxu1 %v15330_v44  ;;  %v14707_v6 = vld [vmem:[#allocation24 + $0x1e8] ss:$16 sps:$4 sm:$0xff]  }
 0x645   :  { %9573 = vmatprep.subr.bf16.mxu1 %v14605_v12  ;;  %v14712_v12 = vld [vmem:[#allocation24 + $0x204] ss:$16 sps:$4 sm:$0xff]  }
 0x646   :  { %11193 = vmatprep.subr.bf16.mxu0 %v14712_v12 }
 0x648   :  { %9574 = vmatpush1.bf16.msra.mxu1 %v14603_v19 }
 0x649   :  { %9614 = vmatprep.subr.bf16.mxu1 %v14608_v16 }
 0x64b   :  { %12559 = vmatmul.mubr.msk.bf16.vlgmr.msra.gmra.mrb[32].mxu1 %vm264_vm7, %v16825_v58 }
 0x64c   :  { %9615 = vmatpush1.bf16.msra.mxu1 %v14606_v1  ;;  %9646 = vmatprep.mubr.bf16.mxu1 %v15330_v44 }
 0x64d   :  { %9616 = vmatprep.subr.bf16.mxu1 %v14611_v42 }
 0x650   :  { %9617 = vmatpush1.bf16.msra.mxu1 %v14609_v26 }
 0x651   :  { %13009 = vmatprep.subr.bf16.mxu1 %v15329_v57 }
 0x653   :  { %12560 = vmatmul.mubr.msk.bf16.vlgmr.msra.gmra.mrb[24].mxu1 %vm264_vm7, %v16825_v58 }
 0x654   :  { %13010 = vmatpush3.bf16.msra.mxu1 %v14612_v32  ;;  %13013 = vmatprep.mubr.msk.bf16.mxu1 %vm15331_vm9, %v15329_v57 }
 0x655   :  { %13011 = vmatprep.subr.bf16.mxu1 %v15329_v57  ;;  %v14643_v57 = vld [vmem:[#allocation24 + $0x8c] ss:$16 sps:$4 sm:$0xff]  }
 0x658   :  { %13012 = vmatpush3.bf16.msra.mxu1 %v14613_v28 }
 0x659   :  { %11322 = vmatprep.subr.bf16.mxu1 %v14619_v2 }
 0x65b   :  { %13014 = vmatmul.mubr.msk.bf16.vlgmr.msra.gmra.mrb[36].mxu1 %vm264_vm7, %v16825_v58  ;;  %v14655_v58 = vld [vmem:[#allocation24 + $0xcc] ss:$16 sps:$4 sm:$0xff]  }
 0x65c   :  { %11323 = vmatpush1.bf16.msra.mxu1 %v14617_v47 }
 0x65d   :  { %11324 = vmatprep.subr.bf16.mxu1 %v14625_v4 }
 0x660   :  { %11325 = vmatpush1.bf16.msra.mxu1 %v14623_v10 }
 0x661   :  { %11326 = vmatprep.subr.bf16.mxu1 %v14631_v9  ;;  %v9725_v9 = vrot.slane %v16922_v39, %v16778_v27 }
 0x664   :  { %11327 = vmatpush1.bf16.msra.mxu1 %v14629_v33 }
 0x665   :  { %11328 = vmatprep.subr.bf16.mxu1 %v14637_v7 }
 0x668   :  { %11329 = vmatpush1.bf16.msra.mxu1 %v14635_v37  ;;  %v9729_v37 = vrot.slane %v16922_v39, %v16781_v51 }
 0x669   :  { %11330 = vmatprep.subr.bf16.mxu1 %v14643_v57  ;;  %v14710_v57 = vld [vmem:[#allocation24 + $0x200] ss:$16 sps:$4 sm:$0xff]  }
 0x66c   :  { %11331 = vmatpush1.bf16.msra.mxu1 %v14641_v48  ;;  %v14713_v48 = vld [vmem:[#allocation24 + $0x208] ss:$16 sps:$4 sm:$0xff]  }
 0x66d   :  { %11332 = vmatprep.subr.bf16.mxu1 %v14649_v20 }
 0x670   :  { %11333 = vmatpush1.bf16.msra.mxu1 %v14647_v46 }
 0x671   :  { %11334 = vmatprep.subr.bf16.mxu1 %v14655_v58  ;;  %v14718_v58 = vld [vmem:[#allocation24 + $0x224] ss:$16 sps:$4 sm:$0xff]  }
 0x674   :  { %11335 = vmatpush1.bf16.msra.mxu1 %v14653_v21  ;;  %v14721_v21 = vld [vmem:[#allocation24 + $0x22c] ss:$16 sps:$4 sm:$0xff]  }
 0x675   :  { %11336 = vmatprep.subr.bf16.mxu1 %v14661_v40 }
 0x678   :  { %11337 = vmatpush1.bf16.msra.mxu1 %v14659_v17 }
 0x679   :  { %11338 = vmatprep.subr.bf16.mxu1 %v14667_v11 }
 0x67c   :  { %11339 = vmatpush1.bf16.msra.mxu1 %v14665_v13 }
 0x67d   :  { %11340 = vmatprep.subr.bf16.mxu1 %v14673_v5 }
 0x680   :  { %11341 = vmatpush1.bf16.msra.mxu1 %v14671_v38 }
 0x681   :  { %11342 = vmatprep.subr.bf16.mxu1 %v14679_v24 }
 0x684   :  { %11343 = vmatpush1.bf16.msra.mxu1 %v14677_v52  ;;  %v14719_v52 = vld [vmem:[#allocation24 + $0x228] ss:$16 sps:$4 sm:$0xff]  }
 0x685   :  { %11344 = vmatprep.subr.bf16.mxu1 %v14685_v55 }
 0x688   :  { %11345 = vmatpush1.bf16.msra.mxu1 %v14683_v22  ;;  %v14724_v22 = vld [vmem:[#allocation24 + $0x244] ss:$16 sps:$4 sm:$0xff]  }
 0x689   :  { %11346 = vmatprep.subr.bf16.mxu1 %v14691_v35  ;;  %v14727_v35 = vld [vmem:[#allocation24 + $0x24c] ss:$16 sps:$4 sm:$0xff]  }
 0x68c   :  { %11347 = vmatpush1.bf16.msra.mxu1 %v14689_v50 }
 0x68d   :  { %11348 = vmatprep.subr.bf16.mxu1 %v14697_v61 }
 0x690   :  { %11349 = vmatpush1.bf16.msra.mxu1 %v14695_v63 }
 0x691   :  { %11350 = vmatprep.subr.bf16.mxu1 %v14703_v45 }
 0x694   :  { %11351 = vmatpush1.bf16.msra.mxu1 %v14701_v8  ;;  %v14725_v8 = vld [vmem:[#allocation24 + $0x248] ss:$16 sps:$4 sm:$0xff]  }
 0x695   :  { %11352 = vmatprep.subr.bf16.mxu1 %v14709_v23 }
 0x698   :  { %11353 = vmatpush1.bf16.msra.mxu1 %v14707_v6 }
 0x699   :  { %11365 = vmatprep.subr.bf16.mxu1 %v14715_v41  ;;  %v14730_v41 = vld [vmem:[#allocation24 + $0x264] ss:$16 sps:$4 sm:$0xff]  }
 0x716   :  { %v9562_v19 = vpop.f32.mrb[20].mxu1 }
 0x717   :  { %v9749_v14 = vadd.f32 %v9717_v53, %v9562_v19  ;;  %v9564_v16 = vpop.f32.mrb[21].mxu1  ;;  %v9740_v19 = vsub.s32 6, %v16752_v60 }
 0x718   :  { %v9750_v43 = vadd.f32 %v9721_v15, %v9564_v16  ;;  %v9566_v1 = vpop.f32.mrb[22].mxu1  ;;  %v14728_v16 = vld [vmem:[#allocation24 + $0x260] ss:$16 sps:$4 sm:$0xff]  }
 0x719   :  { %v9756_v42 = vadd.f32 %v9717_v53, %v9566_v1  ;;  %v9568_v26 = vpop.f32.mrb[23].mxu1  ;;  %v9763_v28 = vmax.f32 %v9749_v14, 0.0 }
 0x71a   :  { %v9757_v32 = vadd.f32 %v9721_v15, %v9568_v26  ;;  %v9764_v47 = vmax.f32 %v9750_v43, 0.0  ;;  %v14731_v43 = vld [vmem:[#allocation24 + $0x268] ss:$16 sps:$4 sm:$0xff]   ;;  %v14736_v26 = vld [vmem:[#allocation24 + $0x284] ss:$16 sps:$4 sm:$0xff]  }
 0x71b   :  { %v9770_v2 = vmax.f32 %v9756_v42, 0.0 }
 0x71c   :  { %v9771_v4 = vmax.f32 %v9757_v32, 0.0  ;;  %v14739_v32 = vld [vmem:[#allocation24 + $0x28c] ss:$16 sps:$4 sm:$0xff]  }
 0x71d   :  { %v9777_v10 = vpack.c.bf16 %v9770_v2, %v9763_v28 }
 0x71e   :  { %v9778_v33 = vpack.c.bf16 %v9771_v4, %v9764_v47  ;;  %v9605_v7 = vpop.f32.mrb[32].mxu1  ;;  %v9741_v4 = vrot.slane %v16922_v39, %v9740_v19  ;;  %v14790_v19 = vld [vmem:[#allocation24 + $0x3a4] ss:$16 sps:$4 sm:$0xff]  }
 0x71f   :  { %v13033_v20 = vadd.f32 %v9605_v7, %v16890_v25  ;;  %v9607_v46 = vpop.f32.mrb[33].mxu1  ;;  %v14716_v25 = vld [vmem:[#allocation24 + $0x220] ss:$16 sps:$4 sm:$0xff]  }
 0x720   :  { %v13034_v40 = vadd.f32 %v9607_v46, %v16892_v36  ;;  %v9609_v17 = vpop.f32.mrb[34].mxu1  ;;  %11182 = vmatprep.mubr.bf16.mxu0 %v9778_v33  ;;  %11354 = vmatprep.mubr.bf16.mxu1 %v9778_v33  ;;  %v9733_v36 = vrot.slane %v16922_v39, %v16795_v54  ;;  %v14737_v33 = vld [vmem:[#allocation24 + $0x288] ss:$16 sps:$4 sm:$0xff]  }
 0x721   :  { %v9751_v11 = vadd.f32 %v13033_v20, %v9725_v9  ;;  %v13035_v13 = vadd.f32 %v9609_v17, %v16894_v3  ;;  %v9611_v5 = vpop.f32.mrb[35].mxu1  ;;  %11183 = vmatmul.mubr.bf16.vlgmr.msra.gmra.mrb[36].mxu0 %v9777_v10  ;;  %11355 = vmatmul.mubr.bf16.vlgmr.msra.gmra.mrb[40].mxu1 %v9777_v10  ;;  %v9737_v3 = vrot.slane %v16922_v39, %v16798_v0  ;;  %v14733_v0 = vld [vmem:[#allocation24 + $0x26c] ss:$16 sps:$4 sm:$0xff]   ;;  %v14740_v39 = vld [vmem:[#allocation24 + $0x2a0] ss:$16 sps:$4 sm:$0xff]  }
 0x722   :  { %v9752_v38 = vadd.f32 %v13034_v40, %v9729_v37  ;;  %v13036_v24 = vadd.f32 %v9611_v5, %v16896_v49  ;;  %11194 = vmatpush1.bf16.msra.mxu0 %v14710_v57  ;;  %11366 = vmatpush1.bf16.msra.mxu1 %v14713_v48  ;;  %v14742_v57 = vld [vmem:[#allocation24 + $0x2a4] ss:$16 sps:$4 sm:$0xff]   ;;  %v14745_v48 = vld [vmem:[#allocation24 + $0x2ac] ss:$16 sps:$4 sm:$0xff]   ;;  %v14743_v40 = vld [vmem:[#allocation24 + $0x2a8] ss:$16 sps:$4 sm:$0xff]  }
 0x723   :  { %v9758_v55 = vadd.f32 %v13035_v13, %v9725_v9  ;;  %11195 = vmatprep.subr.bf16.mxu0 %v14718_v58  ;;  %11367 = vmatprep.subr.bf16.mxu1 %v14721_v21  ;;  %v9765_v61 = vmax.f32 %v9751_v11, 0.0  ;;  %v14734_v9 = vld [vmem:[#allocation24 + $0x280] ss:$16 sps:$4 sm:$0xff]   ;;  %v14748_v11 = vld [vmem:[#allocation24 + $0x2c4] ss:$16 sps:$4 sm:$0xff]  }
 0x724   :  { %v9759_v50 = vadd.f32 %v13036_v24, %v9729_v37  ;;  %v9766_v49 = vmax.f32 %v9752_v38, 0.0  ;;  %v14751_v13 = vld [vmem:[#allocation24 + $0x2cc] ss:$16 sps:$4 sm:$0xff]   ;;  %v14746_v38 = vld [vmem:[#allocation24 + $0x2c0] ss:$16 sps:$4 sm:$0xff]  }
 0x725   :  { %v9772_v63 = vmax.f32 %v9758_v55, 0.0  ;;  %v14749_v24 = vld [vmem:[#allocation24 + $0x2c8] ss:$16 sps:$4 sm:$0xff]   ;;  %v14752_v55 = vld [vmem:[#allocation24 + $0x2e0] ss:$16 sps:$4 sm:$0xff]  }
 0x726   :  { %v9773_v45 = vmax.f32 %v9759_v50, 0.0  ;;  %11196 = vmatpush1.bf16.msra.mxu0 %v14716_v25  ;;  %11368 = vmatpush1.bf16.msra.mxu1 %v14719_v52  ;;  %v9648_v29 = vpop.f32.mrb[24].mxu1  ;;  %v14757_v52 = vld [vmem:[#allocation24 + $0x2ec] ss:$16 sps:$4 sm:$0xff]   ;;  %v14758_v50 = vld [vmem:[#allocation24 + $0x300] ss:$16 sps:$4 sm:$0xff]  }
 0x727   :  { %v16940_v62 = vpack.c.bf16 %v9772_v63, %v9765_v61  ;;  %v9753_v23 = vadd.f32 %v9733_v36, %v9648_v29  ;;  %v9650_v31 = vpop.f32.mrb[25].mxu1  ;;  %11197 = vmatprep.subr.bf16.mxu0 %v14724_v22  ;;  %11369 = vmatprep.subr.bf16.mxu1 %v14727_v35  ;;  %v14760_v22 = vld [vmem:[#allocation24 + $0x304] ss:$16 sps:$4 sm:$0xff]   ;;  %v14763_v35 = vld [vmem:[#allocation24 + $0x30c] ss:$16 sps:$4 sm:$0xff]  }
 0x728   :  { %v9754_v54 = vadd.f32 %v9737_v3, %v9650_v31  ;;  %v9652_v6 = vpop.f32.mrb[26].mxu1  ;;  %v9780_v12 = vpack.c.bf16 %v9773_v45, %v9766_v49  ;;  %v14766_v61 = vld [vmem:[#allocation24 + $0x324] ss:$16 sps:$4 sm:$0xff]   ;;  %v14769_v63 = vld [vmem:[#allocation24 + $0x32c] ss:$16 sps:$4 sm:$0xff]  }
 0x729   :  { %v9760_v53 = vadd.f32 %v9733_v36, %v9652_v6  ;;  %v9654_v15 = vpop.f32.mrb[27].mxu1  ;;  %v9767_v1 = vmax.f32 %v9753_v23, 0.0  ;;  %v14755_v36 = vld [vmem:[#allocation24 + $0x2e8] ss:$16 sps:$4 sm:$0xff]   ;;  %v14772_v45 = vld [vmem:[#allocation24 + $0x344] ss:$16 sps:$4 sm:$0xff]  }
 0x72a   :  { %v9761_v14 = vadd.f32 %v9737_v3, %v9654_v15  ;;  %11198 = vmatpush1.bf16.msra.mxu0 %v14722_v34  ;;  %11370 = vmatpush1.bf16.msra.mxu1 %v14725_v8  ;;  %v9768_v28 = vmax.f32 %v9754_v54, 0.0  ;;  %v14761_v3 = vld [vmem:[#allocation24 + $0x308] ss:$16 sps:$4 sm:$0xff]   ;;  %v14764_v34 = vld [vmem:[#allocation24 + $0x320] ss:$16 sps:$4 sm:$0xff]  }
 0x72b   :  { %v9774_v42 = vmax.f32 %v9760_v53, 0.0  ;;  %11225 = vmatprep.mubr.bf16.mxu0 %v9780_v12  ;;  %11397 = vmatprep.mubr.bf16.mxu1 %v9780_v12  ;;  %v14767_v49 = vld [vmem:[#allocation24 + $0x328] ss:$16 sps:$4 sm:$0xff]   ;;  %v14775_v29 = vld [vmem:[#allocation24 + $0x34c] ss:$16 sps:$4 sm:$0xff]  }
 0x72c   :  { %v9775_v2 = vmax.f32 %v9761_v14, 0.0  ;;  %11199 = vmatprep.subr.bf16.mxu0 %v14730_v41  ;;  %11371 = vmatprep.subr.bf16.mxu1 %v14733_v0  ;;  %v14770_v8 = vld [vmem:[#allocation24 + $0x340] ss:$16 sps:$4 sm:$0xff]   ;;  %v14773_v23 = vld [vmem:[#allocation24 + $0x348] ss:$16 sps:$4 sm:$0xff]  }
 0x72d   :  { %v16943_v47 = vpack.c.bf16 %v9774_v42, %v9767_v1  ;;  %v14778_v31 = vld [vmem:[#allocation24 + $0x364] ss:$16 sps:$4 sm:$0xff]   ;;  %v14781_v54 = vld [vmem:[#allocation24 + $0x36c] ss:$16 sps:$4 sm:$0xff]   ;;  %v14776_v6 = vld [vmem:[#allocation24 + $0x360] ss:$16 sps:$4 sm:$0xff]  }
 0x72e   :  { %v16946_v60 = vpack.c.bf16 %v9775_v2, %v9768_v28  ;;  %11200 = vmatpush1.bf16.msra.mxu0 %v14728_v16  ;;  %11372 = vmatpush1.bf16.msra.mxu1 %v14731_v43  ;;  %v9691_v10 = vpop.f32.mrb[36].mxu1  ;;  %v14779_v12 = vld [vmem:[#allocation24 + $0x368] ss:$16 sps:$4 sm:$0xff]   ;;  %v14784_v41 = vld [vmem:[#allocation24 + $0x384] ss:$16 sps:$4 sm:$0xff]  }
 0x72f   :  { %v9704_v7 = vadd.f32 %v9691_v10, %v16907_v56  ;;  %v13015_v37 = vpop.f32.mrb[37].mxu1  ;;  %11201 = vmatprep.subr.bf16.mxu0 %v14736_v26  ;;  %11373 = vmatprep.subr.bf16.mxu1 %v14739_v32  ;;  %v14787_v0 = vld [vmem:[#allocation24 + $0x38c] ss:$16 sps:$4 sm:$0xff]   ;;  %v14782_v53 = vld [vmem:[#allocation24 + $0x380] ss:$16 sps:$4 sm:$0xff]  }
 0x730   :  { %v9694_v20 = vpop.f32.mrb[38].mxu1  ;;  %v14785_v15 = vld [vmem:[#allocation24 + $0x388] ss:$16 sps:$4 sm:$0xff]   ;;  %v14793_v14 = vld [vmem:[#allocation24 + $0x3ac] ss:$16 sps:$4 sm:$0xff]  }
 0x731   :  { %v9755_v46 = vadd.f32 %v9741_v4, %v9704_v7  ;;  %v9711_v58 = vadd.f32 %v9694_v20, %v16909_v18  ;;  %v13016_v21 = vpop.f32.mrb[39].mxu1  ;;  %v14754_v18 = vld [vmem:[#allocation24 + $0x2e4] ss:$16 sps:$4 sm:$0xff]   ;;  %v14788_v16 = vld [vmem:[#allocation24 + $0x3a0] ss:$16 sps:$4 sm:$0xff]  }
 0x732   :  { %11202 = vmatpush1.bf16.msra.mxu0 %v14734_v9  ;;  %11374 = vmatpush1.bf16.msra.mxu1 %v14737_v33  ;;  %v14791_v43 = vld [vmem:[#allocation24 + $0x3a8] ss:$16 sps:$4 sm:$0xff]   ;;  %v14796_v1 = vld [vmem:[#allocation24 + $0x3c4] ss:$16 sps:$4 sm:$0xff]   ;;  %v14799_v42 = vld [vmem:[#allocation24 + $0x3cc] ss:$16 sps:$4 sm:$0xff]  }
 0x733   :  { %v9762_v17 = vadd.f32 %v9741_v4, %v9711_v58  ;;  %11203 = vmatprep.subr.bf16.mxu0 %v14742_v57  ;;  %11375 = vmatprep.subr.bf16.mxu1 %v14745_v48  ;;  %v9769_v56 = vmax.f32 %v9755_v46, 0.0  ;;  %v14794_v26 = vld [vmem:[#allocation24 + $0x3c0] ss:$16 sps:$4 sm:$0xff]   ;;  %v14797_v32 = vld [vmem:[#allocation24 + $0x3c8] ss:$16 sps:$4 sm:$0xff]  }
 0x734   :  { %v14802_v28 = vld [vmem:[#allocation24 + $0x3e4] ss:$16 sps:$4 sm:$0xff]   ;;  %v14805_v2 = vld [vmem:[#allocation24 + $0x3ec] ss:$16 sps:$4 sm:$0xff]   ;;  %v14800_v4 = vld [vmem:[#allocation24 + $0x3e0] ss:$16 sps:$4 sm:$0xff]  }
 0x735   :  { %v9776_v5 = vmax.f32 %v9762_v17, 0.0  ;;  %v14803_v10 = vld [vmem:[#allocation24 + $0x3e8] ss:$16 sps:$4 sm:$0xff]   ;;  %v14808_v9 = vld [vmem:[#allocation24 + $0x404] ss:$16 sps:$4 sm:$0xff]  }
 0x736   :  { %11204 = vmatpush1.bf16.msra.mxu0 %v14740_v39  ;;  %11376 = vmatpush1.bf16.msra.mxu1 %v14743_v40  ;;  %v14811_v33 = vld [vmem:[#allocation24 + $0x40c] ss:$16 sps:$4 sm:$0xff]   ;;  %v14806_v7 = vld [vmem:[#allocation24 + $0x400] ss:$16 sps:$4 sm:$0xff]   ;;  %v14809_v37 = vld [vmem:[#allocation24 + $0x408] ss:$16 sps:$4 sm:$0xff]  }
 0x737   :  { %v16950_v25 = vpack.c.bf16 %v9776_v5, %v9769_v56  ;;  %11205 = vmatprep.subr.bf16.mxu0 %v14748_v11  ;;  %11377 = vmatprep.subr.bf16.mxu1 %v14751_v13  ;;  %v14814_v57 = vld [vmem:[#allocation24 + $0x424] ss:$16 sps:$4 sm:$0xff]   ;;  %v14817_v48 = vld [vmem:[#allocation24 + $0x42c] ss:$16 sps:$4 sm:$0xff]   ;;  %v14812_v20 = vld [vmem:[#allocation24 + $0x420] ss:$16 sps:$4 sm:$0xff]  }
 0x738   :  { %v14815_v46 = vld [vmem:[#allocation24 + $0x428] ss:$16 sps:$4 sm:$0xff]   ;;  %v14820_v58 = vld [vmem:[#allocation24 + $0x444] ss:$16 sps:$4 sm:$0xff]   ;;  %v14823_v21 = vld [vmem:[#allocation24 + $0x44c] ss:$16 sps:$4 sm:$0xff]  }
 0x739   :  { %v14818_v39 = vld [vmem:[#allocation24 + $0x440] ss:$16 sps:$4 sm:$0xff]   ;;  %v14821_v40 = vld [vmem:[#allocation24 + $0x448] ss:$16 sps:$4 sm:$0xff]   ;;  %v14826_v17 = vld [vmem:[#allocation24 + $0x464] ss:$16 sps:$4 sm:$0xff]  }
 0x73a   :  { %11206 = vmatpush1.bf16.msra.mxu0 %v14746_v38  ;;  %11378 = vmatpush1.bf16.msra.mxu1 %v14749_v24  ;;  %v14824_v11 = vld [vmem:[#allocation24 + $0x460] ss:$16 sps:$4 sm:$0xff]   ;;  %v14827_v13 = vld [vmem:[#allocation24 + $0x468] ss:$16 sps:$4 sm:$0xff]   ;;  %v14832_v56 = vld [vmem:[#allocation24 + $0x484] ss:$16 sps:$4 sm:$0xff]  }
 0x73b   :  { %11207 = vmatprep.subr.bf16.mxu0 %v14754_v18  ;;  %11379 = vmatprep.subr.bf16.mxu1 %v14757_v52  ;;  %v14830_v5 = vld [vmem:[#allocation24 + $0x480] ss:$16 sps:$4 sm:$0xff]   ;;  %v14833_v38 = vld [vmem:[#allocation24 + $0x488] ss:$16 sps:$4 sm:$0xff]   ;;  %v14838_v24 = vld [vmem:[#allocation24 + $0x4a4] ss:$16 sps:$4 sm:$0xff]  }
 0x73c   :  { %v14841_v18 = vld [vmem:[#allocation24 + $0x4ac] ss:$16 sps:$4 sm:$0xff]   ;;  %v14836_v52 = vld [vmem:[#allocation24 + $0x4a0] ss:$16 sps:$4 sm:$0xff]  }
 0x73e   :  { %11208 = vmatpush1.bf16.msra.mxu0 %v14752_v55  ;;  %11380 = vmatpush1.bf16.msra.mxu1 %v14755_v36  ;;  %v14839_v55 = vld [vmem:[#allocation24 + $0x4a8] ss:$16 sps:$4 sm:$0xff]   ;;  %v14844_v36 = vld [vmem:[#allocation24 + $0x4c4] ss:$16 sps:$4 sm:$0xff]  }
 0x73f   :  { %11209 = vmatprep.subr.bf16.mxu0 %v14760_v22  ;;  %11381 = vmatprep.subr.bf16.mxu1 %v14763_v35  ;;  %v14847_v22 = vld [vmem:[#allocation24 + $0x4cc] ss:$16 sps:$4 sm:$0xff]   ;;  %v14842_v35 = vld [vmem:[#allocation24 + $0x4c0] ss:$16 sps:$4 sm:$0xff]  }
 0x742   :  { %11210 = vmatpush1.bf16.msra.mxu0 %v14758_v50  ;;  %11382 = vmatpush1.bf16.msra.mxu1 %v14761_v3  ;;  %v14845_v50 = vld [vmem:[#allocation24 + $0x4c8] ss:$16 sps:$4 sm:$0xff]   ;;  %v14850_v3 = vld [vmem:[#allocation24 + $0x4e4] ss:$16 sps:$4 sm:$0xff]  }
 0x743   :  { %11211 = vmatprep.subr.bf16.mxu0 %v14766_v61  ;;  %11383 = vmatprep.subr.bf16.mxu1 %v14769_v63  ;;  %v14853_v61 = vld [vmem:[#allocation24 + $0x4ec] ss:$16 sps:$4 sm:$0xff]   ;;  %v14848_v63 = vld [vmem:[#allocation24 + $0x4e0] ss:$16 sps:$4 sm:$0xff]  }
 0x746   :  { %11212 = vmatpush1.bf16.msra.mxu0 %v14764_v34  ;;  %11384 = vmatpush1.bf16.msra.mxu1 %v14767_v49  ;;  %v14851_v34 = vld [vmem:[#allocation24 + $0x4e8] ss:$16 sps:$4 sm:$0xff]   ;;  %v14856_v49 = vld [vmem:[#allocation24 + $0x504] ss:$16 sps:$4 sm:$0xff]  }
 0x747   :  { %11213 = vmatprep.subr.bf16.mxu0 %v14772_v45  ;;  %11385 = vmatprep.subr.bf16.mxu1 %v14775_v29  ;;  %v14859_v45 = vld [vmem:[#allocation24 + $0x50c] ss:$16 sps:$4 sm:$0xff]   ;;  %v14854_v29 = vld [vmem:[#allocation24 + $0x500] ss:$16 sps:$4 sm:$0xff]  }
 0x74a   :  { %11214 = vmatpush1.bf16.msra.mxu0 %v14770_v8  ;;  %11386 = vmatpush1.bf16.msra.mxu1 %v14773_v23  ;;  %v14857_v8 = vld [vmem:[#allocation24 + $0x508] ss:$16 sps:$4 sm:$0xff]   ;;  %v14862_v23 = vld [vmem:[#allocation24 + $0x524] ss:$16 sps:$4 sm:$0xff]  }
 0x74b   :  { %11215 = vmatprep.subr.bf16.mxu0 %v14778_v31  ;;  %11387 = vmatprep.subr.bf16.mxu1 %v14781_v54  ;;  %v14865_v31 = vld [vmem:[#allocation24 + $0x52c] ss:$16 sps:$4 sm:$0xff]   ;;  %v14860_v54 = vld [vmem:[#allocation24 + $0x520] ss:$16 sps:$4 sm:$0xff]  }
 0x74e   :  { %11216 = vmatpush1.bf16.msra.mxu0 %v14776_v6  ;;  %11388 = vmatpush1.bf16.msra.mxu1 %v14779_v12  ;;  %v14863_v6 = vld [vmem:[#allocation24 + $0x528] ss:$16 sps:$4 sm:$0xff]   ;;  %v14868_v12 = vld [vmem:[#allocation24 + $0x544] ss:$16 sps:$4 sm:$0xff]  }
 0x74f   :  { %11217 = vmatprep.subr.bf16.mxu0 %v14784_v41  ;;  %11389 = vmatprep.subr.bf16.mxu1 %v14787_v0  ;;  %v14871_v41 = vld [vmem:[#allocation24 + $0x54c] ss:$16 sps:$4 sm:$0xff]   ;;  %v14866_v0 = vld [vmem:[#allocation24 + $0x540] ss:$16 sps:$4 sm:$0xff]  }
 0x752   :  { %11218 = vmatpush1.bf16.msra.mxu0 %v14782_v53  ;;  %11390 = vmatpush1.bf16.msra.mxu1 %v14785_v15  ;;  %v14869_v53 = vld [vmem:[#allocation24 + $0x548] ss:$16 sps:$4 sm:$0xff]   ;;  %v14874_v15 = vld [vmem:[#allocation24 + $0x564] ss:$16 sps:$4 sm:$0xff]  }
 0x753   :  { %11219 = vmatprep.subr.bf16.mxu0 %v14790_v19  ;;  %11391 = vmatprep.subr.bf16.mxu1 %v14793_v14  ;;  %v14877_v19 = vld [vmem:[#allocation24 + $0x56c] ss:$16 sps:$4 sm:$0xff]   ;;  %v14872_v14 = vld [vmem:[#allocation24 + $0x560] ss:$16 sps:$4 sm:$0xff]  }
 0x756   :  { %11220 = vmatpush1.bf16.msra.mxu0 %v14788_v16  ;;  %11392 = vmatpush1.bf16.msra.mxu1 %v14791_v43  ;;  %v14875_v16 = vld [vmem:[#allocation24 + $0x568] ss:$16 sps:$4 sm:$0xff]   ;;  %v14880_v43 = vld [vmem:[#allocation24 + $0x584] ss:$16 sps:$4 sm:$0xff]  }
 0x757   :  { %11221 = vmatprep.subr.bf16.mxu0 %v14796_v1  ;;  %11393 = vmatprep.subr.bf16.mxu1 %v14799_v42  ;;  %v14883_v1 = vld [vmem:[#allocation24 + $0x58c] ss:$16 sps:$4 sm:$0xff]   ;;  %v14878_v42 = vld [vmem:[#allocation24 + $0x580] ss:$16 sps:$4 sm:$0xff]  }
 0x75a   :  { %11222 = vmatpush1.bf16.msra.mxu0 %v14794_v26  ;;  %11394 = vmatpush1.bf16.msra.mxu1 %v14797_v32  ;;  %v14881_v26 = vld [vmem:[#allocation24 + $0x588] ss:$16 sps:$4 sm:$0xff]   ;;  %v14886_v32 = vld [vmem:[#allocation24 + $0x5a4] ss:$16 sps:$4 sm:$0xff]  }
 0x75b   :  { %11223 = vmatprep.subr.bf16.mxu0 %v14802_v28  ;;  %11395 = vmatprep.subr.bf16.mxu1 %v14805_v2  ;;  %v14889_v28 = vld [vmem:[#allocation24 + $0x5ac] ss:$16 sps:$4 sm:$0xff]   ;;  %v14884_v2 = vld [vmem:[#allocation24 + $0x5a0] ss:$16 sps:$4 sm:$0xff]  }
 0x75e   :  { %11224 = vmatpush1.bf16.msra.mxu0 %v14800_v4  ;;  %11396 = vmatpush1.bf16.msra.mxu1 %v14803_v10  ;;  %v14887_v4 = vld [vmem:[#allocation24 + $0x5a8] ss:$16 sps:$4 sm:$0xff]   ;;  %v14892_v10 = vld [vmem:[#allocation24 + $0x5c4] ss:$16 sps:$4 sm:$0xff]  }
 0x75f   :  { %11236 = vmatprep.subr.bf16.mxu0 %v14808_v9  ;;  %11408 = vmatprep.subr.bf16.mxu1 %v14811_v33  ;;  %v14895_v9 = vld [vmem:[#allocation24 + $0x5cc] ss:$16 sps:$4 sm:$0xff]   ;;  %v14890_v33 = vld [vmem:[#allocation24 + $0x5c0] ss:$16 sps:$4 sm:$0xff]  }
 0x761   :  { %11226 = vmatmul.mubr.bf16.vlgmr.msra.gmra.mrb[36].mxu0 %v16940_v62  ;;  %11398 = vmatmul.mubr.bf16.vlgmr.msra.gmra.mrb[40].mxu1 %v16940_v62  ;;  %v14829_v62 = vld [vmem:[#allocation24 + $0x46c] ss:$16 sps:$4 sm:$0xff]  }
 0x762   :  { %11237 = vmatpush1.bf16.msra.mxu0 %v14806_v7  ;;  %11268 = vmatprep.mubr.bf16.mxu0 %v16946_v60  ;;  %v14893_v7 = vld [vmem:[#allocation24 + $0x5c8] ss:$16 sps:$4 sm:$0xff]  }
 0x763   :  { %11409 = vmatpush1.bf16.msra.mxu1 %v14809_v37  ;;  %11440 = vmatprep.mubr.bf16.mxu1 %v16946_v60  ;;  %v14835_v60 = vld [vmem:[#allocation24 + $0x48c] ss:$16 sps:$4 sm:$0xff]   ;;  %v14898_v37 = vld [vmem:[#allocation24 + $0x5e4] ss:$16 sps:$4 sm:$0xff]  }
 0x764   :  { %11238 = vmatprep.subr.bf16.mxu0 %v14814_v57  ;;  %11410 = vmatprep.subr.bf16.mxu1 %v14817_v48  ;;  %v14901_v57 = vld [vmem:[#allocation24 + $0x5ec] ss:$16 sps:$4 sm:$0xff]   ;;  %v14896_v48 = vld [vmem:[#allocation24 + $0x5e0] ss:$16 sps:$4 sm:$0xff]  }
 0x766   :  { %11239 = vmatpush1.bf16.msra.mxu0 %v14812_v20  ;;  %v14899_v20 = vld [vmem:[#allocation24 + $0x5e8] ss:$16 sps:$4 sm:$0xff]  }
 0x767   :  { %11411 = vmatpush1.bf16.msra.mxu1 %v14815_v46  ;;  %11240 = vmatprep.subr.bf16.mxu0 %v14820_v58  ;;  %v14904_v46 = vld [vmem:[#allocation24 + $0x604] ss:$16 sps:$4 sm:$0xff]   ;;  %v14907_v58 = vld [vmem:[#allocation24 + $0x60c] ss:$16 sps:$4 sm:$0xff]  }
 0x768   :  { %11412 = vmatprep.subr.bf16.mxu1 %v14823_v21  ;;  %v14902_v21 = vld [vmem:[#allocation24 + $0x600] ss:$16 sps:$4 sm:$0xff]  }
 0x76a   :  { %11241 = vmatpush1.bf16.msra.mxu0 %v14818_v39  ;;  %v14905_v39 = vld [vmem:[#allocation24 + $0x608] ss:$16 sps:$4 sm:$0xff]  }
 0x76b   :  { %11413 = vmatpush1.bf16.msra.mxu1 %v14821_v40  ;;  %11242 = vmatprep.subr.bf16.mxu0 %v14826_v17  ;;  %v14910_v40 = vld [vmem:[#allocation24 + $0x624] ss:$16 sps:$4 sm:$0xff]   ;;  %v14913_v17 = vld [vmem:[#allocation24 + $0x62c] ss:$16 sps:$4 sm:$0xff]  }
 0x76c   :  { %11414 = vmatprep.subr.bf16.mxu1 %v14829_v62  ;;  %v14908_v62 = vld [vmem:[#allocation24 + $0x620] ss:$16 sps:$4 sm:$0xff]  }
 0x76e   :  { %11243 = vmatpush1.bf16.msra.mxu0 %v14824_v11  ;;  %v14911_v11 = vld [vmem:[#allocation24 + $0x628] ss:$16 sps:$4 sm:$0xff]  }
 0x76f   :  { %11415 = vmatpush1.bf16.msra.mxu1 %v14827_v13  ;;  %11244 = vmatprep.subr.bf16.mxu0 %v14832_v56  ;;  %v14916_v13 = vld [vmem:[#allocation24 + $0x644] ss:$16 sps:$4 sm:$0xff]   ;;  %v14919_v56 = vld [vmem:[#allocation24 + $0x64c] ss:$16 sps:$4 sm:$0xff]  }
 0x770   :  { %11416 = vmatprep.subr.bf16.mxu1 %v14835_v60  ;;  %v14914_v60 = vld [vmem:[#allocation24 + $0x640] ss:$16 sps:$4 sm:$0xff]  }
 0x772   :  { %11245 = vmatpush1.bf16.msra.mxu0 %v14830_v5  ;;  %v14917_v5 = vld [vmem:[#allocation24 + $0x648] ss:$16 sps:$4 sm:$0xff]  }
 0x773   :  { %11417 = vmatpush1.bf16.msra.mxu1 %v14833_v38  ;;  %11246 = vmatprep.subr.bf16.mxu0 %v14838_v24  ;;  %v14922_v38 = vld [vmem:[#allocation24 + $0x664] ss:$16 sps:$4 sm:$0xff]   ;;  %v14920_v24 = vld [vmem:[#allocation24 + $0x660] ss:$16 sps:$4 sm:$0xff]  }
 0x774   :  { %11418 = vmatprep.subr.bf16.mxu1 %v14841_v18  ;;  %v14923_v18 = vld [vmem:[#allocation24 + $0x668] ss:$16 sps:$4 sm:$0xff]  }
 0x776   :  { %11247 = vmatpush1.bf16.msra.mxu0 %v14836_v52  ;;  %v14928_v52 = vld [vmem:[#allocation24 + $0x684] ss:$16 sps:$4 sm:$0xff]  }
 0x777   :  { %11419 = vmatpush1.bf16.msra.mxu1 %v14839_v55  ;;  %11248 = vmatprep.subr.bf16.mxu0 %v14844_v36  ;;  %v14931_v55 = vld [vmem:[#allocation24 + $0x68c] ss:$16 sps:$4 sm:$0xff]   ;;  %v14926_v36 = vld [vmem:[#allocation24 + $0x680] ss:$16 sps:$4 sm:$0xff]  }
 0x778   :  { %11420 = vmatprep.subr.bf16.mxu1 %v14847_v22  ;;  %v14934_v22 = vld [vmem:[#allocation24 + $0x6a4] ss:$16 sps:$4 sm:$0xff]  }
 0x77a   :  { %11249 = vmatpush1.bf16.msra.mxu0 %v14842_v35  ;;  %v14937_v35 = vld [vmem:[#allocation24 + $0x6ac] ss:$16 sps:$4 sm:$0xff]  }
 0x77b   :  { %11421 = vmatpush1.bf16.msra.mxu1 %v14845_v50  ;;  %11250 = vmatprep.subr.bf16.mxu0 %v14850_v3  ;;  %v14932_v50 = vld [vmem:[#allocation24 + $0x6a0] ss:$16 sps:$4 sm:$0xff]   ;;  %v14935_v3 = vld [vmem:[#allocation24 + $0x6a8] ss:$16 sps:$4 sm:$0xff]  }
 0x77c   :  { %11422 = vmatprep.subr.bf16.mxu1 %v14853_v61  ;;  %v14940_v61 = vld [vmem:[#allocation24 + $0x6c4] ss:$16 sps:$4 sm:$0xff]  }
 0x77e   :  { %11251 = vmatpush1.bf16.msra.mxu0 %v14848_v63  ;;  %v14943_v63 = vld [vmem:[#allocation24 + $0x6cc] ss:$16 sps:$4 sm:$0xff]  }
 0x77f   :  { %11423 = vmatpush1.bf16.msra.mxu1 %v14851_v34  ;;  %11252 = vmatprep.subr.bf16.mxu0 %v14856_v49  ;;  %v14938_v34 = vld [vmem:[#allocation24 + $0x6c0] ss:$16 sps:$4 sm:$0xff]   ;;  %v14941_v49 = vld [vmem:[#allocation24 + $0x6c8] ss:$16 sps:$4 sm:$0xff]  }
 0x780   :  { %11424 = vmatprep.subr.bf16.mxu1 %v14859_v45  ;;  %v14946_v45 = vld [vmem:[#allocation24 + $0x6e4] ss:$16 sps:$4 sm:$0xff]  }
 0x782   :  { %11253 = vmatpush1.bf16.msra.mxu0 %v14854_v29  ;;  %v14949_v29 = vld [vmem:[#allocation24 + $0x6ec] ss:$16 sps:$4 sm:$0xff]  }
 0x783   :  { %11425 = vmatpush1.bf16.msra.mxu1 %v14857_v8  ;;  %11254 = vmatprep.subr.bf16.mxu0 %v14862_v23  ;;  %v14944_v8 = vld [vmem:[#allocation24 + $0x6e0] ss:$16 sps:$4 sm:$0xff]   ;;  %v14947_v23 = vld [vmem:[#allocation24 + $0x6e8] ss:$16 sps:$4 sm:$0xff]  }
 0x784   :  { %11426 = vmatprep.subr.bf16.mxu1 %v14865_v31  ;;  %v10008_v31 = vld [vmem:[#allocation25] sm:$0xf] }
 0x786   :  { %11255 = vmatpush1.bf16.msra.mxu0 %v14860_v54  ;;  %v10013_v54 = vrot.slane %v10008_v31, %v16755_v59 }
 0x787   :  { %11427 = vmatpush1.bf16.msra.mxu1 %v14863_v6  ;;  %11256 = vmatprep.subr.bf16.mxu0 %v14868_v12  ;;  %v11502_v6 = vld [vmem:[#allocation27] sm:$0xf]  ;;  %v10021_v12 = vrot.slane %v10008_v31, %v16778_v27 }
 0x788   :  { %11428 = vmatprep.subr.bf16.mxu1 %v14871_v41  ;;  %v10017_v41 = vrot.slane %v10008_v31, %v16758_v30 }
 0x78a   :  { %11257 = vmatpush1.bf16.msra.mxu0 %v14866_v0  ;;  %v10025_v0 = vrot.slane %v10008_v31, %v16781_v51 }
 0x78b   :  { %11429 = vmatpush1.bf16.msra.mxu1 %v14869_v53  ;;  %11258 = vmatprep.subr.bf16.mxu0 %v14874_v15 }
 0x78c   :  { %11430 = vmatprep.subr.bf16.mxu1 %v14877_v19  ;;  %v11507_v19 = vrot.slane %v11502_v6, %v16755_v59 }
 0x78e   :  { %11259 = vmatpush1.bf16.msra.mxu0 %v14872_v14 }
 0x78f   :  { %11431 = vmatpush1.bf16.msra.mxu1 %v14875_v16  ;;  %11260 = vmatprep.subr.bf16.mxu0 %v14880_v43 }
 0x790   :  { %11432 = vmatprep.subr.bf16.mxu1 %v14883_v1 }
 0x792   :  { %11261 = vmatpush1.bf16.msra.mxu0 %v14878_v42 }
 0x793   :  { %11433 = vmatpush1.bf16.msra.mxu1 %v14881_v26  ;;  %11262 = vmatprep.subr.bf16.mxu0 %v14886_v32 }
 0x794   :  { %11434 = vmatprep.subr.bf16.mxu1 %v14889_v28  ;;  %v11515_v28 = vrot.slane %v11502_v6, %v16778_v27 }
 0x796   :  { %11263 = vmatpush1.bf16.msra.mxu0 %v14884_v2 }
 0x797   :  { %11435 = vmatpush1.bf16.msra.mxu1 %v14887_v4  ;;  %11264 = vmatprep.subr.bf16.mxu0 %v14892_v10 }
 0x798   :  { %11436 = vmatprep.subr.bf16.mxu1 %v14895_v9 }
 0x79a   :  { %11265 = vmatpush1.bf16.msra.mxu0 %v14890_v33 }
 0x79b   :  { %11437 = vmatpush1.bf16.msra.mxu1 %v14893_v7  ;;  %11266 = vmatprep.subr.bf16.mxu0 %v14898_v37 }
 0x79c   :  { %11438 = vmatprep.subr.bf16.mxu1 %v14901_v57 }
 0x79e   :  { %11267 = vmatpush1.bf16.msra.mxu0 %v14896_v48 }
 0x79f   :  { %11439 = vmatpush1.bf16.msra.mxu1 %v14899_v20  ;;  %11279 = vmatprep.subr.bf16.mxu0 %v14904_v46 }
 0x7a0   :  { %11451 = vmatprep.subr.bf16.mxu1 %v14907_v58  ;;  %v11519_v58 = vrot.slane %v11502_v6, %v16781_v51  ;;  %v12786_v51 = vld [vmem:[#allocation4] ss:$0 sm:$0xff] }
 0x7a1   :  { %11269 = vmatmul.mubr.bf16.vlgmr.msra.gmra.mrb[36].mxu0 %v16943_v47 }
 0x7a2   :  { %11441 = vmatmul.mubr.bf16.vlgmr.msra.gmra.mrb[40].mxu1 %v16943_v47  ;;  %11280 = vmatpush1.bf16.msra.mxu0 %v14902_v21  ;;  %v14925_v47 = vld [vmem:[#allocation24 + $0x66c] ss:$16 sps:$4 sm:$0xff]  }
 0x7a3   :  { %11452 = vmatpush1.bf16.msra.mxu1 %v14905_v39  ;;  %11281 = vmatprep.subr.bf16.mxu0 %v14910_v40 }
 0x7a4   :  { %11453 = vmatprep.subr.bf16.mxu1 %v14913_v17  ;;  %11311 = vmatprep.mubr.bf16.mxu0 %v15330_v44 }
 0x7a5   :  { %11483 = vmatprep.mubr.bf16.mxu1 %v15330_v44  ;;  %v14929_v44 = vld [vmem:[#allocation24 + $0x688] ss:$16 sps:$4 sm:$0xff]  }
 0x7a6   :  { %11282 = vmatpush1.bf16.msra.mxu0 %v14908_v62 }
 0x7a7   :  { %11454 = vmatpush1.bf16.msra.mxu1 %v14911_v11  ;;  %11283 = vmatprep.subr.bf16.mxu0 %v14916_v13 }
 0x7a8   :  { %11455 = vmatprep.subr.bf16.mxu1 %v14919_v56 }
 0x7aa   :  { %11284 = vmatpush1.bf16.msra.mxu0 %v14914_v60 }
 0x7ab   :  { %11456 = vmatpush1.bf16.msra.mxu1 %v14917_v5  ;;  %11285 = vmatprep.subr.bf16.mxu0 %v14922_v38 }
 0x7ac   :  { %11457 = vmatprep.subr.bf16.mxu1 %v14925_v47 }
 0x7ae   :  { %11286 = vmatpush1.bf16.msra.mxu0 %v14920_v24 }
 0x7af   :  { %11458 = vmatpush1.bf16.msra.mxu1 %v14923_v18  ;;  %11287 = vmatprep.subr.bf16.mxu0 %v14928_v52 }
 0x7b0   :  { %11459 = vmatprep.subr.bf16.mxu1 %v14931_v55 }
 0x7b2   :  { %11288 = vmatpush1.bf16.msra.mxu0 %v14926_v36 }
 0x7b3   :  { %11460 = vmatpush1.bf16.msra.mxu1 %v14929_v44  ;;  %11289 = vmatprep.subr.bf16.mxu0 %v14934_v22 }
 0x7b4   :  { %11461 = vmatprep.subr.bf16.mxu1 %v14937_v35 }
 0x7b6   :  { %11290 = vmatpush1.bf16.msra.mxu0 %v14932_v50 }
 0x7b7   :  { %11462 = vmatpush1.bf16.msra.mxu1 %v14935_v3  ;;  %11291 = vmatprep.subr.bf16.mxu0 %v14940_v61 }
 0x7b8   :  { %11463 = vmatprep.subr.bf16.mxu1 %v14943_v63 }
 0x7ba   :  { %11292 = vmatpush1.bf16.msra.mxu0 %v14938_v34 }
 0x7bb   :  { %11464 = vmatpush1.bf16.msra.mxu1 %v14941_v49  ;;  %11293 = vmatprep.subr.bf16.mxu0 %v14946_v45 }
 0x7bc   :  { %11465 = vmatprep.subr.bf16.mxu1 %v14949_v29 }
 0x7be   :  { %11294 = vmatpush1.bf16.msra.mxu0 %v14944_v8 }
 0x7bf   :  { %11466 = vmatpush1.bf16.msra.mxu1 %v14947_v23 }
 0x7c1   :  { %11312 = vmatmul.mubr.bf16.vlgmr.msra.gmra.mrb[36].mxu0 %v16950_v25 }
 0x7c2   :  { %11484 = vmatmul.mubr.bf16.vlgmr.msra.gmra.mrb[40].mxu1 %v16950_v25  ;;  %v11511_v25 = vrot.slane %v11502_v6, %v16758_v30 }
 0x894   :  { %v11313_v53 = vpop.f32.mrb[36].mxu0 }
 0x895   :  { %v13037_v15 = vadd.f32 %v11313_v53, %v10013_v54  ;;  %v11485_v14 = vpop.f32.mrb[40].mxu1  ;;  %v11315_v16 = vpop.f32.mrb[37].mxu0 }
 0x896   :  { %v13041_v43 = vadd.f32 %v11485_v14, %v10021_v12  ;;  %v13038_v1 = vadd.f32 %v11315_v16, %v10017_v41  ;;  %v11487_v42 = vpop.f32.mrb[41].mxu1  ;;  %v11317_v26 = vpop.f32.mrb[38].mxu0 }
 0x897   :  { %v11494_v32 = vmax.f32 %v13037_v15, 0.0  ;;  %v13042_v2 = vadd.f32 %v11487_v42, %v10025_v0  ;;  %v13039_v4 = vadd.f32 %v11317_v26, %v10013_v54  ;;  %v11489_v10 = vpop.f32.mrb[42].mxu1  ;;  %v11319_v9 = vpop.f32.mrb[39].mxu0 }
 0x898   :  { %v11496_v33 = vmax.f32 %v13041_v43, 0.0  ;;  %v11495_v7 = vmax.f32 %v13038_v1, 0.0  ;;  %v13043_v37 = vadd.f32 %v11489_v10, %v10021_v12  ;;  %v13040_v57 = vadd.f32 %v11319_v9, %v10017_v41  ;;  %v11491_v59 = vpop.f32.mrb[43].mxu1 }
 0x899   :  { %v11524_v48 = vmul.f32 %v11507_v19, %v11494_v32  ;;  %v11498_v20 = vmax.f32 %v13039_v4, 0.0  ;;  %v13044_v46 = vadd.f32 %v11491_v59, %v10025_v0  ;;  %v11497_v21 = vmax.f32 %v13042_v2, 0.0 }
 0x89a   :  { %v11525_v30 = vmul.f32 %v11511_v25, %v11495_v7  ;;  %v11500_v39 = vmax.f32 %v13043_v37, 0.0  ;;  %v11499_v40 = vmax.f32 %v13040_v57, 0.0  ;;  %v11526_v27 = vmul.f32 %v11515_v28, %v11496_v33 }
 0x89b   :  { %v11528_v17 = vmul.f32 %v11507_v19, %v11498_v20  ;;  %v11501_v11 = vmax.f32 %v13044_v46, 0.0  ;;  %v11527_v5 = vmul.f32 %v11519_v58, %v11497_v21 }
 0x89c   :  { %v11529_v62 = vmul.f32 %v11511_v25, %v11499_v40  ;;  %v11532_v13 = vadd.f32 %v11525_v30, %v11524_v48  ;;  %v11530_v56 = vmul.f32 %v11515_v28, %v11500_v39 }
 0x89d   :  { %v11531_v47 = vmul.f32 %v11519_v58, %v11501_v11 }
 0x89e   :  { %v11537_v60 = vadd.f32 %v11529_v62, %v11528_v17  ;;  %v11533_v38 = vadd.f32 %v11532_v13, %v11526_v27 }
 0x8a0   :  { %v11534_v24 = vadd.f32 %v11533_v38, %v11527_v5  ;;  %v11538_v18 = vadd.f32 %v11537_v60, %v11530_v56 }
 0x8a2   :  { %11535 = vadd.xlane.f32.xlu0 %v11534_v24  ;;  %v11539_v52 = vadd.f32 %v11538_v18, %v11531_v47 }
 0x8a6   :  { %11540 = vadd.xlane.f32.xlu0 %v11539_v52 }
 0x92f   :  { %v11536_v55 = vpop.xlane.xlu0 %11535 }
 0x930   :  { %v11549_v36 = vadd.f32 %v12786_v51, %v11536_v55 }
 0x932   :  { %11552 = vst.msk [vmem:[%s17265_s9] sm:$0xff] %vm11551_vm11, %v11549_v36 }
 0x933   :  { %v11541_v44 = vpop.xlane.xlu0 %11540 }
 0x934   :  { %v11550_v22 = vadd.f32 %v12786_v51, %v11541_v44 }
 0x936   :  { %11553 = vst.msk [vmem:[%s17265_s9 + $0x8] sm:$0xff] %vm11551_vm11, %v11550_v22 }
 0x937   :  { %11558 = vsyncpa [#allocation6], 1 }
 0x938   :  { %11559 = vsyncpa [#allocation8], 1 }
 0x939   :  { %11560 = vsyncpa [#allocation11], 1 }
 0x93a   :  { %11561 = vsyncpa [#allocation14], 1 }
 0x93b   :  { %11562 = vsyncpa [#allocation17], 1 }
 0x93c   :  { %11563 = vsyncpa [#allocation20], 1 }
 0x93d   :  { %11564 = vsyncpa [#allocation23], 1 }
 0x93e   :  { %11565 = vsyncpa [#allocation26], 1 }

</bundles_post_ra>
